<compile_context>
chip_gen: v6e
topology: v6e:2x2x1
jax: 0.10.0
libtpu: 0.0.40
codegen_flags: <defaults>
</compile_context>

<pallas_src>
import functools
import numpy as np
import jax
import jax.numpy as jnp
from jax.experimental import pallas as pl
from jax.experimental.pallas import tpu as pltpu

_PAD = 3              # halo = max dilation of the three 3x3 branches
_DILATIONS = (1, 2, 3)


# ----------------------------- Pallas kernel --------------------------------

def _hscam_kernel(xp_ref, w_ref, p_ref, o_ref, xf_ref, col_ref, *, H, W, Cin):
    # xp_ref : (1, H+6, W+6, Cin) bf16  zero-padded NHWC input (halo = 3)
    # w_ref  : (Cout, Kpad)       bf16  fused weight, rows already in final
    #                                   (post-shuffle) channel order; column
    #                                   27*Cin is the bias row
    # p_ref  : (Cout, 6)          f32   [is_ca, is_gn, cw, cb, sw, sb]
    # o_ref  : (1, Cout, H*W)     f32   output, final (NCHW) channel order
    # xf_ref : (H+6, W+6, Cin)    f32   staging copy (window reads stay f32)
    # col_ref: (H, W, Kpad)       bf16  im2col columns (K padded to 128)
    HW = H * W
    K = 27 * Cin
    Kpad = col_ref.shape[-1]

    # Stage the padded input as f32 so the 27 shifted-window reads below use
    # plain f32 sublane addressing (the input stays bf16 in HBM for the DMA).
    xf_ref[...] = xp_ref[0].astype(jnp.float32)

    # In-kernel im2col: 27 shifted windows (9 taps x 3 dilations), each written
    # to a contiguous lane slice of the bf16 column scratch.
    # TODO(synk): fuse the three kx taps per (dilation, ky) with pltpu.roll to
    # cut the shifted window reads 27 -> 9 (review item 4).
    t = 0
    for d in _DILATIONS:
        base = _PAD - d
        for ky in range(3):
            for kx in range(3):
                y0 = base + ky * d
                x0 = base + kx * d
                col_ref[:, :, t * Cin:(t + 1) * Cin] = (
                    xf_ref[y0:y0 + H, x0:x0 + W, :].astype(jnp.bfloat16))
                t += 1

    # Bias rides the matmul: ones column at lane K; zero the remaining padded
    # lanes (their weight rows are zero, but garbage * 0 could be NaN).
    col_ref[:, :, K:K + 1] = jnp.ones((H, W, 1), jnp.bfloat16)
    if Kpad > K + 1:
        col_ref[:, :, K + 1:] = jnp.zeros((H, W, Kpad - K - 1), jnp.bfloat16)

    col = col_ref[...].reshape(HW, Kpad)          # free view (minor dims kept)

    # One fused MXU matmul for all four branches + bias.  Contracting the last
    # dims of both operands (q @ k.T form) yields the result directly in
    # (Cout, HW): lane-dense output stores and a dense epilogue layout.
    y = jax.lax.dot_general(
        w_ref[...], col,
        dimension_numbers=(((1,), (1,)), ((), ())),
        preferred_element_type=jnp.float32)        # (Cout, HW) f32

    # sa_layer epilogue (fully per-channel; GroupNorm has groups == channels).
    is_ca = p_ref[:, 0:1]                          # (Cout, 1) each
    is_gn = p_ref[:, 1:2]
    cw, cb = p_ref[:, 2:3], p_ref[:, 3:4]
    sw, sb = p_ref[:, 4:5], p_ref[:, 5:6]

    inv_hw = 1.0 / HW
    m = jnp.sum(y, axis=1, keepdims=True) * inv_hw            # (Cout, 1)
    yc = y - m                                                # centered
    var = jnp.sum(yc * yc, axis=1, keepdims=True) * inv_hw    # two-pass var
    a = sw * jax.lax.rsqrt(var + 1e-5)                        # GN scale folded
    attn_s = jax.nn.sigmoid(a * yc + sb)                      # spatial gate
    # is_ca / is_gn are disjoint {0,1} flags; pool-branch channels get gate 1.
    gate0 = is_ca * jax.nn.sigmoid(cw * m + cb) + (1.0 - is_ca - is_gn)
    attn = gate0 + is_gn * attn_s
    # TODO(synk): compute attn_s only on the is_gn lane slice (review item 6).

    o_ref[0] = (y * attn).astype(o_ref.dtype)


# ----------------------------- parameter packing ----------------------------

def init_hscam_params(key, in_channels, out_channels):
    """Random conv weights/biases and (small random) sa_layer params packed for
    the fused kernel.  Both channel shuffles and the avg-pool are folded into
    the fused weight; the conv bias occupies an extra K row driven by a
    ones-column in the im2col scratch."""
    Cin, Cout = in_channels, out_channels
    Cq = Cout // 4
    assert Cout % 4 == 0 and Cq % 4 == 0
    quarter, half = Cq // 4, Cq // 2
    K = 27 * Cin
    Kpad = ((K + 1 + 127) // 128) * 128

    ks = jax.random.split(key, 12)
    w3 = np.asarray(jax.random.normal(ks[0], (3, 3, Cin, Cq), jnp.float32)) * 0.1
    w5 = np.asarray(jax.random.normal(ks[1], (3, 3, Cin, Cq), jnp.float32)) * 0.1
    w7 = np.asarray(jax.random.normal(ks[2], (3, 3, Cin, Cq), jnp.float32)) * 0.1
    wp = np.asarray(jax.random.normal(ks[3], (Cin, Cq), jnp.float32)) * 0.1
    b3 = np.asarray(jax.random.normal(ks[4], (Cq,), jnp.float32)) * 0.1
    b5 = np.asarray(jax.random.normal(ks[5], (Cq,), jnp.float32)) * 0.1
    b7 = np.asarray(jax.random.normal(ks[6], (Cq,), jnp.float32)) * 0.1
    bp = np.asarray(jax.random.normal(ks[7], (Cq,), jnp.float32)) * 0.1

    # sa_layer params (shared by the 3 attention branches).  PyTorch inits
    # cweight/sweight to 0 and cbias/sbias to 1; randomize slightly so the
    # correctness check exercises both attention paths.
    cweight = np.asarray(jax.random.normal(ks[8], (quarter,), jnp.float32)) * 0.3
    cbias = 1.0 + np.asarray(jax.random.normal(ks[9], (quarter,), jnp.float32)) * 0.3
    sweight = np.asarray(jax.random.normal(ks[10], (quarter,), jnp.float32)) * 0.3
    sbias = 1.0 + np.asarray(jax.random.normal(ks[11], (quarter,), jnp.float32)) * 0.3

    # Branch weights in im2col form (rows ordered (ky, kx, cin)); the 3x3
    # avg-pool of the pool branch is folded into its 1x1 weight (d=1 taps,
    # count_include_pad=True semantics — matches F.avg_pool2d defaults).
    branch_w = [w3.reshape(9 * Cin, Cq), w5.reshape(9 * Cin, Cq),
                w7.reshape(9 * Cin, Cq), np.tile(wp / 9.0, (9, 1))]
    branch_b = [b3, b5, b7, bp]
    branch_sec = [0, 1, 2, 0]   # which 9*Cin K-section (dilation) each branch reads

    # channel_shuffle(groups=2) per sa branch and final_channel_shuffle(groups=4)
    perm_sa = [(n % 2) * half + n // 2 for n in range(Cq)]
    perm_f = [(n % 4) * Cq + n // 4 for n in range(Cout)]

    wT = np.zeros((Cout, Kpad), np.float32)       # pre-transposed fused weight
    p = np.zeros((Cout, 6), np.float32)           # [is_ca, is_gn, cw, cb, sw, sb]
    for n in range(Cout):                         # n = final output channel
        c_old = perm_f[n]                         # channel before final shuffle
        br, j = c_old // Cq, c_old % Cq           # branch, post-sa-shuffle channel
        r = perm_sa[j] if br < 3 else j           # raw conv-output channel
        sec = branch_sec[br]
        wT[n, sec * 9 * Cin:(sec + 1) * 9 * Cin] = branch_w[br][:, r]
        wT[n, K] = branch_b[br][r]                # bias row (ones column in col)
        if br < 3:                                # attention branches
            cc = r % half
            if cc < quarter:                      # x_0 half -> channel attention
                p[n, 0] = 1.0
                p[n, 2] = cweight[cc]
                p[n, 3] = cbias[cc]
            else:                                 # x_1 half -> GroupNorm attention
                p[n, 1] = 1.0
                p[n, 4] = sweight[cc - quarter]
                p[n, 5] = sbias[cc - quarter]
        # br == 3 (pool branch): identity gate.

    raw = dict(w3=jnp.asarray(w3), w5=jnp.asarray(w5), w7=jnp.asarray(w7),
               wp=jnp.asarray(wp), b3=jnp.asarray(b3), b5=jnp.asarray(b5),
               b7=jnp.asarray(b7), bp=jnp.asarray(bp),
               cweight=jnp.asarray(cweight), cbias=jnp.asarray(cbias),
               sweight=jnp.asarray(sweight), sbias=jnp.asarray(sbias))
    return dict(w=jnp.asarray(wT, jnp.bfloat16), p=jnp.asarray(p), raw=raw)


# ------------------------------ forward wrapper ------------------------------

def hscam_forward(x_nchw, w_fused, p_packed):
    B, Cin, H, W = x_nchw.shape
    Cout = p_packed.shape[0]
    Kpad = w_fused.shape[1]
    HW = H * W
    Hp, Wp = H + 2 * _PAD, W + 2 * _PAD

    x = jnp.transpose(x_nchw, (0, 2, 3, 1)).astype(jnp.bfloat16)   # NHWC bf16
    xp = jnp.pad(x, ((0, 0), (_PAD, _PAD), (_PAD, _PAD), (0, 0)))  # halo pad

    kernel = functools.partial(_hscam_kernel, H=H, W=W, Cin=Cin)
    bytes_accessed = (xp.size * 2 + w_fused.size * 2 + p_packed.size * 4
                      + B * HW * Cout * 4)

    # TODO(synk): on v7x with B < 2*num_cores, add an H*W grid axis to restore
    # per-core pipelining (review item 9).
    out = pl.pallas_call(
        kernel,
        out_shape=jax.ShapeDtypeStruct((B, Cout, HW), jnp.float32),
        grid_spec=pltpu.PrefetchScalarGridSpec(
            num_scalar_prefetch=0,
            grid=(B,),
            in_specs=[
                pl.BlockSpec((1, Hp, Wp, Cin), lambda b: (b, 0, 0, 0)),
                pl.BlockSpec((Cout, Kpad), lambda b: (0, 0)),
                pl.BlockSpec((Cout, 6), lambda b: (0, 0)),
            ],
            out_specs=pl.BlockSpec((1, Cout, HW), lambda b: (b, 0, 0)),
            scratch_shapes=[
                pltpu.VMEM((Hp, Wp, Cin), jnp.float32),     # f32 staging copy
                pltpu.VMEM((H, W, Kpad), jnp.bfloat16),     # im2col columns
            ],
        ),
        compiler_params=pltpu.CompilerParams(
            dimension_semantics=("parallel",)),
        cost_estimate=pl.CostEstimate(
            flops=2 * B * HW * Kpad * Cout,
            transcendentals=B * HW * Cout,
            bytes_accessed=bytes_accessed),
    )(xp, w_fused, p_packed)

    # Channels are already in final (post-shuffle) order and channel-major.
    return out.reshape(B, Cout, H, W)


# ------------------------- pure-JAX reference (f32) --------------------------

def _channel_shuffle_ref(x, groups):
    B, C, H, W = x.shape
    return (x.reshape(B, groups, C // groups, H, W)
             .transpose(0, 2, 1, 3, 4).reshape(B, C, H, W))


def _sa_layer_ref(x, cweight, cbias, sweight, sbias):
    B, C, H, W = x.shape
    xg = x.reshape(B * 2, C // 2, H, W)
    x0, x1 = jnp.split(xg, 2, axis=1)
    xn = jnp.mean(x0, axis=(2, 3), keepdims=True)
    xn = cweight[None, :, None, None] * xn + cbias[None, :, None, None]
    xn = x0 * jax.nn.sigmoid(xn)
    m = jnp.mean(x1, axis=(2, 3), keepdims=True)
    v = jnp.mean((x1 - m) ** 2, axis=(2, 3), keepdims=True)
    xs = (x1 - m) / jnp.sqrt(v + 1e-5)
    xs = sweight[None, :, None, None] * xs + sbias[None, :, None, None]
    xs = x1 * jax.nn.sigmoid(xs)
    out = jnp.concatenate([xn, xs], axis=1).reshape(B, C, H, W)
    return _channel_shuffle_ref(out, 2)


def hscam_reference(x, raw):
    def conv3x3(w, b, d):
        y = jax.lax.conv_general_dilated(
            x, w, window_strides=(1, 1), padding=((d, d), (d, d)),
            rhs_dilation=(d, d), dimension_numbers=("NCHW", "HWIO", "NCHW"))
        return y + b[None, :, None, None]

    def sa(y):
        return _sa_layer_ref(y, raw["cweight"], raw["cbias"],
                             raw["sweight"], raw["sbias"])

    o3 = sa(conv3x3(raw["w3"], raw["b3"], 1))
    o5 = sa(conv3x3(raw["w5"], raw["b5"], 2))
    o7 = sa(conv3x3(raw["w7"], raw["b7"], 3))
    pooled = jax.lax.reduce_window(
        x, jnp.float32(0), jax.lax.add, (1, 1, 3, 3), (1, 1, 1, 1),
        padding=((0, 0), (0, 0), (1, 1), (1, 1))) / 9.0
    op = (jnp.einsum("bchw,cq->bqhw", pooled, raw["wp"])
          + raw["bp"][None, :, None, None])
    out = jnp.concatenate([o3, o5, o7, op], axis=1)
    return _channel_shuffle_ref(out, 4)


# ----------------------------------- main ------------------------------------

if __name__ == "__main__":
    key = jax.random.PRNGKey(0)
    k_x, k_p = jax.random.split(key)

    B, Cin, H, W = 2, 4, 16, 16
    Cout = 32                                      # Cq = 8 per branch

    x = jax.random.normal(k_x, (B, Cin, H, W), jnp.float32)
    params = init_hscam_params(k_p, Cin, Cout)

    fwd = jax.jit(hscam_forward)
    out = jax.block_until_ready(fwd(x, params["w"], params["p"]))
    assert out.shape == (B, Cout, H, W), out.shape
    assert bool(jnp.all(jnp.isfinite(out)))

    # Cross-check against a pure-JAX f32 reference of the PyTorch module
    # (loose tolerance: the kernel feeds the MXU in bf16).
    ref = hscam_reference(x, params["raw"])
    np.testing.assert_allclose(np.asarray(out), np.asarray(ref),
                               rtol=3e-2, atol=3e-2)
    print("KERNEL_OK")
</pallas_src>

<mosaic_0001>
module attributes {stable_mosaic.version = 11 : i64} {
  func.func @_hscam_kernel(%arg0: i32, %arg1: memref<1x22x22x4xbf16, #tpu.memory_space<vmem>>, %arg2: memref<32x128xbf16, #tpu.memory_space<vmem>>, %arg3: memref<32x6xf32, #tpu.memory_space<vmem>>, %arg4: memref<1x32x256xf32, #tpu.memory_space<vmem>>, %arg5: memref<22x22x4xf32, #tpu.memory_space<vmem>>, %arg6: memref<16x16x128xbf16, #tpu.memory_space<vmem>>) attributes {dimension_semantics = [#tpu.dimension_semantics<parallel>], iteration_bounds = array<i64: 2>, scalar_prefetch = 0 : i64, scratch_operands = 2 : i64, tpu.core_type = #tpu.core_type<tc>, window_params = [{transform_indices = @transform_0, window_bounds = array<i64: 1, 22, 22, 4>}, {pipeline_mode = #tpu.pipeline_mode<synchronous>, transform_indices = @transform_1, window_bounds = array<i64: 32, 128>}, {pipeline_mode = #tpu.pipeline_mode<synchronous>, transform_indices = @transform_2, window_bounds = array<i64: 32, 6>}, {transform_indices = @transform_3, window_bounds = array<i64: 1, 32, 256>}]} {
    %c0 = arith.constant 0 : index
    %c0_0 = arith.constant 0 : index
    %c0_1 = arith.constant 0 : index
    %c0_2 = arith.constant 0 : index
    %0 = vector.load %arg1[%c0, %c0_0, %c0_1, %c0_2] : memref<1x22x22x4xbf16, #tpu.memory_space<vmem>>, vector<1x22x22x4xbf16>
    %1 = vector.shape_cast %0 : vector<1x22x22x4xbf16> to vector<22x22x4xbf16>
    %2 = arith.extf %1 : vector<22x22x4xbf16> to vector<22x22x4xf32>
    %c0_3 = arith.constant 0 : index
    %c0_4 = arith.constant 0 : index
    %c0_5 = arith.constant 0 : index
    %3 = vector.load %arg5[%c0_3, %c0_4, %c0_5] : memref<22x22x4xf32, #tpu.memory_space<vmem>>, vector<22x22x4xf32>
    tpu.vector_store %arg5[%c0_3, %c0_4, %c0_5], %2 {strides = array<i32>} : memref<22x22x4xf32, #tpu.memory_space<vmem>>, vector<22x22x4xf32>,
    %c2 = arith.constant 2 : index
    %c2_6 = arith.constant 2 : index
    %c0_7 = arith.constant 0 : index
    %4 = vector.load %arg5[%c2, %c2_6, %c0_7] : memref<22x22x4xf32, #tpu.memory_space<vmem>>, vector<16x16x4xf32>
    %5 = arith.truncf %4 : vector<16x16x4xf32> to vector<16x16x4xbf16>
    %c0_8 = arith.constant 0 : index
    %c0_9 = arith.constant 0 : index
    %c0_10 = arith.constant 0 : index
    %6 = vector.load %arg6[%c0_8, %c0_9, %c0_10] : memref<16x16x128xbf16, #tpu.memory_space<vmem>>, vector<16x16x4xbf16>
    tpu.vector_store %arg6[%c0_8, %c0_9, %c0_10], %5 {strides = array<i32>} : memref<16x16x128xbf16, #tpu.memory_space<vmem>>, vector<16x16x4xbf16>,
    %c2_11 = arith.constant 2 : index
    %c3 = arith.constant 3 : index
    %c0_12 = arith.constant 0 : index
    %7 = vector.load %arg5[%c2_11, %c3, %c0_12] : memref<22x22x4xf32, #tpu.memory_space<vmem>>, vector<16x16x4xf32>
    %8 = arith.truncf %7 : vector<16x16x4xf32> to vector<16x16x4xbf16>
    %c0_13 = arith.constant 0 : index
    %c0_14 = arith.constant 0 : index
    %c4 = arith.constant 4 : index
    %9 = vector.load %arg6[%c0_13, %c0_14, %c4] : memref<16x16x128xbf16, #tpu.memory_space<vmem>>, vector<16x16x4xbf16>
    tpu.vector_store %arg6[%c0_13, %c0_14, %c4], %8 {strides = array<i32>} : memref<16x16x128xbf16, #tpu.memory_space<vmem>>, vector<16x16x4xbf16>,
    %c2_15 = arith.constant 2 : index
    %c4_16 = arith.constant 4 : index
    %c0_17 = arith.constant 0 : index
    %10 = vector.load %arg5[%c2_15, %c4_16, %c0_17] : memref<22x22x4xf32, #tpu.memory_space<vmem>>, vector<16x16x4xf32>
    %11 = arith.truncf %10 : vector<16x16x4xf32> to vector<16x16x4xbf16>
    %c0_18 = arith.constant 0 : index
    %c0_19 = arith.constant 0 : index
    %c8 = arith.constant 8 : index
    %12 = vector.load %arg6[%c0_18, %c0_19, %c8] : memref<16x16x128xbf16, #tpu.memory_space<vmem>>, vector<16x16x4xbf16>
    tpu.vector_store %arg6[%c0_18, %c0_19, %c8], %11 {strides = array<i32>} : memref<16x16x128xbf16, #tpu.memory_space<vmem>>, vector<16x16x4xbf16>,
    %c3_20 = arith.constant 3 : index
    %c2_21 = arith.constant 2 : index
    %c0_22 = arith.constant 0 : index
    %13 = vector.load %arg5[%c3_20, %c2_21, %c0_22] : memref<22x22x4xf32, #tpu.memory_space<vmem>>, vector<16x16x4xf32>
    %14 = arith.truncf %13 : vector<16x16x4xf32> to vector<16x16x4xbf16>
    %c0_23 = arith.constant 0 : index
    %c0_24 = arith.constant 0 : index
    %c12 = arith.constant 12 : index
    %15 = vector.load %arg6[%c0_23, %c0_24, %c12] : memref<16x16x128xbf16, #tpu.memory_space<vmem>>, vector<16x16x4xbf16>
    tpu.vector_store %arg6[%c0_23, %c0_24, %c12], %14 {strides = array<i32>} : memref<16x16x128xbf16, #tpu.memory_space<vmem>>, vector<16x16x4xbf16>,
    %c3_25 = arith.constant 3 : index
    %c3_26 = arith.constant 3 : index
    %c0_27 = arith.constant 0 : index
    %16 = vector.load %arg5[%c3_25, %c3_26, %c0_27] : memref<22x22x4xf32, #tpu.memory_space<vmem>>, vector<16x16x4xf32>
    %17 = arith.truncf %16 : vector<16x16x4xf32> to vector<16x16x4xbf16>
    %c0_28 = arith.constant 0 : index
    %c0_29 = arith.constant 0 : index
    %c16 = arith.constant 16 : index
    %18 = vector.load %arg6[%c0_28, %c0_29, %c16] : memref<16x16x128xbf16, #tpu.memory_space<vmem>>, vector<16x16x4xbf16>
    tpu.vector_store %arg6[%c0_28, %c0_29, %c16], %17 {strides = array<i32>} : memref<16x16x128xbf16, #tpu.memory_space<vmem>>, vector<16x16x4xbf16>,
    %c3_30 = arith.constant 3 : index
    %c4_31 = arith.constant 4 : index
    %c0_32 = arith.constant 0 : index
    %19 = vector.load %arg5[%c3_30, %c4_31, %c0_32] : memref<22x22x4xf32, #tpu.memory_space<vmem>>, vector<16x16x4xf32>
    %20 = arith.truncf %19 : vector<16x16x4xf32> to vector<16x16x4xbf16>
    %c0_33 = arith.constant 0 : index
    %c0_34 = arith.constant 0 : index
    %c20 = arith.constant 20 : index
    %21 = vector.load %arg6[%c0_33, %c0_34, %c20] : memref<16x16x128xbf16, #tpu.memory_space<vmem>>, vector<16x16x4xbf16>
    tpu.vector_store %arg6[%c0_33, %c0_34, %c20], %20 {strides = array<i32>} : memref<16x16x128xbf16, #tpu.memory_space<vmem>>, vector<16x16x4xbf16>,
    %c4_35 = arith.constant 4 : index
    %c2_36 = arith.constant 2 : index
    %c0_37 = arith.constant 0 : index
    %22 = vector.load %arg5[%c4_35, %c2_36, %c0_37] : memref<22x22x4xf32, #tpu.memory_space<vmem>>, vector<16x16x4xf32>
    %23 = arith.truncf %22 : vector<16x16x4xf32> to vector<16x16x4xbf16>
    %c0_38 = arith.constant 0 : index
    %c0_39 = arith.constant 0 : index
    %c24 = arith.constant 24 : index
    %24 = vector.load %arg6[%c0_38, %c0_39, %c24] : memref<16x16x128xbf16, #tpu.memory_space<vmem>>, vector<16x16x4xbf16>
    tpu.vector_store %arg6[%c0_38, %c0_39, %c24], %23 {strides = array<i32>} : memref<16x16x128xbf16, #tpu.memory_space<vmem>>, vector<16x16x4xbf16>,
    %c4_40 = arith.constant 4 : index
    %c3_41 = arith.constant 3 : index
    %c0_42 = arith.constant 0 : index
    %25 = vector.load %arg5[%c4_40, %c3_41, %c0_42] : memref<22x22x4xf32, #tpu.memory_space<vmem>>, vector<16x16x4xf32>
    %26 = arith.truncf %25 : vector<16x16x4xf32> to vector<16x16x4xbf16>
    %c0_43 = arith.constant 0 : index
    %c0_44 = arith.constant 0 : index
    %c28 = arith.constant 28 : index
    %27 = vector.load %arg6[%c0_43, %c0_44, %c28] : memref<16x16x128xbf16, #tpu.memory_space<vmem>>, vector<16x16x4xbf16>
    tpu.vector_store %arg6[%c0_43, %c0_44, %c28], %26 {strides = array<i32>} : memref<16x16x128xbf16, #tpu.memory_space<vmem>>, vector<16x16x4xbf16>,
    %c4_45 = arith.constant 4 : index
    %c4_46 = arith.constant 4 : index
    %c0_47 = arith.constant 0 : index
    %28 = vector.load %arg5[%c4_45, %c4_46, %c0_47] : memref<22x22x4xf32, #tpu.memory_space<vmem>>, vector<16x16x4xf32>
    %29 = arith.truncf %28 : vector<16x16x4xf32> to vector<16x16x4xbf16>
    %c0_48 = arith.constant 0 : index
    %c0_49 = arith.constant 0 : index
    %c32 = arith.constant 32 : index
    %30 = vector.load %arg6[%c0_48, %c0_49, %c32] : memref<16x16x128xbf16, #tpu.memory_space<vmem>>, vector<16x16x4xbf16>
    tpu.vector_store %arg6[%c0_48, %c0_49, %c32], %29 {strides = array<i32>} : memref<16x16x128xbf16, #tpu.memory_space<vmem>>, vector<16x16x4xbf16>,
    %c1 = arith.constant 1 : index
    %c1_50 = arith.constant 1 : index
    %c0_51 = arith.constant 0 : index
    %31 = vector.load %arg5[%c1, %c1_50, %c0_51] : memref<22x22x4xf32, #tpu.memory_space<vmem>>, vector<16x16x4xf32>
    %32 = arith.truncf %31 : vector<16x16x4xf32> to vector<16x16x4xbf16>
    %c0_52 = arith.constant 0 : index
    %c0_53 = arith.constant 0 : index
    %c36 = arith.constant 36 : index
    %33 = vector.load %arg6[%c0_52, %c0_53, %c36] : memref<16x16x128xbf16, #tpu.memory_space<vmem>>, vector<16x16x4xbf16>
    tpu.vector_store %arg6[%c0_52, %c0_53, %c36], %32 {strides = array<i32>} : memref<16x16x128xbf16, #tpu.memory_space<vmem>>, vector<16x16x4xbf16>,
    %c1_54 = arith.constant 1 : index
    %c3_55 = arith.constant 3 : index
    %c0_56 = arith.constant 0 : index
    %34 = vector.load %arg5[%c1_54, %c3_55, %c0_56] : memref<22x22x4xf32, #tpu.memory_space<vmem>>, vector<16x16x4xf32>
    %35 = arith.truncf %34 : vector<16x16x4xf32> to vector<16x16x4xbf16>
    %c0_57 = arith.constant 0 : index
    %c0_58 = arith.constant 0 : index
    %c40 = arith.constant 40 : index
    %36 = vector.load %arg6[%c0_57, %c0_58, %c40] : memref<16x16x128xbf16, #tpu.memory_space<vmem>>, vector<16x16x4xbf16>
    tpu.vector_store %arg6[%c0_57, %c0_58, %c40], %35 {strides = array<i32>} : memref<16x16x128xbf16, #tpu.memory_space<vmem>>, vector<16x16x4xbf16>,
    %c1_59 = arith.constant 1 : index
    %c5 = arith.constant 5 : index
    %c0_60 = arith.constant 0 : index
    %37 = vector.load %arg5[%c1_59, %c5, %c0_60] : memref<22x22x4xf32, #tpu.memory_space<vmem>>, vector<16x16x4xf32>
    %38 = arith.truncf %37 : vector<16x16x4xf32> to vector<16x16x4xbf16>
    %c0_61 = arith.constant 0 : index
    %c0_62 = arith.constant 0 : index
    %c44 = arith.constant 44 : index
    %39 = vector.load %arg6[%c0_61, %c0_62, %c44] : memref<16x16x128xbf16, #tpu.memory_space<vmem>>, vector<16x16x4xbf16>
    tpu.vector_store %arg6[%c0_61, %c0_62, %c44], %38 {strides = array<i32>} : memref<16x16x128xbf16, #tpu.memory_space<vmem>>, vector<16x16x4xbf16>,
    %c3_63 = arith.constant 3 : index
    %c1_64 = arith.constant 1 : index
    %c0_65 = arith.constant 0 : index
    %40 = vector.load %arg5[%c3_63, %c1_64, %c0_65] : memref<22x22x4xf32, #tpu.memory_space<vmem>>, vector<16x16x4xf32>
    %41 = arith.truncf %40 : vector<16x16x4xf32> to vector<16x16x4xbf16>
    %c0_66 = arith.constant 0 : index
    %c0_67 = arith.constant 0 : index
    %c48 = arith.constant 48 : index
    %42 = vector.load %arg6[%c0_66, %c0_67, %c48] : memref<16x16x128xbf16, #tpu.memory_space<vmem>>, vector<16x16x4xbf16>
    tpu.vector_store %arg6[%c0_66, %c0_67, %c48], %41 {strides = array<i32>} : memref<16x16x128xbf16, #tpu.memory_space<vmem>>, vector<16x16x4xbf16>,
    %c3_68 = arith.constant 3 : index
    %c3_69 = arith.constant 3 : index
    %c0_70 = arith.constant 0 : index
    %43 = vector.load %arg5[%c3_68, %c3_69, %c0_70] : memref<22x22x4xf32, #tpu.memory_space<vmem>>, vector<16x16x4xf32>
    %44 = arith.truncf %43 : vector<16x16x4xf32> to vector<16x16x4xbf16>
    %c0_71 = arith.constant 0 : index
    %c0_72 = arith.constant 0 : index
    %c52 = arith.constant 52 : index
    %45 = vector.load %arg6[%c0_71, %c0_72, %c52] : memref<16x16x128xbf16, #tpu.memory_space<vmem>>, vector<16x16x4xbf16>
    tpu.vector_store %arg6[%c0_71, %c0_72, %c52], %44 {strides = array<i32>} : memref<16x16x128xbf16, #tpu.memory_space<vmem>>, vector<16x16x4xbf16>,
    %c3_73 = arith.constant 3 : index
    %c5_74 = arith.constant 5 : index
    %c0_75 = arith.constant 0 : index
    %46 = vector.load %arg5[%c3_73, %c5_74, %c0_75] : memref<22x22x4xf32, #tpu.memory_space<vmem>>, vector<16x16x4xf32>
    %47 = arith.truncf %46 : vector<16x16x4xf32> to vector<16x16x4xbf16>
    %c0_76 = arith.constant 0 : index
    %c0_77 = arith.constant 0 : index
    %c56 = arith.constant 56 : index
    %48 = vector.load %arg6[%c0_76, %c0_77, %c56] : memref<16x16x128xbf16, #tpu.memory_space<vmem>>, vector<16x16x4xbf16>
    tpu.vector_store %arg6[%c0_76, %c0_77, %c56], %47 {strides = array<i32>} : memref<16x16x128xbf16, #tpu.memory_space<vmem>>, vector<16x16x4xbf16>,
    %c5_78 = arith.constant 5 : index
    %c1_79 = arith.constant 1 : index
    %c0_80 = arith.constant 0 : index
    %49 = vector.load %arg5[%c5_78, %c1_79, %c0_80] : memref<22x22x4xf32, #tpu.memory_space<vmem>>, vector<16x16x4xf32>
    %50 = arith.truncf %49 : vector<16x16x4xf32> to vector<16x16x4xbf16>
    %c0_81 = arith.constant 0 : index
    %c0_82 = arith.constant 0 : index
    %c60 = arith.constant 60 : index
    %51 = vector.load %arg6[%c0_81, %c0_82, %c60] : memref<16x16x128xbf16, #tpu.memory_space<vmem>>, vector<16x16x4xbf16>
    tpu.vector_store %arg6[%c0_81, %c0_82, %c60], %50 {strides = array<i32>} : memref<16x16x128xbf16, #tpu.memory_space<vmem>>, vector<16x16x4xbf16>,
    %c5_83 = arith.constant 5 : index
    %c3_84 = arith.constant 3 : index
    %c0_85 = arith.constant 0 : index
    %52 = vector.load %arg5[%c5_83, %c3_84, %c0_85] : memref<22x22x4xf32, #tpu.memory_space<vmem>>, vector<16x16x4xf32>
    %53 = arith.truncf %52 : vector<16x16x4xf32> to vector<16x16x4xbf16>
    %c0_86 = arith.constant 0 : index
    %c0_87 = arith.constant 0 : index
    %c64 = arith.constant 64 : index
    %54 = vector.load %arg6[%c0_86, %c0_87, %c64] : memref<16x16x128xbf16, #tpu.memory_space<vmem>>, vector<16x16x4xbf16>
    tpu.vector_store %arg6[%c0_86, %c0_87, %c64], %53 {strides = array<i32>} : memref<16x16x128xbf16, #tpu.memory_space<vmem>>, vector<16x16x4xbf16>,
    %c5_88 = arith.constant 5 : index
    %c5_89 = arith.constant 5 : index
    %c0_90 = arith.constant 0 : index
    %55 = vector.load %arg5[%c5_88, %c5_89, %c0_90] : memref<22x22x4xf32, #tpu.memory_space<vmem>>, vector<16x16x4xf32>
    %56 = arith.truncf %55 : vector<16x16x4xf32> to vector<16x16x4xbf16>
    %c0_91 = arith.constant 0 : index
    %c0_92 = arith.constant 0 : index
    %c68 = arith.constant 68 : index
    %57 = vector.load %arg6[%c0_91, %c0_92, %c68] : memref<16x16x128xbf16, #tpu.memory_space<vmem>>, vector<16x16x4xbf16>
    tpu.vector_store %arg6[%c0_91, %c0_92, %c68], %56 {strides = array<i32>} : memref<16x16x128xbf16, #tpu.memory_space<vmem>>, vector<16x16x4xbf16>,
    %c0_93 = arith.constant 0 : index
    %c0_94 = arith.constant 0 : index
    %c0_95 = arith.constant 0 : index
    %58 = vector.load %arg5[%c0_93, %c0_94, %c0_95] : memref<22x22x4xf32, #tpu.memory_space<vmem>>, vector<16x16x4xf32>
    %59 = arith.truncf %58 : vector<16x16x4xf32> to vector<16x16x4xbf16>
    %c0_96 = arith.constant 0 : index
    %c0_97 = arith.constant 0 : index
    %c72 = arith.constant 72 : index
    %60 = vector.load %arg6[%c0_96, %c0_97, %c72] : memref<16x16x128xbf16, #tpu.memory_space<vmem>>, vector<16x16x4xbf16>
    tpu.vector_store %arg6[%c0_96, %c0_97, %c72], %59 {strides = array<i32>} : memref<16x16x128xbf16, #tpu.memory_space<vmem>>, vector<16x16x4xbf16>,
    %c0_98 = arith.constant 0 : index
    %c3_99 = arith.constant 3 : index
    %c0_100 = arith.constant 0 : index
    %61 = vector.load %arg5[%c0_98, %c3_99, %c0_100] : memref<22x22x4xf32, #tpu.memory_space<vmem>>, vector<16x16x4xf32>
    %62 = arith.truncf %61 : vector<16x16x4xf32> to vector<16x16x4xbf16>
    %c0_101 = arith.constant 0 : index
    %c0_102 = arith.constant 0 : index
    %c76 = arith.constant 76 : index
    %63 = vector.load %arg6[%c0_101, %c0_102, %c76] : memref<16x16x128xbf16, #tpu.memory_space<vmem>>, vector<16x16x4xbf16>
    tpu.vector_store %arg6[%c0_101, %c0_102, %c76], %62 {strides = array<i32>} : memref<16x16x128xbf16, #tpu.memory_space<vmem>>, vector<16x16x4xbf16>,
    %c0_103 = arith.constant 0 : index
    %c6 = arith.constant 6 : index
    %c0_104 = arith.constant 0 : index
    %64 = vector.load %arg5[%c0_103, %c6, %c0_104] : memref<22x22x4xf32, #tpu.memory_space<vmem>>, vector<16x16x4xf32>
    %65 = arith.truncf %64 : vector<16x16x4xf32> to vector<16x16x4xbf16>
    %c0_105 = arith.constant 0 : index
    %c0_106 = arith.constant 0 : index
    %c80 = arith.constant 80 : index
    %66 = vector.load %arg6[%c0_105, %c0_106, %c80] : memref<16x16x128xbf16, #tpu.memory_space<vmem>>, vector<16x16x4xbf16>
    tpu.vector_store %arg6[%c0_105, %c0_106, %c80], %65 {strides = array<i32>} : memref<16x16x128xbf16, #tpu.memory_space<vmem>>, vector<16x16x4xbf16>,
    %c3_107 = arith.constant 3 : index
    %c0_108 = arith.constant 0 : index
    %c0_109 = arith.constant 0 : index
    %67 = vector.load %arg5[%c3_107, %c0_108, %c0_109] : memref<22x22x4xf32, #tpu.memory_space<vmem>>, vector<16x16x4xf32>
    %68 = arith.truncf %67 : vector<16x16x4xf32> to vector<16x16x4xbf16>
    %c0_110 = arith.constant 0 : index
    %c0_111 = arith.constant 0 : index
    %c84 = arith.constant 84 : index
    %69 = vector.load %arg6[%c0_110, %c0_111, %c84] : memref<16x16x128xbf16, #tpu.memory_space<vmem>>, vector<16x16x4xbf16>
    tpu.vector_store %arg6[%c0_110, %c0_111, %c84], %68 {strides = array<i32>} : memref<16x16x128xbf16, #tpu.memory_space<vmem>>, vector<16x16x4xbf16>,
    %c3_112 = arith.constant 3 : index
    %c3_113 = arith.constant 3 : index
    %c0_114 = arith.constant 0 : index
    %70 = vector.load %arg5[%c3_112, %c3_113, %c0_114] : memref<22x22x4xf32, #tpu.memory_space<vmem>>, vector<16x16x4xf32>
    %71 = arith.truncf %70 : vector<16x16x4xf32> to vector<16x16x4xbf16>
    %c0_115 = arith.constant 0 : index
    %c0_116 = arith.constant 0 : index
    %c88 = arith.constant 88 : index
    %72 = vector.load %arg6[%c0_115, %c0_116, %c88] : memref<16x16x128xbf16, #tpu.memory_space<vmem>>, vector<16x16x4xbf16>
    tpu.vector_store %arg6[%c0_115, %c0_116, %c88], %71 {strides = array<i32>} : memref<16x16x128xbf16, #tpu.memory_space<vmem>>, vector<16x16x4xbf16>,
    %c3_117 = arith.constant 3 : index
    %c6_118 = arith.constant 6 : index
    %c0_119 = arith.constant 0 : index
    %73 = vector.load %arg5[%c3_117, %c6_118, %c0_119] : memref<22x22x4xf32, #tpu.memory_space<vmem>>, vector<16x16x4xf32>
    %74 = arith.truncf %73 : vector<16x16x4xf32> to vector<16x16x4xbf16>
    %c0_120 = arith.constant 0 : index
    %c0_121 = arith.constant 0 : index
    %c92 = arith.constant 92 : index
    %75 = vector.load %arg6[%c0_120, %c0_121, %c92] : memref<16x16x128xbf16, #tpu.memory_space<vmem>>, vector<16x16x4xbf16>
    tpu.vector_store %arg6[%c0_120, %c0_121, %c92], %74 {strides = array<i32>} : memref<16x16x128xbf16, #tpu.memory_space<vmem>>, vector<16x16x4xbf16>,
    %c6_122 = arith.constant 6 : index
    %c0_123 = arith.constant 0 : index
    %c0_124 = arith.constant 0 : index
    %76 = vector.load %arg5[%c6_122, %c0_123, %c0_124] : memref<22x22x4xf32, #tpu.memory_space<vmem>>, vector<16x16x4xf32>
    %77 = arith.truncf %76 : vector<16x16x4xf32> to vector<16x16x4xbf16>
    %c0_125 = arith.constant 0 : index
    %c0_126 = arith.constant 0 : index
    %c96 = arith.constant 96 : index
    %78 = vector.load %arg6[%c0_125, %c0_126, %c96] : memref<16x16x128xbf16, #tpu.memory_space<vmem>>, vector<16x16x4xbf16>
    tpu.vector_store %arg6[%c0_125, %c0_126, %c96], %77 {strides = array<i32>} : memref<16x16x128xbf16, #tpu.memory_space<vmem>>, vector<16x16x4xbf16>,
    %c6_127 = arith.constant 6 : index
    %c3_128 = arith.constant 3 : index
    %c0_129 = arith.constant 0 : index
    %79 = vector.load %arg5[%c6_127, %c3_128, %c0_129] : memref<22x22x4xf32, #tpu.memory_space<vmem>>, vector<16x16x4xf32>
    %80 = arith.truncf %79 : vector<16x16x4xf32> to vector<16x16x4xbf16>
    %c0_130 = arith.constant 0 : index
    %c0_131 = arith.constant 0 : index
    %c100 = arith.constant 100 : index
    %81 = vector.load %arg6[%c0_130, %c0_131, %c100] : memref<16x16x128xbf16, #tpu.memory_space<vmem>>, vector<16x16x4xbf16>
    tpu.vector_store %arg6[%c0_130, %c0_131, %c100], %80 {strides = array<i32>} : memref<16x16x128xbf16, #tpu.memory_space<vmem>>, vector<16x16x4xbf16>,
    %c6_132 = arith.constant 6 : index
    %c6_133 = arith.constant 6 : index
    %c0_134 = arith.constant 0 : index
    %82 = vector.load %arg5[%c6_132, %c6_133, %c0_134] : memref<22x22x4xf32, #tpu.memory_space<vmem>>, vector<16x16x4xf32>
    %83 = arith.truncf %82 : vector<16x16x4xf32> to vector<16x16x4xbf16>
    %c0_135 = arith.constant 0 : index
    %c0_136 = arith.constant 0 : index
    %c104 = arith.constant 104 : index
    %84 = vector.load %arg6[%c0_135, %c0_136, %c104] : memref<16x16x128xbf16, #tpu.memory_space<vmem>>, vector<16x16x4xbf16>
    tpu.vector_store %arg6[%c0_135, %c0_136, %c104], %83 {strides = array<i32>} : memref<16x16x128xbf16, #tpu.memory_space<vmem>>, vector<16x16x4xbf16>,
    %cst = arith.constant 1.000000e+00 : bf16
    %85 = vector.broadcast %cst : bf16 to vector<16x16x1xbf16>
    %c0_137 = arith.constant 0 : index
    %c0_138 = arith.constant 0 : index
    %c108 = arith.constant 108 : index
    %86 = vector.load %arg6[%c0_137, %c0_138, %c108] : memref<16x16x128xbf16, #tpu.memory_space<vmem>>, vector<16x16x1xbf16>
    tpu.vector_store %arg6[%c0_137, %c0_138, %c108], %85 {strides = array<i32>} : memref<16x16x128xbf16, #tpu.memory_space<vmem>>, vector<16x16x1xbf16>,
    %cst_139 = arith.constant 0.000000e+00 : bf16
    %87 = vector.broadcast %cst_139 : bf16 to vector<16x16x19xbf16>
    %c0_140 = arith.constant 0 : index
    %c0_141 = arith.constant 0 : index
    %c109 = arith.constant 109 : index
    %88 = vector.load %arg6[%c0_140, %c0_141, %c109] : memref<16x16x128xbf16, #tpu.memory_space<vmem>>, vector<16x16x19xbf16>
    tpu.vector_store %arg6[%c0_140, %c0_141, %c109], %87 {strides = array<i32>} : memref<16x16x128xbf16, #tpu.memory_space<vmem>>, vector<16x16x19xbf16>,
    %c0_142 = arith.constant 0 : index
    %c0_143 = arith.constant 0 : index
    %c0_144 = arith.constant 0 : index
    %89 = vector.load %arg6[%c0_142, %c0_143, %c0_144] : memref<16x16x128xbf16, #tpu.memory_space<vmem>>, vector<16x16x128xbf16>
    %90 = vector.shape_cast %89 : vector<16x16x128xbf16> to vector<256x128xbf16>
    %c0_145 = arith.constant 0 : index
    %c0_146 = arith.constant 0 : index
    %91 = vector.load %arg2[%c0_145, %c0_146] : memref<32x128xbf16, #tpu.memory_space<vmem>>, vector<32x128xbf16>
    %cst_147 = arith.constant dense<0.000000e+00> : vector<32x256xf32>
    %92 = tpu.matmul %91, %90, %cst_147 {dimension_numbers = #tpu.dot_dimension_numbers<[1], [1], [0], [0], [0, 0, 1, 0], [], []>} : vector<32x128xbf16>, vector<256x128xbf16>, vector<32x256xf32> -> vector<32x256xf32>
    %c0_148 = arith.constant 0 : index
    %c0_149 = arith.constant 0 : index
    %93 = vector.load %arg3[%c0_148, %c0_149] : memref<32x6xf32, #tpu.memory_space<vmem>>, vector<32x1xf32>
    %c0_150 = arith.constant 0 : index
    %c1_151 = arith.constant 1 : index
    %94 = vector.load %arg3[%c0_150, %c1_151] : memref<32x6xf32, #tpu.memory_space<vmem>>, vector<32x1xf32>
    %c0_152 = arith.constant 0 : index
    %c2_153 = arith.constant 2 : index
    %95 = vector.load %arg3[%c0_152, %c2_153] : memref<32x6xf32, #tpu.memory_space<vmem>>, vector<32x1xf32>
    %c0_154 = arith.constant 0 : index
    %c3_155 = arith.constant 3 : index
    %96 = vector.load %arg3[%c0_154, %c3_155] : memref<32x6xf32, #tpu.memory_space<vmem>>, vector<32x1xf32>
    %c0_156 = arith.constant 0 : index
    %c4_157 = arith.constant 4 : index
    %97 = vector.load %arg3[%c0_156, %c4_157] : memref<32x6xf32, #tpu.memory_space<vmem>>, vector<32x1xf32>
    %c0_158 = arith.constant 0 : index
    %c5_159 = arith.constant 5 : index
    %98 = vector.load %arg3[%c0_158, %c5_159] : memref<32x6xf32, #tpu.memory_space<vmem>>, vector<32x1xf32>
    %cst_160 = arith.constant dense<0.000000e+00> : vector<32xf32>
    %99 = vector.multi_reduction <add>, %92, %cst_160 [1] : vector<32x256xf32> to vector<32xf32>
    %100 = vector.shape_cast %99 : vector<32xf32> to vector<32x1xf32>
    %cst_161 = arith.constant 3.906250e-03 : f32
    %101 = vector.broadcast %cst_161 : f32 to vector<32x1xf32>
    %102 = arith.mulf %100, %101 : vector<32x1xf32>
    %103 = vector.broadcast %102 : vector<32x1xf32> to vector<32x256xf32>
    %104 = arith.subf %92, %103 : vector<32x256xf32>
    %105 = arith.mulf %104, %104 : vector<32x256xf32>
    %cst_162 = arith.constant dense<0.000000e+00> : vector<32xf32>
    %106 = vector.multi_reduction <add>, %105, %cst_162 [1] : vector<32x256xf32> to vector<32xf32>
    %107 = vector.shape_cast %106 : vector<32xf32> to vector<32x1xf32>
    %cst_163 = arith.constant 3.906250e-03 : f32
    %108 = vector.broadcast %cst_163 : f32 to vector<32x1xf32>
    %109 = arith.mulf %107, %108 : vector<32x1xf32>
    %cst_164 = arith.constant 9.99999974E-6 : f32
    %110 = vector.broadcast %cst_164 : f32 to vector<32x1xf32>
    %111 = arith.addf %109, %110 : vector<32x1xf32>
    %112 = math.rsqrt %111 : vector<32x1xf32>
    %113 = arith.mulf %97, %112 : vector<32x1xf32>
    %114 = vector.broadcast %113 : vector<32x1xf32> to vector<32x256xf32>
    %115 = arith.mulf %114, %104 : vector<32x256xf32>
    %116 = vector.broadcast %98 : vector<32x1xf32> to vector<32x256xf32>
    %117 = arith.addf %115, %116 : vector<32x256xf32>
    %118 = arith.negf %117 : vector<32x256xf32>
    %119 = math.exp %118 : vector<32x256xf32>
    %cst_165 = arith.constant 1.000000e+00 : f32
    %120 = vector.broadcast %cst_165 : f32 to vector<32x256xf32>
    %121 = arith.addf %120, %119 : vector<32x256xf32>
    %122 = arith.divf %120, %121 : vector<32x256xf32>
    %123 = arith.mulf %95, %102 : vector<32x1xf32>
    %124 = arith.addf %123, %96 : vector<32x1xf32>
    %125 = arith.negf %124 : vector<32x1xf32>
    %126 = math.exp %125 : vector<32x1xf32>
    %cst_166 = arith.constant 1.000000e+00 : f32
    %127 = vector.broadcast %cst_166 : f32 to vector<32x1xf32>
    %128 = arith.addf %127, %126 : vector<32x1xf32>
    %129 = arith.divf %127, %128 : vector<32x1xf32>
    %130 = arith.mulf %93, %129 : vector<32x1xf32>
    %cst_167 = arith.constant 1.000000e+00 : f32
    %131 = vector.broadcast %cst_167 : f32 to vector<32x1xf32>
    %132 = arith.subf %131, %93 : vector<32x1xf32>
    %133 = arith.subf %132, %94 : vector<32x1xf32>
    %134 = arith.addf %130, %133 : vector<32x1xf32>
    %135 = vector.broadcast %94 : vector<32x1xf32> to vector<32x256xf32>
    %136 = arith.mulf %135, %122 : vector<32x256xf32>
    %137 = vector.broadcast %134 : vector<32x1xf32> to vector<32x256xf32>
    %138 = arith.addf %137, %136 : vector<32x256xf32>
    %139 = arith.mulf %92, %138 : vector<32x256xf32>
    %c0_168 = arith.constant 0 : index
    %c0_169 = arith.constant 0 : index
    %c0_170 = arith.constant 0 : index
    %140 = vector.load %arg4[%c0_168, %c0_169, %c0_170] : memref<1x32x256xf32, #tpu.memory_space<vmem>>, vector<1x32x256xf32>
    %141 = vector.shape_cast %140 : vector<1x32x256xf32> to vector<32x256xf32>
    %142 = vector.shape_cast %139 : vector<32x256xf32> to vector<1x32x256xf32>
    tpu.vector_store %arg4[%c0_168, %c0_169, %c0_170], %142 {strides = array<i32>} : memref<1x32x256xf32, #tpu.memory_space<vmem>>, vector<1x32x256xf32>,
    return
  }
  func.func @transform_0(%arg0: i32) -> (i32, i32, i32, i32) {
    %c0_i32 = arith.constant 0 : i32
    %c0_i32_0 = arith.constant 0 : i32
    %c0_i32_1 = arith.constant 0 : i32
    %c0_i32_2 = arith.constant 0 : i32
    return %arg0, %c0_i32, %c0_i32_0, %c0_i32_1 : i32, i32, i32, i32
  }
  func.func @transform_1(%arg0: i32) -> (i32, i32) {
    %c0_i32 = arith.constant 0 : i32
    %c0_i32_0 = arith.constant 0 : i32
    %c0_i32_1 = arith.constant 0 : i32
    return %c0_i32, %c0_i32_0 : i32, i32
  }
  func.func @transform_2(%arg0: i32) -> (i32, i32) {
    %c0_i32 = arith.constant 0 : i32
    %c0_i32_0 = arith.constant 0 : i32
    %c0_i32_1 = arith.constant 0 : i32
    return %c0_i32, %c0_i32_0 : i32, i32
  }
  func.func @transform_3(%arg0: i32) -> (i32, i32, i32) {
    %c0_i32 = arith.constant 0 : i32
    %c0_i32_0 = arith.constant 0 : i32
    %c0_i32_1 = arith.constant 0 : i32
    return %arg0, %c0_i32, %c0_i32_0 : i32, i32, i32
  }
}

</mosaic_0001>

<bundles_post_ra>
// kernel: hscam_forward.1
= control target key start
LH: loop header
LB: loop body
LE: loop exit
PB: predicated region body
PF: predicated region fallthrough
CT: control target
= control target key end

     0   :  { %s9928_s12 = smov 0   ;;  %s12955_s0 = inlined_call_operand.vmem [shape: bf16[2,22,22,4], index: 0, kind: input, shape index: {}]   ;;  %s12956_s1 = inlined_call_operand.vmem [shape: bf16[32,128], index: 1, kind: input, shape index: {}]   ;;  %s12957_s2 = inlined_call_operand.vmem [shape: f32[32,6], index: 2, kind: input, shape index: {}]   ;;  %s12958_s3 = inlined_call_operand.vmem [shape: f32[2,32,256], index: 3, kind: output, shape index: {}]  }
   0x1 LB: > { %s7884_s13 = sadd.s32 4294967295, %s9873_s12   ;;  %p7888_p0 = scmp.ge.s32.totalorder %s9873_s12, 1  ;;  %s9873_s12 = sphi %s9928_s12, %s13_s12  }
   0x2   : > { %p137_p1 = scmp.lt.s32.totalorder %s9873_s12, 3 }
   0x4   : > { %p138_p2 = pnand %p7888_p0, %p137_p1 }
   0x6   : > { %141 = sbr.rel (%p138_p2) target bundleno = 2515 (0x9d3), region = 32 }
   0xb   : > { %p161_p3 = scmp.lt.s32.totalorder %s7884_s13, 1  ;;  %vm305_vm0 = vcmask 31744   ;;  %vm308_vm1 = vcmask 29696   ;;  %s9875_s18 = smov 4   ;;  %vm534_vm2 = vcmask 27648   ;;  %vm791_vm3 = vcmask 60448  }
   0xc   : > { %s9876_s19 = smov 8   ;;  %s9877_s20 = smov 12   ;;  %vm1048_vm4 = vcmask 93248   ;;  %vm1306_vm5 = vcmask 126048   ;;  %vm1563_vm6 = vcmask 158848   ;;  %vm1820_vm7 = vcmask 191648  }
   0xd   : > { %s13074_s13 = smov (!%p161_p3, %s7884_s13), 1  ;;  %s9878_s21 = smov 16   ;;  %vm2078_vm8 = vcmask 224448   ;;  %vm2335_vm9 = vcmask 257248   ;;  %vm2592_vm10 = vcmask 290048   ;;  %vm2850_vm11 = vcmask 322848  }
   0xe   : > { %s9743_s14 = smul.u32 264, %s13074_s13  ;;  %s9879_s22 = smov 20   ;;  %vm3107_vm12 = vcmask 355648   ;;  %vm3364_vm13 = vcmask 388448   ;;  %vm3621_vm14 = vcmask 421248   ;;  %vm3878_vm15 = vcmask 454048  }
   0xf   : > { %s9880_s23 = smov 24   ;;  %s9881_s24 = smov 28  }
  0x10   : > { %s9942_s17 = scalar_lea.vmem %s12955_s0, %s9743_s14  ;;  %s9882_s25 = smov 32  }
  0x11   : > { %v182_v0 = vld [vmem:[%s9942_s17 + $0x24] sm:$0xff]   ;;  %v9697_v1 = vld [vmem:[%s9942_s17 + $0x18] sm:$0xff]   ;;  %v184_v2 = vld [vmem:[%s9942_s17 + $0x2c] sm:$0x7]  ;;  %s9883_s26 = smov 36   ;;  %s9884_s27 = smov 40  }
  0x12   : > { %v248_v3 = vunpack.c.l.bf16 %v182_v0  ;;  %v249_v4 = vunpack.c.h.bf16 %v182_v0  ;;  %v9659_v5 = vunpack.c.l.bf16 %v9697_v1  ;;  %v9660_v6 = vunpack.c.h.bf16 %v9697_v1  ;;  %v181_v7 = vld [vmem:[%s9942_s17 + $0x20] sm:$0x7]  ;;  %v9698_v8 = vld [vmem:[%s9942_s17 + $0x30] sm:$0xff]   ;;  %v187_v9 = vld [vmem:[%s9942_s17 + $0x38] sm:$0x7]  ;;  %s9885_s28 = smov 44  }
  0x13   : > { %v250_v10 = vunpack.c.l.bf16 %v184_v2  ;;  %v247_v11 = vunpack.c.l.bf16 %v181_v7  ;;  %v9664_v12 = vunpack.c.h.bf16 %v9698_v8  ;;  %v253_v13 = vunpack.c.l.bf16 %v187_v9  ;;  %v189_v14 = vld [vmem:[%s9942_s17 + $0x3c] sm:$0xff]   ;;  %v190_v15 = vld [vmem:[%s9942_s17 + $0x44] sm:$0x7]  ;;  %v9699_v16 = vld [vmem:[%s9942_s17 + $0x48] sm:$0xff]   ;;  %s9886_s29 = smov 48   ;;  %s9887_s30 = smov 52  }
  0x14   : > { %316 = vst.msk [vmem:[#allocation2 + $0x48] sm:$0xff] %vm305_vm0, %v248_v3  ;;  %317 = vst.msk [vmem:[#allocation2 + $0x50] sm:$0xff] %vm305_vm0, %v249_v4  ;;  %v9663_v17 = vunpack.c.l.bf16 %v9698_v8  ;;  %v255_v18 = vunpack.c.h.bf16 %v189_v14  ;;  %v256_v19 = vunpack.c.l.bf16 %v190_v15  ;;  %v254_v20 = vunpack.c.l.bf16 %v189_v14  ;;  %v193_v21 = vld [vmem:[%s9942_s17 + $0x50] sm:$0x7]  ;;  %v195_v22 = vld [vmem:[%s9942_s17 + $0x54] sm:$0xff]   ;;  %s9888_s4 = smov 56  }
  0x15   : > { %313 = vst.msk [vmem:[#allocation2 + $0x30] sm:$0xff] %vm305_vm0, %v9659_v5  ;;  %314 = vst.msk [vmem:[#allocation2 + $0x38] sm:$0xff] %vm305_vm0, %v9660_v6  ;;  %v196_v23 = vld [vmem:[%s9942_s17 + $0x5c] sm:$0x7]  ;;  %v9668_v24 = vunpack.c.h.bf16 %v9699_v16  ;;  %v259_v25 = vunpack.c.l.bf16 %v193_v21  ;;  %v9667_v26 = vunpack.c.l.bf16 %v9699_v16  ;;  %v261_v27 = vunpack.c.h.bf16 %v195_v22  ;;  %v9700_v28 = vld [vmem:[%s9942_s17 + $0x60] sm:$0xff]   ;;  %s9889_s5 = smov 60  }
  0x16   : > { %318 = vst.msk [vmem:[#allocation2 + $0x58] sm:$0x3f] %vm308_vm1, %v250_v10  ;;  %315 = vst.msk [vmem:[#allocation2 + $0x40] sm:$0x3f] %vm308_vm1, %v247_v11  ;;  %v199_v29 = vld [vmem:[%s9942_s17 + $0x68] sm:$0x7]  ;;  %v262_v31 = vunpack.c.l.bf16 %v196_v23  ;;  %v260_v32 = vunpack.c.l.bf16 %v195_v22  ;;  %v9672_v33 = vunpack.c.h.bf16 %v9700_v28  ;;  %v9671_v38 = vunpack.c.l.bf16 %v9700_v28 }
  0x17   : > { %320 = vst.msk [vmem:[#allocation2 + $0x68] sm:$0xff] %vm305_vm0, %v9664_v12  ;;  %v201_v30 = vld [vmem:[%s9942_s17 + $0x6c] sm:$0xff]   ;;  %319 = vst.msk [vmem:[#allocation2 + $0x60] sm:$0xff] %vm305_vm0, %v9663_v17  ;;  %v265_v34 = vunpack.c.l.bf16 %v199_v29  ;;  %v202_v35 = vld [vmem:[%s9942_s17 + $0x74] sm:$0x7]  ;;  %s9890_s6 = smov 64  }
  0x18   : > { %321 = vst.msk [vmem:[#allocation2 + $0x70] sm:$0x3f] %vm308_vm1, %v253_v13  ;;  %324 = vst.msk [vmem:[#allocation2 + $0x88] sm:$0x3f] %vm308_vm1, %v256_v19  ;;  %v9701_v36 = vld [vmem:[%s9942_s17 + $0x78] sm:$0xff]   ;;  %v267_v39 = vunpack.c.h.bf16 %v201_v30  ;;  %v268_v40 = vunpack.c.l.bf16 %v202_v35  ;;  %v266_v41 = vunpack.c.l.bf16 %v201_v30  ;;  %v207_v42 = vld [vmem:[%s9942_s17 + $0x84] sm:$0xff]  }
  0x19   : > { %323 = vst.msk [vmem:[#allocation2 + $0x80] sm:$0xff] %vm305_vm0, %v255_v18  ;;  %322 = vst.msk [vmem:[#allocation2 + $0x78] sm:$0xff] %vm305_vm0, %v254_v20  ;;  %v205_v37 = vld [vmem:[%s9942_s17 + $0x80] sm:$0x7]  ;;  %v208_v43 = vld [vmem:[%s9942_s17 + $0x8c] sm:$0x7]  ;;  %v9676_v45 = vunpack.c.h.bf16 %v9701_v36  ;;  %v9675_v47 = vunpack.c.l.bf16 %v9701_v36  ;;  %v273_v48 = vunpack.c.h.bf16 %v207_v42  ;;  %v272_v53 = vunpack.c.l.bf16 %v207_v42 }
  0x1a   : > { %326 = vst.msk [vmem:[#allocation2 + $0x98] sm:$0xff] %vm305_vm0, %v9668_v24  ;;  %325 = vst.msk [vmem:[#allocation2 + $0x90] sm:$0xff] %vm305_vm0, %v9667_v26  ;;  %v9702_v44 = vld [vmem:[%s9942_s17 + $0x90] sm:$0xff]   ;;  %v271_v46 = vunpack.c.l.bf16 %v205_v37  ;;  %v211_v49 = vld [vmem:[%s9942_s17 + $0x98] sm:$0x7]  ;;  %v274_v52 = vunpack.c.l.bf16 %v208_v43  ;;  %s9891_s7 = smov 68  }
  0x1b   : > { %327 = vst.msk [vmem:[#allocation2 + $0xa0] sm:$0x3f] %vm308_vm1, %v259_v25  ;;  %330 = vst.msk [vmem:[#allocation2 + $0xb8] sm:$0x3f] %vm308_vm1, %v262_v31  ;;  %v213_v50 = vld [vmem:[%s9942_s17 + $0x9c] sm:$0xff]   ;;  %v9680_v54 = vunpack.c.h.bf16 %v9702_v44  ;;  %v277_v55 = vunpack.c.l.bf16 %v211_v49  ;;  %v9703_v56 = vld [vmem:[%s9942_s17 + $0xa8] sm:$0xff]   ;;  %v9679_v59 = vunpack.c.l.bf16 %v9702_v44 }
  0x1c   : > { %329 = vst.msk [vmem:[#allocation2 + $0xb0] sm:$0xff] %vm305_vm0, %v261_v27  ;;  %328 = vst.msk [vmem:[#allocation2 + $0xa8] sm:$0xff] %vm305_vm0, %v260_v32  ;;  %v214_v51 = vld [vmem:[%s9942_s17 + $0xa4] sm:$0x7]  ;;  %v217_v57 = vld [vmem:[%s9942_s17 + $0xb0] sm:$0x7]  ;;  %v279_v60 = vunpack.c.h.bf16 %v213_v50  ;;  %v278_v62 = vunpack.c.l.bf16 %v213_v50  ;;  %v9684_v3 = vunpack.c.h.bf16 %v9703_v56  ;;  %v9683_v5 = vunpack.c.l.bf16 %v9703_v56 }
  0x1d   : > { %332 = vst.msk [vmem:[#allocation2 + $0xc8] sm:$0xff] %vm305_vm0, %v9672_v33  ;;  %331 = vst.msk [vmem:[#allocation2 + $0xc0] sm:$0xff] %vm305_vm0, %v9671_v38  ;;  %v219_v58 = vld [vmem:[%s9942_s17 + $0xb4] sm:$0xff]   ;;  %v280_v61 = vunpack.c.l.bf16 %v214_v51  ;;  %v220_v63 = vld [vmem:[%s9942_s17 + $0xbc] sm:$0x7]  ;;  %v283_v4 = vunpack.c.l.bf16 %v217_v57  ;;  %s9892_s8 = smov 72  }
  0x1e   : > { %333 = vst.msk [vmem:[#allocation2 + $0xd0] sm:$0x3f] %vm308_vm1, %v265_v34  ;;  %336 = vst.msk [vmem:[#allocation2 + $0xe8] sm:$0x3f] %vm308_vm1, %v268_v40  ;;  %v9704_v0 = vld [vmem:[%s9942_s17 + $0xc0] sm:$0xff]   ;;  %v569_v1 = vld [vmem:[#allocation2 + $0x4b] sm:$0xff]  ;;  %v285_v6 = vunpack.c.h.bf16 %v219_v58  ;;  %v286_v12 = vunpack.c.l.bf16 %v220_v63  ;;  %v284_v13 = vunpack.c.l.bf16 %v219_v58 }
  0x1f   : > { %335 = vst.msk [vmem:[#allocation2 + $0xe0] sm:$0xff] %vm305_vm0, %v267_v39  ;;  %334 = vst.msk [vmem:[#allocation2 + $0xd8] sm:$0xff] %vm305_vm0, %v266_v41  ;;  %v567_v2 = vld [vmem:[#allocation2 + $0x33] sm:$0xff]  ;;  %v223_v7 = vld [vmem:[%s9942_s17 + $0xc8] sm:$0x7]  ;;  %v8823_v8 = vpack.c.bf16 %v569_v1, %v569_v1  ;;  %v9688_v15 = vunpack.c.h.bf16 %v9704_v0  ;;  %v9687_v22 = vunpack.c.l.bf16 %v9704_v0  ;;  %s9893_s9 = smov 76  }
  0x20   : > { %338 = vst.msk [vmem:[#allocation2 + $0xf8] sm:$0xff] %vm305_vm0, %v9676_v45  ;;  %337 = vst.msk [vmem:[#allocation2 + $0xf0] sm:$0xff] %vm305_vm0, %v9675_v47  ;;  %v8821_v9 = vpack.c.bf16 %v567_v2, %v567_v2  ;;  %v570_v10 = vld [vmem:[#allocation2 + $0x53] sm:$0xff]  ;;  %v568_v11 = vld [vmem:[#allocation2 + $0x3b] sm:$0xff]  ;;  %v289_v18 = vunpack.c.l.bf16 %v223_v7  ;;  %s9894_s10 = smov 80   ;;  %s9895_s11 = smov 84  }
  0x21   : > { %339 = vst.msk [vmem:[#allocation2 + $0x100] sm:$0x3f] %vm308_vm1, %v271_v46  ;;  %342 = vst.msk [vmem:[#allocation2 + $0x118] sm:$0x3f] %vm308_vm1, %v274_v52  ;;  %v225_v14 = vld [vmem:[%s9942_s17 + $0xcc] sm:$0xff]   ;;  %699 = vrot.lane.b32.xlu1 %v8823_v8, %s9875_s18  ;;  %v8824_v16 = vpack.c.bf16 %v570_v10, %v570_v10  ;;  %v8822_v17 = vpack.c.bf16 %v568_v11, %v568_v11  ;;  %v571_v21 = vld [vmem:[#allocation2 + $0x63] sm:$0xff] }
  0x22   : > { %341 = vst.msk [vmem:[#allocation2 + $0x110] sm:$0xff] %vm305_vm0, %v273_v48  ;;  %340 = vst.msk [vmem:[#allocation2 + $0x108] sm:$0xff] %vm305_vm0, %v272_v53  ;;  %695 = vrot.lane.b32.xlu0 %v8821_v9, %s9875_s18  ;;  %v226_v19 = vld [vmem:[%s9942_s17 + $0xd4] sm:$0x7]  ;;  %v572_v20 = vld [vmem:[#allocation2 + $0x6b] sm:$0xff]  ;;  %v291_v23 = vunpack.c.h.bf16 %v225_v14  ;;  %v290_v25 = vunpack.c.l.bf16 %v225_v14  ;;  %v8825_v27 = vpack.c.bf16 %v571_v21, %v571_v21  ;;  %s9896_s14 = smov 88  }
  0x23   : > { %344 = vst.msk [vmem:[#allocation2 + $0x128] sm:$0xff] %vm305_vm0, %v9680_v54  ;;  %343 = vst.msk [vmem:[#allocation2 + $0x120] sm:$0xff] %vm305_vm0, %v9679_v59  ;;  %v292_v24 = vunpack.c.l.bf16 %v226_v19  ;;  %v8826_v26 = vpack.c.bf16 %v572_v20, %v572_v20  ;;  %v574_v28 = vld [vmem:[#allocation2 + $0x83] sm:$0xff]  ;;  %v573_v29 = vld [vmem:[#allocation2 + $0x7b] sm:$0xff]  ;;  %s9897_s15 = smov 92   ;;  %s9898_s16 = smov 96  }
  0x24   : > { %345 = vst.msk [vmem:[#allocation2 + $0x130] sm:$0x3f] %vm308_vm1, %v277_v55  ;;  %348 = vst.msk [vmem:[#allocation2 + $0x148] sm:$0x3f] %vm308_vm1, %v280_v61  ;;  %v8828_v30 = vpack.c.bf16 %v574_v28, %v574_v28  ;;  %v8827_v31 = vpack.c.bf16 %v573_v29, %v573_v29  ;;  %v576_v32 = vld [vmem:[#allocation2 + $0x9b] sm:$0xff]  ;;  %v575_v33 = vld [vmem:[#allocation2 + $0x93] sm:$0xff] }
  0x25   : > { %347 = vst.msk [vmem:[#allocation2 + $0x140] sm:$0xff] %vm305_vm0, %v279_v60  ;;  %346 = vst.msk [vmem:[#allocation2 + $0x138] sm:$0xff] %vm305_vm0, %v278_v62  ;;  %701 = vrot.lane.b32.xlu1 %v8824_v16, %s9875_s18  ;;  %v8830_v34 = vpack.c.bf16 %v576_v32, %v576_v32  ;;  %v8829_v35 = vpack.c.bf16 %v575_v33, %v575_v33  ;;  %v578_v36 = vld [vmem:[#allocation2 + $0xb3] sm:$0xff]  ;;  %v577_v37 = vld [vmem:[#allocation2 + $0xab] sm:$0xff] }
  0x26   : > { %350 = vst.msk [vmem:[#allocation2 + $0x158] sm:$0xff] %vm305_vm0, %v9684_v3  ;;  %349 = vst.msk [vmem:[#allocation2 + $0x150] sm:$0xff] %vm305_vm0, %v9683_v5  ;;  %697 = vrot.lane.b32.xlu0 %v8822_v17, %s9875_s18  ;;  %v8832_v38 = vpack.c.bf16 %v578_v36, %v578_v36  ;;  %v8831_v39 = vpack.c.bf16 %v577_v37, %v577_v37  ;;  %v580_v40 = vld [vmem:[#allocation2 + $0xcb] sm:$0xff]  ;;  %v579_v41 = vld [vmem:[#allocation2 + $0xc3] sm:$0xff] }
  0x27   : > { %351 = vst.msk [vmem:[#allocation2 + $0x160] sm:$0x3f] %vm308_vm1, %v283_v4  ;;  %354 = vst.msk [vmem:[#allocation2 + $0x178] sm:$0x3f] %vm308_vm1, %v286_v12  ;;  %v376_v42 = vld [vmem:[#allocation2 + $0x4a] sm:$0xff]  ;;  %v374_v43 = vld [vmem:[#allocation2 + $0x32] sm:$0xff]  ;;  %v8834_v52 = vpack.c.bf16 %v580_v40, %v580_v40  ;;  %v8833_v53 = vpack.c.bf16 %v579_v41, %v579_v41 }
  0x28   : > { %353 = vst.msk [vmem:[#allocation2 + $0x170] sm:$0xff] %vm305_vm0, %v285_v6  ;;  %352 = vst.msk [vmem:[#allocation2 + $0x168] sm:$0xff] %vm305_vm0, %v284_v13  ;;  %v10034_v44 = vpack.c.bf16 %v376_v42, %v376_v42  ;;  %v8789_v45 = vpack.c.bf16 %v374_v43, %v374_v43  ;;  %v377_v46 = vld [vmem:[#allocation2 + $0x52] sm:$0xff]  ;;  %v375_v47 = vld [vmem:[#allocation2 + $0x3a] sm:$0xff] }
  0x29   : > { %356 = vst.msk [vmem:[#allocation2 + $0x188] sm:$0xff] %vm305_vm0, %v9688_v15  ;;  %355 = vst.msk [vmem:[#allocation2 + $0x180] sm:$0xff] %vm305_vm0, %v9687_v22  ;;  %705 = vrot.lane.b32.xlu1 %v8826_v26, %s9875_s18  ;;  %v10036_v48 = vld [vmem:[#allocation2 + $0xe3] sm:$0xff]  ;;  %v10038_v49 = vpack.c.bf16 %v377_v46, %v377_v46  ;;  %v8790_v50 = vpack.c.bf16 %v375_v47, %v375_v47  ;;  %v10042_v54 = vld [vmem:[#allocation2 + $0xdb] sm:$0xff] }
  0x2a   : > { %357 = vst.msk [vmem:[#allocation2 + $0x190] sm:$0x3f] %vm308_vm1, %v289_v18  ;;  %360 = vst.msk [vmem:[#allocation2 + $0x1a8] sm:$0x3f] %vm308_vm1, %v292_v24  ;;  %703 = vrot.lane.b32.xlu0 %v8825_v27, %s9875_s18  ;;  %v379_v51 = vld [vmem:[#allocation2 + $0x6a] sm:$0xff]  ;;  %v378_v56 = vld [vmem:[#allocation2 + $0x62] sm:$0xff]  ;;  %v8836_v61 = vpack.c.bf16 %v10036_v48, %v10036_v48  ;;  %v8835_v5 = vpack.c.bf16 %v10042_v54, %v10042_v54 }
  0x2b   : > { %359 = vst.msk [vmem:[#allocation2 + $0x1a0] sm:$0xff] %vm305_vm0, %v291_v23  ;;  %358 = vst.msk [vmem:[#allocation2 + $0x198] sm:$0xff] %vm305_vm0, %v290_v25  ;;  %v10047_v55 = vpack.c.bf16 %v379_v51, %v379_v51  ;;  %v10052_v57 = vpack.c.bf16 %v378_v56, %v378_v56  ;;  %v381_v58 = vld [vmem:[#allocation2 + $0x82] sm:$0xff]  ;;  %v380_v59 = vld [vmem:[#allocation2 + $0x7a] sm:$0xff] }
  0x2c   : > { %537 = vst.msk [vmem:[#allocation3 + $0x8] sm:$0xf] %vm534_vm2, %v10034_v44  ;;  %535 = vst.msk [vmem:[#allocation3] sm:$0xf] %vm534_vm2, %v8789_v45  ;;  %v383_v60 = vld [vmem:[#allocation2 + $0x9a] sm:$0xff]  ;;  %v10060_v63 = vpack.c.bf16 %v381_v58, %v381_v58  ;;  %v10062_v0 = vpack.c.bf16 %v380_v59, %v380_v59  ;;  %v382_v2 = vld [vmem:[#allocation2 + $0x92] sm:$0xff] }
  0x2d   : > { %709 = vrot.lane.b32.xlu1 %v8828_v30, %s9875_s18  ;;  %538 = vst.msk [vmem:[#allocation3 + $0xc] sm:$0xf] %vm534_vm2, %v10038_v49  ;;  %536 = vst.msk [vmem:[#allocation3 + $0x4] sm:$0xf] %vm534_vm2, %v8790_v50  ;;  %v10056_v62 = vld [vmem:[#allocation2 + $0xfb] sm:$0xff]  ;;  %v10064_v1 = vpack.c.bf16 %v383_v60, %v383_v60  ;;  %v385_v3 = vld [vmem:[#allocation2 + $0xb2] sm:$0xff]  ;;  %v10070_v7 = vpack.c.bf16 %v382_v2, %v382_v2 }
  0x2e   : > { %707 = vrot.lane.b32.xlu0 %v8827_v31, %s9875_s18  ;;  %540 = vst.msk [vmem:[#allocation3 + $0x14] sm:$0xf] %vm534_vm2, %v10047_v55  ;;  %v384_v4 = vld [vmem:[#allocation2 + $0xaa] sm:$0xff]  ;;  %v583_v6 = vld [vmem:[#allocation2 + $0xf3] sm:$0xff]  ;;  %539 = vst.msk [vmem:[#allocation3 + $0x10] sm:$0xf] %vm534_vm2, %v10052_v57  ;;  %v10072_v8 = vpack.c.bf16 %v385_v3, %v385_v3  ;;  %v8838_v29 = vpack.c.bf16 %v10056_v62, %v10056_v62 }
  0x2f   : > { %v10074_v9 = vpack.c.bf16 %v384_v4, %v384_v4  ;;  %v387_v10 = vld [vmem:[#allocation2 + $0xca] sm:$0xff]  ;;  %v386_v11 = vld [vmem:[#allocation2 + $0xc2] sm:$0xff]  ;;  %542 = vst.msk [vmem:[#allocation3 + $0x1c] sm:$0xf] %vm534_vm2, %v10060_v63  ;;  %541 = vst.msk [vmem:[#allocation3 + $0x18] sm:$0xf] %vm534_vm2, %v10062_v0  ;;  %v8837_v33 = vpack.c.bf16 %v583_v6, %v583_v6 }
  0x30   : > { %v389_v12 = vld [vmem:[#allocation2 + $0xe2] sm:$0xff]  ;;  %544 = vst.msk [vmem:[#allocation3 + $0x24] sm:$0xf] %vm534_vm2, %v10064_v1  ;;  %v10084_v13 = vpack.c.bf16 %v387_v10, %v387_v10  ;;  %v10086_v14 = vpack.c.bf16 %v386_v11, %v386_v11  ;;  %v388_v16 = vld [vmem:[#allocation2 + $0xda] sm:$0xff]  ;;  %v390_v18 = vld [vmem:[#allocation2 + $0xf2] sm:$0xff] }
  0x31   : > { %713 = vrot.lane.b32.xlu1 %v8830_v34, %s9875_s18  ;;  %v10088_v15 = vpack.c.bf16 %v389_v12, %v389_v12  ;;  %v391_v17 = vld [vmem:[#allocation2 + $0xfa] sm:$0xff]  ;;  %543 = vst.msk [vmem:[#allocation3 + $0x20] sm:$0xf] %vm534_vm2, %v10070_v7  ;;  %546 = vst.msk [vmem:[#allocation3 + $0x2c] sm:$0xf] %vm534_vm2, %v10072_v8  ;;  %v10096_v19 = vpack.c.bf16 %v388_v16, %v388_v16  ;;  %v10100_v21 = vpack.c.bf16 %v390_v18, %v390_v18  ;;  %v393_v22 = vld [vmem:[#allocation2 + $0x112] sm:$0xff] }
  0x32   : > { %711 = vrot.lane.b32.xlu0 %v8829_v35, %s9875_s18  ;;  %545 = vst.msk [vmem:[#allocation3 + $0x28] sm:$0xf] %vm534_vm2, %v10074_v9  ;;  %v10098_v20 = vpack.c.bf16 %v391_v17, %v391_v17  ;;  %v392_v23 = vld [vmem:[#allocation2 + $0x10a] sm:$0xff]  ;;  %548 = vst.msk [vmem:[#allocation3 + $0x34] sm:$0xf] %vm534_vm2, %v10084_v13  ;;  %v10108_v25 = vpack.c.bf16 %v393_v22, %v393_v22  ;;  %v394_v28 = vld [vmem:[#allocation2 + $0x122] sm:$0xff] }
  0x33   : > { %v395_v24 = vld [vmem:[#allocation2 + $0x12a] sm:$0xff]  ;;  %547 = vst.msk [vmem:[#allocation3 + $0x30] sm:$0xf] %vm534_vm2, %v10086_v14  ;;  %550 = vst.msk [vmem:[#allocation3 + $0x3c] sm:$0xf] %vm534_vm2, %v10088_v15  ;;  %v10110_v26 = vpack.c.bf16 %v392_v23, %v392_v23  ;;  %v10122_v30 = vpack.c.bf16 %v394_v28, %v394_v28  ;;  %v397_v31 = vld [vmem:[#allocation2 + $0x142] sm:$0xff] }
  0x34   : > { %v10112_v27 = vpack.c.bf16 %v395_v24, %v395_v24  ;;  %549 = vst.msk [vmem:[#allocation3 + $0x38] sm:$0xf] %vm534_vm2, %v10096_v19  ;;  %552 = vst.msk [vmem:[#allocation3 + $0x44] sm:$0xf] %vm534_vm2, %v10098_v20  ;;  %v396_v32 = vld [vmem:[#allocation2 + $0x13a] sm:$0xff]  ;;  %v10132_v35 = vpack.c.bf16 %v397_v31, %v397_v31  ;;  %v585_v37 = vld [vmem:[#allocation2 + $0x10b] sm:$0xff] }
  0x35   : > { %717 = vrot.lane.b32.xlu1 %v8832_v38, %s9875_s18  ;;  %551 = vst.msk [vmem:[#allocation3 + $0x40] sm:$0xf] %vm534_vm2, %v10100_v21  ;;  %v586_v34 = vld [vmem:[#allocation2 + $0x113] sm:$0xff]  ;;  %554 = vst.msk [vmem:[#allocation3 + $0x4c] sm:$0xf] %vm534_vm2, %v10108_v25  ;;  %v10134_v36 = vpack.c.bf16 %v396_v32, %v396_v32  ;;  %v8839_v41 = vpack.c.bf16 %v585_v37, %v585_v37  ;;  %v588_v42 = vld [vmem:[#allocation2 + $0x12b] sm:$0xff] }
  0x36   : > { %715 = vrot.lane.b32.xlu0 %v8831_v39, %s9875_s18  ;;  %553 = vst.msk [vmem:[#allocation3 + $0x48] sm:$0xf] %vm534_vm2, %v10110_v26  ;;  %556 = vst.msk [vmem:[#allocation3 + $0x54] sm:$0xf] %vm534_vm2, %v10112_v27  ;;  %v8840_v38 = vpack.c.bf16 %v586_v34, %v586_v34  ;;  %v399_v39 = vld [vmem:[#allocation2 + $0x15a] sm:$0xff]  ;;  %v398_v40 = vld [vmem:[#allocation2 + $0x152] sm:$0xff]  ;;  %v8842_v47 = vpack.c.bf16 %v588_v42, %v588_v42 }
  0x37   : > { %555 = vst.msk [vmem:[#allocation3 + $0x50] sm:$0xf] %vm534_vm2, %v10122_v30  ;;  %558 = vst.msk [vmem:[#allocation3 + $0x5c] sm:$0xf] %vm534_vm2, %v10132_v35  ;;  %v10144_v43 = vpack.c.bf16 %v399_v39, %v399_v39  ;;  %v10146_v45 = vpack.c.bf16 %v398_v40, %v398_v40  ;;  %v587_v46 = vld [vmem:[#allocation2 + $0x123] sm:$0xff]  ;;  %v401_v48 = vld [vmem:[#allocation2 + $0x172] sm:$0xff] }
  0x38   : > { %557 = vst.msk [vmem:[#allocation3 + $0x58] sm:$0xf] %vm534_vm2, %v10134_v36  ;;  %v400_v50 = vld [vmem:[#allocation2 + $0x16a] sm:$0xff]  ;;  %v8841_v51 = vpack.c.bf16 %v587_v46, %v587_v46  ;;  %v589_v56 = vld [vmem:[#allocation2 + $0x13b] sm:$0xff]  ;;  %v591_v4 = vld [vmem:[#allocation2 + $0x153] sm:$0xff] }
  0x39   : > { %721 = vrot.lane.b32.xlu1 %v8834_v52, %s9875_s18  ;;  %560 = vst.msk [vmem:[#allocation3 + $0x64] sm:$0xf] %vm534_vm2, %v10144_v43  ;;  %559 = vst.msk [vmem:[#allocation3 + $0x60] sm:$0xf] %vm534_vm2, %v10146_v45  ;;  %v590_v52 = vld [vmem:[#allocation2 + $0x143] sm:$0xff]  ;;  %v10156_v54 = vpack.c.bf16 %v400_v50, %v400_v50  ;;  %v592_v62 = vld [vmem:[#allocation2 + $0x15b] sm:$0xff]  ;;  %v8845_v11 = vpack.c.bf16 %v591_v4, %v591_v4 }
  0x3a   : > { %719 = vrot.lane.b32.xlu0 %v8833_v53, %s9875_s18  ;;  %v10154_v53 = vpack.c.bf16 %v401_v48, %v401_v48  ;;  %v8844_v58 = vpack.c.bf16 %v590_v52, %v590_v52  ;;  %v403_v59 = vld [vmem:[#allocation2 + $0x18a] sm:$0xff]  ;;  %v402_v60 = vld [vmem:[#allocation2 + $0x182] sm:$0xff]  ;;  %v404_v10 = vld [vmem:[#allocation2 + $0x19a] sm:$0xff] }
  0x3b   : > { %561 = vst.msk [vmem:[#allocation3 + $0x68] sm:$0xf] %vm534_vm2, %v10156_v54  ;;  %v10164_v2 = vpack.c.bf16 %v403_v59, %v403_v59  ;;  %v10166_v3 = vpack.c.bf16 %v402_v60, %v402_v60  ;;  %v405_v6 = vld [vmem:[#allocation2 + $0x1a2] sm:$0xff]  ;;  %v594_v12 = vld [vmem:[#allocation2 + $0x173] sm:$0xff]  ;;  %v10176_v17 = vpack.c.bf16 %v404_v10, %v404_v10  ;;  %v593_v18 = vld [vmem:[#allocation2 + $0x16b] sm:$0xff] }
  0x3c   : > { %562 = vst.msk [vmem:[#allocation3 + $0x6c] sm:$0xf] %vm534_vm2, %v10154_v53  ;;  %v10174_v16 = vpack.c.bf16 %v405_v6, %v405_v6  ;;  %v8848_v22 = vpack.c.bf16 %v594_v12, %v594_v12  ;;  %v9705_v23 = vld [vmem:[%s9942_s17 + $0xd8] sm:$0xff]   ;;  %v229_v24 = vld [vmem:[%s9942_s17 + $0xe0] sm:$0x7]  ;;  %v8847_v28 = vpack.c.bf16 %v593_v18, %v593_v18  ;;  %v595_v34 = vld [vmem:[#allocation2 + $0x183] sm:$0xff] }
  0x3d   : > { %725 = vrot.lane.b32.xlu1 %v8836_v61, %s9875_s18  ;;  %v8843_v61 = vpack.c.bf16 %v589_v56, %v589_v56  ;;  %564 = vst.msk [vmem:[#allocation3 + $0x74] sm:$0xf] %vm534_vm2, %v10164_v2  ;;  %563 = vst.msk [vmem:[#allocation3 + $0x70] sm:$0xf] %vm534_vm2, %v10166_v3  ;;  %v295_v31 = vunpack.c.l.bf16 %v229_v24  ;;  %v9691_v32 = vunpack.c.l.bf16 %v9705_v23  ;;  %v598_v39 = vld [vmem:[#allocation2 + $0x1a3] sm:$0xff]  ;;  %v597_v40 = vld [vmem:[#allocation2 + $0x19b] sm:$0xff] }
  0x3e   : > { %723 = vrot.lane.b32.xlu0 %v8835_v5, %s9875_s18  ;;  %v8846_v5 = vpack.c.bf16 %v592_v62, %v592_v62  ;;  %566 = vst.msk [vmem:[#allocation3 + $0x7c] sm:$0xf] %vm534_vm2, %v10174_v16  ;;  %565 = vst.msk [vmem:[#allocation3 + $0x78] sm:$0xf] %vm534_vm2, %v10176_v17  ;;  %v8851_v42 = vpack.c.bf16 %v597_v40, %v597_v40  ;;  %v825_v46 = vld [vmem:[#allocation2 + $0x3c] sm:$0xff]  ;;  %v826_v52 = vld [vmem:[#allocation2 + $0x4c] sm:$0xff] }
  0x3f   : > { %363 = vst.msk [vmem:[#allocation2 + $0x1c0] sm:$0x3f] %vm308_vm1, %v295_v31  ;;  %v8854_v48 = vpack.c.bf16 %v825_v46, %v825_v46  ;;  %v829_v59 = vld [vmem:[#allocation2 + $0x6c] sm:$0xff]  ;;  %v828_v60 = vld [vmem:[#allocation2 + $0x64] sm:$0xff]  ;;  %v832_v12 = vld [vmem:[#allocation2 + $0x94] sm:$0xff]  ;;  %vm4135_vm2 = vcmask 486848  }
  0x40   : > { %361 = vst.msk [vmem:[#allocation2 + $0x1b0] sm:$0xff] %vm305_vm0, %v9691_v32  ;;  %v8857_v62 = vpack.c.bf16 %v828_v60, %v828_v60  ;;  %v831_v4 = vld [vmem:[#allocation2 + $0x84] sm:$0xff]  ;;  %v834_v24 = vld [vmem:[#allocation2 + $0xac] sm:$0xff] }
  0x41   : > { %729 = vrot.lane.b32.xlu1 %v8838_v29, %s9875_s18  ;;  %v9692_v29 = vunpack.c.h.bf16 %v9705_v23  ;;  %v8860_v6 = vpack.c.bf16 %v831_v4, %v831_v4  ;;  %v835_v23 = vld [vmem:[#allocation2 + $0xb4] sm:$0xff]  ;;  %v837_v31 = vld [vmem:[#allocation2 + $0xcc] sm:$0xff]  ;;  %v836_v32 = vld [vmem:[#allocation2 + $0xc4] sm:$0xff] }
  0x42   : > { %727 = vrot.lane.b32.xlu0 %v8837_v33, %s9875_s18  ;;  %v596_v33 = vld [vmem:[#allocation2 + $0x18b] sm:$0xff] }
  0x43   : > { %362 = vst.msk [vmem:[#allocation2 + $0x1b8] sm:$0xff] %vm305_vm0, %v9692_v29  ;;  %v8850_v37 = vpack.c.bf16 %v596_v33, %v596_v33  ;;  %v8863_v29 = vpack.c.bf16 %v834_v24, %v834_v24  ;;  %v8866_v33 = vpack.c.bf16 %v837_v31, %v837_v31 }
  0x45   : > { %733 = vrot.lane.b32.xlu1 %v8840_v38, %s9875_s18  ;;  %v8849_v38 = vpack.c.bf16 %v595_v34, %v595_v34  ;;  %v8865_v34 = vpack.c.bf16 %v836_v32, %v836_v32 }
  0x46   : > { %731 = vrot.lane.b32.xlu0 %v8839_v41, %s9875_s18  ;;  %v8852_v41 = vpack.c.bf16 %v598_v39, %v598_v39 }
  0x49   : > { %737 = vrot.lane.b32.xlu1 %v8842_v47, %s9875_s18  ;;  %v824_v47 = vld [vmem:[#allocation2 + $0x34] sm:$0xff] }
  0x4a   : > { %735 = vrot.lane.b32.xlu0 %v8841_v51, %s9875_s18  ;;  %v8853_v50 = vpack.c.bf16 %v824_v47, %v824_v47  ;;  %v827_v51 = vld [vmem:[#allocation2 + $0x54] sm:$0xff] }
  0x4b   : > { %v8856_v56 = vpack.c.bf16 %v827_v51, %v827_v51 }
  0x4d   : > { %741 = vrot.lane.b32.xlu1 %v8844_v58, %s9875_s18  ;;  %v8855_v58 = vpack.c.bf16 %v826_v52, %v826_v52 }
  0x4e   : > { %739 = vrot.lane.b32.xlu0 %v8843_v61, %s9875_s18  ;;  %v8858_v61 = vpack.c.bf16 %v829_v59, %v829_v59 }
  0x51   : > { %745 = vrot.lane.b32.xlu1 %v8846_v5, %s9875_s18  ;;  %v830_v5 = vld [vmem:[#allocation2 + $0x7c] sm:$0xff] }
  0x52   : > { %743 = vrot.lane.b32.xlu0 %v8845_v11, %s9875_s18  ;;  %v8859_v10 = vpack.c.bf16 %v830_v5, %v830_v5  ;;  %v833_v11 = vld [vmem:[#allocation2 + $0x9c] sm:$0xff] }
  0x53   : > { %v8862_v18 = vpack.c.bf16 %v833_v11, %v833_v11 }
  0x55   : > { %749 = vrot.lane.b32.xlu1 %v8848_v22, %s9875_s18  ;;  %v8861_v22 = vpack.c.bf16 %v832_v12, %v832_v12 }
  0x56   : > { %747 = vrot.lane.b32.xlu0 %v8847_v28, %s9875_s18  ;;  %v8864_v28 = vpack.c.bf16 %v835_v23, %v835_v23 }
  0x59   : > { %753 = vrot.lane.b32.xlu1 %v8850_v37, %s9875_s18  ;;  %v839_v37 = vld [vmem:[#allocation2 + $0xe4] sm:$0xff] }
  0x5a   : > { %751 = vrot.lane.b32.xlu0 %v8849_v38, %s9875_s18  ;;  %v838_v38 = vld [vmem:[#allocation2 + $0xdc] sm:$0xff]  ;;  %v8868_v39 = vpack.c.bf16 %v839_v37, %v839_v37  ;;  %v855_v37 = vld [vmem:[#allocation2 + $0x1a4] sm:$0xff] }
  0x5b   : > { %v8867_v40 = vpack.c.bf16 %v838_v38, %v838_v38  ;;  %v854_v38 = vld [vmem:[#allocation2 + $0x19c] sm:$0xff] }
  0x5d   : > { %757 = vrot.lane.b32.xlu1 %v8852_v41, %s9875_s18  ;;  %v841_v41 = vld [vmem:[#allocation2 + $0xfc] sm:$0xff] }
  0x5e   : > { %755 = vrot.lane.b32.xlu0 %v8851_v42, %s9875_s18  ;;  %v840_v42 = vld [vmem:[#allocation2 + $0xf4] sm:$0xff]  ;;  %v8870_v46 = vpack.c.bf16 %v841_v41, %v841_v41  ;;  %v8884_v41 = vpack.c.bf16 %v855_v37, %v855_v37  ;;  %s9900_s18 = smov 104  }
  0x5f   : > { %v8869_v47 = vpack.c.bf16 %v840_v42, %v840_v42  ;;  %v8883_v42 = vpack.c.bf16 %v854_v38, %v854_v38 }
  0x61   : > { %954 = vrot.lane.b32.xlu1 %v8854_v48, %s9876_s19  ;;  %v843_v48 = vld [vmem:[#allocation2 + $0x114] sm:$0xff] }
  0x62   : > { %952 = vrot.lane.b32.xlu0 %v8853_v50, %s9876_s19  ;;  %v842_v50 = vld [vmem:[#allocation2 + $0x10c] sm:$0xff]  ;;  %v8872_v51 = vpack.c.bf16 %v843_v48, %v843_v48 }
  0x63   : > { %v8871_v52 = vpack.c.bf16 %v842_v50, %v842_v50 }
  0x65   : > { %958 = vrot.lane.b32.xlu1 %v8856_v56, %s9876_s19  ;;  %v845_v56 = vld [vmem:[#allocation2 + $0x12c] sm:$0xff] }
  0x66   : > { %956 = vrot.lane.b32.xlu0 %v8855_v58, %s9876_s19  ;;  %v844_v58 = vld [vmem:[#allocation2 + $0x124] sm:$0xff]  ;;  %v8874_v59 = vpack.c.bf16 %v845_v56, %v845_v56 }
  0x67   : > { %v8873_v60 = vpack.c.bf16 %v844_v58, %v844_v58 }
  0x69   : > { %962 = vrot.lane.b32.xlu1 %v8858_v61, %s9876_s19  ;;  %v847_v61 = vld [vmem:[#allocation2 + $0x144] sm:$0xff] }
  0x6a   : > { %960 = vrot.lane.b32.xlu0 %v8857_v62, %s9876_s19  ;;  %v846_v62 = vld [vmem:[#allocation2 + $0x13c] sm:$0xff]  ;;  %v8876_v4 = vpack.c.bf16 %v847_v61, %v847_v61 }
  0x6b   : > { %v8875_v5 = vpack.c.bf16 %v846_v62, %v846_v62 }
  0x6d   : > { %966 = vrot.lane.b32.xlu1 %v8860_v6, %s9876_s19  ;;  %v849_v6 = vld [vmem:[#allocation2 + $0x15c] sm:$0xff] }
  0x6e   : > { %964 = vrot.lane.b32.xlu0 %v8859_v10, %s9876_s19  ;;  %v848_v10 = vld [vmem:[#allocation2 + $0x154] sm:$0xff]  ;;  %v8878_v11 = vpack.c.bf16 %v849_v6, %v849_v6 }
  0x6f   : > { %v8877_v12 = vpack.c.bf16 %v848_v10, %v848_v10 }
  0x71   : > { %970 = vrot.lane.b32.xlu1 %v8862_v18, %s9876_s19  ;;  %v851_v18 = vld [vmem:[#allocation2 + $0x174] sm:$0xff] }
  0x72   : > { %968 = vrot.lane.b32.xlu0 %v8861_v22, %s9876_s19  ;;  %v850_v22 = vld [vmem:[#allocation2 + $0x16c] sm:$0xff]  ;;  %v8880_v23 = vpack.c.bf16 %v851_v18, %v851_v18  ;;  %v1344_v18 = vld [vmem:[#allocation2 + $0x83] sm:$0xff] }
  0x73   : > { %v8879_v24 = vpack.c.bf16 %v850_v22, %v850_v22  ;;  %v1343_v22 = vld [vmem:[#allocation2 + $0x7b] sm:$0xff] }
  0x75   : > { %974 = vrot.lane.b32.xlu1 %v8864_v28, %s9876_s19  ;;  %v853_v28 = vld [vmem:[#allocation2 + $0x18c] sm:$0xff] }
  0x76   : > { %972 = vrot.lane.b32.xlu0 %v8863_v29, %s9876_s19  ;;  %v852_v29 = vld [vmem:[#allocation2 + $0x184] sm:$0xff] }
  0x79   : > { %978 = vrot.lane.b32.xlu1 %v8866_v33, %s9876_s19  ;;  %v8882_v33 = vpack.c.bf16 %v853_v28, %v853_v28  ;;  %v10347_v28 = vpack.c.bf16 %v1344_v18, %v1344_v18  ;;  %v1364_v18 = vld [vmem:[#allocation2 + $0x173] sm:$0xff] }
  0x7a   : > { %976 = vrot.lane.b32.xlu0 %v8865_v34, %s9876_s19  ;;  %v8881_v34 = vpack.c.bf16 %v852_v29, %v852_v29  ;;  %v10349_v29 = vpack.c.bf16 %v1343_v22, %v1343_v22  ;;  %v1363_v22 = vld [vmem:[#allocation2 + $0x16b] sm:$0xff] }
  0x7d   : > { %982 = vrot.lane.b32.xlu1 %v8868_v39, %s9876_s19 }
  0x7e   : > { %980 = vrot.lane.b32.xlu0 %v8867_v40, %s9876_s19 }
  0x81   : > { %986 = vrot.lane.b32.xlu1 %v8870_v46, %s9876_s19 }
  0x82   : > { %984 = vrot.lane.b32.xlu0 %v8869_v47, %s9876_s19 }
  0x85   : > { %990 = vrot.lane.b32.xlu1 %v8872_v51, %s9876_s19 }
  0x86   : > { %988 = vrot.lane.b32.xlu0 %v8871_v52, %s9876_s19 }
  0x89   : > { %994 = vrot.lane.b32.xlu1 %v8874_v59, %s9876_s19 }
  0x8a   : > { %992 = vrot.lane.b32.xlu0 %v8873_v60, %s9876_s19  ;;  %v1340_v60 = vld [vmem:[#allocation2 + $0x53] sm:$0xff] }
  0x8d   : > { %998 = vrot.lane.b32.xlu1 %v8876_v4, %s9876_s19  ;;  %v1342_v4 = vld [vmem:[#allocation2 + $0x6b] sm:$0xff] }
  0x8e   : > { %996 = vrot.lane.b32.xlu0 %v8875_v5, %s9876_s19  ;;  %v1341_v5 = vld [vmem:[#allocation2 + $0x63] sm:$0xff] }
  0x91   : > { %1002 = vrot.lane.b32.xlu1 %v8878_v11, %s9876_s19  ;;  %v10337_v11 = vpack.c.bf16 %v1342_v4, %v1342_v4 }
  0x92   : > { %1000 = vrot.lane.b32.xlu0 %v8877_v12, %s9876_s19  ;;  %v10339_v12 = vpack.c.bf16 %v1341_v5, %v1341_v5 }
  0x93   : > { %v700_v31 = vpop.permute.xlu1 %699 }
  0x94   : > { %v696_v32 = vpop.permute.xlu0 %695  ;;  %794 = vst.msk [vmem:[#allocation3 + $0x8] sm:$0xf] %vm791_vm3, %v700_v31  ;;  %v1346_v31 = vld [vmem:[#allocation2 + $0x9b] sm:$0xff] }
  0x95   : > { %792 = vst.msk [vmem:[#allocation3] sm:$0xf] %vm791_vm3, %v696_v32  ;;  %1006 = vrot.lane.b32.xlu1 %v8880_v23, %s9876_s19  ;;  %v1345_v32 = vld [vmem:[#allocation2 + $0x93] sm:$0xff]  ;;  %v10357_v37 = vpack.c.bf16 %v1346_v31, %v1346_v31  ;;  %v10447_v31 = vpack.c.bf16 %v1364_v18, %v1364_v18 }
  0x96   : > { %1004 = vrot.lane.b32.xlu0 %v8879_v24, %s9876_s19  ;;  %v10359_v38 = vpack.c.bf16 %v1345_v32, %v1345_v32  ;;  %v10449_v32 = vpack.c.bf16 %v1363_v22, %v1363_v22  ;;  %v1601_v22 = vld [vmem:[#allocation2 + $0x84] sm:$0xff] }
  0x97   : > { %v702_v39 = vpop.permute.xlu1 %701 }
  0x98   : > { %v698_v40 = vpop.permute.xlu0 %697  ;;  %795 = vst.msk [vmem:[#allocation3 + $0xc] sm:$0xf] %vm791_vm3, %v702_v39  ;;  %v1348_v39 = vld [vmem:[#allocation2 + $0xb3] sm:$0xff] }
  0x99   : > { %793 = vst.msk [vmem:[#allocation3 + $0x4] sm:$0xf] %vm791_vm3, %v698_v40  ;;  %1010 = vrot.lane.b32.xlu1 %v8882_v33, %s9876_s19  ;;  %v1347_v40 = vld [vmem:[#allocation2 + $0xab] sm:$0xff] }
  0x9a   : > { %1008 = vrot.lane.b32.xlu0 %v8881_v34, %s9876_s19 }
  0x9b   : > { %v706_v46 = vpop.permute.xlu1 %705 }
  0x9c   : > { %v704_v47 = vpop.permute.xlu0 %703  ;;  %797 = vst.msk [vmem:[#allocation3 + $0x14] sm:$0xf] %vm791_vm3, %v706_v46  ;;  %v10367_v46 = vpack.c.bf16 %v1348_v39, %v1348_v39 }
  0x9d   : > { %796 = vst.msk [vmem:[#allocation3 + $0x10] sm:$0xf] %vm791_vm3, %v704_v47  ;;  %1014 = vrot.lane.b32.xlu1 %v8884_v41, %s9876_s19  ;;  %v10369_v47 = vpack.c.bf16 %v1347_v40, %v1347_v40 }
  0x9e   : > { %1012 = vrot.lane.b32.xlu0 %v8883_v42, %s9876_s19 }
  0x9f   : > { %v710_v48 = vpop.permute.xlu1 %709 }
  0xa0   : > { %v708_v50 = vpop.permute.xlu0 %707  ;;  %799 = vst.msk [vmem:[#allocation3 + $0x1c] sm:$0xf] %vm791_vm3, %v710_v48  ;;  %v1350_v48 = vld [vmem:[#allocation2 + $0xcb] sm:$0xff] }
  0xa1   : > { %798 = vst.msk [vmem:[#allocation3 + $0x18] sm:$0xf] %vm791_vm3, %v708_v50  ;;  %1212 = vrot.lane.b32.xlu1 %v10038_v49, %s9877_s20  ;;  %v1349_v50 = vld [vmem:[#allocation2 + $0xc3] sm:$0xff] }
  0xa2   : > { %1210 = vrot.lane.b32.xlu0 %v10034_v44, %s9877_s20 }
  0xa3   : > { %v714_v51 = vpop.permute.xlu1 %713 }
  0xa4   : > { %v712_v52 = vpop.permute.xlu0 %711  ;;  %801 = vst.msk [vmem:[#allocation3 + $0x24] sm:$0xf] %vm791_vm3, %v714_v51 }
  0xa5   : > { %800 = vst.msk [vmem:[#allocation3 + $0x20] sm:$0xf] %vm791_vm3, %v712_v52  ;;  %1216 = vrot.lane.b32.xlu1 %v10047_v55, %s9877_s20 }
  0xa6   : > { %1214 = vrot.lane.b32.xlu0 %v10052_v57, %s9877_s20 }
  0xa7   : > { %v718_v56 = vpop.permute.xlu1 %717 }
  0xa8   : > { %v716_v58 = vpop.permute.xlu0 %715  ;;  %803 = vst.msk [vmem:[#allocation3 + $0x2c] sm:$0xf] %vm791_vm3, %v718_v56  ;;  %v10377_v56 = vpack.c.bf16 %v1350_v48, %v1350_v48  ;;  %v232_v48 = vld [vmem:[%s9942_s17 + $0xec] sm:$0x7] }
  0xa9   : > { %802 = vst.msk [vmem:[#allocation3 + $0x28] sm:$0xf] %vm791_vm3, %v716_v58  ;;  %1220 = vrot.lane.b32.xlu1 %v10060_v63, %s9877_s20  ;;  %v10379_v58 = vpack.c.bf16 %v1349_v50, %v1349_v50 }
  0xaa   : > { %1218 = vrot.lane.b32.xlu0 %v10062_v0, %s9877_s20 }
  0xab   : > { %v722_v44 = vpop.permute.xlu1 %721 }
  0xac   : > { %v720_v49 = vpop.permute.xlu0 %719  ;;  %805 = vst.msk [vmem:[#allocation3 + $0x34] sm:$0xf] %vm791_vm3, %v722_v44  ;;  %v1352_v44 = vld [vmem:[#allocation2 + $0xe3] sm:$0xff] }
  0xad   : > { %804 = vst.msk [vmem:[#allocation3 + $0x30] sm:$0xf] %vm791_vm3, %v720_v49  ;;  %1224 = vrot.lane.b32.xlu1 %v10064_v1, %s9877_s20  ;;  %v1351_v49 = vld [vmem:[#allocation2 + $0xdb] sm:$0xff] }
  0xae   : > { %1222 = vrot.lane.b32.xlu0 %v10070_v7, %s9877_s20 }
  0xaf   : > { %v726_v55 = vpop.permute.xlu1 %725 }
  0xb0   : > { %v724_v57 = vpop.permute.xlu0 %723  ;;  %807 = vst.msk [vmem:[#allocation3 + $0x3c] sm:$0xf] %vm791_vm3, %v726_v55 }
  0xb1   : > { %806 = vst.msk [vmem:[#allocation3 + $0x38] sm:$0xf] %vm791_vm3, %v724_v57  ;;  %1228 = vrot.lane.b32.xlu1 %v10072_v8, %s9877_s20 }
  0xb2   : > { %1226 = vrot.lane.b32.xlu0 %v10074_v9, %s9877_s20 }
  0xb3   : > { %v730_v63 = vpop.permute.xlu1 %729 }
  0xb4   : > { %v728_v0 = vpop.permute.xlu0 %727  ;;  %809 = vst.msk [vmem:[#allocation3 + $0x44] sm:$0xf] %vm791_vm3, %v730_v63  ;;  %v10387_v63 = vpack.c.bf16 %v1352_v44, %v1352_v44 }
  0xb5   : > { %808 = vst.msk [vmem:[#allocation3 + $0x40] sm:$0xf] %vm791_vm3, %v728_v0  ;;  %1232 = vrot.lane.b32.xlu1 %v10084_v13, %s9877_s20  ;;  %v10389_v0 = vpack.c.bf16 %v1351_v49, %v1351_v49  ;;  %v1368_v49 = vld [vmem:[#allocation2 + $0x1a3] sm:$0xff] }
  0xb6   : > { %1230 = vrot.lane.b32.xlu0 %v10086_v14, %s9877_s20 }
  0xb7   : > { %v734_v1 = vpop.permute.xlu1 %733 }
  0xb8   : > { %v732_v7 = vpop.permute.xlu0 %731  ;;  %811 = vst.msk [vmem:[#allocation3 + $0x4c] sm:$0xf] %vm791_vm3, %v734_v1  ;;  %v1354_v1 = vld [vmem:[#allocation2 + $0xfb] sm:$0xff] }
  0xb9   : > { %810 = vst.msk [vmem:[#allocation3 + $0x48] sm:$0xf] %vm791_vm3, %v732_v7  ;;  %1236 = vrot.lane.b32.xlu1 %v10088_v15, %s9877_s20  ;;  %v1353_v7 = vld [vmem:[#allocation2 + $0xf3] sm:$0xff] }
  0xba   : > { %1234 = vrot.lane.b32.xlu0 %v10096_v19, %s9877_s20 }
  0xbb   : > { %v738_v8 = vpop.permute.xlu1 %737 }
  0xbc   : > { %v736_v9 = vpop.permute.xlu0 %735  ;;  %813 = vst.msk [vmem:[#allocation3 + $0x54] sm:$0xf] %vm791_vm3, %v738_v8 }
  0xbd   : > { %812 = vst.msk [vmem:[#allocation3 + $0x50] sm:$0xf] %vm791_vm3, %v736_v9  ;;  %1240 = vrot.lane.b32.xlu1 %v10098_v20, %s9877_s20 }
  0xbe   : > { %1238 = vrot.lane.b32.xlu0 %v10100_v21, %s9877_s20 }
  0xbf   : > { %v742_v13 = vpop.permute.xlu1 %741 }
  0xc0   : > { %v740_v14 = vpop.permute.xlu0 %739  ;;  %815 = vst.msk [vmem:[#allocation3 + $0x5c] sm:$0xf] %vm791_vm3, %v742_v13  ;;  %v10397_v13 = vpack.c.bf16 %v1354_v1, %v1354_v1 }
  0xc1   : > { %814 = vst.msk [vmem:[#allocation3 + $0x58] sm:$0xf] %vm791_vm3, %v740_v14  ;;  %1244 = vrot.lane.b32.xlu1 %v10108_v25, %s9877_s20  ;;  %v10399_v14 = vpack.c.bf16 %v1353_v7, %v1353_v7  ;;  %v10472_v7 = vpack.c.bf16 %v1368_v49, %v1368_v49  ;;  %v1605_v49 = vld [vmem:[#allocation2 + $0xb4] sm:$0xff] }
  0xc2   : > { %1242 = vrot.lane.b32.xlu0 %v10110_v26, %s9877_s20 }
  0xc3   : > { %v746_v15 = vpop.permute.xlu1 %745 }
  0xc4   : > { %v744_v19 = vpop.permute.xlu0 %743  ;;  %817 = vst.msk [vmem:[#allocation3 + $0x64] sm:$0xf] %vm791_vm3, %v746_v15  ;;  %v1356_v15 = vld [vmem:[#allocation2 + $0x113] sm:$0xff] }
  0xc5   : > { %816 = vst.msk [vmem:[#allocation3 + $0x60] sm:$0xf] %vm791_vm3, %v744_v19  ;;  %1248 = vrot.lane.b32.xlu1 %v10112_v27, %s9877_s20  ;;  %v1355_v19 = vld [vmem:[#allocation2 + $0x10b] sm:$0xff] }
  0xc6   : > { %1246 = vrot.lane.b32.xlu0 %v10122_v30, %s9877_s20 }
  0xc7   : > { %v750_v20 = vpop.permute.xlu1 %749 }
  0xc8   : > { %v748_v21 = vpop.permute.xlu0 %747  ;;  %819 = vst.msk [vmem:[#allocation3 + $0x6c] sm:$0xf] %vm791_vm3, %v750_v20 }
  0xc9   : > { %818 = vst.msk [vmem:[#allocation3 + $0x68] sm:$0xf] %vm791_vm3, %v748_v21  ;;  %1252 = vrot.lane.b32.xlu1 %v10132_v35, %s9877_s20 }
  0xca   : > { %1250 = vrot.lane.b32.xlu0 %v10134_v36, %s9877_s20 }
  0xcb   : > { %v754_v25 = vpop.permute.xlu1 %753 }
  0xcc   : > { %v752_v26 = vpop.permute.xlu0 %751  ;;  %821 = vst.msk [vmem:[#allocation3 + $0x74] sm:$0xf] %vm791_vm3, %v754_v25  ;;  %v10407_v25 = vpack.c.bf16 %v1356_v15, %v1356_v15  ;;  %v1369_v15 = vld [vmem:[#allocation2 + $0x1b3] sm:$0xff] }
  0xcd   : > { %820 = vst.msk [vmem:[#allocation3 + $0x70] sm:$0xf] %vm791_vm3, %v752_v26  ;;  %1256 = vrot.lane.b32.xlu1 %v10144_v43, %s9877_s20  ;;  %v1113_v43 = vld [vmem:[#allocation2 + $0x1ba] sm:$0xff]  ;;  %v10409_v26 = vpack.c.bf16 %v1355_v19, %v1355_v19 }
  0xce   : > { %1254 = vrot.lane.b32.xlu0 %v10146_v45, %s9877_s20  ;;  %v1112_v45 = vld [vmem:[#allocation2 + $0x1b2] sm:$0xff] }
  0xcf   : > { %v758_v27 = vpop.permute.xlu1 %757 }
  0xd0   : > { %v756_v30 = vpop.permute.xlu0 %755  ;;  %823 = vst.msk [vmem:[#allocation3 + $0x7c] sm:$0xf] %vm791_vm3, %v758_v27  ;;  %v1358_v27 = vld [vmem:[#allocation2 + $0x12b] sm:$0xff] }
  0xd1   : > { %822 = vst.msk [vmem:[#allocation3 + $0x78] sm:$0xf] %vm791_vm3, %v756_v30  ;;  %1260 = vrot.lane.b32.xlu1 %v10154_v53, %s9877_s20  ;;  %v1357_v30 = vld [vmem:[#allocation2 + $0x123] sm:$0xff]  ;;  %vm4393_vm3 = vcmask 519648  }
  0xd2   : > { %1258 = vrot.lane.b32.xlu0 %v10156_v54, %s9877_s20  ;;  %v10323_v54 = vpack.c.bf16 %v1113_v43, %v1113_v43  ;;  %v10417_v43 = vpack.c.bf16 %v1358_v27, %v1358_v27  ;;  %v10484_v27 = vpack.c.bf16 %v1369_v15, %v1369_v15 }
  0xd3   : > { %v955_v35 = vpop.permute.xlu1 %954 }
  0xd4   : > { %v953_v36 = vpop.permute.xlu0 %952  ;;  %1050 = vst.msk [vmem:[#allocation3 + $0x4] sm:$0xf] %vm1048_vm4, %v955_v35 }
  0xd5   : > { %1049 = vst.msk [vmem:[#allocation3] sm:$0xf] %vm1048_vm4, %v953_v36  ;;  %1264 = vrot.lane.b32.xlu1 %v10164_v2, %s9877_s20  ;;  %v10325_v2 = vpack.c.bf16 %v1112_v45, %v1112_v45  ;;  %v10419_v45 = vpack.c.bf16 %v1357_v30, %v1357_v30  ;;  %v1597_v30 = vld [vmem:[#allocation2 + $0x54] sm:$0xff] }
  0xd6   : > { %1262 = vrot.lane.b32.xlu0 %v10166_v3, %s9877_s20  ;;  %v1339_v3 = vld [vmem:[#allocation2 + $0x4b] sm:$0xff] }
  0xd7   : > { %v959_v59 = vpop.permute.xlu1 %958 }
  0xd8   : > { %v957_v53 = vpop.permute.xlu0 %956  ;;  %1052 = vst.msk [vmem:[#allocation3 + $0xc] sm:$0xf] %vm1048_vm4, %v959_v59  ;;  %v1360_v59 = vld [vmem:[#allocation2 + $0x143] sm:$0xff] }
  0xd9   : > { %1051 = vst.msk [vmem:[#allocation3 + $0x8] sm:$0xf] %vm1048_vm4, %v957_v53  ;;  %1268 = vrot.lane.b32.xlu1 %v10174_v16, %s9877_s20  ;;  %v8918_v16 = vpack.c.bf16 %v1340_v60, %v1340_v60  ;;  %v1359_v53 = vld [vmem:[#allocation2 + $0x13b] sm:$0xff] }
  0xda   : > { %1266 = vrot.lane.b32.xlu0 %v10176_v17, %s9877_s20  ;;  %v8917_v17 = vpack.c.bf16 %v1339_v3, %v1339_v3 }
  0xdb   : > { %v963_v61 = vpop.permute.xlu1 %962 }
  0xdc   : > { %v961_v62 = vpop.permute.xlu0 %960  ;;  %1054 = vst.msk [vmem:[#allocation3 + $0x14] sm:$0xf] %vm1048_vm4, %v963_v61  ;;  %v10427_v61 = vpack.c.bf16 %v1360_v59, %v1360_v59 }
  0xdd   : > { %1053 = vst.msk [vmem:[#allocation3 + $0x10] sm:$0xf] %vm1048_vm4, %v961_v62  ;;  %1272 = vrot.lane.b32.xlu1 %v10323_v54, %s9877_s20  ;;  %v10429_v62 = vpack.c.bf16 %v1359_v53, %v1359_v53  ;;  %v8950_v53 = vpack.c.bf16 %v1597_v30, %v1597_v30 }
  0xde   : > { %1270 = vrot.lane.b32.xlu0 %v10325_v2, %s9877_s20 }
  0xdf   : > { %v967_v6 = vpop.permute.xlu1 %966 }
  0xe0   : > { %v965_v10 = vpop.permute.xlu0 %964  ;;  %1056 = vst.msk [vmem:[#allocation3 + $0x1c] sm:$0xf] %vm1048_vm4, %v967_v6 }
  0xe1   : > { %1055 = vst.msk [vmem:[#allocation3 + $0x18] sm:$0xf] %vm1048_vm4, %v965_v10  ;;  %1469 = vrot.lane.b32.xlu1 %v8918_v16, %s9878_s21  ;;  %v1362_v16 = vld [vmem:[#allocation2 + $0x15b] sm:$0xff] }
  0xe2   : > { %1467 = vrot.lane.b32.xlu0 %v8917_v17, %s9878_s21  ;;  %v1361_v17 = vld [vmem:[#allocation2 + $0x153] sm:$0xff]  ;;  %v10437_v6 = vpack.c.bf16 %v1362_v16, %v1362_v16  ;;  %v1598_v16 = vld [vmem:[#allocation2 + $0x64] sm:$0xff] }
  0xe3   : > { %v971_v23 = vpop.permute.xlu1 %970  ;;  %v10439_v10 = vpack.c.bf16 %v1361_v17, %v1361_v17  ;;  %v10498_v18 = vpack.c.bf16 %v1598_v16, %v1598_v16 }
  0xe4   : > { %v969_v24 = vpop.permute.xlu0 %968  ;;  %1058 = vst.msk [vmem:[#allocation3 + $0x24] sm:$0xf] %vm1048_vm4, %v971_v23 }
  0xe5   : > { %1057 = vst.msk [vmem:[#allocation3 + $0x20] sm:$0xf] %vm1048_vm4, %v969_v24  ;;  %1473 = vrot.lane.b32.xlu1 %v10337_v11, %s9878_s21 }
  0xe6   : > { %1471 = vrot.lane.b32.xlu0 %v10339_v12, %s9878_s21 }
  0xe7   : > { %v975_v33 = vpop.permute.xlu1 %974 }
  0xe8   : > { %v973_v34 = vpop.permute.xlu0 %972  ;;  %1060 = vst.msk [vmem:[#allocation3 + $0x2c] sm:$0xf] %vm1048_vm4, %v975_v33  ;;  %v1366_v33 = vld [vmem:[#allocation2 + $0x18b] sm:$0xff] }
  0xe9   : > { %1059 = vst.msk [vmem:[#allocation3 + $0x28] sm:$0xf] %vm1048_vm4, %v973_v34  ;;  %1477 = vrot.lane.b32.xlu1 %v10347_v28, %s9878_s21  ;;  %v1365_v34 = vld [vmem:[#allocation2 + $0x183] sm:$0xff] }
  0xea   : > { %1475 = vrot.lane.b32.xlu0 %v10349_v29, %s9878_s21  ;;  %v10461_v50 = vpack.c.bf16 %v1365_v34, %v1365_v34  ;;  %v10506_v34 = vpack.c.bf16 %v1601_v22, %v1601_v22  ;;  %v1611_v22 = vld [vmem:[#allocation2 + $0xfc] sm:$0xff] }
  0xeb   : > { %v979_v41 = vpop.permute.xlu1 %978 }
  0xec   : > { %v977_v42 = vpop.permute.xlu0 %976  ;;  %1062 = vst.msk [vmem:[#allocation3 + $0x34] sm:$0xf] %vm1048_vm4, %v979_v41  ;;  %v10453_v41 = vpack.c.bf16 %v1366_v33, %v1366_v33 }
  0xed   : > { %1061 = vst.msk [vmem:[#allocation3 + $0x30] sm:$0xf] %vm1048_vm4, %v977_v42  ;;  %1481 = vrot.lane.b32.xlu1 %v10357_v37, %s9878_s21  ;;  %v231_v42 = vld [vmem:[%s9942_s17 + $0xe4] sm:$0xff]  }
  0xee   : > { %1479 = vrot.lane.b32.xlu0 %v10359_v38, %s9878_s21  ;;  %v296_v44 = vunpack.c.l.bf16 %v231_v42 }
  0xef   : > { %v983_v51 = vpop.permute.xlu1 %982 }
  0xf0   : > { %v981_v52 = vpop.permute.xlu0 %980  ;;  %1064 = vst.msk [vmem:[#allocation3 + $0x3c] sm:$0xf] %vm1048_vm4, %v983_v51  ;;  %v297_v51 = vunpack.c.h.bf16 %v231_v42  ;;  %v1602_v42 = vld [vmem:[#allocation2 + $0x94] sm:$0xff] }
  0xf1   : > { %1063 = vst.msk [vmem:[#allocation3 + $0x38] sm:$0xf] %vm1048_vm4, %v981_v52  ;;  %1485 = vrot.lane.b32.xlu1 %v10367_v46, %s9878_s21  ;;  %v298_v52 = vunpack.c.l.bf16 %v232_v48 }
  0xf2   : > { %1483 = vrot.lane.b32.xlu0 %v10369_v47, %s9878_s21  ;;  %365 = vst.msk [vmem:[#allocation2 + $0x1d0] sm:$0xff] %vm305_vm0, %v297_v51  ;;  %364 = vst.msk [vmem:[#allocation2 + $0x1c8] sm:$0xff] %vm305_vm0, %v296_v44  ;;  %v10518_v44 = vpack.c.bf16 %v1602_v42, %v1602_v42 }
  0xf3   : > { %v987_v55 = vpop.permute.xlu1 %986  ;;  %366 = vst.msk [vmem:[#allocation2 + $0x1d8] sm:$0x3f] %vm308_vm1, %v298_v52 }
  0xf4   : > { %v985_v57 = vpop.permute.xlu0 %984  ;;  %1066 = vst.msk [vmem:[#allocation3 + $0x44] sm:$0xf] %vm1048_vm4, %v987_v55  ;;  %v1367_v55 = vld [vmem:[#allocation2 + $0x19b] sm:$0xff] }
  0xf5   : > { %1065 = vst.msk [vmem:[#allocation3 + $0x40] sm:$0xf] %vm1048_vm4, %v985_v57  ;;  %1489 = vrot.lane.b32.xlu1 %v10377_v56, %s9878_s21 }
  0xf6   : > { %1487 = vrot.lane.b32.xlu0 %v10379_v58, %s9878_s21 }
  0xf7   : > { %v991_v8 = vpop.permute.xlu1 %990 }
  0xf8   : > { %v989_v9 = vpop.permute.xlu0 %988  ;;  %1068 = vst.msk [vmem:[#allocation3 + $0x4c] sm:$0xf] %vm1048_vm4, %v991_v8  ;;  %v10474_v8 = vpack.c.bf16 %v1367_v55, %v1367_v55  ;;  %v1604_v55 = vld [vmem:[#allocation2 + $0xac] sm:$0xff] }
  0xf9   : > { %1067 = vst.msk [vmem:[#allocation3 + $0x48] sm:$0xf] %vm1048_vm4, %v989_v9  ;;  %1493 = vrot.lane.b32.xlu1 %v10387_v63, %s9878_s21  ;;  %v1370_v9 = vld [vmem:[#allocation2 + $0x1bb] sm:$0xff]  ;;  %v10528_v15 = vpack.c.bf16 %v1604_v55, %v1604_v55 }
  0xfa   : > { %1491 = vrot.lane.b32.xlu0 %v10389_v0, %s9878_s21 }
  0xfb   : > { %v995_v20 = vpop.permute.xlu1 %994 }
  0xfc   : > { %v993_v21 = vpop.permute.xlu0 %992  ;;  %1070 = vst.msk [vmem:[#allocation3 + $0x54] sm:$0xf] %vm1048_vm4, %v995_v20 }
  0xfd   : > { %1069 = vst.msk [vmem:[#allocation3 + $0x50] sm:$0xf] %vm1048_vm4, %v993_v21  ;;  %1497 = vrot.lane.b32.xlu1 %v10397_v13, %s9878_s21  ;;  %v10482_v21 = vpack.c.bf16 %v1370_v9, %v1370_v9  ;;  %v10526_v9 = vpack.c.bf16 %v1605_v49, %v1605_v49 }
  0xfe   : > { %1495 = vrot.lane.b32.xlu0 %v10399_v14, %s9878_s21 }
  0xff   : > { %v999_v35 = vpop.permute.xlu1 %998 }
 0x100   : > { %v997_v36 = vpop.permute.xlu0 %996  ;;  %1072 = vst.msk [vmem:[#allocation3 + $0x5c] sm:$0xf] %vm1048_vm4, %v999_v35  ;;  %v1596_v35 = vld [vmem:[#allocation2 + $0x4c] sm:$0xff] }
 0x101   : > { %1071 = vst.msk [vmem:[#allocation3 + $0x58] sm:$0xf] %vm1048_vm4, %v997_v36  ;;  %1501 = vrot.lane.b32.xlu1 %v10407_v25, %s9878_s21 }
 0x102   : > { %1499 = vrot.lane.b32.xlu0 %v10409_v26, %s9878_s21 }
 0x103   : > { %v1003_v60 = vpop.permute.xlu1 %1002 }
 0x104   : > { %v1001_v3 = vpop.permute.xlu0 %1000  ;;  %1074 = vst.msk [vmem:[#allocation3 + $0x64] sm:$0xf] %vm1048_vm4, %v1003_v60  ;;  %v8949_v60 = vpack.c.bf16 %v1596_v35, %v1596_v35 }
 0x105   : > { %1073 = vst.msk [vmem:[#allocation3 + $0x60] sm:$0xf] %vm1048_vm4, %v1001_v3  ;;  %1505 = vrot.lane.b32.xlu1 %v10417_v43, %s9878_s21  ;;  %v1599_v3 = vld [vmem:[#allocation2 + $0x6c] sm:$0xff] }
 0x106   : > { %1503 = vrot.lane.b32.xlu0 %v10419_v45, %s9878_s21 }
 0x107   : > { %v1007_v4 = vpop.permute.xlu1 %1006 }
 0x108   : > { %v1005_v5 = vpop.permute.xlu0 %1004  ;;  %1076 = vst.msk [vmem:[#allocation3 + $0x6c] sm:$0xf] %vm1048_vm4, %v1007_v4 }
 0x109   : > { %1075 = vst.msk [vmem:[#allocation3 + $0x68] sm:$0xf] %vm1048_vm4, %v1005_v5  ;;  %1509 = vrot.lane.b32.xlu1 %v10427_v61, %s9878_s21  ;;  %v10496_v5 = vpack.c.bf16 %v1599_v3, %v1599_v3 }
 0x10a   : > { %1507 = vrot.lane.b32.xlu0 %v10429_v62, %s9878_s21 }
 0x10b   : > { %v1011_v23 = vpop.permute.xlu1 %1010 }
 0x10c   : > { %v1009_v24 = vpop.permute.xlu0 %1008  ;;  %1078 = vst.msk [vmem:[#allocation3 + $0x74] sm:$0xf] %vm1048_vm4, %v1011_v23  ;;  %v1600_v23 = vld [vmem:[#allocation2 + $0x7c] sm:$0xff] }
 0x10d   : > { %1077 = vst.msk [vmem:[#allocation3 + $0x70] sm:$0xf] %vm1048_vm4, %v1009_v24  ;;  %1513 = vrot.lane.b32.xlu1 %v10437_v6, %s9878_s21 }
 0x10e   : > { %1511 = vrot.lane.b32.xlu0 %v10439_v10, %s9878_s21 }
 0x10f   : > { %v1015_v39 = vpop.permute.xlu1 %1014 }
 0x110   : > { %v1013_v40 = vpop.permute.xlu0 %1012  ;;  %1080 = vst.msk [vmem:[#allocation3 + $0x7c] sm:$0xf] %vm1048_vm4, %v1015_v39  ;;  %v10508_v39 = vpack.c.bf16 %v1600_v23, %v1600_v23  ;;  %v1610_v23 = vld [vmem:[#allocation2 + $0xf4] sm:$0xff] }
 0x111   : > { %1079 = vst.msk [vmem:[#allocation3 + $0x78] sm:$0xf] %vm1048_vm4, %v1013_v40  ;;  %1517 = vrot.lane.b32.xlu1 %v10447_v31, %s9878_s21  ;;  %v1603_v40 = vld [vmem:[#allocation2 + $0x9c] sm:$0xff]  ;;  %v10558_v42 = vpack.c.bf16 %v1610_v23, %v1610_v23  ;;  %vm4650_vm4 = vcmask 552448  }
 0x112   : > { %1515 = vrot.lane.b32.xlu0 %v10449_v32, %s9878_s21  ;;  %v10516_v52 = vpack.c.bf16 %v1603_v40, %v1603_v40  ;;  %v10556_v40 = vpack.c.bf16 %v1611_v22, %v1611_v22 }
 0x113   : > { %v1213_v57 = vpop.permute.xlu1 %1212 }
 0x114   : > { %v1211_v1 = vpop.permute.xlu0 %1210  ;;  %1308 = vst.msk [vmem:[#allocation3 + $0x4] sm:$0xf] %vm1306_vm5, %v1213_v57 }
 0x115   : > { %1307 = vst.msk [vmem:[#allocation3] sm:$0xf] %vm1306_vm5, %v1211_v1  ;;  %1521 = vrot.lane.b32.xlu1 %v10453_v41, %s9878_s21 }
 0x116   : > { %1519 = vrot.lane.b32.xlu0 %v10461_v50, %s9878_s21 }
 0x117   : > { %v1217_v19 = vpop.permute.xlu1 %1216 }
 0x118   : > { %v1215_v20 = vpop.permute.xlu0 %1214  ;;  %1310 = vst.msk [vmem:[#allocation3 + $0xc] sm:$0xf] %vm1306_vm5, %v1217_v19  ;;  %v1607_v19 = vld [vmem:[#allocation2 + $0xcc] sm:$0xff] }
 0x119   : > { %1309 = vst.msk [vmem:[#allocation3 + $0x8] sm:$0xf] %vm1306_vm5, %v1215_v20  ;;  %1525 = vrot.lane.b32.xlu1 %v10472_v7, %s9878_s21  ;;  %v1606_v20 = vld [vmem:[#allocation2 + $0xc4] sm:$0xff] }
 0x11a   : > { %1523 = vrot.lane.b32.xlu0 %v10474_v8, %s9878_s21 }
 0x11b   : > { %v1221_v36 = vpop.permute.xlu1 %1220 }
 0x11c   : > { %v1219_v59 = vpop.permute.xlu0 %1218  ;;  %1312 = vst.msk [vmem:[#allocation3 + $0x14] sm:$0xf] %vm1306_vm5, %v1221_v36  ;;  %v10536_v36 = vpack.c.bf16 %v1607_v19, %v1607_v19  ;;  %v1615_v19 = vld [vmem:[#allocation2 + $0x12c] sm:$0xff] }
 0x11d   : > { %1311 = vst.msk [vmem:[#allocation3 + $0x10] sm:$0xf] %vm1306_vm5, %v1219_v59  ;;  %1529 = vrot.lane.b32.xlu1 %v10482_v21, %s9878_s21  ;;  %v10538_v59 = vpack.c.bf16 %v1606_v20, %v1606_v20  ;;  %v1614_v20 = vld [vmem:[#allocation2 + $0x124] sm:$0xff] }
 0x11e   : > { %1527 = vrot.lane.b32.xlu0 %v10484_v27, %s9878_s21 }
 0x11f   : > { %v1225_v17 = vpop.permute.xlu1 %1224 }
 0x120   : > { %v1223_v4 = vpop.permute.xlu0 %1222  ;;  %1314 = vst.msk [vmem:[#allocation3 + $0x1c] sm:$0xf] %vm1306_vm5, %v1225_v17 }
 0x121   : > { %1313 = vst.msk [vmem:[#allocation3 + $0x18] sm:$0xf] %vm1306_vm5, %v1223_v4  ;;  %1726 = vrot.lane.b32.xlu1 %v8950_v53, %s9879_s22  ;;  %v1609_v53 = vld [vmem:[#allocation2 + $0xe4] sm:$0xff] }
 0x122   : > { %1724 = vrot.lane.b32.xlu0 %v8949_v60, %s9879_s22  ;;  %v1608_v60 = vld [vmem:[#allocation2 + $0xdc] sm:$0xff]  ;;  %v10546_v17 = vpack.c.bf16 %v1609_v53, %v1609_v53  ;;  %v10576_v53 = vpack.c.bf16 %v1615_v19, %v1615_v19 }
 0x123   : > { %v1229_v24 = vpop.permute.xlu1 %1228  ;;  %v10548_v4 = vpack.c.bf16 %v1608_v60, %v1608_v60  ;;  %v10578_v60 = vpack.c.bf16 %v1614_v20, %v1614_v20 }
 0x124   : > { %v1227_v33 = vpop.permute.xlu0 %1226  ;;  %1316 = vst.msk [vmem:[#allocation3 + $0x24] sm:$0xf] %vm1306_vm5, %v1229_v24 }
 0x125   : > { %1315 = vst.msk [vmem:[#allocation3 + $0x20] sm:$0xf] %vm1306_vm5, %v1227_v33  ;;  %1730 = vrot.lane.b32.xlu1 %v10496_v5, %s9879_s22 }
 0x126   : > { %1728 = vrot.lane.b32.xlu0 %v10498_v18, %s9879_s22 }
 0x127   : > { %v1233_v48 = vpop.permute.xlu1 %1232 }
 0x128   : > { %v1231_v51 = vpop.permute.xlu0 %1230  ;;  %1318 = vst.msk [vmem:[#allocation3 + $0x2c] sm:$0xf] %vm1306_vm5, %v1233_v48  ;;  %v1613_v48 = vld [vmem:[#allocation2 + $0x114] sm:$0xff] }
 0x129   : > { %1317 = vst.msk [vmem:[#allocation3 + $0x28] sm:$0xf] %vm1306_vm5, %v1231_v51  ;;  %1734 = vrot.lane.b32.xlu1 %v10506_v34, %s9879_s22  ;;  %v1612_v51 = vld [vmem:[#allocation2 + $0x10c] sm:$0xff] }
 0x12a   : > { %1732 = vrot.lane.b32.xlu0 %v10508_v39, %s9879_s22 }
 0x12b   : > { %v1237_v57 = vpop.permute.xlu1 %1236 }
 0x12c   : > { %v1235_v1 = vpop.permute.xlu0 %1234  ;;  %1320 = vst.msk [vmem:[#allocation3 + $0x34] sm:$0xf] %vm1306_vm5, %v1237_v57  ;;  %v10566_v57 = vpack.c.bf16 %v1613_v48, %v1613_v48  ;;  %v1619_v48 = vld [vmem:[#allocation2 + $0x15c] sm:$0xff] }
 0x12d   : > { %1319 = vst.msk [vmem:[#allocation3 + $0x30] sm:$0xf] %vm1306_vm5, %v1235_v1  ;;  %1738 = vrot.lane.b32.xlu1 %v10516_v52, %s9879_s22  ;;  %v10568_v1 = vpack.c.bf16 %v1612_v51, %v1612_v51  ;;  %v1618_v51 = vld [vmem:[#allocation2 + $0x154] sm:$0xff]  ;;  %v10596_v19 = vpack.c.bf16 %v1619_v48, %v1619_v48  ;;  %v1623_v48 = vld [vmem:[#allocation2 + $0x18c] sm:$0xff] }
 0x12e   : > { %1736 = vrot.lane.b32.xlu0 %v10518_v44, %s9879_s22  ;;  %v10598_v20 = vpack.c.bf16 %v1618_v51, %v1618_v51  ;;  %v1622_v51 = vld [vmem:[#allocation2 + $0x184] sm:$0xff] }
 0x12f   : > { %v1241_v30 = vpop.permute.xlu1 %1240  ;;  %12999 = vst [vmem:[#allocation6_spill] sm:$0xff] %v10596_v19 }
 0x130   : > { %v1239_v35 = vpop.permute.xlu0 %1238  ;;  %1322 = vst.msk [vmem:[#allocation3 + $0x3c] sm:$0xf] %vm1306_vm5, %v1241_v30  ;;  %13000 = vst [vmem:[#allocation7_spill] sm:$0xff] %v10598_v20 }
 0x131   : > { %1321 = vst.msk [vmem:[#allocation3 + $0x38] sm:$0xf] %vm1306_vm5, %v1239_v35  ;;  %1742 = vrot.lane.b32.xlu1 %v10526_v9, %s9879_s22 }
 0x132   : > { %1740 = vrot.lane.b32.xlu0 %v10528_v15, %s9879_s22 }
 0x133   : > { %v1245_v3 = vpop.permute.xlu1 %1244 }
 0x134   : > { %v1243_v16 = vpop.permute.xlu0 %1242  ;;  %1324 = vst.msk [vmem:[#allocation3 + $0x44] sm:$0xf] %vm1306_vm5, %v1245_v3  ;;  %v1617_v3 = vld [vmem:[#allocation2 + $0x144] sm:$0xff] }
 0x135   : > { %1323 = vst.msk [vmem:[#allocation3 + $0x40] sm:$0xf] %vm1306_vm5, %v1243_v16  ;;  %1746 = vrot.lane.b32.xlu1 %v10536_v36, %s9879_s22  ;;  %v1616_v16 = vld [vmem:[#allocation2 + $0x13c] sm:$0xff] }
 0x136   : > { %1744 = vrot.lane.b32.xlu0 %v10538_v59, %s9879_s22 }
 0x137   : > { %v1249_v24 = vpop.permute.xlu1 %1248 }
 0x138   : > { %v1247_v33 = vpop.permute.xlu0 %1246  ;;  %1326 = vst.msk [vmem:[#allocation3 + $0x4c] sm:$0xf] %vm1306_vm5, %v1249_v24  ;;  %v10586_v24 = vpack.c.bf16 %v1617_v3, %v1617_v3 }
 0x139   : > { %1325 = vst.msk [vmem:[#allocation3 + $0x48] sm:$0xf] %vm1306_vm5, %v1247_v33  ;;  %1750 = vrot.lane.b32.xlu1 %v10546_v17, %s9879_s22  ;;  %v10588_v33 = vpack.c.bf16 %v1616_v16, %v1616_v16 }
 0x13a   : > { %1748 = vrot.lane.b32.xlu0 %v10548_v4, %s9879_s22  ;;  %12997 = vst [vmem:[#allocation4_spill] sm:$0xff] %v10586_v24 }
 0x13b   : > { %v1253_v49 = vpop.permute.xlu1 %1252  ;;  %12998 = vst [vmem:[#allocation5_spill] sm:$0xff] %v10588_v33 }
 0x13c   : > { %v1251_v55 = vpop.permute.xlu0 %1250  ;;  %1328 = vst.msk [vmem:[#allocation3 + $0x54] sm:$0xf] %vm1306_vm5, %v1253_v49 }
 0x13d   : > { %1327 = vst.msk [vmem:[#allocation3 + $0x50] sm:$0xf] %vm1306_vm5, %v1251_v55  ;;  %1754 = vrot.lane.b32.xlu1 %v10556_v40, %s9879_s22 }
 0x13e   : > { %1752 = vrot.lane.b32.xlu0 %v10558_v42, %s9879_s22 }
 0x13f   : > { %v1257_v30 = vpop.permute.xlu1 %1256 }
 0x140   : > { %v1255_v35 = vpop.permute.xlu0 %1254  ;;  %1330 = vst.msk [vmem:[#allocation3 + $0x5c] sm:$0xf] %vm1306_vm5, %v1257_v30  ;;  %v1621_v30 = vld [vmem:[#allocation2 + $0x174] sm:$0xff] }
 0x141   : > { %1329 = vst.msk [vmem:[#allocation3 + $0x58] sm:$0xf] %vm1306_vm5, %v1255_v35  ;;  %1758 = vrot.lane.b32.xlu1 %v10566_v57, %s9879_s22  ;;  %v1620_v35 = vld [vmem:[#allocation2 + $0x16c] sm:$0xff] }
 0x142   : > { %1756 = vrot.lane.b32.xlu0 %v10568_v1, %s9879_s22 }
 0x143   : > { %v1261_v22 = vpop.permute.xlu1 %1260 }
 0x144   : > { %v1259_v23 = vpop.permute.xlu0 %1258  ;;  %1332 = vst.msk [vmem:[#allocation3 + $0x64] sm:$0xf] %vm1306_vm5, %v1261_v22  ;;  %v10606_v22 = vpack.c.bf16 %v1621_v30, %v1621_v30  ;;  %v10618_v30 = vpack.c.bf16 %v1622_v51, %v1622_v51  ;;  %v1627_v51 = vld [vmem:[#allocation2 + $0x1bc] sm:$0xff] }
 0x145   : > { %1331 = vst.msk [vmem:[#allocation3 + $0x60] sm:$0xf] %vm1306_vm5, %v1259_v23  ;;  %1762 = vrot.lane.b32.xlu1 %v10576_v53, %s9879_s22  ;;  %v10608_v23 = vpack.c.bf16 %v1620_v35, %v1620_v35  ;;  %v1625_v35 = vld [vmem:[#allocation2 + $0x1a4] sm:$0xff] }
 0x146   : > { %1760 = vrot.lane.b32.xlu0 %v10578_v60, %s9879_s22  ;;  %13001 = vst [vmem:[#allocation8_spill] sm:$0xff] %v10606_v22  ;;  %13004 = vst [vmem:[#allocation11_spill] sm:$0xff] %v10618_v30 }
 0x147   : > { %v1265_v49 = vpop.permute.xlu1 %1264  ;;  %13002 = vst [vmem:[#allocation9_spill] sm:$0xff] %v10608_v23 }
 0x148   : > { %v1263_v55 = vpop.permute.xlu0 %1262  ;;  %1334 = vst.msk [vmem:[#allocation3 + $0x6c] sm:$0xf] %vm1306_vm5, %v1265_v49 }
 0x149   : > { %1333 = vst.msk [vmem:[#allocation3 + $0x68] sm:$0xf] %vm1306_vm5, %v1263_v55  ;;  %1766 = vrot.lane.b32.xlu1 %v10586_v24, %s9879_s22 }
 0x14a   : > { %1764 = vrot.lane.b32.xlu0 %v10588_v33, %s9879_s22  ;;  %v1858_v33 = vld [vmem:[#allocation2 + $0x92] sm:$0xff] }
 0x14b   : > { %v1269_v3 = vpop.permute.xlu1 %1268 }
 0x14c   : > { %v1267_v16 = vpop.permute.xlu0 %1266  ;;  %1336 = vst.msk [vmem:[#allocation3 + $0x74] sm:$0xf] %vm1306_vm5, %v1269_v3  ;;  %v10616_v3 = vpack.c.bf16 %v1623_v48, %v1623_v48 }
 0x14d   : > { %1335 = vst.msk [vmem:[#allocation3 + $0x70] sm:$0xf] %vm1306_vm5, %v1267_v16  ;;  %1770 = vrot.lane.b32.xlu1 %v10596_v19, %s9879_s22  ;;  %v1624_v16 = vld [vmem:[#allocation2 + $0x19c] sm:$0xff] }
 0x14e   : > { %1768 = vrot.lane.b32.xlu0 %v10598_v20, %s9879_s22  ;;  %13003 = vst [vmem:[#allocation10_spill] sm:$0xff] %v10616_v3  ;;  %v10628_v48 = vpack.c.bf16 %v1624_v16, %v1624_v16  ;;  %v1854_v16 = vld [vmem:[#allocation2 + $0x62] sm:$0xff] }
 0x14f   : > { %v1273_v49 = vpop.permute.xlu1 %1272 }
 0x150   : > { %v1271_v55 = vpop.permute.xlu0 %1270  ;;  %1338 = vst.msk [vmem:[#allocation3 + $0x7c] sm:$0xf] %vm1306_vm5, %v1273_v49  ;;  %v10626_v49 = vpack.c.bf16 %v1625_v35, %v1625_v35  ;;  %13006 = vst [vmem:[#allocation13_spill] sm:$0xff] %v10628_v48  ;;  %v1855_v35 = vld [vmem:[#allocation2 + $0x6a] sm:$0xff] }
 0x151   : > { %1337 = vst.msk [vmem:[#allocation3 + $0x78] sm:$0xf] %vm1306_vm5, %v1271_v55  ;;  %1774 = vrot.lane.b32.xlu1 %v10606_v22, %s9879_s22  ;;  %v1626_v55 = vld [vmem:[#allocation2 + $0x1b4] sm:$0xff]  ;;  %vm5421_vm5 = vcmask 650848  }
 0x152   : > { %1772 = vrot.lane.b32.xlu0 %v10608_v23, %s9879_s22  ;;  %13005 = vst [vmem:[#allocation12_spill] sm:$0xff] %v10626_v49 }
 0x153   : > { %v1470_v20 = vpop.permute.xlu1 %1469 }
 0x154   : > { %v1468_v19 = vpop.permute.xlu0 %1467  ;;  %1565 = vst.msk [vmem:[#allocation3 + $0x4] sm:$0xf] %vm1563_vm6, %v1470_v20  ;;  %v10638_v20 = vpack.c.bf16 %v1626_v55, %v1626_v55 }
 0x155   : > { %1564 = vst.msk [vmem:[#allocation3] sm:$0xf] %vm1563_vm6, %v1468_v19  ;;  %1778 = vrot.lane.b32.xlu1 %v10616_v3, %s9879_s22  ;;  %v10636_v19 = vpack.c.bf16 %v1627_v51, %v1627_v51  ;;  %v1857_v51 = vld [vmem:[#allocation2 + $0x82] sm:$0xff] }
 0x156   : > { %1776 = vrot.lane.b32.xlu0 %v10618_v30, %s9879_s22  ;;  %13008 = vst [vmem:[#allocation15_spill] sm:$0xff] %v10638_v20 }
 0x157   : > { %v1474_v23 = vpop.permute.xlu1 %1473  ;;  %13007 = vst [vmem:[#allocation14_spill] sm:$0xff] %v10636_v19 }
 0x158   : > { %v1472_v22 = vpop.permute.xlu0 %1471  ;;  %1567 = vst.msk [vmem:[#allocation3 + $0xc] sm:$0xf] %vm1563_vm6, %v1474_v23  ;;  %v8981_v23 = vpack.c.bf16 %v1854_v16, %v1854_v16  ;;  %v8985_v16 = vpack.c.bf16 %v1858_v33, %v1858_v33 }
 0x159   : > { %1566 = vst.msk [vmem:[#allocation3 + $0x8] sm:$0xf] %vm1563_vm6, %v1472_v22  ;;  %1782 = vrot.lane.b32.xlu1 %v10626_v49, %s9879_s22  ;;  %v8982_v22 = vpack.c.bf16 %v1855_v35, %v1855_v35 }
 0x15a   : > { %1780 = vrot.lane.b32.xlu0 %v10628_v48, %s9879_s22  ;;  %v1856_v48 = vld [vmem:[#allocation2 + $0x7a] sm:$0xff] }
 0x15b   : > { %v1478_v30 = vpop.permute.xlu1 %1477 }
 0x15c   : > { %v1476_v3 = vpop.permute.xlu0 %1475  ;;  %1569 = vst.msk [vmem:[#allocation3 + $0x14] sm:$0xf] %vm1563_vm6, %v1478_v30  ;;  %v8983_v30 = vpack.c.bf16 %v1856_v48, %v1856_v48 }
 0x15d   : > { %1568 = vst.msk [vmem:[#allocation3 + $0x10] sm:$0xf] %vm1563_vm6, %v1476_v3  ;;  %1786 = vrot.lane.b32.xlu1 %v10636_v19, %s9879_s22  ;;  %v8984_v3 = vpack.c.bf16 %v1857_v51, %v1857_v51  ;;  %v1859_v19 = vld [vmem:[#allocation2 + $0x9a] sm:$0xff]  ;;  %v1863_v51 = vld [vmem:[#allocation2 + $0xca] sm:$0xff] }
 0x15e   : > { %1784 = vrot.lane.b32.xlu0 %v10638_v20, %s9879_s22 }
 0x15f   : > { %v1482_v55 = vpop.permute.xlu1 %1481 }
 0x160   : > { %v1480_v49 = vpop.permute.xlu0 %1479  ;;  %1571 = vst.msk [vmem:[#allocation3 + $0x1c] sm:$0xf] %vm1563_vm6, %v1482_v55  ;;  %v1861_v55 = vld [vmem:[#allocation2 + $0xb2] sm:$0xff] }
 0x161   : > { %1570 = vst.msk [vmem:[#allocation3 + $0x18] sm:$0xf] %vm1563_vm6, %v1480_v49  ;;  %1984 = vrot.lane.b32.xlu1 %v8982_v22, %s9880_s23  ;;  %v8986_v49 = vpack.c.bf16 %v1859_v19, %v1859_v19  ;;  %v1860_v22 = vld [vmem:[#allocation2 + $0xaa] sm:$0xff]  ;;  %v8988_v48 = vpack.c.bf16 %v1861_v55, %v1861_v55  ;;  %v1865_v19 = vld [vmem:[#allocation2 + $0xe2] sm:$0xff] }
 0x162   : > { %1982 = vrot.lane.b32.xlu0 %v8981_v23, %s9880_s23  ;;  %v8992_v55 = vpack.c.bf16 %v1865_v19, %v1865_v19 }
 0x163   : > { %v1486_v20 = vpop.permute.xlu1 %1485 }
 0x164   : > { %v1484_v35 = vpop.permute.xlu0 %1483  ;;  %1573 = vst.msk [vmem:[#allocation3 + $0x24] sm:$0xf] %vm1563_vm6, %v1486_v20  ;;  %v8987_v20 = vpack.c.bf16 %v1860_v22, %v1860_v22 }
 0x165   : > { %1572 = vst.msk [vmem:[#allocation3 + $0x20] sm:$0xf] %vm1563_vm6, %v1484_v35  ;;  %1988 = vrot.lane.b32.xlu1 %v8984_v3, %s9880_s23  ;;  %v1862_v3 = vld [vmem:[#allocation2 + $0xc2] sm:$0xff] }
 0x166   : > { %1986 = vrot.lane.b32.xlu0 %v8983_v30, %s9880_s23  ;;  %v8989_v33 = vpack.c.bf16 %v1862_v3, %v1862_v3 }
 0x167   : > { %v1490_v24 = vpop.permute.xlu1 %1489 }
 0x168   : > { %v1488_v23 = vpop.permute.xlu0 %1487  ;;  %1575 = vst.msk [vmem:[#allocation3 + $0x2c] sm:$0xf] %vm1563_vm6, %v1490_v24  ;;  %v8990_v24 = vpack.c.bf16 %v1863_v51, %v1863_v51 }
 0x169   : > { %1574 = vst.msk [vmem:[#allocation3 + $0x28] sm:$0xf] %vm1563_vm6, %v1488_v23  ;;  %1992 = vrot.lane.b32.xlu1 %v8986_v49, %s9880_s23  ;;  %v1864_v49 = vld [vmem:[#allocation2 + $0xda] sm:$0xff] }
 0x16a   : > { %1990 = vrot.lane.b32.xlu0 %v8985_v16, %s9880_s23  ;;  %v8991_v22 = vpack.c.bf16 %v1864_v49, %v1864_v49 }
 0x16b   : > { %v1494_v35 = vpop.permute.xlu1 %1493 }
 0x16c   : > { %v1492_v30 = vpop.permute.xlu0 %1491  ;;  %1577 = vst.msk [vmem:[#allocation3 + $0x34] sm:$0xf] %vm1563_vm6, %v1494_v35  ;;  %v1867_v35 = vld [vmem:[#allocation2 + $0xfa] sm:$0xff] }
 0x16d   : > { %1576 = vst.msk [vmem:[#allocation3 + $0x30] sm:$0xf] %vm1563_vm6, %v1492_v30  ;;  %1996 = vrot.lane.b32.xlu1 %v8988_v48, %s9880_s23  ;;  %v1866_v48 = vld [vmem:[#allocation2 + $0xf2] sm:$0xff]  ;;  %v8994_v51 = vpack.c.bf16 %v1867_v35, %v1867_v35 }
 0x16e   : > { %1994 = vrot.lane.b32.xlu0 %v8987_v20, %s9880_s23  ;;  %v8993_v3 = vpack.c.bf16 %v1866_v48, %v1866_v48 }
 0x16f   : > { %v1498_v23 = vpop.permute.xlu1 %1497 }
 0x170   : > { %v1496_v16 = vpop.permute.xlu0 %1495  ;;  %1579 = vst.msk [vmem:[#allocation3 + $0x3c] sm:$0xf] %vm1563_vm6, %v1498_v23  ;;  %v1869_v23 = vld [vmem:[#allocation2 + $0x112] sm:$0xff] }
 0x171   : > { %1578 = vst.msk [vmem:[#allocation3 + $0x38] sm:$0xf] %vm1563_vm6, %v1496_v16  ;;  %2000 = vrot.lane.b32.xlu1 %v8990_v24, %s9880_s23  ;;  %v1868_v24 = vld [vmem:[#allocation2 + $0x10a] sm:$0xff]  ;;  %v8996_v19 = vpack.c.bf16 %v1869_v23, %v1869_v23 }
 0x172   : > { %1998 = vrot.lane.b32.xlu0 %v8989_v33, %s9880_s23  ;;  %v8995_v49 = vpack.c.bf16 %v1868_v24, %v1868_v24 }
 0x173   : > { %v1502_v30 = vpop.permute.xlu1 %1501 }
 0x174   : > { %v1500_v20 = vpop.permute.xlu0 %1499  ;;  %1581 = vst.msk [vmem:[#allocation3 + $0x44] sm:$0xf] %vm1563_vm6, %v1502_v30  ;;  %v1871_v30 = vld [vmem:[#allocation2 + $0x12a] sm:$0xff] }
 0x175   : > { %1580 = vst.msk [vmem:[#allocation3 + $0x40] sm:$0xf] %vm1563_vm6, %v1500_v20  ;;  %2004 = vrot.lane.b32.xlu1 %v8992_v55, %s9880_s23  ;;  %v1870_v55 = vld [vmem:[#allocation2 + $0x122] sm:$0xff]  ;;  %v8998_v35 = vpack.c.bf16 %v1871_v30, %v1871_v30 }
 0x176   : > { %2002 = vrot.lane.b32.xlu0 %v8991_v22, %s9880_s23  ;;  %v8997_v48 = vpack.c.bf16 %v1870_v55, %v1870_v55 }
 0x177   : > { %v1506_v16 = vpop.permute.xlu1 %1505 }
 0x178   : > { %v1504_v33 = vpop.permute.xlu0 %1503  ;;  %1583 = vst.msk [vmem:[#allocation3 + $0x4c] sm:$0xf] %vm1563_vm6, %v1506_v16  ;;  %v1873_v16 = vld [vmem:[#allocation2 + $0x142] sm:$0xff] }
 0x179   : > { %1582 = vst.msk [vmem:[#allocation3 + $0x48] sm:$0xf] %vm1563_vm6, %v1504_v33  ;;  %2008 = vrot.lane.b32.xlu1 %v8994_v51, %s9880_s23  ;;  %v1872_v51 = vld [vmem:[#allocation2 + $0x13a] sm:$0xff]  ;;  %v9000_v23 = vpack.c.bf16 %v1873_v16, %v1873_v16 }
 0x17a   : > { %2006 = vrot.lane.b32.xlu0 %v8993_v3, %s9880_s23  ;;  %v8999_v24 = vpack.c.bf16 %v1872_v51, %v1872_v51 }
 0x17b   : > { %v1510_v20 = vpop.permute.xlu1 %1509 }
 0x17c   : > { %v1508_v22 = vpop.permute.xlu0 %1507  ;;  %1585 = vst.msk [vmem:[#allocation3 + $0x54] sm:$0xf] %vm1563_vm6, %v1510_v20  ;;  %v1875_v20 = vld [vmem:[#allocation2 + $0x15a] sm:$0xff] }
 0x17d   : > { %1584 = vst.msk [vmem:[#allocation3 + $0x50] sm:$0xf] %vm1563_vm6, %v1508_v22  ;;  %2012 = vrot.lane.b32.xlu1 %v8996_v19, %s9880_s23  ;;  %v1874_v19 = vld [vmem:[#allocation2 + $0x152] sm:$0xff]  ;;  %v9002_v30 = vpack.c.bf16 %v1875_v20, %v1875_v20 }
 0x17e   : > { %2010 = vrot.lane.b32.xlu0 %v8995_v49, %s9880_s23  ;;  %v9001_v55 = vpack.c.bf16 %v1874_v19, %v1874_v19 }
 0x17f   : > { %v1514_v33 = vpop.permute.xlu1 %1513 }
 0x180   : > { %v1512_v3 = vpop.permute.xlu0 %1511  ;;  %1587 = vst.msk [vmem:[#allocation3 + $0x5c] sm:$0xf] %vm1563_vm6, %v1514_v33  ;;  %v1877_v33 = vld [vmem:[#allocation2 + $0x172] sm:$0xff] }
 0x181   : > { %1586 = vst.msk [vmem:[#allocation3 + $0x58] sm:$0xf] %vm1563_vm6, %v1512_v3  ;;  %2016 = vrot.lane.b32.xlu1 %v8998_v35, %s9880_s23  ;;  %v1876_v35 = vld [vmem:[#allocation2 + $0x16a] sm:$0xff]  ;;  %v9004_v16 = vpack.c.bf16 %v1877_v33, %v1877_v33 }
 0x182   : > { %2014 = vrot.lane.b32.xlu0 %v8997_v48, %s9880_s23  ;;  %v9003_v51 = vpack.c.bf16 %v1876_v35, %v1876_v35 }
 0x183   : > { %v1518_v22 = vpop.permute.xlu1 %1517 }
 0x184   : > { %v1516_v49 = vpop.permute.xlu0 %1515  ;;  %1589 = vst.msk [vmem:[#allocation3 + $0x64] sm:$0xf] %vm1563_vm6, %v1518_v22  ;;  %v1879_v22 = vld [vmem:[#allocation2 + $0x18a] sm:$0xff] }
 0x185   : > { %1588 = vst.msk [vmem:[#allocation3 + $0x60] sm:$0xf] %vm1563_vm6, %v1516_v49  ;;  %2020 = vrot.lane.b32.xlu1 %v9000_v23, %s9880_s23  ;;  %v1878_v23 = vld [vmem:[#allocation2 + $0x182] sm:$0xff]  ;;  %v9006_v20 = vpack.c.bf16 %v1879_v22, %v1879_v22  ;;  %v177_v22 = vld [vmem:[%s9942_s17 + $0xc] sm:$0xff]  }
 0x186   : > { %2018 = vrot.lane.b32.xlu0 %v8999_v24, %s9880_s23  ;;  %v9005_v19 = vpack.c.bf16 %v1878_v23, %v1878_v23  ;;  %v178_v23 = vld [vmem:[%s9942_s17 + $0x14] sm:$0x7] }
 0x187   : > { %v1522_v3 = vpop.permute.xlu1 %1521 }
 0x188   : > { %v1520_v48 = vpop.permute.xlu0 %1519  ;;  %1591 = vst.msk [vmem:[#allocation3 + $0x6c] sm:$0xf] %vm1563_vm6, %v1522_v3 }
 0x189   : > { %1590 = vst.msk [vmem:[#allocation3 + $0x68] sm:$0xf] %vm1563_vm6, %v1520_v48  ;;  %2024 = vrot.lane.b32.xlu1 %v9002_v30, %s9880_s23  ;;  %v1881_v30 = vld [vmem:[#allocation2 + $0x1a2] sm:$0xff] }
 0x18a   : > { %2022 = vrot.lane.b32.xlu0 %v9001_v55, %s9880_s23  ;;  %v1880_v55 = vld [vmem:[#allocation2 + $0x19a] sm:$0xff]  ;;  %v9008_v3 = vpack.c.bf16 %v1881_v30, %v1881_v30 }
 0x18b   : > { %v1526_v49 = vpop.permute.xlu1 %1525  ;;  %v9007_v48 = vpack.c.bf16 %v1880_v55, %v1880_v55 }
 0x18c   : > { %v1524_v24 = vpop.permute.xlu0 %1523  ;;  %1593 = vst.msk [vmem:[#allocation3 + $0x74] sm:$0xf] %vm1563_vm6, %v1526_v49  ;;  %v243_v49 = vunpack.c.h.bf16 %v177_v22 }
 0x18d   : > { %1592 = vst.msk [vmem:[#allocation3 + $0x70] sm:$0xf] %vm1563_vm6, %v1524_v24  ;;  %2028 = vrot.lane.b32.xlu1 %v9004_v16, %s9880_s23  ;;  %v244_v24 = vunpack.c.l.bf16 %v178_v23 }
 0x18e   : > { %2026 = vrot.lane.b32.xlu0 %v9003_v51, %s9880_s23  ;;  %311 = vst.msk [vmem:[#allocation2 + $0x20] sm:$0xff] %vm305_vm0, %v243_v49 }
 0x18f   : > { %v1530_v33 = vpop.permute.xlu1 %1529  ;;  %312 = vst.msk [vmem:[#allocation2 + $0x28] sm:$0x3f] %vm308_vm1, %v244_v24 }
 0x190   : > { %v1528_v35 = vpop.permute.xlu0 %1527  ;;  %1595 = vst.msk [vmem:[#allocation3 + $0x7c] sm:$0xf] %vm1563_vm6, %v1530_v33  ;;  %v1885_v33 = vld [vmem:[#allocation2 + $0x1d2] sm:$0xff] }
 0x191   : > { %1594 = vst.msk [vmem:[#allocation3 + $0x78] sm:$0xf] %vm1563_vm6, %v1528_v35  ;;  %2032 = vrot.lane.b32.xlu1 %v9006_v20, %s9880_s23  ;;  %v242_v20 = vunpack.c.l.bf16 %v177_v22  ;;  %v9012_v55 = vpack.c.bf16 %v1885_v33, %v1885_v33  ;;  %vm5678_vm6 = vcmask 683648  }
 0x192   : > { %2030 = vrot.lane.b32.xlu0 %v9005_v19, %s9880_s23  ;;  %v1884_v19 = vld [vmem:[#allocation2 + $0x1ca] sm:$0xff] }
 0x193   : > { %v1727_v16 = vpop.permute.xlu1 %1726  ;;  %310 = vst.msk [vmem:[#allocation2 + $0x18] sm:$0xff] %vm305_vm0, %v242_v20 }
 0x194   : > { %v1725_v51 = vpop.permute.xlu0 %1724  ;;  %1822 = vst.msk [vmem:[#allocation3 + $0x4] sm:$0xf] %vm1820_vm7, %v1727_v16 }
 0x195   : > { %1821 = vst.msk [vmem:[#allocation3] sm:$0xf] %vm1820_vm7, %v1725_v51  ;;  %2036 = vrot.lane.b32.xlu1 %v9008_v3, %s9880_s23  ;;  %v9011_v3 = vpack.c.bf16 %v1884_v19, %v1884_v19 }
 0x196   : > { %2034 = vrot.lane.b32.xlu0 %v9007_v48, %s9880_s23 }
 0x197   : > { %v1731_v35 = vpop.permute.xlu1 %1730 }
 0x198   : > { %v1729_v30 = vpop.permute.xlu0 %1728  ;;  %1824 = vst.msk [vmem:[#allocation3 + $0xc] sm:$0xf] %vm1820_vm7, %v1731_v35 }
 0x199   : > { %1823 = vst.msk [vmem:[#allocation3 + $0x8] sm:$0xf] %vm1820_vm7, %v1729_v30  ;;  %2040 = vrot.lane.b32.xlu1 %v10323_v54, %s9880_s23 }
 0x19a   : > { %2038 = vrot.lane.b32.xlu0 %v10325_v2, %s9880_s23 }
 0x19b   : > { %v1735_v48 = vpop.permute.xlu1 %1734 }
 0x19c   : > { %v1733_v16 = vpop.permute.xlu0 %1732  ;;  %1826 = vst.msk [vmem:[#allocation3 + $0x14] sm:$0xf] %vm1820_vm7, %v1735_v48 }
 0x19d   : > { %1825 = vst.msk [vmem:[#allocation3 + $0x10] sm:$0xf] %vm1820_vm7, %v1733_v16  ;;  %2044 = vrot.lane.b32.xlu1 %v9012_v55, %s9880_s23 }
 0x19e   : > { %2042 = vrot.lane.b32.xlu0 %v9011_v3, %s9880_s23 }
 0x19f   : > { %v1739_v51 = vpop.permute.xlu1 %1738 }
 0x1a0   : > { %v1737_v22 = vpop.permute.xlu0 %1736  ;;  %1828 = vst.msk [vmem:[#allocation3 + $0x1c] sm:$0xf] %vm1820_vm7, %v1739_v51  ;;  %v13013_v51 = vld [vmem:[#allocation8_spill] sm:$0xff] }
 0x1a1   : > { %1827 = vst.msk [vmem:[#allocation3 + $0x18] sm:$0xf] %vm1820_vm7, %v1737_v22  ;;  %2241 = vrot.lane.b32.xlu1 %v10337_v11, %s9881_s24  ;;  %v13014_v22 = vld [vmem:[#allocation9_spill] sm:$0xff] }
 0x1a2   : > { %2239 = vrot.lane.b32.xlu0 %v10339_v12, %s9881_s24 }
 0x1a3   : > { %v1743_v54 = vpop.permute.xlu1 %1742 }
 0x1a4   : > { %v1741_v2 = vpop.permute.xlu0 %1740  ;;  %1830 = vst.msk [vmem:[#allocation3 + $0x24] sm:$0xf] %vm1820_vm7, %v1743_v54 }
 0x1a5   : > { %1829 = vst.msk [vmem:[#allocation3 + $0x20] sm:$0xf] %vm1820_vm7, %v1741_v2  ;;  %2245 = vrot.lane.b32.xlu1 %v10347_v28, %s9881_s24 }
 0x1a6   : > { %2243 = vrot.lane.b32.xlu0 %v10349_v29, %s9881_s24 }
 0x1a7   : > { %v1747_v23 = vpop.permute.xlu1 %1746 }
 0x1a8   : > { %v1745_v49 = vpop.permute.xlu0 %1744  ;;  %1832 = vst.msk [vmem:[#allocation3 + $0x2c] sm:$0xf] %vm1820_vm7, %v1747_v23  ;;  %v13015_v23 = vld [vmem:[#allocation10_spill] sm:$0xff] }
 0x1a9   : > { %1831 = vst.msk [vmem:[#allocation3 + $0x28] sm:$0xf] %vm1820_vm7, %v1745_v49  ;;  %2249 = vrot.lane.b32.xlu1 %v10357_v37, %s9881_s24  ;;  %v13016_v49 = vld [vmem:[#allocation11_spill] sm:$0xff] }
 0x1aa   : > { %2247 = vrot.lane.b32.xlu0 %v10359_v38, %s9881_s24 }
 0x1ab   : > { %v1751_v11 = vpop.permute.xlu1 %1750 }
 0x1ac   : > { %v1749_v12 = vpop.permute.xlu0 %1748  ;;  %1834 = vst.msk [vmem:[#allocation3 + $0x34] sm:$0xf] %vm1820_vm7, %v1751_v11 }
 0x1ad   : > { %1833 = vst.msk [vmem:[#allocation3 + $0x30] sm:$0xf] %vm1820_vm7, %v1749_v12  ;;  %2253 = vrot.lane.b32.xlu1 %v10367_v46, %s9881_s24 }
 0x1ae   : > { %2251 = vrot.lane.b32.xlu0 %v10369_v47, %s9881_s24 }
 0x1af   : > { %v1755_v28 = vpop.permute.xlu1 %1754 }
 0x1b0   : > { %v1753_v29 = vpop.permute.xlu0 %1752  ;;  %1836 = vst.msk [vmem:[#allocation3 + $0x3c] sm:$0xf] %vm1820_vm7, %v1755_v28  ;;  %v13017_v28 = vld [vmem:[#allocation12_spill] sm:$0xff] }
 0x1b1   : > { %1835 = vst.msk [vmem:[#allocation3 + $0x38] sm:$0xf] %vm1820_vm7, %v1753_v29  ;;  %2257 = vrot.lane.b32.xlu1 %v10377_v56, %s9881_s24  ;;  %v13018_v29 = vld [vmem:[#allocation13_spill] sm:$0xff] }
 0x1b2   : > { %2255 = vrot.lane.b32.xlu0 %v10379_v58, %s9881_s24 }
 0x1b3   : > { %v1759_v37 = vpop.permute.xlu1 %1758 }
 0x1b4   : > { %v1757_v38 = vpop.permute.xlu0 %1756  ;;  %1838 = vst.msk [vmem:[#allocation3 + $0x44] sm:$0xf] %vm1820_vm7, %v1759_v37  ;;  %v2399_v37 = vld [vmem:[#allocation2 + $0x1d4] sm:$0xff] }
 0x1b5   : > { %1837 = vst.msk [vmem:[#allocation3 + $0x40] sm:$0xf] %vm1820_vm7, %v1757_v38  ;;  %2261 = vrot.lane.b32.xlu1 %v10387_v63, %s9881_s24  ;;  %v2398_v38 = vld [vmem:[#allocation2 + $0x1cc] sm:$0xff] }
 0x1b6   : > { %2259 = vrot.lane.b32.xlu0 %v10389_v0, %s9881_s24 }
 0x1b7   : > { %v1763_v46 = vpop.permute.xlu1 %1762 }
 0x1b8   : > { %v1761_v47 = vpop.permute.xlu0 %1760  ;;  %1840 = vst.msk [vmem:[#allocation3 + $0x4c] sm:$0xf] %vm1820_vm7, %v1763_v46 }
 0x1b9   : > { %1839 = vst.msk [vmem:[#allocation3 + $0x48] sm:$0xf] %vm1820_vm7, %v1761_v47  ;;  %2265 = vrot.lane.b32.xlu1 %v10397_v13, %s9881_s24 }
 0x1ba   : > { %2263 = vrot.lane.b32.xlu0 %v10399_v14, %s9881_s24 }
 0x1bb   : > { %v1767_v56 = vpop.permute.xlu1 %1766 }
 0x1bc   : > { %v1765_v58 = vpop.permute.xlu0 %1764  ;;  %1842 = vst.msk [vmem:[#allocation3 + $0x54] sm:$0xf] %vm1820_vm7, %v1767_v56  ;;  %v13019_v56 = vld [vmem:[#allocation14_spill] sm:$0xff] }
 0x1bd   : > { %1841 = vst.msk [vmem:[#allocation3 + $0x50] sm:$0xf] %vm1820_vm7, %v1765_v58  ;;  %2269 = vrot.lane.b32.xlu1 %v10407_v25, %s9881_s24  ;;  %v13020_v58 = vld [vmem:[#allocation15_spill] sm:$0xff] }
 0x1be   : > { %2267 = vrot.lane.b32.xlu0 %v10409_v26, %s9881_s24 }
 0x1bf   : > { %v1771_v63 = vpop.permute.xlu1 %1770 }
 0x1c0   : > { %v1769_v0 = vpop.permute.xlu0 %1768  ;;  %1844 = vst.msk [vmem:[#allocation3 + $0x5c] sm:$0xf] %vm1820_vm7, %v1771_v63  ;;  %v9076_v63 = vpack.c.bf16 %v2399_v37, %v2399_v37 }
 0x1c1   : > { %1843 = vst.msk [vmem:[#allocation3 + $0x58] sm:$0xf] %vm1820_vm7, %v1769_v0  ;;  %2273 = vrot.lane.b32.xlu1 %v10417_v43, %s9881_s24  ;;  %v9075_v0 = vpack.c.bf16 %v2398_v38, %v2398_v38 }
 0x1c2   : > { %2271 = vrot.lane.b32.xlu0 %v10419_v45, %s9881_s24 }
 0x1c3   : > { %v1775_v13 = vpop.permute.xlu1 %1774 }
 0x1c4   : > { %v1773_v14 = vpop.permute.xlu0 %1772  ;;  %1846 = vst.msk [vmem:[#allocation3 + $0x64] sm:$0xf] %vm1820_vm7, %v1775_v13  ;;  %v2627_v13 = vld [vmem:[#allocation2 + $0x21] sm:$0xff] }
 0x1c5   : > { %1845 = vst.msk [vmem:[#allocation3 + $0x60] sm:$0xf] %vm1820_vm7, %v1773_v14  ;;  %2277 = vrot.lane.b32.xlu1 %v10427_v61, %s9881_s24  ;;  %v2626_v14 = vld [vmem:[#allocation2 + $0x19] sm:$0xff] }
 0x1c6   : > { %2275 = vrot.lane.b32.xlu0 %v10429_v62, %s9881_s24 }
 0x1c7   : > { %v1779_v25 = vpop.permute.xlu1 %1778 }
 0x1c8   : > { %v1777_v26 = vpop.permute.xlu0 %1776  ;;  %1848 = vst.msk [vmem:[#allocation3 + $0x6c] sm:$0xf] %vm1820_vm7, %v1779_v25 }
 0x1c9   : > { %1847 = vst.msk [vmem:[#allocation3 + $0x68] sm:$0xf] %vm1820_vm7, %v1777_v26  ;;  %2281 = vrot.lane.b32.xlu1 %v10437_v6, %s9881_s24 }
 0x1ca   : > { %2279 = vrot.lane.b32.xlu0 %v10439_v10, %s9881_s24 }
 0x1cb   : > { %v1783_v43 = vpop.permute.xlu1 %1782 }
 0x1cc   : > { %v1781_v45 = vpop.permute.xlu0 %1780  ;;  %1850 = vst.msk [vmem:[#allocation3 + $0x74] sm:$0xf] %vm1820_vm7, %v1783_v43  ;;  %v9078_v43 = vpack.c.bf16 %v2627_v13, %v2627_v13 }
 0x1cd   : > { %1849 = vst.msk [vmem:[#allocation3 + $0x70] sm:$0xf] %vm1820_vm7, %v1781_v45  ;;  %2285 = vrot.lane.b32.xlu1 %v10447_v31, %s9881_s24  ;;  %v2142_v31 = vld [vmem:[#allocation2 + $0x1d3] sm:$0xff]  ;;  %v9077_v45 = vpack.c.bf16 %v2626_v14, %v2626_v14 }
 0x1ce   : > { %2283 = vrot.lane.b32.xlu0 %v10449_v32, %s9881_s24  ;;  %v2141_v32 = vld [vmem:[#allocation2 + $0x1cb] sm:$0xff] }
 0x1cf   : > { %v1787_v61 = vpop.permute.xlu1 %1786  ;;  %v9043_v20 = vpack.c.bf16 %v2141_v32, %v2141_v32 }
 0x1d0   : > { %v1785_v62 = vpop.permute.xlu0 %1784  ;;  %1852 = vst.msk [vmem:[#allocation3 + $0x7c] sm:$0xf] %vm1820_vm7, %v1787_v61  ;;  %v2629_v61 = vld [vmem:[#allocation2 + $0x39] sm:$0xff] }
 0x1d1   : > { %1851 = vst.msk [vmem:[#allocation3 + $0x78] sm:$0xf] %vm1820_vm7, %v1785_v62  ;;  %2289 = vrot.lane.b32.xlu1 %v10453_v41, %s9881_s24  ;;  %v2628_v62 = vld [vmem:[#allocation2 + $0x31] sm:$0xff]  ;;  %vm5935_vm7 = vcmask 716448  }
 0x1d2   : > { %2287 = vrot.lane.b32.xlu0 %v10461_v50, %s9881_s24  ;;  %v9044_v50 = vpack.c.bf16 %v2142_v31, %v2142_v31  ;;  %v9080_v31 = vpack.c.bf16 %v2629_v61, %v2629_v61  ;;  %v9079_v32 = vpack.c.bf16 %v2628_v62, %v2628_v62 }
 0x1d3   : > { %v1985_v6 = vpop.permute.xlu1 %1984 }
 0x1d4   : > { %v1983_v10 = vpop.permute.xlu0 %1982  ;;  %2080 = vst.msk [vmem:[#allocation3 + $0x4] sm:$0xf] %vm2078_vm8, %v1985_v6 }
 0x1d5   : > { %2079 = vst.msk [vmem:[#allocation3] sm:$0xf] %vm2078_vm8, %v1983_v10  ;;  %2293 = vrot.lane.b32.xlu1 %v10472_v7, %s9881_s24 }
 0x1d6   : > { %2291 = vrot.lane.b32.xlu0 %v10474_v8, %s9881_s24 }
 0x1d7   : > { %v1989_v24 = vpop.permute.xlu1 %1988 }
 0x1d8   : > { %v1987_v41 = vpop.permute.xlu0 %1986  ;;  %2082 = vst.msk [vmem:[#allocation3 + $0xc] sm:$0xf] %vm2078_vm8, %v1989_v24  ;;  %v2631_v24 = vld [vmem:[#allocation2 + $0x51] sm:$0xff] }
 0x1d9   : > { %2081 = vst.msk [vmem:[#allocation3 + $0x8] sm:$0xf] %vm2078_vm8, %v1987_v41  ;;  %2297 = vrot.lane.b32.xlu1 %v10482_v21, %s9881_s24  ;;  %v2630_v41 = vld [vmem:[#allocation2 + $0x49] sm:$0xff] }
 0x1da   : > { %2295 = vrot.lane.b32.xlu0 %v10484_v27, %s9881_s24 }
 0x1db   : > { %v1993_v7 = vpop.permute.xlu1 %1992 }
 0x1dc   : > { %v1991_v33 = vpop.permute.xlu0 %1990  ;;  %2084 = vst.msk [vmem:[#allocation3 + $0x14] sm:$0xf] %vm2078_vm8, %v1993_v7  ;;  %v10913_v7 = vpack.c.bf16 %v2631_v24, %v2631_v24 }
 0x1dd   : > { %2083 = vst.msk [vmem:[#allocation3 + $0x10] sm:$0xf] %vm2078_vm8, %v1991_v33  ;;  %2301 = vrot.lane.b32.xlu1 %v9044_v50, %s9881_s24  ;;  %v10915_v33 = vpack.c.bf16 %v2630_v41, %v2630_v41 }
 0x1de   : > { %2299 = vrot.lane.b32.xlu0 %v9043_v20, %s9881_s24 }
 0x1df   : > { %v1997_v8 = vpop.permute.xlu1 %1996 }
 0x1e0   : > { %v1995_v19 = vpop.permute.xlu0 %1994  ;;  %2086 = vst.msk [vmem:[#allocation3 + $0x1c] sm:$0xf] %vm2078_vm8, %v1997_v8  ;;  %v2633_v8 = vld [vmem:[#allocation2 + $0x69] sm:$0xff] }
 0x1e1   : > { %2085 = vst.msk [vmem:[#allocation3 + $0x18] sm:$0xf] %vm2078_vm8, %v1995_v19  ;;  %2498 = vrot.lane.b32.xlu1 %v10496_v5, %s9882_s25  ;;  %v2632_v19 = vld [vmem:[#allocation2 + $0x61] sm:$0xff] }
 0x1e2   : > { %2496 = vrot.lane.b32.xlu0 %v10498_v18, %s9882_s25 }
 0x1e3   : > { %v2001_v21 = vpop.permute.xlu1 %2000 }
 0x1e4   : > { %v1999_v27 = vpop.permute.xlu0 %1998  ;;  %2088 = vst.msk [vmem:[#allocation3 + $0x24] sm:$0xf] %vm2078_vm8, %v2001_v21 }
 0x1e5   : > { %2087 = vst.msk [vmem:[#allocation3 + $0x20] sm:$0xf] %vm2078_vm8, %v1999_v27  ;;  %2502 = vrot.lane.b32.xlu1 %v10506_v34, %s9882_s25 }
 0x1e6   : > { %2500 = vrot.lane.b32.xlu0 %v10508_v39, %s9882_s25 }
 0x1e7   : > { %v2005_v35 = vpop.permute.xlu1 %2004 }
 0x1e8   : > { %v2003_v30 = vpop.permute.xlu0 %2002  ;;  %2090 = vst.msk [vmem:[#allocation3 + $0x2c] sm:$0xf] %vm2078_vm8, %v2005_v35  ;;  %v10923_v35 = vpack.c.bf16 %v2633_v8, %v2633_v8 }
 0x1e9   : > { %2089 = vst.msk [vmem:[#allocation3 + $0x28] sm:$0xf] %vm2078_vm8, %v2003_v30  ;;  %2506 = vrot.lane.b32.xlu1 %v10516_v52, %s9882_s25  ;;  %v10925_v30 = vpack.c.bf16 %v2632_v19, %v2632_v19 }
 0x1ea   : > { %2504 = vrot.lane.b32.xlu0 %v10518_v44, %s9882_s25 }
 0x1eb   : > { %v2009_v5 = vpop.permute.xlu1 %2008 }
 0x1ec   : > { %v2007_v18 = vpop.permute.xlu0 %2006  ;;  %2092 = vst.msk [vmem:[#allocation3 + $0x34] sm:$0xf] %vm2078_vm8, %v2009_v5  ;;  %v2635_v5 = vld [vmem:[#allocation2 + $0x81] sm:$0xff] }
 0x1ed   : > { %2091 = vst.msk [vmem:[#allocation3 + $0x30] sm:$0xf] %vm2078_vm8, %v2007_v18  ;;  %2510 = vrot.lane.b32.xlu1 %v10526_v9, %s9882_s25  ;;  %v2634_v18 = vld [vmem:[#allocation2 + $0x79] sm:$0xff] }
 0x1ee   : > { %2508 = vrot.lane.b32.xlu0 %v10528_v15, %s9882_s25 }
 0x1ef   : > { %v2013_v34 = vpop.permute.xlu1 %2012 }
 0x1f0   : > { %v2011_v39 = vpop.permute.xlu0 %2010  ;;  %2094 = vst.msk [vmem:[#allocation3 + $0x3c] sm:$0xf] %vm2078_vm8, %v2013_v34 }
 0x1f1   : > { %2093 = vst.msk [vmem:[#allocation3 + $0x38] sm:$0xf] %vm2078_vm8, %v2011_v39  ;;  %2514 = vrot.lane.b32.xlu1 %v10536_v36, %s9882_s25 }
 0x1f2   : > { %2512 = vrot.lane.b32.xlu0 %v10538_v59, %s9882_s25 }
 0x1f3   : > { %v2017_v52 = vpop.permute.xlu1 %2016 }
 0x1f4   : > { %v2015_v44 = vpop.permute.xlu0 %2014  ;;  %2096 = vst.msk [vmem:[#allocation3 + $0x44] sm:$0xf] %vm2078_vm8, %v2017_v52  ;;  %v10933_v52 = vpack.c.bf16 %v2635_v5, %v2635_v5  ;;  %v2655_v5 = vld [vmem:[#allocation2 + $0x171] sm:$0xff] }
 0x1f5   : > { %2095 = vst.msk [vmem:[#allocation3 + $0x40] sm:$0xf] %vm2078_vm8, %v2015_v44  ;;  %2518 = vrot.lane.b32.xlu1 %v10546_v17, %s9882_s25  ;;  %v10935_v44 = vpack.c.bf16 %v2634_v18, %v2634_v18  ;;  %v2654_v18 = vld [vmem:[#allocation2 + $0x169] sm:$0xff] }
 0x1f6   : > { %2516 = vrot.lane.b32.xlu0 %v10548_v4, %s9882_s25 }
 0x1f7   : > { %v2021_v9 = vpop.permute.xlu1 %2020 }
 0x1f8   : > { %v2019_v15 = vpop.permute.xlu0 %2018  ;;  %2098 = vst.msk [vmem:[#allocation3 + $0x4c] sm:$0xf] %vm2078_vm8, %v2021_v9  ;;  %v2637_v9 = vld [vmem:[#allocation2 + $0x99] sm:$0xff] }
 0x1f9   : > { %2097 = vst.msk [vmem:[#allocation3 + $0x48] sm:$0xf] %vm2078_vm8, %v2019_v15  ;;  %2522 = vrot.lane.b32.xlu1 %v10556_v40, %s9882_s25  ;;  %v2636_v15 = vld [vmem:[#allocation2 + $0x91] sm:$0xff] }
 0x1fa   : > { %2520 = vrot.lane.b32.xlu0 %v10558_v42, %s9882_s25 }
 0x1fb   : > { %v2025_v36 = vpop.permute.xlu1 %2024 }
 0x1fc   : > { %v2023_v59 = vpop.permute.xlu0 %2022  ;;  %2100 = vst.msk [vmem:[#allocation3 + $0x54] sm:$0xf] %vm2078_vm8, %v2025_v36 }
 0x1fd   : > { %2099 = vst.msk [vmem:[#allocation3 + $0x50] sm:$0xf] %vm2078_vm8, %v2023_v59  ;;  %2526 = vrot.lane.b32.xlu1 %v10566_v57, %s9882_s25  ;;  %v13009_v57 = vld [vmem:[#allocation4_spill] sm:$0xff] }
 0x1fe   : > { %2524 = vrot.lane.b32.xlu0 %v10568_v1, %s9882_s25  ;;  %v13010_v1 = vld [vmem:[#allocation5_spill] sm:$0xff] }
 0x1ff   : > { %v2029_v17 = vpop.permute.xlu1 %2028 }
 0x200   : > { %v2027_v4 = vpop.permute.xlu0 %2026  ;;  %2102 = vst.msk [vmem:[#allocation3 + $0x5c] sm:$0xf] %vm2078_vm8, %v2029_v17  ;;  %v10943_v17 = vpack.c.bf16 %v2637_v9, %v2637_v9  ;;  %v11033_v9 = vpack.c.bf16 %v2655_v5, %v2655_v5 }
 0x201   : > { %2101 = vst.msk [vmem:[#allocation3 + $0x58] sm:$0xf] %vm2078_vm8, %v2027_v4  ;;  %2530 = vrot.lane.b32.xlu1 %v10576_v53, %s9882_s25  ;;  %v13011_v53 = vld [vmem:[#allocation6_spill] sm:$0xff]  ;;  %v10945_v4 = vpack.c.bf16 %v2636_v15, %v2636_v15  ;;  %v11035_v15 = vpack.c.bf16 %v2654_v18, %v2654_v18 }
 0x202   : > { %2528 = vrot.lane.b32.xlu0 %v10578_v60, %s9882_s25  ;;  %v13012_v60 = vld [vmem:[#allocation7_spill] sm:$0xff] }
 0x203   : > { %v2033_v40 = vpop.permute.xlu1 %2032 }
 0x204   : > { %v2031_v42 = vpop.permute.xlu0 %2030  ;;  %2104 = vst.msk [vmem:[#allocation3 + $0x64] sm:$0xf] %vm2078_vm8, %v2033_v40  ;;  %v2639_v40 = vld [vmem:[#allocation2 + $0xb1] sm:$0xff] }
 0x205   : > { %2103 = vst.msk [vmem:[#allocation3 + $0x60] sm:$0xf] %vm2078_vm8, %v2031_v42  ;;  %2534 = vrot.lane.b32.xlu1 %v13009_v57, %s9882_s25  ;;  %v2638_v42 = vld [vmem:[#allocation2 + $0xa9] sm:$0xff] }
 0x206   : > { %2532 = vrot.lane.b32.xlu0 %v13010_v1, %s9882_s25 }
 0x207   : > { %v2037_v55 = vpop.permute.xlu1 %2036 }
 0x208   : > { %v2035_v3 = vpop.permute.xlu0 %2034  ;;  %2106 = vst.msk [vmem:[#allocation3 + $0x6c] sm:$0xf] %vm2078_vm8, %v2037_v55  ;;  %v10953_v55 = vpack.c.bf16 %v2639_v40, %v2639_v40 }
 0x209   : > { %2105 = vst.msk [vmem:[#allocation3 + $0x68] sm:$0xf] %vm2078_vm8, %v2035_v3  ;;  %2538 = vrot.lane.b32.xlu1 %v13011_v53, %s9882_s25  ;;  %v10955_v3 = vpack.c.bf16 %v2638_v42, %v2638_v42  ;;  %v2641_v53 = vld [vmem:[#allocation2 + $0xc9] sm:$0xff] }
 0x20a   : > { %2536 = vrot.lane.b32.xlu0 %v13012_v60, %s9882_s25  ;;  %v2640_v60 = vld [vmem:[#allocation2 + $0xc1] sm:$0xff] }
 0x20b   : > { %v2041_v48 = vpop.permute.xlu1 %2040 }
 0x20c   : > { %v2039_v16 = vpop.permute.xlu0 %2038  ;;  %2108 = vst.msk [vmem:[#allocation3 + $0x74] sm:$0xf] %vm2078_vm8, %v2041_v48 }
 0x20d   : > { %2107 = vst.msk [vmem:[#allocation3 + $0x70] sm:$0xf] %vm2078_vm8, %v2039_v16  ;;  %2542 = vrot.lane.b32.xlu1 %v13013_v51, %s9882_s25  ;;  %v10963_v51 = vpack.c.bf16 %v2641_v53, %v2641_v53  ;;  %v2884_v53 = vld [vmem:[#allocation2 + $0x23] sm:$0xff] }
 0x20e   : > { %2540 = vrot.lane.b32.xlu0 %v13014_v22, %s9882_s25  ;;  %v10965_v22 = vpack.c.bf16 %v2640_v60, %v2640_v60  ;;  %v2883_v60 = vld [vmem:[#allocation2 + $0x1b] sm:$0xff] }
 0x20f   : > { %v2045_v54 = vpop.permute.xlu1 %2044 }
 0x210   : > { %v2043_v2 = vpop.permute.xlu0 %2042  ;;  %2110 = vst.msk [vmem:[#allocation3 + $0x7c] sm:$0xf] %vm2078_vm8, %v2045_v54  ;;  %v2643_v54 = vld [vmem:[#allocation2 + $0xe1] sm:$0xff] }
 0x211   : > { %2109 = vst.msk [vmem:[#allocation3 + $0x78] sm:$0xf] %vm2078_vm8, %v2043_v2  ;;  %2546 = vrot.lane.b32.xlu1 %v13015_v23, %s9882_s25  ;;  %v2642_v2 = vld [vmem:[#allocation2 + $0xd9] sm:$0xff]  ;;  %vm6192_vm8 = vcmask 749248  }
 0x212   : > { %2544 = vrot.lane.b32.xlu0 %v13016_v49, %s9882_s25 }
 0x213   : > { %v2242_v11 = vpop.permute.xlu1 %2241 }
 0x214   : > { %v2240_v12 = vpop.permute.xlu0 %2239  ;;  %2337 = vst.msk [vmem:[#allocation3 + $0x4] sm:$0xf] %vm2335_vm9, %v2242_v11  ;;  %v10973_v11 = vpack.c.bf16 %v2643_v54, %v2643_v54  ;;  %v9110_v54 = vpack.c.bf16 %v2884_v53, %v2884_v53  ;;  %v2896_v53 = vld [vmem:[#allocation2 + $0xb3] sm:$0xff] }
 0x215   : > { %2336 = vst.msk [vmem:[#allocation3] sm:$0xf] %vm2335_vm9, %v2240_v12  ;;  %2550 = vrot.lane.b32.xlu1 %v13017_v28, %s9882_s25  ;;  %v10975_v12 = vpack.c.bf16 %v2642_v2, %v2642_v2  ;;  %v2645_v28 = vld [vmem:[#allocation2 + $0xf9] sm:$0xff]  ;;  %v9109_v2 = vpack.c.bf16 %v2883_v60, %v2883_v60  ;;  %v2895_v60 = vld [vmem:[#allocation2 + $0xab] sm:$0xff] }
 0x216   : > { %2548 = vrot.lane.b32.xlu0 %v13018_v29, %s9882_s25  ;;  %v2644_v29 = vld [vmem:[#allocation2 + $0xf1] sm:$0xff] }
 0x217   : > { %v2246_v46 = vpop.permute.xlu1 %2245 }
 0x218   : > { %v2244_v47 = vpop.permute.xlu0 %2243  ;;  %2339 = vst.msk [vmem:[#allocation3 + $0xc] sm:$0xf] %vm2335_vm9, %v2246_v46  ;;  %v10983_v46 = vpack.c.bf16 %v2645_v28, %v2645_v28 }
 0x219   : > { %2338 = vst.msk [vmem:[#allocation3 + $0x8] sm:$0xf] %vm2335_vm9, %v2244_v47  ;;  %2554 = vrot.lane.b32.xlu1 %v13019_v56, %s9882_s25  ;;  %v10985_v47 = vpack.c.bf16 %v2644_v29, %v2644_v29  ;;  %v2647_v56 = vld [vmem:[#allocation2 + $0x111] sm:$0xff] }
 0x21a   : > { %2552 = vrot.lane.b32.xlu0 %v13020_v58, %s9882_s25  ;;  %v2646_v58 = vld [vmem:[#allocation2 + $0x109] sm:$0xff]  ;;  %v10993_v13 = vpack.c.bf16 %v2647_v56, %v2647_v56  ;;  %v2888_v56 = vld [vmem:[#allocation2 + $0x53] sm:$0xff] }
 0x21b   : > { %v2250_v25 = vpop.permute.xlu1 %2249  ;;  %v10995_v14 = vpack.c.bf16 %v2646_v58, %v2646_v58  ;;  %v2887_v58 = vld [vmem:[#allocation2 + $0x4b] sm:$0xff] }
 0x21c   : > { %v2248_v26 = vpop.permute.xlu0 %2247  ;;  %2341 = vst.msk [vmem:[#allocation3 + $0x14] sm:$0xf] %vm2335_vm9, %v2250_v25  ;;  %v2649_v25 = vld [vmem:[#allocation2 + $0x129] sm:$0xff] }
 0x21d   : > { %2340 = vst.msk [vmem:[#allocation3 + $0x10] sm:$0xf] %vm2335_vm9, %v2248_v26  ;;  %2558 = vrot.lane.b32.xlu1 %v9076_v63, %s9882_s25  ;;  %v2648_v26 = vld [vmem:[#allocation2 + $0x121] sm:$0xff]  ;;  %v11003_v61 = vpack.c.bf16 %v2649_v25, %v2649_v25  ;;  %v11061_v25 = vpack.c.bf16 %v2888_v56, %v2888_v56 }
 0x21e   : > { %2556 = vrot.lane.b32.xlu0 %v9075_v0, %s9882_s25  ;;  %v11005_v62 = vpack.c.bf16 %v2648_v26, %v2648_v26  ;;  %v11063_v26 = vpack.c.bf16 %v2887_v58, %v2887_v58  ;;  %v2900_v56 = vld [vmem:[#allocation2 + $0xe3] sm:$0xff]  ;;  %v2899_v58 = vld [vmem:[#allocation2 + $0xdb] sm:$0xff]  ;;  %s9903_s25 = smov 127  }
 0x21f   : > { %v2254_v6 = vpop.permute.xlu1 %2253 }
 0x220   : > { %v2252_v10 = vpop.permute.xlu0 %2251  ;;  %2343 = vst.msk [vmem:[#allocation3 + $0x1c] sm:$0xf] %vm2335_vm9, %v2254_v6  ;;  %v2651_v6 = vld [vmem:[#allocation2 + $0x141] sm:$0xff] }
 0x221   : > { %2342 = vst.msk [vmem:[#allocation3 + $0x18] sm:$0xf] %vm2335_vm9, %v2252_v10  ;;  %2756 = vrot.lane.b32.xlu1 %v9078_v43, %s9883_s26  ;;  %v2650_v10 = vld [vmem:[#allocation2 + $0x139] sm:$0xff]  ;;  %v11013_v24 = vpack.c.bf16 %v2651_v6, %v2651_v6 }
 0x222   : > { %2754 = vrot.lane.b32.xlu0 %v9077_v45, %s9883_s26  ;;  %v11015_v41 = vpack.c.bf16 %v2650_v10, %v2650_v10 }
 0x223   : > { %v2258_v50 = vpop.permute.xlu1 %2257 }
 0x224   : > { %v2256_v20 = vpop.permute.xlu0 %2255  ;;  %2345 = vst.msk [vmem:[#allocation3 + $0x24] sm:$0xf] %vm2335_vm9, %v2258_v50  ;;  %v2653_v50 = vld [vmem:[#allocation2 + $0x159] sm:$0xff] }
 0x225   : > { %2344 = vst.msk [vmem:[#allocation3 + $0x20] sm:$0xf] %vm2335_vm9, %v2256_v20  ;;  %2760 = vrot.lane.b32.xlu1 %v9080_v31, %s9883_s26  ;;  %v2652_v20 = vld [vmem:[#allocation2 + $0x151] sm:$0xff] }
 0x226   : > { %2758 = vrot.lane.b32.xlu0 %v9079_v32, %s9883_s26 }
 0x227   : > { %v2262_v21 = vpop.permute.xlu1 %2261 }
 0x228   : > { %v2260_v27 = vpop.permute.xlu0 %2259  ;;  %2347 = vst.msk [vmem:[#allocation3 + $0x2c] sm:$0xf] %vm2335_vm9, %v2262_v21  ;;  %v11023_v21 = vpack.c.bf16 %v2653_v50, %v2653_v50  ;;  %v2892_v50 = vld [vmem:[#allocation2 + $0x83] sm:$0xff] }
 0x229   : > { %2346 = vst.msk [vmem:[#allocation3 + $0x28] sm:$0xf] %vm2335_vm9, %v2260_v27  ;;  %2764 = vrot.lane.b32.xlu1 %v10913_v7, %s9883_s26  ;;  %v11025_v27 = vpack.c.bf16 %v2652_v20, %v2652_v20  ;;  %v2891_v20 = vld [vmem:[#allocation2 + $0x7b] sm:$0xff]  ;;  %v11081_v5 = vpack.c.bf16 %v2892_v50, %v2892_v50 }
 0x22a   : > { %2762 = vrot.lane.b32.xlu0 %v10915_v33, %s9883_s26  ;;  %v11083_v18 = vpack.c.bf16 %v2891_v20, %v2891_v20 }
 0x22b   : > { %v2266_v34 = vpop.permute.xlu1 %2265 }
 0x22c   : > { %v2264_v39 = vpop.permute.xlu0 %2263  ;;  %2349 = vst.msk [vmem:[#allocation3 + $0x34] sm:$0xf] %vm2335_vm9, %v2266_v34 }
 0x22d   : > { %2348 = vst.msk [vmem:[#allocation3 + $0x30] sm:$0xf] %vm2335_vm9, %v2264_v39  ;;  %2768 = vrot.lane.b32.xlu1 %v10923_v35, %s9883_s26 }
 0x22e   : > { %2766 = vrot.lane.b32.xlu0 %v10925_v30, %s9883_s26 }
 0x22f   : > { %v2270_v36 = vpop.permute.xlu1 %2269 }
 0x230   : > { %v2268_v59 = vpop.permute.xlu0 %2267  ;;  %2351 = vst.msk [vmem:[#allocation3 + $0x3c] sm:$0xf] %vm2335_vm9, %v2270_v36  ;;  %v2657_v36 = vld [vmem:[#allocation2 + $0x189] sm:$0xff] }
 0x231   : > { %2350 = vst.msk [vmem:[#allocation3 + $0x38] sm:$0xf] %vm2335_vm9, %v2268_v59  ;;  %2772 = vrot.lane.b32.xlu1 %v10933_v52, %s9883_s26  ;;  %v2656_v59 = vld [vmem:[#allocation2 + $0x181] sm:$0xff] }
 0x232   : > { %2770 = vrot.lane.b32.xlu0 %v10935_v44, %s9883_s26 }
 0x233   : > { %v2274_v57 = vpop.permute.xlu1 %2273 }
 0x234   : > { %v2272_v1 = vpop.permute.xlu0 %2271  ;;  %2353 = vst.msk [vmem:[#allocation3 + $0x44] sm:$0xf] %vm2335_vm9, %v2274_v57  ;;  %v11043_v57 = vpack.c.bf16 %v2657_v36, %v2657_v36 }
 0x235   : > { %2352 = vst.msk [vmem:[#allocation3 + $0x40] sm:$0xf] %vm2335_vm9, %v2272_v1  ;;  %2776 = vrot.lane.b32.xlu1 %v10943_v17, %s9883_s26  ;;  %v11045_v1 = vpack.c.bf16 %v2656_v59, %v2656_v59 }
 0x236   : > { %2774 = vrot.lane.b32.xlu0 %v10945_v4, %s9883_s26 }
 0x237   : > { %v2278_v48 = vpop.permute.xlu1 %2277 }
 0x238   : > { %v2276_v16 = vpop.permute.xlu0 %2275  ;;  %2355 = vst.msk [vmem:[#allocation3 + $0x4c] sm:$0xf] %vm2335_vm9, %v2278_v48 }
 0x239   : > { %2354 = vst.msk [vmem:[#allocation3 + $0x48] sm:$0xf] %vm2335_vm9, %v2276_v16  ;;  %2780 = vrot.lane.b32.xlu1 %v10953_v55, %s9883_s26 }
 0x23a   : > { %2778 = vrot.lane.b32.xlu0 %v10955_v3, %s9883_s26 }
 0x23b   : > { %v2282_v23 = vpop.permute.xlu1 %2281 }
 0x23c   : > { %v2280_v49 = vpop.permute.xlu0 %2279  ;;  %2357 = vst.msk [vmem:[#allocation3 + $0x54] sm:$0xf] %vm2335_vm9, %v2282_v23  ;;  %v2886_v23 = vld [vmem:[#allocation2 + $0x3b] sm:$0xff] }
 0x23d   : > { %2356 = vst.msk [vmem:[#allocation3 + $0x50] sm:$0xf] %vm2335_vm9, %v2280_v49  ;;  %2784 = vrot.lane.b32.xlu1 %v10963_v51, %s9883_s26  ;;  %v2885_v49 = vld [vmem:[#allocation2 + $0x33] sm:$0xff] }
 0x23e   : > { %2782 = vrot.lane.b32.xlu0 %v10965_v22, %s9883_s26 }
 0x23f   : > { %v2286_v37 = vpop.permute.xlu1 %2285 }
 0x240   : > { %v2284_v38 = vpop.permute.xlu0 %2283  ;;  %2359 = vst.msk [vmem:[#allocation3 + $0x5c] sm:$0xf] %vm2335_vm9, %v2286_v37  ;;  %v9112_v37 = vpack.c.bf16 %v2886_v23, %v2886_v23  ;;  %v2898_v23 = vld [vmem:[#allocation2 + $0xcb] sm:$0xff] }
 0x241   : > { %2358 = vst.msk [vmem:[#allocation3 + $0x58] sm:$0xf] %vm2335_vm9, %v2284_v38  ;;  %2788 = vrot.lane.b32.xlu1 %v10973_v11, %s9883_s26  ;;  %v9111_v38 = vpack.c.bf16 %v2885_v49, %v2885_v49  ;;  %v2897_v49 = vld [vmem:[#allocation2 + $0xc3] sm:$0xff] }
 0x242   : > { %2786 = vrot.lane.b32.xlu0 %v10975_v12, %s9883_s26 }
 0x243   : > { %v2290_v63 = vpop.permute.xlu1 %2289 }
 0x244   : > { %v2288_v0 = vpop.permute.xlu0 %2287  ;;  %2361 = vst.msk [vmem:[#allocation3 + $0x64] sm:$0xf] %vm2335_vm9, %v2290_v63 }
 0x245   : > { %2360 = vst.msk [vmem:[#allocation3 + $0x60] sm:$0xf] %vm2335_vm9, %v2288_v0  ;;  %2792 = vrot.lane.b32.xlu1 %v10983_v46, %s9883_s26 }
 0x246   : > { %2790 = vrot.lane.b32.xlu0 %v10985_v47, %s9883_s26 }
 0x247   : > { %v2294_v43 = vpop.permute.xlu1 %2293 }
 0x248   : > { %v2292_v45 = vpop.permute.xlu0 %2291  ;;  %2363 = vst.msk [vmem:[#allocation3 + $0x6c] sm:$0xf] %vm2335_vm9, %v2294_v43  ;;  %v2890_v43 = vld [vmem:[#allocation2 + $0x6b] sm:$0xff] }
 0x249   : > { %2362 = vst.msk [vmem:[#allocation3 + $0x68] sm:$0xf] %vm2335_vm9, %v2292_v45  ;;  %2796 = vrot.lane.b32.xlu1 %v10993_v13, %s9883_s26  ;;  %v2889_v45 = vld [vmem:[#allocation2 + $0x63] sm:$0xff] }
 0x24a   : > { %2794 = vrot.lane.b32.xlu0 %v10995_v14, %s9883_s26 }
 0x24b   : > { %v2298_v31 = vpop.permute.xlu1 %2297 }
 0x24c   : > { %v2296_v32 = vpop.permute.xlu0 %2295  ;;  %2365 = vst.msk [vmem:[#allocation3 + $0x74] sm:$0xf] %vm2335_vm9, %v2298_v31  ;;  %v11071_v31 = vpack.c.bf16 %v2890_v43, %v2890_v43  ;;  %v11121_v43 = vpack.c.bf16 %v2900_v56, %v2900_v56  ;;  %v2908_v56 = vld [vmem:[#allocation2 + $0x143] sm:$0xff] }
 0x24d   : > { %2364 = vst.msk [vmem:[#allocation3 + $0x70] sm:$0xf] %vm2335_vm9, %v2296_v32  ;;  %2800 = vrot.lane.b32.xlu1 %v11003_v61, %s9883_s26  ;;  %v11073_v32 = vpack.c.bf16 %v2889_v45, %v2889_v45  ;;  %v11123_v45 = vpack.c.bf16 %v2899_v58, %v2899_v58  ;;  %v2907_v58 = vld [vmem:[#allocation2 + $0x13b] sm:$0xff] }
 0x24e   : > { %2798 = vrot.lane.b32.xlu0 %v11005_v62, %s9883_s26 }
 0x24f   : > { %v2302_v8 = vpop.permute.xlu1 %2301 }
 0x250   : > { %v2300_v19 = vpop.permute.xlu0 %2299  ;;  %2367 = vst.msk [vmem:[#allocation3 + $0x7c] sm:$0xf] %vm2335_vm9, %v2302_v8 }
 0x251   : > { %2366 = vst.msk [vmem:[#allocation3 + $0x78] sm:$0xf] %vm2335_vm9, %v2300_v19  ;;  %2804 = vrot.lane.b32.xlu1 %v11013_v24, %s9883_s26  ;;  %vm6449_vm9 = vcmask 782048  }
 0x252   : > { %2802 = vrot.lane.b32.xlu0 %v11015_v41, %s9883_s26 }
 0x253   : > { %v2499_v34 = vpop.permute.xlu1 %2498 }
 0x254   : > { %v2497_v39 = vpop.permute.xlu0 %2496  ;;  %2594 = vst.msk [vmem:[#allocation3 + $0x4] sm:$0xf] %vm2592_vm10, %v2499_v34  ;;  %v2894_v34 = vld [vmem:[#allocation2 + $0x9b] sm:$0xff] }
 0x255   : > { %2593 = vst.msk [vmem:[#allocation3] sm:$0xf] %vm2592_vm10, %v2497_v39  ;;  %2808 = vrot.lane.b32.xlu1 %v11023_v21, %s9883_s26  ;;  %v2893_v39 = vld [vmem:[#allocation2 + $0x93] sm:$0xff] }
 0x256   : > { %2806 = vrot.lane.b32.xlu0 %v11025_v27, %s9883_s26 }
 0x257   : > { %v2503_v40 = vpop.permute.xlu1 %2502 }
 0x258   : > { %v2501_v42 = vpop.permute.xlu0 %2500  ;;  %2596 = vst.msk [vmem:[#allocation3 + $0xc] sm:$0xf] %vm2592_vm10, %v2503_v40  ;;  %v11091_v40 = vpack.c.bf16 %v2894_v34, %v2894_v34  ;;  %v2904_v34 = vld [vmem:[#allocation2 + $0x113] sm:$0xff] }
 0x259   : > { %2595 = vst.msk [vmem:[#allocation3 + $0x8] sm:$0xf] %vm2592_vm10, %v2501_v42  ;;  %2812 = vrot.lane.b32.xlu1 %v11033_v9, %s9883_s26  ;;  %v11093_v42 = vpack.c.bf16 %v2893_v39, %v2893_v39  ;;  %v2903_v39 = vld [vmem:[#allocation2 + $0x10b] sm:$0xff] }
 0x25a   : > { %2810 = vrot.lane.b32.xlu0 %v11035_v15, %s9883_s26 }
 0x25b   : > { %v2507_v48 = vpop.permute.xlu1 %2506 }
 0x25c   : > { %v2505_v16 = vpop.permute.xlu0 %2504  ;;  %2598 = vst.msk [vmem:[#allocation3 + $0x14] sm:$0xf] %vm2592_vm10, %v2507_v48 }
 0x25d   : > { %2597 = vst.msk [vmem:[#allocation3 + $0x10] sm:$0xf] %vm2592_vm10, %v2505_v16  ;;  %2816 = vrot.lane.b32.xlu1 %v11043_v57, %s9883_s26 }
 0x25e   : > { %2814 = vrot.lane.b32.xlu0 %v11045_v1, %s9883_s26 }
 0x25f   : > { %v2511_v28 = vpop.permute.xlu1 %2510 }
 0x260   : > { %v2509_v29 = vpop.permute.xlu0 %2508  ;;  %2600 = vst.msk [vmem:[#allocation3 + $0x1c] sm:$0xf] %vm2592_vm10, %v2511_v28 }
 0x261   : > { %2599 = vst.msk [vmem:[#allocation3 + $0x18] sm:$0xf] %vm2592_vm10, %v2509_v29  ;;  %3013 = vrot.lane.b32.xlu1 %v9110_v54, %s9884_s27  ;;  %v11101_v54 = vpack.c.bf16 %v2896_v53, %v2896_v53  ;;  %v11141_v53 = vpack.c.bf16 %v2904_v34, %v2904_v34 }
 0x262   : > { %3011 = vrot.lane.b32.xlu0 %v9109_v2, %s9884_s27  ;;  %v11103_v2 = vpack.c.bf16 %v2895_v60, %v2895_v60  ;;  %v11143_v60 = vpack.c.bf16 %v2903_v39, %v2903_v39 }
 0x263   : > { %v2515_v63 = vpop.permute.xlu1 %2514 }
 0x264   : > { %v2513_v0 = vpop.permute.xlu0 %2512  ;;  %2602 = vst.msk [vmem:[#allocation3 + $0x24] sm:$0xf] %vm2592_vm10, %v2515_v63 }
 0x265   : > { %2601 = vst.msk [vmem:[#allocation3 + $0x20] sm:$0xf] %vm2592_vm10, %v2513_v0  ;;  %3017 = vrot.lane.b32.xlu1 %v9112_v37, %s9884_s27  ;;  %v11111_v37 = vpack.c.bf16 %v2898_v23, %v2898_v23 }
 0x266   : > { %3015 = vrot.lane.b32.xlu0 %v9111_v38, %s9884_s27  ;;  %v11113_v38 = vpack.c.bf16 %v2897_v49, %v2897_v49 }
 0x267   : > { %v2519_v6 = vpop.permute.xlu1 %2518 }
 0x268   : > { %v2517_v10 = vpop.permute.xlu0 %2516  ;;  %2604 = vst.msk [vmem:[#allocation3 + $0x2c] sm:$0xf] %vm2592_vm10, %v2519_v6  ;;  %v2902_v6 = vld [vmem:[#allocation2 + $0xfb] sm:$0xff] }
 0x269   : > { %2603 = vst.msk [vmem:[#allocation3 + $0x28] sm:$0xf] %vm2592_vm10, %v2517_v10  ;;  %3021 = vrot.lane.b32.xlu1 %v11061_v25, %s9884_s27  ;;  %v2901_v10 = vld [vmem:[#allocation2 + $0xf3] sm:$0xff] }
 0x26a   : > { %3019 = vrot.lane.b32.xlu0 %v11063_v26, %s9884_s27 }
 0x26b   : > { %v2523_v8 = vpop.permute.xlu1 %2522 }
 0x26c   : > { %v2521_v19 = vpop.permute.xlu0 %2520  ;;  %2606 = vst.msk [vmem:[#allocation3 + $0x34] sm:$0xf] %vm2592_vm10, %v2523_v8  ;;  %v11131_v8 = vpack.c.bf16 %v2902_v6, %v2902_v6  ;;  %v11161_v6 = vpack.c.bf16 %v2908_v56, %v2908_v56 }
 0x26d   : > { %2605 = vst.msk [vmem:[#allocation3 + $0x30] sm:$0xf] %vm2592_vm10, %v2521_v19  ;;  %3025 = vrot.lane.b32.xlu1 %v11071_v31, %s9884_s27  ;;  %v11133_v19 = vpack.c.bf16 %v2901_v10, %v2901_v10  ;;  %v11163_v10 = vpack.c.bf16 %v2907_v58, %v2907_v58 }
 0x26e   : > { %3023 = vrot.lane.b32.xlu0 %v11073_v32, %s9884_s27 }
 0x26f   : > { %v2527_v36 = vpop.permute.xlu1 %2526 }
 0x270   : > { %v2525_v59 = vpop.permute.xlu0 %2524  ;;  %2608 = vst.msk [vmem:[#allocation3 + $0x3c] sm:$0xf] %vm2592_vm10, %v2527_v36 }
 0x271   : > { %2607 = vst.msk [vmem:[#allocation3 + $0x38] sm:$0xf] %vm2592_vm10, %v2525_v59  ;;  %3029 = vrot.lane.b32.xlu1 %v11081_v5, %s9884_s27 }
 0x272   : > { %3027 = vrot.lane.b32.xlu0 %v11083_v18, %s9884_s27 }
 0x273   : > { %v2531_v48 = vpop.permute.xlu1 %2530 }
 0x274   : > { %v2529_v16 = vpop.permute.xlu0 %2528  ;;  %2610 = vst.msk [vmem:[#allocation3 + $0x44] sm:$0xf] %vm2592_vm10, %v2531_v48  ;;  %v2906_v48 = vld [vmem:[#allocation2 + $0x12b] sm:$0xff] }
 0x275   : > { %2609 = vst.msk [vmem:[#allocation3 + $0x40] sm:$0xf] %vm2592_vm10, %v2529_v16  ;;  %3033 = vrot.lane.b32.xlu1 %v11091_v40, %s9884_s27  ;;  %v2905_v16 = vld [vmem:[#allocation2 + $0x123] sm:$0xff] }
 0x276   : > { %3031 = vrot.lane.b32.xlu0 %v11093_v42, %s9884_s27 }
 0x277   : > { %v2535_v28 = vpop.permute.xlu1 %2534 }
 0x278   : > { %v2533_v29 = vpop.permute.xlu0 %2532  ;;  %2612 = vst.msk [vmem:[#allocation3 + $0x4c] sm:$0xf] %vm2592_vm10, %v2535_v28  ;;  %v11151_v28 = vpack.c.bf16 %v2906_v48, %v2906_v48  ;;  %v2912_v48 = vld [vmem:[#allocation2 + $0x173] sm:$0xff] }
 0x279   : > { %2611 = vst.msk [vmem:[#allocation3 + $0x48] sm:$0xf] %vm2592_vm10, %v2533_v29  ;;  %3037 = vrot.lane.b32.xlu1 %v11101_v54, %s9884_s27  ;;  %v11153_v29 = vpack.c.bf16 %v2905_v16, %v2905_v16  ;;  %v2911_v16 = vld [vmem:[#allocation2 + $0x16b] sm:$0xff]  ;;  %v11181_v56 = vpack.c.bf16 %v2912_v48, %v2912_v48 }
 0x27a   : > { %3035 = vrot.lane.b32.xlu0 %v11103_v2, %s9884_s27  ;;  %v11183_v58 = vpack.c.bf16 %v2911_v16, %v2911_v16  ;;  %v3141_v48 = vld [vmem:[#allocation2 + $0x25] sm:$0xff]  ;;  %v3140_v16 = vld [vmem:[#allocation2 + $0x1d] sm:$0xff] }
 0x27b   : > { %v2539_v63 = vpop.permute.xlu1 %2538  ;;  %13022 = vst [vmem:[#allocation5_spill] sm:$0xff] %v11181_v56 }
 0x27c   : > { %v2537_v0 = vpop.permute.xlu0 %2536  ;;  %2614 = vst.msk [vmem:[#allocation3 + $0x54] sm:$0xf] %vm2592_vm10, %v2539_v63  ;;  %13023 = vst [vmem:[#allocation6_spill] sm:$0xff] %v11183_v58 }
 0x27d   : > { %2613 = vst.msk [vmem:[#allocation3 + $0x50] sm:$0xf] %vm2592_vm10, %v2537_v0  ;;  %3041 = vrot.lane.b32.xlu1 %v11111_v37, %s9884_s27 }
 0x27e   : > { %3039 = vrot.lane.b32.xlu0 %v11113_v38, %s9884_s27 }
 0x27f   : > { %v2543_v50 = vpop.permute.xlu1 %2542 }
 0x280   : > { %v2541_v20 = vpop.permute.xlu0 %2540  ;;  %2616 = vst.msk [vmem:[#allocation3 + $0x5c] sm:$0xf] %vm2592_vm10, %v2543_v50  ;;  %v2910_v50 = vld [vmem:[#allocation2 + $0x15b] sm:$0xff] }
 0x281   : > { %2615 = vst.msk [vmem:[#allocation3 + $0x58] sm:$0xf] %vm2592_vm10, %v2541_v20  ;;  %3045 = vrot.lane.b32.xlu1 %v11121_v43, %s9884_s27  ;;  %v2909_v20 = vld [vmem:[#allocation2 + $0x153] sm:$0xff] }
 0x282   : > { %3043 = vrot.lane.b32.xlu0 %v11123_v45, %s9884_s27 }
 0x283   : > { %v2547_v36 = vpop.permute.xlu1 %2546 }
 0x284   : > { %v2545_v59 = vpop.permute.xlu0 %2544  ;;  %2618 = vst.msk [vmem:[#allocation3 + $0x64] sm:$0xf] %vm2592_vm10, %v2547_v36  ;;  %v11171_v36 = vpack.c.bf16 %v2910_v50, %v2910_v50 }
 0x285   : > { %2617 = vst.msk [vmem:[#allocation3 + $0x60] sm:$0xf] %vm2592_vm10, %v2545_v59  ;;  %3049 = vrot.lane.b32.xlu1 %v11131_v8, %s9884_s27  ;;  %v11173_v59 = vpack.c.bf16 %v2909_v20, %v2909_v20 }
 0x286   : > { %3047 = vrot.lane.b32.xlu0 %v11133_v19, %s9884_s27 }
 0x287   : > { %v2551_v23 = vpop.permute.xlu1 %2550  ;;  %13021 = vst [vmem:[#allocation4_spill] sm:$0xff] %v11173_v59 }
 0x288   : > { %v2549_v49 = vpop.permute.xlu0 %2548  ;;  %2620 = vst.msk [vmem:[#allocation3 + $0x6c] sm:$0xf] %vm2592_vm10, %v2551_v23 }
 0x289   : > { %2619 = vst.msk [vmem:[#allocation3 + $0x68] sm:$0xf] %vm2592_vm10, %v2549_v49  ;;  %3053 = vrot.lane.b32.xlu1 %v11141_v53, %s9884_s27 }
 0x28a   : > { %3051 = vrot.lane.b32.xlu0 %v11143_v60, %s9884_s27 }
 0x28b   : > { %v2555_v63 = vpop.permute.xlu1 %2554 }
 0x28c   : > { %v2553_v0 = vpop.permute.xlu0 %2552  ;;  %2622 = vst.msk [vmem:[#allocation3 + $0x74] sm:$0xf] %vm2592_vm10, %v2555_v63  ;;  %v2914_v63 = vld [vmem:[#allocation2 + $0x18b] sm:$0xff] }
 0x28d   : > { %2621 = vst.msk [vmem:[#allocation3 + $0x70] sm:$0xf] %vm2592_vm10, %v2553_v0  ;;  %3057 = vrot.lane.b32.xlu1 %v11151_v28, %s9884_s27  ;;  %v2913_v0 = vld [vmem:[#allocation2 + $0x183] sm:$0xff] }
 0x28e   : > { %3055 = vrot.lane.b32.xlu0 %v11153_v29, %s9884_s27 }
 0x28f   : > { %v2559_v34 = vpop.permute.xlu1 %2558 }
 0x290   : > { %v2557_v39 = vpop.permute.xlu0 %2556  ;;  %2624 = vst.msk [vmem:[#allocation3 + $0x7c] sm:$0xf] %vm2592_vm10, %v2559_v34  ;;  %v11191_v34 = vpack.c.bf16 %v2914_v63, %v2914_v63  ;;  %v3143_v63 = vld [vmem:[#allocation2 + $0x3d] sm:$0xff] }
 0x291   : > { %2623 = vst.msk [vmem:[#allocation3 + $0x78] sm:$0xf] %vm2592_vm10, %v2557_v39  ;;  %3061 = vrot.lane.b32.xlu1 %v11161_v6, %s9884_s27  ;;  %v11193_v39 = vpack.c.bf16 %v2913_v0, %v2913_v0  ;;  %vm6707_vm10 = vcmask 814848  }
 0x292   : > { %3059 = vrot.lane.b32.xlu0 %v11163_v10, %s9884_s27  ;;  %13024 = vst [vmem:[#allocation7_spill] sm:$0xff] %v11191_v34 }
 0x293   : > { %v2757_v23 = vpop.permute.xlu1 %2756  ;;  %13025 = vst [vmem:[#allocation8_spill] sm:$0xff] %v11193_v39 }
 0x294   : > { %v2755_v49 = vpop.permute.xlu0 %2754  ;;  %2852 = vst.msk [vmem:[#allocation3 + $0x4] sm:$0xf] %vm2850_vm11, %v2757_v23 }
 0x295   : > { %2851 = vst.msk [vmem:[#allocation3] sm:$0xf] %vm2850_vm11, %v2755_v49  ;;  %3065 = vrot.lane.b32.xlu1 %v11171_v36, %s9884_s27 }
 0x296   : > { %3063 = vrot.lane.b32.xlu0 %v11173_v59, %s9884_s27  ;;  %v3144_v59 = vld [vmem:[#allocation2 + $0x4d] sm:$0xff] }
 0x297   : > { %v2761_v50 = vpop.permute.xlu1 %2760 }
 0x298   : > { %v2759_v20 = vpop.permute.xlu0 %2758  ;;  %2854 = vst.msk [vmem:[#allocation3 + $0xc] sm:$0xf] %vm2850_vm11, %v2761_v50  ;;  %v9142_v50 = vpack.c.bf16 %v3141_v48, %v3141_v48 }
 0x299   : > { %2853 = vst.msk [vmem:[#allocation3 + $0x8] sm:$0xf] %vm2850_vm11, %v2759_v20  ;;  %3069 = vrot.lane.b32.xlu1 %v11181_v56, %s9884_s27  ;;  %v9141_v20 = vpack.c.bf16 %v3140_v16, %v3140_v16  ;;  %v11211_v16 = vpack.c.bf16 %v3144_v59, %v3144_v59  ;;  %v3149_v59 = vld [vmem:[#allocation2 + $0x85] sm:$0xff] }
 0x29a   : > { %3067 = vrot.lane.b32.xlu0 %v11183_v58, %s9884_s27  ;;  %v3142_v58 = vld [vmem:[#allocation2 + $0x35] sm:$0xff] }
 0x29b   : > { %v2765_v23 = vpop.permute.xlu1 %2764  ;;  %13026 = vst [vmem:[#allocation9_spill] sm:$0xff] %v11211_v16 }
 0x29c   : > { %v2763_v49 = vpop.permute.xlu0 %2762  ;;  %2856 = vst.msk [vmem:[#allocation3 + $0x14] sm:$0xf] %vm2850_vm11, %v2765_v23  ;;  %v9144_v23 = vpack.c.bf16 %v3143_v63, %v3143_v63 }
 0x29d   : > { %2855 = vst.msk [vmem:[#allocation3 + $0x10] sm:$0xf] %vm2850_vm11, %v2763_v49  ;;  %3073 = vrot.lane.b32.xlu1 %v11191_v34, %s9884_s27  ;;  %v9143_v49 = vpack.c.bf16 %v3142_v58, %v3142_v58  ;;  %v3145_v34 = vld [vmem:[#allocation2 + $0x55] sm:$0xff] }
 0x29e   : > { %3071 = vrot.lane.b32.xlu0 %v11193_v39, %s9884_s27 }
 0x29f   : > { %v2769_v0 = vpop.permute.xlu1 %2768 }
 0x2a0   : > { %v2767_v56 = vpop.permute.xlu0 %2766  ;;  %2858 = vst.msk [vmem:[#allocation3 + $0x1c] sm:$0xf] %vm2850_vm11, %v2769_v0  ;;  %v3148_v0 = vld [vmem:[#allocation2 + $0x7d] sm:$0xff] }
 0x2a1   : > { %2857 = vst.msk [vmem:[#allocation3 + $0x18] sm:$0xf] %vm2850_vm11, %v2767_v56  ;;  %3270 = vrot.lane.b32.xlu1 %v9142_v50, %s9885_s28  ;;  %v11209_v56 = vpack.c.bf16 %v3145_v34, %v3145_v34  ;;  %v3147_v50 = vld [vmem:[#allocation2 + $0x6d] sm:$0xff] }
 0x2a2   : > { %3268 = vrot.lane.b32.xlu0 %v9141_v20, %s9885_s28  ;;  %v3146_v20 = vld [vmem:[#allocation2 + $0x65] sm:$0xff] }
 0x2a3   : > { %v2773_v39 = vpop.permute.xlu1 %2772  ;;  %v11221_v34 = vpack.c.bf16 %v3146_v20, %v3146_v20  ;;  %v3151_v20 = vld [vmem:[#allocation2 + $0x9d] sm:$0xff] }
 0x2a4   : > { %v2771_v48 = vpop.permute.xlu0 %2770  ;;  %2860 = vst.msk [vmem:[#allocation3 + $0x24] sm:$0xf] %vm2850_vm11, %v2773_v39  ;;  %v11219_v39 = vpack.c.bf16 %v3147_v50, %v3147_v50  ;;  %v11231_v50 = vpack.c.bf16 %v3148_v0, %v3148_v0  ;;  %v3153_v0 = vld [vmem:[#allocation2 + $0xb5] sm:$0xff] }
 0x2a5   : > { %2859 = vst.msk [vmem:[#allocation3 + $0x20] sm:$0xf] %vm2850_vm11, %v2771_v48  ;;  %3274 = vrot.lane.b32.xlu1 %v9144_v23, %s9885_s28  ;;  %13028 = vst [vmem:[#allocation11_spill] sm:$0xff] %v11221_v34  ;;  %v11229_v48 = vpack.c.bf16 %v3149_v59, %v3149_v59 }
 0x2a6   : > { %3272 = vrot.lane.b32.xlu0 %v9143_v49, %s9885_s28  ;;  %13027 = vst [vmem:[#allocation10_spill] sm:$0xff] %v11219_v39  ;;  %13030 = vst [vmem:[#allocation13_spill] sm:$0xff] %v11231_v50 }
 0x2a7   : > { %v2777_v63 = vpop.permute.xlu1 %2776  ;;  %13029 = vst [vmem:[#allocation12_spill] sm:$0xff] %v11229_v48 }
 0x2a8   : > { %v2775_v58 = vpop.permute.xlu0 %2774  ;;  %2862 = vst.msk [vmem:[#allocation3 + $0x2c] sm:$0xf] %vm2850_vm11, %v2777_v63  ;;  %v3150_v63 = vld [vmem:[#allocation2 + $0x95] sm:$0xff] }
 0x2a9   : > { %2861 = vst.msk [vmem:[#allocation3 + $0x28] sm:$0xf] %vm2850_vm11, %v2775_v58  ;;  %3278 = vrot.lane.b32.xlu1 %v11209_v56, %s9885_s28  ;;  %v11241_v59 = vpack.c.bf16 %v3150_v63, %v3150_v63  ;;  %v3155_v63 = vld [vmem:[#allocation2 + $0xcd] sm:$0xff] }
 0x2aa   : > { %3276 = vrot.lane.b32.xlu0 %v11211_v16, %s9885_s28 }
 0x2ab   : > { %v2781_v23 = vpop.permute.xlu1 %2780  ;;  %13032 = vst [vmem:[#allocation15_spill] sm:$0xff] %v11241_v59 }
 0x2ac   : > { %v2779_v49 = vpop.permute.xlu0 %2778  ;;  %2864 = vst.msk [vmem:[#allocation3 + $0x34] sm:$0xf] %vm2850_vm11, %v2781_v23  ;;  %v11239_v23 = vpack.c.bf16 %v3151_v20, %v3151_v20 }
 0x2ad   : > { %2863 = vst.msk [vmem:[#allocation3 + $0x30] sm:$0xf] %vm2850_vm11, %v2779_v49  ;;  %3282 = vrot.lane.b32.xlu1 %v11219_v39, %s9885_s28  ;;  %v3152_v49 = vld [vmem:[#allocation2 + $0xad] sm:$0xff] }
 0x2ae   : > { %3280 = vrot.lane.b32.xlu0 %v11221_v34, %s9885_s28  ;;  %13031 = vst [vmem:[#allocation14_spill] sm:$0xff] %v11239_v23  ;;  %v11251_v20 = vpack.c.bf16 %v3152_v49, %v3152_v49  ;;  %v3156_v49 = vld [vmem:[#allocation2 + $0xdd] sm:$0xff] }
 0x2af   : > { %v2785_v58 = vpop.permute.xlu1 %2784 }
 0x2b0   : > { %v2783_v16 = vpop.permute.xlu0 %2782  ;;  %2866 = vst.msk [vmem:[#allocation3 + $0x3c] sm:$0xf] %vm2850_vm11, %v2785_v58  ;;  %13034 = vst [vmem:[#allocation17_spill] sm:$0xff] %v11251_v20  ;;  %v3154_v58 = vld [vmem:[#allocation2 + $0xc5] sm:$0xff] }
 0x2b1   : > { %2865 = vst.msk [vmem:[#allocation3 + $0x38] sm:$0xf] %vm2850_vm11, %v2783_v16  ;;  %3286 = vrot.lane.b32.xlu1 %v11229_v48, %s9885_s28  ;;  %v11249_v16 = vpack.c.bf16 %v3153_v0, %v3153_v0  ;;  %v3157_v0 = vld [vmem:[#allocation2 + $0xe5] sm:$0xff] }
 0x2b2   : > { %3284 = vrot.lane.b32.xlu0 %v11231_v50, %s9885_s28 }
 0x2b3   : > { %v2789_v34 = vpop.permute.xlu1 %2788  ;;  %13033 = vst [vmem:[#allocation16_spill] sm:$0xff] %v11249_v16 }
 0x2b4   : > { %v2787_v39 = vpop.permute.xlu0 %2786  ;;  %2868 = vst.msk [vmem:[#allocation3 + $0x44] sm:$0xf] %vm2850_vm11, %v2789_v34  ;;  %v11261_v34 = vpack.c.bf16 %v3154_v58, %v3154_v58  ;;  %v3158_v58 = vld [vmem:[#allocation2 + $0xf5] sm:$0xff] }
 0x2b5   : > { %2867 = vst.msk [vmem:[#allocation3 + $0x40] sm:$0xf] %vm2850_vm11, %v2787_v39  ;;  %3290 = vrot.lane.b32.xlu1 %v11239_v23, %s9885_s28  ;;  %v11259_v39 = vpack.c.bf16 %v3155_v63, %v3155_v63  ;;  %v3159_v63 = vld [vmem:[#allocation2 + $0xfd] sm:$0xff] }
 0x2b6   : > { %3288 = vrot.lane.b32.xlu0 %v11241_v59, %s9885_s28  ;;  %13036 = vst [vmem:[#allocation19_spill] sm:$0xff] %v11261_v34 }
 0x2b7   : > { %v2793_v50 = vpop.permute.xlu1 %2792  ;;  %13035 = vst [vmem:[#allocation18_spill] sm:$0xff] %v11259_v39 }
 0x2b8   : > { %v2791_v48 = vpop.permute.xlu0 %2790  ;;  %2870 = vst.msk [vmem:[#allocation3 + $0x4c] sm:$0xf] %vm2850_vm11, %v2793_v50  ;;  %v11271_v50 = vpack.c.bf16 %v3156_v49, %v3156_v49  ;;  %v3160_v49 = vld [vmem:[#allocation2 + $0x10d] sm:$0xff] }
 0x2b9   : > { %2869 = vst.msk [vmem:[#allocation3 + $0x48] sm:$0xf] %vm2850_vm11, %v2791_v48  ;;  %3294 = vrot.lane.b32.xlu1 %v11249_v16, %s9885_s28  ;;  %v11269_v48 = vpack.c.bf16 %v3157_v0, %v3157_v0  ;;  %v3161_v0 = vld [vmem:[#allocation2 + $0x115] sm:$0xff] }
 0x2ba   : > { %3292 = vrot.lane.b32.xlu0 %v11251_v20, %s9885_s28  ;;  %13038 = vst [vmem:[#allocation21_spill] sm:$0xff] %v11271_v50 }
 0x2bb   : > { %v2797_v59 = vpop.permute.xlu1 %2796  ;;  %13037 = vst [vmem:[#allocation20_spill] sm:$0xff] %v11269_v48 }
 0x2bc   : > { %v2795_v23 = vpop.permute.xlu0 %2794  ;;  %2872 = vst.msk [vmem:[#allocation3 + $0x54] sm:$0xf] %vm2850_vm11, %v2797_v59  ;;  %v11281_v59 = vpack.c.bf16 %v3158_v58, %v3158_v58  ;;  %v3162_v58 = vld [vmem:[#allocation2 + $0x125] sm:$0xff] }
 0x2bd   : > { %2871 = vst.msk [vmem:[#allocation3 + $0x50] sm:$0xf] %vm2850_vm11, %v2795_v23  ;;  %3298 = vrot.lane.b32.xlu1 %v11259_v39, %s9885_s28  ;;  %v11279_v23 = vpack.c.bf16 %v3159_v63, %v3159_v63  ;;  %v3163_v63 = vld [vmem:[#allocation2 + $0x12d] sm:$0xff] }
 0x2be   : > { %3296 = vrot.lane.b32.xlu0 %v11261_v34, %s9885_s28  ;;  %13040 = vst [vmem:[#allocation23_spill] sm:$0xff] %v11281_v59 }
 0x2bf   : > { %v2801_v20 = vpop.permute.xlu1 %2800  ;;  %13039 = vst [vmem:[#allocation22_spill] sm:$0xff] %v11279_v23 }
 0x2c0   : > { %v2799_v16 = vpop.permute.xlu0 %2798  ;;  %2874 = vst.msk [vmem:[#allocation3 + $0x5c] sm:$0xf] %vm2850_vm11, %v2801_v20  ;;  %v11291_v20 = vpack.c.bf16 %v3160_v49, %v3160_v49  ;;  %v3164_v49 = vld [vmem:[#allocation2 + $0x13d] sm:$0xff] }
 0x2c1   : > { %2873 = vst.msk [vmem:[#allocation3 + $0x58] sm:$0xf] %vm2850_vm11, %v2799_v16  ;;  %3302 = vrot.lane.b32.xlu1 %v11269_v48, %s9885_s28  ;;  %v11289_v16 = vpack.c.bf16 %v3161_v0, %v3161_v0  ;;  %v3165_v0 = vld [vmem:[#allocation2 + $0x145] sm:$0xff] }
 0x2c2   : > { %3300 = vrot.lane.b32.xlu0 %v11271_v50, %s9885_s28  ;;  %13042 = vst [vmem:[#allocation25_spill] sm:$0xff] %v11291_v20 }
 0x2c3   : > { %v2805_v34 = vpop.permute.xlu1 %2804  ;;  %13041 = vst [vmem:[#allocation24_spill] sm:$0xff] %v11289_v16 }
 0x2c4   : > { %v2803_v39 = vpop.permute.xlu0 %2802  ;;  %2876 = vst.msk [vmem:[#allocation3 + $0x64] sm:$0xf] %vm2850_vm11, %v2805_v34  ;;  %v11301_v34 = vpack.c.bf16 %v3162_v58, %v3162_v58  ;;  %v3166_v58 = vld [vmem:[#allocation2 + $0x155] sm:$0xff] }
 0x2c5   : > { %2875 = vst.msk [vmem:[#allocation3 + $0x60] sm:$0xf] %vm2850_vm11, %v2803_v39  ;;  %3306 = vrot.lane.b32.xlu1 %v11279_v23, %s9885_s28  ;;  %v11299_v39 = vpack.c.bf16 %v3163_v63, %v3163_v63  ;;  %v3167_v63 = vld [vmem:[#allocation2 + $0x15d] sm:$0xff] }
 0x2c6   : > { %3304 = vrot.lane.b32.xlu0 %v11281_v59, %s9885_s28  ;;  %13044 = vst [vmem:[#allocation27_spill] sm:$0xff] %v11301_v34 }
 0x2c7   : > { %v2809_v50 = vpop.permute.xlu1 %2808  ;;  %13043 = vst [vmem:[#allocation26_spill] sm:$0xff] %v11299_v39 }
 0x2c8   : > { %v2807_v48 = vpop.permute.xlu0 %2806  ;;  %2878 = vst.msk [vmem:[#allocation3 + $0x6c] sm:$0xf] %vm2850_vm11, %v2809_v50  ;;  %v11311_v50 = vpack.c.bf16 %v3164_v49, %v3164_v49  ;;  %v3168_v49 = vld [vmem:[#allocation2 + $0x16d] sm:$0xff] }
 0x2c9   : > { %2877 = vst.msk [vmem:[#allocation3 + $0x68] sm:$0xf] %vm2850_vm11, %v2807_v48  ;;  %3310 = vrot.lane.b32.xlu1 %v11289_v16, %s9885_s28  ;;  %v11309_v48 = vpack.c.bf16 %v3165_v0, %v3165_v0  ;;  %v3169_v0 = vld [vmem:[#allocation2 + $0x175] sm:$0xff] }
 0x2ca   : > { %3308 = vrot.lane.b32.xlu0 %v11291_v20, %s9885_s28  ;;  %13046 = vst [vmem:[#allocation29_spill] sm:$0xff] %v11311_v50 }
 0x2cb   : > { %v2813_v59 = vpop.permute.xlu1 %2812  ;;  %13045 = vst [vmem:[#allocation28_spill] sm:$0xff] %v11309_v48 }
 0x2cc   : > { %v2811_v23 = vpop.permute.xlu0 %2810  ;;  %2880 = vst.msk [vmem:[#allocation3 + $0x74] sm:$0xf] %vm2850_vm11, %v2813_v59  ;;  %v11321_v59 = vpack.c.bf16 %v3166_v58, %v3166_v58  ;;  %v3170_v58 = vld [vmem:[#allocation2 + $0x185] sm:$0xff] }
 0x2cd   : > { %2879 = vst.msk [vmem:[#allocation3 + $0x70] sm:$0xf] %vm2850_vm11, %v2811_v23  ;;  %3314 = vrot.lane.b32.xlu1 %v11299_v39, %s9885_s28  ;;  %v11319_v23 = vpack.c.bf16 %v3167_v63, %v3167_v63  ;;  %v3171_v63 = vld [vmem:[#allocation2 + $0x18d] sm:$0xff] }
 0x2ce   : > { %3312 = vrot.lane.b32.xlu0 %v11301_v34, %s9885_s28 }
 0x2cf   : > { %v2817_v20 = vpop.permute.xlu1 %2816 }
 0x2d0   : > { %v2815_v16 = vpop.permute.xlu0 %2814  ;;  %2882 = vst.msk [vmem:[#allocation3 + $0x7c] sm:$0xf] %vm2850_vm11, %v2817_v20  ;;  %v11331_v20 = vpack.c.bf16 %v3168_v49, %v3168_v49 }
 0x2d1   : > { %2881 = vst.msk [vmem:[#allocation3 + $0x78] sm:$0xf] %vm2850_vm11, %v2815_v16  ;;  %3318 = vrot.lane.b32.xlu1 %v11309_v48, %s9885_s28  ;;  %v11329_v16 = vpack.c.bf16 %v3169_v0, %v3169_v0  ;;  %vm6964_vm11 = vcmask 847648  }
 0x2d2   : > { %3316 = vrot.lane.b32.xlu0 %v11311_v50, %s9885_s28 }
 0x2d3   : > { %v3014_v34 = vpop.permute.xlu1 %3013 }
 0x2d4   : > { %v3012_v39 = vpop.permute.xlu0 %3011  ;;  %3109 = vst.msk [vmem:[#allocation3 + $0x4] sm:$0xf] %vm3107_vm12, %v3014_v34  ;;  %v11341_v34 = vpack.c.bf16 %v3170_v58, %v3170_v58 }
 0x2d5   : > { %3108 = vst.msk [vmem:[#allocation3] sm:$0xf] %vm3107_vm12, %v3012_v39  ;;  %3322 = vrot.lane.b32.xlu1 %v11319_v23, %s9885_s28  ;;  %v11339_v39 = vpack.c.bf16 %v3171_v63, %v3171_v63 }
 0x2d6   : > { %3320 = vrot.lane.b32.xlu0 %v11321_v59, %s9885_s28 }
 0x2d7   : > { %v3018_v50 = vpop.permute.xlu1 %3017 }
 0x2d8   : > { %v3016_v48 = vpop.permute.xlu0 %3015  ;;  %3111 = vst.msk [vmem:[#allocation3 + $0xc] sm:$0xf] %vm3107_vm12, %v3018_v50 }
 0x2d9   : > { %3110 = vst.msk [vmem:[#allocation3 + $0x8] sm:$0xf] %vm3107_vm12, %v3016_v48  ;;  %3326 = vrot.lane.b32.xlu1 %v11329_v16, %s9885_s28 }
 0x2da   : > { %3324 = vrot.lane.b32.xlu0 %v11331_v20, %s9885_s28 }
 0x2db   : > { %v3022_v0 = vpop.permute.xlu1 %3021 }
 0x2dc   : > { %v3020_v49 = vpop.permute.xlu0 %3019  ;;  %3113 = vst.msk [vmem:[#allocation3 + $0x14] sm:$0xf] %vm3107_vm12, %v3022_v0 }
 0x2dd   : > { %3112 = vst.msk [vmem:[#allocation3 + $0x10] sm:$0xf] %vm3107_vm12, %v3020_v49  ;;  %3330 = vrot.lane.b32.xlu1 %v11339_v39, %s9885_s28 }
 0x2de   : > { %3328 = vrot.lane.b32.xlu0 %v11341_v34, %s9885_s28 }
 0x2df   : > { %v3026_v48 = vpop.permute.xlu1 %3025 }
 0x2e0   : > { %v3024_v50 = vpop.permute.xlu0 %3023  ;;  %3115 = vst.msk [vmem:[#allocation3 + $0x1c] sm:$0xf] %vm3107_vm12, %v3026_v48 }
 0x2e1   : > { %3114 = vst.msk [vmem:[#allocation3 + $0x18] sm:$0xf] %vm3107_vm12, %v3024_v50  ;;  %3527 = vrot.lane.b32.xlu1 %v10913_v7, %s9886_s29  ;;  %v3427_v50 = vld [vmem:[#allocation2 + $0x1b1] sm:$0xff] }
 0x2e2   : > { %3525 = vrot.lane.b32.xlu0 %v10915_v33, %s9886_s29 }
 0x2e3   : > { %v3030_v63 = vpop.permute.xlu1 %3029 }
 0x2e4   : > { %v3028_v58 = vpop.permute.xlu0 %3027  ;;  %3117 = vst.msk [vmem:[#allocation3 + $0x24] sm:$0xf] %vm3107_vm12, %v3030_v63 }
 0x2e5   : > { %3116 = vst.msk [vmem:[#allocation3 + $0x20] sm:$0xf] %vm3107_vm12, %v3028_v58  ;;  %3531 = vrot.lane.b32.xlu1 %v10923_v35, %s9886_s29 }
 0x2e6   : > { %3529 = vrot.lane.b32.xlu0 %v10925_v30, %s9886_s29 }
 0x2e7   : > { %v3034_v0 = vpop.permute.xlu1 %3033 }
 0x2e8   : > { %v3032_v49 = vpop.permute.xlu0 %3031  ;;  %3119 = vst.msk [vmem:[#allocation3 + $0x2c] sm:$0xf] %vm3107_vm12, %v3034_v0 }
 0x2e9   : > { %3118 = vst.msk [vmem:[#allocation3 + $0x28] sm:$0xf] %vm3107_vm12, %v3032_v49  ;;  %3535 = vrot.lane.b32.xlu1 %v10933_v52, %s9886_s29 }
 0x2ea   : > { %3533 = vrot.lane.b32.xlu0 %v10935_v44, %s9886_s29 }
 0x2eb   : > { %v3038_v7 = vpop.permute.xlu1 %3037 }
 0x2ec   : > { %v3036_v33 = vpop.permute.xlu0 %3035  ;;  %3121 = vst.msk [vmem:[#allocation3 + $0x34] sm:$0xf] %vm3107_vm12, %v3038_v7 }
 0x2ed   : > { %3120 = vst.msk [vmem:[#allocation3 + $0x30] sm:$0xf] %vm3107_vm12, %v3036_v33  ;;  %3539 = vrot.lane.b32.xlu1 %v10943_v17, %s9886_s29 }
 0x2ee   : > { %3537 = vrot.lane.b32.xlu0 %v10945_v4, %s9886_s29 }
 0x2ef   : > { %v3042_v35 = vpop.permute.xlu1 %3041 }
 0x2f0   : > { %v3040_v30 = vpop.permute.xlu0 %3039  ;;  %3123 = vst.msk [vmem:[#allocation3 + $0x3c] sm:$0xf] %vm3107_vm12, %v3042_v35 }
 0x2f1   : > { %3122 = vst.msk [vmem:[#allocation3 + $0x38] sm:$0xf] %vm3107_vm12, %v3040_v30  ;;  %3543 = vrot.lane.b32.xlu1 %v10953_v55, %s9886_s29 }
 0x2f2   : > { %3541 = vrot.lane.b32.xlu0 %v10955_v3, %s9886_s29 }
 0x2f3   : > { %v3046_v52 = vpop.permute.xlu1 %3045 }
 0x2f4   : > { %v3044_v44 = vpop.permute.xlu0 %3043  ;;  %3125 = vst.msk [vmem:[#allocation3 + $0x44] sm:$0xf] %vm3107_vm12, %v3046_v52 }
 0x2f5   : > { %3124 = vst.msk [vmem:[#allocation3 + $0x40] sm:$0xf] %vm3107_vm12, %v3044_v44  ;;  %3547 = vrot.lane.b32.xlu1 %v10963_v51, %s9886_s29 }
 0x2f6   : > { %3545 = vrot.lane.b32.xlu0 %v10965_v22, %s9886_s29 }
 0x2f7   : > { %v3050_v17 = vpop.permute.xlu1 %3049 }
 0x2f8   : > { %v3048_v4 = vpop.permute.xlu0 %3047  ;;  %3127 = vst.msk [vmem:[#allocation3 + $0x4c] sm:$0xf] %vm3107_vm12, %v3050_v17 }
 0x2f9   : > { %3126 = vst.msk [vmem:[#allocation3 + $0x48] sm:$0xf] %vm3107_vm12, %v3048_v4  ;;  %3551 = vrot.lane.b32.xlu1 %v10973_v11, %s9886_s29  ;;  %v13048_v4 = vld [vmem:[#allocation5_spill] sm:$0xff] }
 0x2fa   : > { %3549 = vrot.lane.b32.xlu0 %v10975_v12, %s9886_s29 }
 0x2fb   : > { %v3054_v55 = vpop.permute.xlu1 %3053 }
 0x2fc   : > { %v3052_v3 = vpop.permute.xlu0 %3051  ;;  %3129 = vst.msk [vmem:[#allocation3 + $0x54] sm:$0xf] %vm3107_vm12, %v3054_v55  ;;  %v13049_v55 = vld [vmem:[#allocation6_spill] sm:$0xff] }
 0x2fd   : > { %3128 = vst.msk [vmem:[#allocation3 + $0x50] sm:$0xf] %vm3107_vm12, %v3052_v3  ;;  %3555 = vrot.lane.b32.xlu1 %v10983_v46, %s9886_s29 }
 0x2fe   : > { %3553 = vrot.lane.b32.xlu0 %v10985_v47, %s9886_s29 }
 0x2ff   : > { %v3058_v51 = vpop.permute.xlu1 %3057 }
 0x300   : > { %v3056_v22 = vpop.permute.xlu0 %3055  ;;  %3131 = vst.msk [vmem:[#allocation3 + $0x5c] sm:$0xf] %vm3107_vm12, %v3058_v51 }
 0x301   : > { %3130 = vst.msk [vmem:[#allocation3 + $0x58] sm:$0xf] %vm3107_vm12, %v3056_v22  ;;  %3559 = vrot.lane.b32.xlu1 %v10993_v13, %s9886_s29  ;;  %v3683_v22 = vld [vmem:[#allocation2 + $0x1a3] sm:$0xff] }
 0x302   : > { %3557 = vrot.lane.b32.xlu0 %v10995_v14, %s9886_s29 }
 0x303   : > { %v3062_v11 = vpop.permute.xlu1 %3061 }
 0x304   : > { %v3060_v12 = vpop.permute.xlu0 %3059  ;;  %3133 = vst.msk [vmem:[#allocation3 + $0x64] sm:$0xf] %vm3107_vm12, %v3062_v11  ;;  %v3682_v11 = vld [vmem:[#allocation2 + $0x19b] sm:$0xff] }
 0x305   : > { %3132 = vst.msk [vmem:[#allocation3 + $0x60] sm:$0xf] %vm3107_vm12, %v3060_v12  ;;  %3563 = vrot.lane.b32.xlu1 %v11003_v61, %s9886_s29 }
 0x306   : > { %3561 = vrot.lane.b32.xlu0 %v11005_v62, %s9886_s29 }
 0x307   : > { %v3066_v46 = vpop.permute.xlu1 %3065 }
 0x308   : > { %v3064_v47 = vpop.permute.xlu0 %3063  ;;  %3135 = vst.msk [vmem:[#allocation3 + $0x6c] sm:$0xf] %vm3107_vm12, %v3066_v46 }
 0x309   : > { %3134 = vst.msk [vmem:[#allocation3 + $0x68] sm:$0xf] %vm3107_vm12, %v3064_v47  ;;  %3567 = vrot.lane.b32.xlu1 %v11013_v24, %s9886_s29  ;;  %v3426_v24 = vld [vmem:[#allocation2 + $0x1a1] sm:$0xff] }
 0x30a   : > { %3565 = vrot.lane.b32.xlu0 %v11015_v41, %s9886_s29  ;;  %v3425_v41 = vld [vmem:[#allocation2 + $0x199] sm:$0xff]  ;;  %v13050_v47 = vld [vmem:[#allocation7_spill] sm:$0xff] }
 0x30b   : > { %v3070_v13 = vpop.permute.xlu1 %3069 }
 0x30c   : > { %v3068_v14 = vpop.permute.xlu0 %3067  ;;  %3137 = vst.msk [vmem:[#allocation3 + $0x74] sm:$0xf] %vm3107_vm12, %v3070_v13  ;;  %v13051_v13 = vld [vmem:[#allocation8_spill] sm:$0xff] }
 0x30d   : > { %3136 = vst.msk [vmem:[#allocation3 + $0x70] sm:$0xf] %vm3107_vm12, %v3068_v14  ;;  %3571 = vrot.lane.b32.xlu1 %v11023_v21, %s9886_s29  ;;  %v11542_v14 = vpack.c.bf16 %v3683_v22, %v3683_v22  ;;  %v13070_v22 = vld [vmem:[#allocation27_spill] sm:$0xff] }
 0x30e   : > { %3569 = vrot.lane.b32.xlu0 %v11025_v27, %s9886_s29  ;;  %v11433_v27 = vpack.c.bf16 %v3426_v24, %v3426_v24  ;;  %v3684_v24 = vld [vmem:[#allocation2 + $0x1b3] sm:$0xff] }
 0x30f   : > { %v3074_v61 = vpop.permute.xlu1 %3073 }
 0x310   : > { %v3072_v62 = vpop.permute.xlu0 %3071  ;;  %3139 = vst.msk [vmem:[#allocation3 + $0x7c] sm:$0xf] %vm3107_vm12, %v3074_v61  ;;  %v11544_v61 = vpack.c.bf16 %v3682_v11, %v3682_v11 }
 0x311   : > { %3138 = vst.msk [vmem:[#allocation3 + $0x78] sm:$0xf] %vm3107_vm12, %v3072_v62  ;;  %3575 = vrot.lane.b32.xlu1 %v11033_v9, %s9886_s29  ;;  %v11435_v9 = vpack.c.bf16 %v3425_v41, %v3425_v41  ;;  %v3685_v62 = vld [vmem:[#allocation2 + $0x1bb] sm:$0xff]  ;;  %vm7221_vm12 = vcmask 880448  }
 0x312   : > { %3573 = vrot.lane.b32.xlu0 %v11035_v15, %s9886_s29  ;;  %v3428_v15 = vld [vmem:[#allocation2 + $0x1b9] sm:$0xff] }
 0x313   : > { %v3271_v48 = vpop.permute.xlu1 %3270 }
 0x314   : > { %v3269_v21 = vpop.permute.xlu0 %3268  ;;  %3366 = vst.msk [vmem:[#allocation3 + $0x4] sm:$0xf] %vm3364_vm13, %v3271_v48 }
 0x315   : > { %3365 = vst.msk [vmem:[#allocation3] sm:$0xf] %vm3364_vm13, %v3269_v21  ;;  %3579 = vrot.lane.b32.xlu1 %v11043_v57, %s9886_s29  ;;  %v11443_v57 = vpack.c.bf16 %v3428_v15, %v3428_v15  ;;  %v11552_v21 = vpack.c.bf16 %v3685_v62, %v3685_v62  ;;  %v11554_v15 = vpack.c.bf16 %v3684_v24, %v3684_v24 }
 0x316   : > { %3577 = vrot.lane.b32.xlu0 %v11045_v1, %s9886_s29  ;;  %v11445_v1 = vpack.c.bf16 %v3427_v50, %v3427_v50 }
 0x317   : > { %v3275_v63 = vpop.permute.xlu1 %3274 }
 0x318   : > { %v3273_v58 = vpop.permute.xlu0 %3272  ;;  %3368 = vst.msk [vmem:[#allocation3 + $0xc] sm:$0xf] %vm3364_vm13, %v3275_v63 }
 0x319   : > { %3367 = vst.msk [vmem:[#allocation3 + $0x8] sm:$0xf] %vm3364_vm13, %v3273_v58  ;;  %3583 = vrot.lane.b32.xlu1 %v11433_v27, %s9886_s29 }
 0x31a   : > { %3581 = vrot.lane.b32.xlu0 %v11435_v9, %s9886_s29 }
 0x31b   : > { %v3279_v0 = vpop.permute.xlu1 %3278 }
 0x31c   : > { %v3277_v49 = vpop.permute.xlu0 %3276  ;;  %3370 = vst.msk [vmem:[#allocation3 + $0x14] sm:$0xf] %vm3364_vm13, %v3279_v0 }
 0x31d   : > { %3369 = vst.msk [vmem:[#allocation3 + $0x10] sm:$0xf] %vm3364_vm13, %v3277_v49  ;;  %3587 = vrot.lane.b32.xlu1 %v11443_v57, %s9886_s29  ;;  %v13052_v49 = vld [vmem:[#allocation9_spill] sm:$0xff] }
 0x31e   : > { %3585 = vrot.lane.b32.xlu0 %v11445_v1, %s9886_s29 }
 0x31f   : > { %v3283_v7 = vpop.permute.xlu1 %3282 }
 0x320   : > { %v3281_v33 = vpop.permute.xlu0 %3280  ;;  %3372 = vst.msk [vmem:[#allocation3 + $0x1c] sm:$0xf] %vm3364_vm13, %v3283_v7 }
 0x321   : > { %3371 = vst.msk [vmem:[#allocation3 + $0x18] sm:$0xf] %vm3364_vm13, %v3281_v33  ;;  %3784 = vrot.lane.b32.xlu1 %v11061_v25, %s9887_s30 }
 0x322   : > { %3782 = vrot.lane.b32.xlu0 %v11063_v26, %s9887_s30 }
 0x323   : > { %v3287_v35 = vpop.permute.xlu1 %3286 }
 0x324   : > { %v3285_v30 = vpop.permute.xlu0 %3284  ;;  %3374 = vst.msk [vmem:[#allocation3 + $0x24] sm:$0xf] %vm3364_vm13, %v3287_v35  ;;  %v13053_v35 = vld [vmem:[#allocation10_spill] sm:$0xff] }
 0x325   : > { %3373 = vst.msk [vmem:[#allocation3 + $0x20] sm:$0xf] %vm3364_vm13, %v3285_v30  ;;  %3788 = vrot.lane.b32.xlu1 %v11071_v31, %s9887_s30  ;;  %v13054_v30 = vld [vmem:[#allocation11_spill] sm:$0xff] }
 0x326   : > { %3786 = vrot.lane.b32.xlu0 %v11073_v32, %s9887_s30 }
 0x327   : > { %v3291_v52 = vpop.permute.xlu1 %3290 }
 0x328   : > { %v3289_v44 = vpop.permute.xlu0 %3288  ;;  %3376 = vst.msk [vmem:[#allocation3 + $0x2c] sm:$0xf] %vm3364_vm13, %v3291_v52 }
 0x329   : > { %3375 = vst.msk [vmem:[#allocation3 + $0x28] sm:$0xf] %vm3364_vm13, %v3289_v44  ;;  %3792 = vrot.lane.b32.xlu1 %v11081_v5, %s9887_s30 }
 0x32a   : > { %3790 = vrot.lane.b32.xlu0 %v11083_v18, %s9887_s30 }
 0x32b   : > { %v3295_v25 = vpop.permute.xlu1 %3294 }
 0x32c   : > { %v3293_v26 = vpop.permute.xlu0 %3292  ;;  %3378 = vst.msk [vmem:[#allocation3 + $0x34] sm:$0xf] %vm3364_vm13, %v3295_v25  ;;  %v13056_v25 = vld [vmem:[#allocation13_spill] sm:$0xff] }
 0x32d   : > { %3377 = vst.msk [vmem:[#allocation3 + $0x30] sm:$0xf] %vm3364_vm13, %v3293_v26  ;;  %3796 = vrot.lane.b32.xlu1 %v11091_v40, %s9887_s30 }
 0x32e   : > { %3794 = vrot.lane.b32.xlu0 %v11093_v42, %s9887_s30 }
 0x32f   : > { %v3299_v31 = vpop.permute.xlu1 %3298 }
 0x330   : > { %v3297_v32 = vpop.permute.xlu0 %3296  ;;  %3380 = vst.msk [vmem:[#allocation3 + $0x3c] sm:$0xf] %vm3364_vm13, %v3299_v31 }
 0x331   : > { %3379 = vst.msk [vmem:[#allocation3 + $0x38] sm:$0xf] %vm3364_vm13, %v3297_v32  ;;  %3800 = vrot.lane.b32.xlu1 %v11101_v54, %s9887_s30  ;;  %v13057_v32 = vld [vmem:[#allocation14_spill] sm:$0xff] }
 0x332   : > { %3798 = vrot.lane.b32.xlu0 %v11103_v2, %s9887_s30 }
 0x333   : > { %v3303_v5 = vpop.permute.xlu1 %3302 }
 0x334   : > { %v3301_v18 = vpop.permute.xlu0 %3300  ;;  %3382 = vst.msk [vmem:[#allocation3 + $0x44] sm:$0xf] %vm3364_vm13, %v3303_v5  ;;  %v13058_v5 = vld [vmem:[#allocation15_spill] sm:$0xff] }
 0x335   : > { %3381 = vst.msk [vmem:[#allocation3 + $0x40] sm:$0xf] %vm3364_vm13, %v3301_v18  ;;  %3804 = vrot.lane.b32.xlu1 %v11111_v37, %s9887_s30 }
 0x336   : > { %3802 = vrot.lane.b32.xlu0 %v11113_v38, %s9887_s30 }
 0x337   : > { %v3307_v40 = vpop.permute.xlu1 %3306 }
 0x338   : > { %v3305_v42 = vpop.permute.xlu0 %3304  ;;  %3384 = vst.msk [vmem:[#allocation3 + $0x4c] sm:$0xf] %vm3364_vm13, %v3307_v40 }
 0x339   : > { %3383 = vst.msk [vmem:[#allocation3 + $0x48] sm:$0xf] %vm3364_vm13, %v3305_v42  ;;  %3808 = vrot.lane.b32.xlu1 %v11121_v43, %s9887_s30  ;;  %v13059_v42 = vld [vmem:[#allocation16_spill] sm:$0xff] }
 0x33a   : > { %3806 = vrot.lane.b32.xlu0 %v11123_v45, %s9887_s30 }
 0x33b   : > { %v3311_v54 = vpop.permute.xlu1 %3310 }
 0x33c   : > { %v3309_v2 = vpop.permute.xlu0 %3308  ;;  %3386 = vst.msk [vmem:[#allocation3 + $0x54] sm:$0xf] %vm3364_vm13, %v3311_v54  ;;  %v13060_v54 = vld [vmem:[#allocation17_spill] sm:$0xff] }
 0x33d   : > { %3385 = vst.msk [vmem:[#allocation3 + $0x50] sm:$0xf] %vm3364_vm13, %v3309_v2  ;;  %3812 = vrot.lane.b32.xlu1 %v11131_v8, %s9887_s30 }
 0x33e   : > { %3810 = vrot.lane.b32.xlu0 %v11133_v19, %s9887_s30 }
 0x33f   : > { %v3315_v37 = vpop.permute.xlu1 %3314 }
 0x340   : > { %v3313_v38 = vpop.permute.xlu0 %3312  ;;  %3388 = vst.msk [vmem:[#allocation3 + $0x5c] sm:$0xf] %vm3364_vm13, %v3315_v37 }
 0x341   : > { %3387 = vst.msk [vmem:[#allocation3 + $0x58] sm:$0xf] %vm3364_vm13, %v3313_v38  ;;  %3816 = vrot.lane.b32.xlu1 %v11141_v53, %s9887_s30  ;;  %v13061_v38 = vld [vmem:[#allocation18_spill] sm:$0xff] }
 0x342   : > { %3814 = vrot.lane.b32.xlu0 %v11143_v60, %s9887_s30 }
 0x343   : > { %v3319_v43 = vpop.permute.xlu1 %3318 }
 0x344   : > { %v3317_v45 = vpop.permute.xlu0 %3316  ;;  %3390 = vst.msk [vmem:[#allocation3 + $0x64] sm:$0xf] %vm3364_vm13, %v3319_v43  ;;  %v13062_v43 = vld [vmem:[#allocation19_spill] sm:$0xff] }
 0x345   : > { %3389 = vst.msk [vmem:[#allocation3 + $0x60] sm:$0xf] %vm3364_vm13, %v3317_v45  ;;  %3820 = vrot.lane.b32.xlu1 %v11151_v28, %s9887_s30  ;;  %v13047_v28 = vld [vmem:[#allocation4_spill] sm:$0xff] }
 0x346   : > { %3818 = vrot.lane.b32.xlu0 %v11153_v29, %s9887_s30 }
 0x347   : > { %v3323_v8 = vpop.permute.xlu1 %3322 }
 0x348   : > { %v3321_v19 = vpop.permute.xlu0 %3320  ;;  %3392 = vst.msk [vmem:[#allocation3 + $0x6c] sm:$0xf] %vm3364_vm13, %v3323_v8 }
 0x349   : > { %3391 = vst.msk [vmem:[#allocation3 + $0x68] sm:$0xf] %vm3364_vm13, %v3321_v19  ;;  %3824 = vrot.lane.b32.xlu1 %v11161_v6, %s9887_s30  ;;  %v9706_v6 = vld [vmem:[%s9942_s17 + $0xf0] sm:$0xff]  }
 0x34a   : > { %3822 = vrot.lane.b32.xlu0 %v11163_v10, %s9887_s30  ;;  %v235_v10 = vld [vmem:[%s9942_s17 + $0xf8] sm:$0x7]  ;;  %v9696_v3 = vunpack.c.h.bf16 %v9706_v6  ;;  %v9695_v51 = vunpack.c.l.bf16 %v9706_v6  ;;  %v13063_v19 = vld [vmem:[#allocation20_spill] sm:$0xff] }
 0x34b   : > { %v3327_v53 = vpop.permute.xlu1 %3326 }
 0x34c   : > { %v3325_v60 = vpop.permute.xlu0 %3324  ;;  %3394 = vst.msk [vmem:[#allocation3 + $0x74] sm:$0xf] %vm3364_vm13, %v3327_v53  ;;  %v13064_v53 = vld [vmem:[#allocation21_spill] sm:$0xff] }
 0x34d   : > { %3393 = vst.msk [vmem:[#allocation3 + $0x70] sm:$0xf] %vm3364_vm13, %v3325_v60  ;;  %3828 = vrot.lane.b32.xlu1 %v11171_v36, %s9887_s30  ;;  %v301_v36 = vunpack.c.l.bf16 %v235_v10 }
 0x34e   : > { %3826 = vrot.lane.b32.xlu0 %v13047_v28, %s9887_s30  ;;  %368 = vst.msk [vmem:[#allocation2 + $0x1e8] sm:$0xff] %vm305_vm0, %v9696_v3  ;;  %367 = vst.msk [vmem:[#allocation2 + $0x1e0] sm:$0xff] %vm305_vm0, %v9695_v51  ;;  %v13069_v51 = vld [vmem:[#allocation26_spill] sm:$0xff] }
 0x34f   : > { %v3331_v29 = vpop.permute.xlu1 %3330  ;;  %369 = vst.msk [vmem:[#allocation2 + $0x1f0] sm:$0x3f] %vm308_vm1, %v301_v36 }
 0x350   : > { %v3329_v17 = vpop.permute.xlu0 %3328  ;;  %3396 = vst.msk [vmem:[#allocation3 + $0x7c] sm:$0xf] %vm3364_vm13, %v3331_v29  ;;  %v13065_v29 = vld [vmem:[#allocation22_spill] sm:$0xff] }
 0x351   : > { %3395 = vst.msk [vmem:[#allocation3 + $0x78] sm:$0xf] %vm3364_vm13, %v3329_v17  ;;  %3832 = vrot.lane.b32.xlu1 %v13048_v4, %s9887_s30  ;;  %v13066_v17 = vld [vmem:[#allocation23_spill] sm:$0xff]  ;;  %v13067_v4 = vld [vmem:[#allocation24_spill] sm:$0xff]  ;;  %vm7254_vm13 = vcmask 888672  }
 0x352   : > { %3830 = vrot.lane.b32.xlu0 %v13049_v55, %s9887_s30  ;;  %v13068_v55 = vld [vmem:[#allocation25_spill] sm:$0xff] }
 0x353   : > { %v3528_v12 = vpop.permute.xlu1 %3527 }
 0x354   : > { %v3526_v46 = vpop.permute.xlu0 %3525  ;;  %3623 = vst.msk [vmem:[#allocation3 + $0x4] sm:$0xf] %vm3621_vm14, %v3528_v12 }
 0x355   : > { %3622 = vst.msk [vmem:[#allocation3] sm:$0xf] %vm3621_vm14, %v3526_v46  ;;  %3836 = vrot.lane.b32.xlu1 %v13050_v47, %s9887_s30  ;;  %v13071_v46 = vld [vmem:[#allocation28_spill] sm:$0xff]  ;;  %v13072_v47 = vld [vmem:[#allocation29_spill] sm:$0xff] }
 0x356   : > { %3834 = vrot.lane.b32.xlu0 %v13051_v13, %s9887_s30 }
 0x357   : > { %v3532_v41 = vpop.permute.xlu1 %3531 }
 0x358   : > { %v3530_v48 = vpop.permute.xlu0 %3529  ;;  %3625 = vst.msk [vmem:[#allocation3 + $0xc] sm:$0xf] %vm3621_vm14, %v3532_v41 }
 0x359   : > { %3624 = vst.msk [vmem:[#allocation3 + $0x8] sm:$0xf] %vm3621_vm14, %v3530_v48  ;;  %3840 = vrot.lane.b32.xlu1 %v11542_v14, %s9887_s30  ;;  %v3940_v48 = vld [vmem:[#allocation2 + $0x1a5] sm:$0xff] }
 0x35a   : > { %3838 = vrot.lane.b32.xlu0 %v11544_v61, %s9887_s30 }
 0x35b   : > { %v3536_v50 = vpop.permute.xlu1 %3535 }
 0x35c   : > { %v3534_v63 = vpop.permute.xlu0 %3533  ;;  %3627 = vst.msk [vmem:[#allocation3 + $0x14] sm:$0xf] %vm3621_vm14, %v3536_v50  ;;  %v3939_v50 = vld [vmem:[#allocation2 + $0x19d] sm:$0xff] }
 0x35d   : > { %3626 = vst.msk [vmem:[#allocation3 + $0x10] sm:$0xf] %vm3621_vm14, %v3534_v63  ;;  %3844 = vrot.lane.b32.xlu1 %v11552_v21, %s9887_s30 }
 0x35e   : > { %3842 = vrot.lane.b32.xlu0 %v11554_v15, %s9887_s30 }
 0x35f   : > { %v3540_v58 = vpop.permute.xlu1 %3539 }
 0x360   : > { %v3538_v0 = vpop.permute.xlu0 %3537  ;;  %3629 = vst.msk [vmem:[#allocation3 + $0x1c] sm:$0xf] %vm3621_vm14, %v3540_v58  ;;  %v3941_v58 = vld [vmem:[#allocation2 + $0x1b5] sm:$0xff] }
 0x361   : > { %3628 = vst.msk [vmem:[#allocation3 + $0x18] sm:$0xf] %vm3621_vm14, %v3538_v0  ;;  %4041 = vrot.lane.b32.xlu1 %v11209_v56, %s9888_s4  ;;  %v13055_v56 = vld [vmem:[#allocation12_spill] sm:$0xff] }
 0x362   : > { %4039 = vrot.lane.b32.xlu0 %v13052_v49, %s9888_s4 }
 0x363   : > { %v3544_v7 = vpop.permute.xlu1 %3543 }
 0x364   : > { %v3542_v33 = vpop.permute.xlu0 %3541  ;;  %3631 = vst.msk [vmem:[#allocation3 + $0x24] sm:$0xf] %vm3621_vm14, %v3544_v7  ;;  %v4170_v7 = vld [vmem:[#allocation2 + $0x81] sm:$0xff] }
 0x365   : > { %3630 = vst.msk [vmem:[#allocation3 + $0x20] sm:$0xf] %vm3621_vm14, %v3542_v33  ;;  %4045 = vrot.lane.b32.xlu1 %v13053_v35, %s9888_s4  ;;  %v4169_v33 = vld [vmem:[#allocation2 + $0x79] sm:$0xff] }
 0x366   : > { %4043 = vrot.lane.b32.xlu0 %v13054_v30, %s9888_s4 }
 0x367   : > { %v3548_v52 = vpop.permute.xlu1 %3547 }
 0x368   : > { %v3546_v44 = vpop.permute.xlu0 %3545  ;;  %3633 = vst.msk [vmem:[#allocation3 + $0x2c] sm:$0xf] %vm3621_vm14, %v3548_v52  ;;  %v9270_v52 = vpack.c.bf16 %v4170_v7, %v4170_v7 }
 0x369   : > { %3632 = vst.msk [vmem:[#allocation3 + $0x28] sm:$0xf] %vm3621_vm14, %v3546_v44  ;;  %4049 = vrot.lane.b32.xlu1 %v13055_v56, %s9888_s4  ;;  %v9269_v44 = vpack.c.bf16 %v4169_v33, %v4169_v33  ;;  %v4172_v56 = vld [vmem:[#allocation2 + $0x99] sm:$0xff] }
 0x36a   : > { %4047 = vrot.lane.b32.xlu0 %v13056_v25, %s9888_s4  ;;  %v4171_v25 = vld [vmem:[#allocation2 + $0x91] sm:$0xff] }
 0x36b   : > { %v3552_v26 = vpop.permute.xlu1 %3551 }
 0x36c   : > { %v3550_v31 = vpop.permute.xlu0 %3549  ;;  %3635 = vst.msk [vmem:[#allocation3 + $0x34] sm:$0xf] %vm3621_vm14, %v3552_v26 }
 0x36d   : > { %3634 = vst.msk [vmem:[#allocation3 + $0x30] sm:$0xf] %vm3621_vm14, %v3550_v31  ;;  %4053 = vrot.lane.b32.xlu1 %v13057_v32, %s9888_s4  ;;  %v9272_v32 = vpack.c.bf16 %v4172_v56, %v4172_v56 }
 0x36e   : > { %4051 = vrot.lane.b32.xlu0 %v13058_v5, %s9888_s4  ;;  %v9271_v5 = vpack.c.bf16 %v4171_v25, %v4171_v25 }
 0x36f   : > { %v3556_v18 = vpop.permute.xlu1 %3555 }
 0x370   : > { %v3554_v40 = vpop.permute.xlu0 %3553  ;;  %3637 = vst.msk [vmem:[#allocation3 + $0x3c] sm:$0xf] %vm3621_vm14, %v3556_v18  ;;  %v4174_v18 = vld [vmem:[#allocation2 + $0xb1] sm:$0xff] }
 0x371   : > { %3636 = vst.msk [vmem:[#allocation3 + $0x38] sm:$0xf] %vm3621_vm14, %v3554_v40  ;;  %4057 = vrot.lane.b32.xlu1 %v13059_v42, %s9888_s4  ;;  %v4173_v40 = vld [vmem:[#allocation2 + $0xa9] sm:$0xff] }
 0x372   : > { %4055 = vrot.lane.b32.xlu0 %v13060_v54, %s9888_s4 }
 0x373   : > { %v3560_v2 = vpop.permute.xlu1 %3559 }
 0x374   : > { %v3558_v37 = vpop.permute.xlu0 %3557  ;;  %3639 = vst.msk [vmem:[#allocation3 + $0x44] sm:$0xf] %vm3621_vm14, %v3560_v2  ;;  %v9274_v2 = vpack.c.bf16 %v4174_v18, %v4174_v18 }
 0x375   : > { %3638 = vst.msk [vmem:[#allocation3 + $0x40] sm:$0xf] %vm3621_vm14, %v3558_v37  ;;  %4061 = vrot.lane.b32.xlu1 %v13061_v38, %s9888_s4  ;;  %v9273_v37 = vpack.c.bf16 %v4173_v40, %v4173_v40  ;;  %v4176_v38 = vld [vmem:[#allocation2 + $0xc9] sm:$0xff] }
 0x376   : > { %4059 = vrot.lane.b32.xlu0 %v13062_v43, %s9888_s4  ;;  %v4175_v43 = vld [vmem:[#allocation2 + $0xc1] sm:$0xff] }
 0x377   : > { %v3564_v45 = vpop.permute.xlu1 %3563 }
 0x378   : > { %v3562_v8 = vpop.permute.xlu0 %3561  ;;  %3641 = vst.msk [vmem:[#allocation3 + $0x4c] sm:$0xf] %vm3621_vm14, %v3564_v45 }
 0x379   : > { %3640 = vst.msk [vmem:[#allocation3 + $0x48] sm:$0xf] %vm3621_vm14, %v3562_v8  ;;  %4065 = vrot.lane.b32.xlu1 %v13063_v19, %s9888_s4  ;;  %v9276_v19 = vpack.c.bf16 %v4176_v38, %v4176_v38 }
 0x37a   : > { %4063 = vrot.lane.b32.xlu0 %v13064_v53, %s9888_s4  ;;  %v9275_v53 = vpack.c.bf16 %v4175_v43, %v4175_v43 }
 0x37b   : > { %v3568_v60 = vpop.permute.xlu1 %3567 }
 0x37c   : > { %v3566_v28 = vpop.permute.xlu0 %3565  ;;  %3643 = vst.msk [vmem:[#allocation3 + $0x54] sm:$0xf] %vm3621_vm14, %v3568_v60  ;;  %v4178_v60 = vld [vmem:[#allocation2 + $0xe1] sm:$0xff] }
 0x37d   : > { %3642 = vst.msk [vmem:[#allocation3 + $0x50] sm:$0xf] %vm3621_vm14, %v3566_v28  ;;  %4069 = vrot.lane.b32.xlu1 %v13065_v29, %s9888_s4  ;;  %v4177_v28 = vld [vmem:[#allocation2 + $0xd9] sm:$0xff] }
 0x37e   : > { %4067 = vrot.lane.b32.xlu0 %v13066_v17, %s9888_s4 }
 0x37f   : > { %v3572_v6 = vpop.permute.xlu1 %3571 }
 0x380   : > { %v3570_v10 = vpop.permute.xlu0 %3569  ;;  %3645 = vst.msk [vmem:[#allocation3 + $0x5c] sm:$0xf] %vm3621_vm14, %v3572_v6  ;;  %v9278_v6 = vpack.c.bf16 %v4178_v60, %v4178_v60  ;;  %v4198_v60 = vld [vmem:[#allocation2 + $0x1d1] sm:$0xff] }
 0x381   : > { %3644 = vst.msk [vmem:[#allocation3 + $0x58] sm:$0xf] %vm3621_vm14, %v3570_v10  ;;  %4073 = vrot.lane.b32.xlu1 %v13067_v4, %s9888_s4  ;;  %v9277_v10 = vpack.c.bf16 %v4177_v28, %v4177_v28  ;;  %v4180_v4 = vld [vmem:[#allocation2 + $0xf9] sm:$0xff]  ;;  %v4197_v28 = vld [vmem:[#allocation2 + $0x1c9] sm:$0xff] }
 0x382   : > { %4071 = vrot.lane.b32.xlu0 %v13068_v55, %s9888_s4  ;;  %v4179_v55 = vld [vmem:[#allocation2 + $0xf1] sm:$0xff] }
 0x383   : > { %v3576_v3 = vpop.permute.xlu1 %3575 }
 0x384   : > { %v3574_v36 = vpop.permute.xlu0 %3573  ;;  %3647 = vst.msk [vmem:[#allocation3 + $0x64] sm:$0xf] %vm3621_vm14, %v3576_v3 }
 0x385   : > { %3646 = vst.msk [vmem:[#allocation3 + $0x60] sm:$0xf] %vm3621_vm14, %v3574_v36  ;;  %4077 = vrot.lane.b32.xlu1 %v13069_v51, %s9888_s4  ;;  %v9280_v51 = vpack.c.bf16 %v4180_v4, %v4180_v4 }
 0x386   : > { %4075 = vrot.lane.b32.xlu0 %v13070_v22, %s9888_s4  ;;  %v9279_v22 = vpack.c.bf16 %v4179_v55, %v4179_v55  ;;  %v4200_v55 = vld [vmem:[#allocation2 + $0x1e9] sm:$0xff] }
 0x387   : > { %v3580_v11 = vpop.permute.xlu1 %3579 }
 0x388   : > { %v3578_v12 = vpop.permute.xlu0 %3577  ;;  %3649 = vst.msk [vmem:[#allocation3 + $0x6c] sm:$0xf] %vm3621_vm14, %v3580_v11  ;;  %v4182_v11 = vld [vmem:[#allocation2 + $0x111] sm:$0xff] }
 0x389   : > { %3648 = vst.msk [vmem:[#allocation3 + $0x68] sm:$0xf] %vm3621_vm14, %v3578_v12  ;;  %4081 = vrot.lane.b32.xlu1 %v13071_v46, %s9888_s4  ;;  %v4181_v12 = vld [vmem:[#allocation2 + $0x109] sm:$0xff] }
 0x38a   : > { %4079 = vrot.lane.b32.xlu0 %v13072_v47, %s9888_s4 }
 0x38b   : > { %v3584_v13 = vpop.permute.xlu1 %3583 }
 0x38c   : > { %v3582_v62 = vpop.permute.xlu0 %3581  ;;  %3651 = vst.msk [vmem:[#allocation3 + $0x74] sm:$0xf] %vm3621_vm14, %v3584_v13  ;;  %v9282_v13 = vpack.c.bf16 %v4182_v11, %v4182_v11  ;;  %v4426_v11 = vld [vmem:[#allocation2 + $0x7b] sm:$0xff] }
 0x38d   : > { %3650 = vst.msk [vmem:[#allocation3 + $0x70] sm:$0xf] %vm3621_vm14, %v3582_v62  ;;  %4085 = vrot.lane.b32.xlu1 %v11319_v23, %s9888_s4  ;;  %v9281_v62 = vpack.c.bf16 %v4181_v12, %v4181_v12 }
 0x38e   : > { %4083 = vrot.lane.b32.xlu0 %v11321_v59, %s9888_s4  ;;  %v11646_v59 = vpack.c.bf16 %v3940_v48, %v3940_v48 }
 0x38f   : > { %v3588_v24 = vpop.permute.xlu1 %3587 }
 0x390   : > { %v3586_v41 = vpop.permute.xlu0 %3585  ;;  %3653 = vst.msk [vmem:[#allocation3 + $0x7c] sm:$0xf] %vm3621_vm14, %v3588_v24  ;;  %v4184_v24 = vld [vmem:[#allocation2 + $0x129] sm:$0xff] }
 0x391   : > { %3652 = vst.msk [vmem:[#allocation3 + $0x78] sm:$0xf] %vm3621_vm14, %v3586_v41  ;;  %4089 = vrot.lane.b32.xlu1 %v11329_v16, %s9888_s4  ;;  %v11648_v16 = vpack.c.bf16 %v3939_v50, %v3939_v50  ;;  %v4183_v41 = vld [vmem:[#allocation2 + $0x121] sm:$0xff]  ;;  %vm7287_vm14 = vcmask 1044328  }
 0x392   : > { %4087 = vrot.lane.b32.xlu0 %v11331_v20, %s9888_s4  ;;  %v3942_v20 = vld [vmem:[#allocation2 + $0x1bd] sm:$0xff] }
 0x393   : > { %v3785_v63 = vpop.permute.xlu1 %3784 }
 0x394   : > { %v3783_v23 = vpop.permute.xlu0 %3782  ;;  %3880 = vst.msk [vmem:[#allocation3 + $0x4] sm:$0xf] %vm3878_vm15, %v3785_v63  ;;  %v9284_v63 = vpack.c.bf16 %v4184_v24, %v4184_v24  ;;  %v4428_v24 = vld [vmem:[#allocation2 + $0x93] sm:$0xff] }
 0x395   : > { %3879 = vst.msk [vmem:[#allocation3] sm:$0xf] %vm3878_vm15, %v3783_v23  ;;  %4093 = vrot.lane.b32.xlu1 %v11339_v39, %s9888_s4  ;;  %v11656_v39 = vpack.c.bf16 %v3942_v20, %v3942_v20  ;;  %v9283_v23 = vpack.c.bf16 %v4183_v41, %v4183_v41  ;;  %v4186_v20 = vld [vmem:[#allocation2 + $0x141] sm:$0xff] }
 0x396   : > { %4091 = vrot.lane.b32.xlu0 %v11341_v34, %s9888_s4  ;;  %v11658_v34 = vpack.c.bf16 %v3941_v58, %v3941_v58  ;;  %v4185_v58 = vld [vmem:[#allocation2 + $0x139] sm:$0xff]  ;;  %v9286_v7 = vpack.c.bf16 %v4186_v20, %v4186_v20  ;;  %v4430_v20 = vld [vmem:[#allocation2 + $0xab] sm:$0xff] }
 0x397   : > { %v3789_v0 = vpop.permute.xlu1 %3788  ;;  %v9285_v33 = vpack.c.bf16 %v4185_v58, %v4185_v58 }
 0x398   : > { %v3787_v49 = vpop.permute.xlu0 %3786  ;;  %3882 = vst.msk [vmem:[#allocation3 + $0xc] sm:$0xf] %vm3878_vm15, %v3789_v0 }
 0x399   : > { %3881 = vst.msk [vmem:[#allocation3 + $0x8] sm:$0xf] %vm3878_vm15, %v3787_v49  ;;  %4097 = vrot.lane.b32.xlu1 %v11646_v59, %s9888_s4 }
 0x39a   : > { %4095 = vrot.lane.b32.xlu0 %v11648_v16, %s9888_s4 }
 0x39b   : > { %v3793_v35 = vpop.permute.xlu1 %3792 }
 0x39c   : > { %v3791_v30 = vpop.permute.xlu0 %3790  ;;  %3884 = vst.msk [vmem:[#allocation3 + $0x14] sm:$0xf] %vm3878_vm15, %v3793_v35  ;;  %v4188_v35 = vld [vmem:[#allocation2 + $0x159] sm:$0xff] }
 0x39d   : > { %3883 = vst.msk [vmem:[#allocation3 + $0x10] sm:$0xf] %vm3878_vm15, %v3791_v30  ;;  %4101 = vrot.lane.b32.xlu1 %v11656_v39, %s9888_s4  ;;  %v4187_v30 = vld [vmem:[#allocation2 + $0x151] sm:$0xff]  ;;  %v9288_v56 = vpack.c.bf16 %v4188_v35, %v4188_v35  ;;  %v4432_v35 = vld [vmem:[#allocation2 + $0xc3] sm:$0xff] }
 0x39e   : > { %4099 = vrot.lane.b32.xlu0 %v11658_v34, %s9888_s4  ;;  %v9287_v25 = vpack.c.bf16 %v4187_v30, %v4187_v30 }
 0x39f   : > { %v3797_v26 = vpop.permute.xlu1 %3796 }
 0x3a0   : > { %v3795_v31 = vpop.permute.xlu0 %3794  ;;  %3886 = vst.msk [vmem:[#allocation3 + $0x1c] sm:$0xf] %vm3878_vm15, %v3797_v26  ;;  %v4190_v26 = vld [vmem:[#allocation2 + $0x171] sm:$0xff] }
 0x3a1   : > { %3885 = vst.msk [vmem:[#allocation3 + $0x18] sm:$0xf] %vm3878_vm15, %v3795_v31  ;;  %4299 = vrot.lane.b32.xlu1 %v9270_v52, %s9889_s5  ;;  %v4189_v31 = vld [vmem:[#allocation2 + $0x169] sm:$0xff]  ;;  %v9290_v18 = vpack.c.bf16 %v4190_v26, %v4190_v26  ;;  %v4434_v26 = vld [vmem:[#allocation2 + $0xdb] sm:$0xff] }
 0x3a2   : > { %4297 = vrot.lane.b32.xlu0 %v9269_v44, %s9889_s5  ;;  %v9289_v40 = vpack.c.bf16 %v4189_v31, %v4189_v31 }
 0x3a3   : > { %v3801_v42 = vpop.permute.xlu1 %3800 }
 0x3a4   : > { %v3799_v54 = vpop.permute.xlu0 %3798  ;;  %3888 = vst.msk [vmem:[#allocation3 + $0x24] sm:$0xf] %vm3878_vm15, %v3801_v42  ;;  %v4192_v42 = vld [vmem:[#allocation2 + $0x189] sm:$0xff] }
 0x3a5   : > { %3887 = vst.msk [vmem:[#allocation3 + $0x20] sm:$0xf] %vm3878_vm15, %v3799_v54  ;;  %4303 = vrot.lane.b32.xlu1 %v9272_v32, %s9889_s5  ;;  %v4191_v54 = vld [vmem:[#allocation2 + $0x181] sm:$0xff]  ;;  %v9292_v38 = vpack.c.bf16 %v4192_v42, %v4192_v42  ;;  %v4436_v42 = vld [vmem:[#allocation2 + $0xf3] sm:$0xff] }
 0x3a6   : > { %4301 = vrot.lane.b32.xlu0 %v9271_v5, %s9889_s5  ;;  %v9291_v43 = vpack.c.bf16 %v4191_v54, %v4191_v54 }
 0x3a7   : > { %v3805_v45 = vpop.permute.xlu1 %3804 }
 0x3a8   : > { %v3803_v8 = vpop.permute.xlu0 %3802  ;;  %3890 = vst.msk [vmem:[#allocation3 + $0x2c] sm:$0xf] %vm3878_vm15, %v3805_v45 }
 0x3a9   : > { %3889 = vst.msk [vmem:[#allocation3 + $0x28] sm:$0xf] %vm3878_vm15, %v3803_v8  ;;  %4307 = vrot.lane.b32.xlu1 %v9274_v2, %s9889_s5 }
 0x3aa   : > { %4305 = vrot.lane.b32.xlu0 %v9273_v37, %s9889_s5 }
 0x3ab   : > { %v3809_v29 = vpop.permute.xlu1 %3808 }
 0x3ac   : > { %v3807_v17 = vpop.permute.xlu0 %3806  ;;  %3892 = vst.msk [vmem:[#allocation3 + $0x34] sm:$0xf] %vm3878_vm15, %v3809_v29 }
 0x3ad   : > { %3891 = vst.msk [vmem:[#allocation3 + $0x30] sm:$0xf] %vm3878_vm15, %v3807_v17  ;;  %4311 = vrot.lane.b32.xlu1 %v9276_v19, %s9889_s5 }
 0x3ae   : > { %4309 = vrot.lane.b32.xlu0 %v9275_v53, %s9889_s5 }
 0x3af   : > { %v3813_v3 = vpop.permute.xlu1 %3812 }
 0x3b0   : > { %v3811_v36 = vpop.permute.xlu0 %3810  ;;  %3894 = vst.msk [vmem:[#allocation3 + $0x3c] sm:$0xf] %vm3878_vm15, %v3813_v3  ;;  %v4199_v3 = vld [vmem:[#allocation2 + $0x1e1] sm:$0xff] }
 0x3b1   : > { %3893 = vst.msk [vmem:[#allocation3 + $0x38] sm:$0xf] %vm3878_vm15, %v3811_v36  ;;  %4315 = vrot.lane.b32.xlu1 %v9278_v6, %s9889_s5  ;;  %v9654_v6 = vld [vmem:[%s9942_s17] sm:$0xff]  }
 0x3b2   : > { %4313 = vrot.lane.b32.xlu0 %v9277_v10, %s9889_s5  ;;  %v9297_v10 = vpack.c.bf16 %v4197_v28, %v4197_v28  ;;  %v9656_v4 = vunpack.c.h.bf16 %v9654_v6  ;;  %v4441_v28 = vld [vmem:[#allocation2 + $0x12b] sm:$0xff] }
 0x3b3   : > { %v3817_v46 = vpop.permute.xlu1 %3816 }
 0x3b4   : > { %v3815_v47 = vpop.permute.xlu0 %3814  ;;  %3896 = vst.msk [vmem:[#allocation3 + $0x44] sm:$0xf] %vm3878_vm15, %v3817_v46 }
 0x3b5   : > { %3895 = vst.msk [vmem:[#allocation3 + $0x40] sm:$0xf] %vm3878_vm15, %v3815_v47  ;;  %4319 = vrot.lane.b32.xlu1 %v9280_v51, %s9889_s5 }
 0x3b6   : > { %4317 = vrot.lane.b32.xlu0 %v9279_v22, %s9889_s5  ;;  %307 = vst.msk [vmem:[#allocation2 + $0x8] sm:$0xff] %vm305_vm0, %v9656_v4  ;;  %v4427_v22 = vld [vmem:[#allocation2 + $0x83] sm:$0xff] }
 0x3b7   : > { %v3821_v48 = vpop.permute.xlu1 %3820  ;;  %v9302_v47 = vpack.c.bf16 %v4427_v22, %v4427_v22  ;;  %v4443_v4 = vld [vmem:[#allocation2 + $0x143] sm:$0xff] }
 0x3b8   : > { %v3819_v50 = vpop.permute.xlu0 %3818  ;;  %3898 = vst.msk [vmem:[#allocation3 + $0x4c] sm:$0xf] %vm3878_vm15, %v3821_v48 }
 0x3b9   : > { %3897 = vst.msk [vmem:[#allocation3 + $0x48] sm:$0xf] %vm3878_vm15, %v3819_v50  ;;  %4323 = vrot.lane.b32.xlu1 %v9282_v13, %s9889_s5  ;;  %v9301_v13 = vpack.c.bf16 %v4426_v11, %v4426_v11 }
 0x3ba   : > { %4321 = vrot.lane.b32.xlu0 %v9281_v62, %s9889_s5  ;;  %v4429_v62 = vld [vmem:[#allocation2 + $0x9b] sm:$0xff] }
 0x3bb   : > { %v3825_v0 = vpop.permute.xlu1 %3824  ;;  %v9304_v50 = vpack.c.bf16 %v4429_v62, %v4429_v62 }
 0x3bc   : > { %v3823_v49 = vpop.permute.xlu0 %3822  ;;  %3900 = vst.msk [vmem:[#allocation3 + $0x54] sm:$0xf] %vm3878_vm15, %v3825_v0 }
 0x3bd   : > { %3899 = vst.msk [vmem:[#allocation3 + $0x50] sm:$0xf] %vm3878_vm15, %v3823_v49  ;;  %4327 = vrot.lane.b32.xlu1 %v9284_v63, %s9889_s5  ;;  %v9303_v63 = vpack.c.bf16 %v4428_v24, %v4428_v24 }
 0x3be   : > { %4325 = vrot.lane.b32.xlu0 %v9283_v23, %s9889_s5  ;;  %v4431_v23 = vld [vmem:[#allocation2 + $0xb3] sm:$0xff] }
 0x3bf   : > { %v3829_v52 = vpop.permute.xlu1 %3828  ;;  %v9306_v49 = vpack.c.bf16 %v4431_v23, %v4431_v23 }
 0x3c0   : > { %v3827_v44 = vpop.permute.xlu0 %3826  ;;  %3902 = vst.msk [vmem:[#allocation3 + $0x5c] sm:$0xf] %vm3878_vm15, %v3829_v52 }
 0x3c1   : > { %3901 = vst.msk [vmem:[#allocation3 + $0x58] sm:$0xf] %vm3878_vm15, %v3827_v44  ;;  %4331 = vrot.lane.b32.xlu1 %v9286_v7, %s9889_s5  ;;  %v9305_v7 = vpack.c.bf16 %v4430_v20, %v4430_v20 }
 0x3c2   : > { %4329 = vrot.lane.b32.xlu0 %v9285_v33, %s9889_s5  ;;  %v4433_v33 = vld [vmem:[#allocation2 + $0xcb] sm:$0xff] }
 0x3c3   : > { %v3833_v32 = vpop.permute.xlu1 %3832  ;;  %v9308_v44 = vpack.c.bf16 %v4433_v33, %v4433_v33 }
 0x3c4   : > { %v3831_v5 = vpop.permute.xlu0 %3830  ;;  %3904 = vst.msk [vmem:[#allocation3 + $0x64] sm:$0xf] %vm3878_vm15, %v3833_v32 }
 0x3c5   : > { %3903 = vst.msk [vmem:[#allocation3 + $0x60] sm:$0xf] %vm3878_vm15, %v3831_v5  ;;  %4335 = vrot.lane.b32.xlu1 %v9288_v56, %s9889_s5  ;;  %v9307_v56 = vpack.c.bf16 %v4432_v35, %v4432_v35 }
 0x3c6   : > { %4333 = vrot.lane.b32.xlu0 %v9287_v25, %s9889_s5  ;;  %v4435_v25 = vld [vmem:[#allocation2 + $0xe3] sm:$0xff] }
 0x3c7   : > { %v3837_v2 = vpop.permute.xlu1 %3836  ;;  %v9310_v5 = vpack.c.bf16 %v4435_v25, %v4435_v25  ;;  %v175_v25 = vld [vmem:[%s9942_s17 + $0x8] sm:$0x7] }
 0x3c8   : > { %v3835_v37 = vpop.permute.xlu0 %3834  ;;  %3906 = vst.msk [vmem:[#allocation3 + $0x6c] sm:$0xf] %vm3878_vm15, %v3837_v2 }
 0x3c9   : > { %3905 = vst.msk [vmem:[#allocation3 + $0x68] sm:$0xf] %vm3878_vm15, %v3835_v37  ;;  %4339 = vrot.lane.b32.xlu1 %v9290_v18, %s9889_s5  ;;  %v9309_v18 = vpack.c.bf16 %v4434_v26, %v4434_v26 }
 0x3ca   : > { %4337 = vrot.lane.b32.xlu0 %v9289_v40, %s9889_s5  ;;  %v4437_v40 = vld [vmem:[#allocation2 + $0xfb] sm:$0xff] }
 0x3cb   : > { %v3841_v45 = vpop.permute.xlu1 %3840  ;;  %v9312_v37 = vpack.c.bf16 %v4437_v40, %v4437_v40 }
 0x3cc   : > { %v3839_v8 = vpop.permute.xlu0 %3838  ;;  %3908 = vst.msk [vmem:[#allocation3 + $0x74] sm:$0xf] %vm3878_vm15, %v3841_v45  ;;  %v4438_v45 = vld [vmem:[#allocation2 + $0x10b] sm:$0xff] }
 0x3cd   : > { %3907 = vst.msk [vmem:[#allocation3 + $0x70] sm:$0xf] %vm3878_vm15, %v3839_v8  ;;  %4343 = vrot.lane.b32.xlu1 %v9292_v38, %s9889_s5  ;;  %v9311_v38 = vpack.c.bf16 %v4436_v42, %v4436_v42  ;;  %v4683_v42 = vld [vmem:[#allocation2 + $0x7d] sm:$0xff] }
 0x3ce   : > { %4341 = vrot.lane.b32.xlu0 %v9291_v43, %s9889_s5  ;;  %v4439_v43 = vld [vmem:[#allocation2 + $0x113] sm:$0xff] }
 0x3cf   : > { %v3845_v19 = vpop.permute.xlu1 %3844 }
 0x3d0   : > { %v3843_v53 = vpop.permute.xlu0 %3842  ;;  %3910 = vst.msk [vmem:[#allocation3 + $0x7c] sm:$0xf] %vm3878_vm15, %v3845_v19 }
 0x3d1   : > { %3909 = vst.msk [vmem:[#allocation3 + $0x78] sm:$0xf] %vm3878_vm15, %v3843_v53  ;;  %4347 = vrot.lane.b32.xlu1 %v11433_v27, %s9889_s5  ;;  %v9298_v27 = vpack.c.bf16 %v4198_v60, %v4198_v60  ;;  %v9314_v53 = vpack.c.bf16 %v4439_v43, %v4439_v43  ;;  %v9313_v60 = vpack.c.bf16 %v4438_v45, %v4438_v45  ;;  %v4686_v43 = vld [vmem:[#allocation2 + $0x9d] sm:$0xff]  ;;  %v4685_v45 = vld [vmem:[#allocation2 + $0x95] sm:$0xff] }
 0x3d2   : > { %4345 = vrot.lane.b32.xlu0 %v11435_v9, %s9889_s5  ;;  %v9655_v9 = vunpack.c.l.bf16 %v9654_v6 }
 0x3d3   : > { %v4042_v29 = vpop.permute.xlu1 %4041 }
 0x3d4   : > { %v4040_v17 = vpop.permute.xlu0 %4039  ;;  %4137 = vst.msk [vmem:[#allocation3 + $0x4] sm:$0xf] %vm4135_vm2, %v4042_v29  ;;  %v4440_v29 = vld [vmem:[#allocation2 + $0x123] sm:$0xff] }
 0x3d5   : > { %4136 = vst.msk [vmem:[#allocation3] sm:$0xf] %vm4135_vm2, %v4040_v17  ;;  %4351 = vrot.lane.b32.xlu1 %v11443_v57, %s9889_s5  ;;  %v9300_v57 = vpack.c.bf16 %v4200_v55, %v4200_v55 }
 0x3d6   : > { %4349 = vrot.lane.b32.xlu0 %v11445_v1, %s9889_s5  ;;  %306 = vst.msk [vmem:[#allocation2] sm:$0xff] %vm305_vm0, %v9655_v9  ;;  %v9299_v1 = vpack.c.bf16 %v4199_v3, %v4199_v3  ;;  %v4442_v9 = vld [vmem:[#allocation2 + $0x13b] sm:$0xff] }
 0x3d7   : > { %v4046_v36 = vpop.permute.xlu1 %4045 }
 0x3d8   : > { %v4044_v51 = vpop.permute.xlu0 %4043  ;;  %4139 = vst.msk [vmem:[#allocation3 + $0xc] sm:$0xf] %vm4135_vm2, %v4046_v36  ;;  %v9318_v36 = vpack.c.bf16 %v4443_v4, %v4443_v4  ;;  %v4690_v4 = vld [vmem:[#allocation2 + $0xcd] sm:$0xff] }
 0x3d9   : > { %4138 = vst.msk [vmem:[#allocation3 + $0x8] sm:$0xf] %vm4135_vm2, %v4044_v51  ;;  %4355 = vrot.lane.b32.xlu1 %v9298_v27, %s9889_s5  ;;  %v9316_v27 = vpack.c.bf16 %v4441_v28, %v4441_v28  ;;  %v9317_v51 = vpack.c.bf16 %v4442_v9, %v4442_v9  ;;  %v4688_v28 = vld [vmem:[#allocation2 + $0xb5] sm:$0xff]  ;;  %v4689_v9 = vld [vmem:[#allocation2 + $0xc5] sm:$0xff] }
 0x3da   : > { %4353 = vrot.lane.b32.xlu0 %v9297_v10, %s9889_s5  ;;  %v9315_v10 = vpack.c.bf16 %v4440_v29, %v4440_v29  ;;  %v4687_v29 = vld [vmem:[#allocation2 + $0xad] sm:$0xff] }
 0x3db   : > { %v4050_v12 = vpop.permute.xlu1 %4049 }
 0x3dc   : > { %v4048_v46 = vpop.permute.xlu0 %4047  ;;  %4141 = vst.msk [vmem:[#allocation3 + $0x14] sm:$0xf] %vm4135_vm2, %v4050_v12 }
 0x3dd   : > { %4140 = vst.msk [vmem:[#allocation3 + $0x10] sm:$0xf] %vm4135_vm2, %v4048_v46  ;;  %4359 = vrot.lane.b32.xlu1 %v9300_v57, %s9889_s5  ;;  %v4445_v57 = vld [vmem:[#allocation2 + $0x15b] sm:$0xff] }
 0x3de   : > { %4357 = vrot.lane.b32.xlu0 %v9299_v1, %s9889_s5  ;;  %v4444_v1 = vld [vmem:[#allocation2 + $0x153] sm:$0xff]  ;;  %v9320_v12 = vpack.c.bf16 %v4445_v57, %v4445_v57  ;;  %v4692_v57 = vld [vmem:[#allocation2 + $0xe5] sm:$0xff]  ;;  %s9905_s5 = smov 126  }
 0x3df   : > { %v4054_v41 = vpop.permute.xlu1 %4053  ;;  %v9319_v46 = vpack.c.bf16 %v4444_v1, %v4444_v1  ;;  %v4691_v1 = vld [vmem:[#allocation2 + $0xdd] sm:$0xff] }
 0x3e0   : > { %v4052_v48 = vpop.permute.xlu0 %4051  ;;  %4143 = vst.msk [vmem:[#allocation3 + $0x1c] sm:$0xf] %vm4135_vm2, %v4054_v41 }
 0x3e1   : > { %4142 = vst.msk [vmem:[#allocation3 + $0x18] sm:$0xf] %vm4135_vm2, %v4052_v48  ;;  %4556 = vrot.lane.b32.xlu1 %v9302_v47, %s9890_s6  ;;  %v4447_v47 = vld [vmem:[#allocation2 + $0x173] sm:$0xff] }
 0x3e2   : > { %4554 = vrot.lane.b32.xlu0 %v9301_v13, %s9890_s6  ;;  %v4446_v13 = vld [vmem:[#allocation2 + $0x16b] sm:$0xff]  ;;  %v11777_v41 = vpack.c.bf16 %v4447_v47, %v4447_v47  ;;  %v4694_v47 = vld [vmem:[#allocation2 + $0xfd] sm:$0xff] }
 0x3e3   : > { %v4058_v58 = vpop.permute.xlu1 %4057  ;;  %v11779_v48 = vpack.c.bf16 %v4446_v13, %v4446_v13  ;;  %v4693_v13 = vld [vmem:[#allocation2 + $0xf5] sm:$0xff] }
 0x3e4   : > { %v4056_v0 = vpop.permute.xlu0 %4055  ;;  %4145 = vst.msk [vmem:[#allocation3 + $0x24] sm:$0xf] %vm4135_vm2, %v4058_v58 }
 0x3e5   : > { %4144 = vst.msk [vmem:[#allocation3 + $0x20] sm:$0xf] %vm4135_vm2, %v4056_v0  ;;  %4560 = vrot.lane.b32.xlu1 %v9304_v50, %s9890_s6  ;;  %v4449_v50 = vld [vmem:[#allocation2 + $0x18b] sm:$0xff] }
 0x3e6   : > { %4558 = vrot.lane.b32.xlu0 %v9303_v63, %s9890_s6  ;;  %v4448_v63 = vld [vmem:[#allocation2 + $0x183] sm:$0xff]  ;;  %v9324_v58 = vpack.c.bf16 %v4449_v50, %v4449_v50  ;;  %v9344_v50 = vpack.c.bf16 %v4694_v47, %v4694_v47 }
 0x3e7   : > { %v4062_v30 = vpop.permute.xlu1 %4061  ;;  %v9323_v0 = vpack.c.bf16 %v4448_v63, %v4448_v63  ;;  %v9343_v63 = vpack.c.bf16 %v4693_v13, %v4693_v13  ;;  %v4940_v47 = vld [vmem:[#allocation2] sm:$0xff] }
 0x3e8   : > { %v4060_v52 = vpop.permute.xlu0 %4059  ;;  %4147 = vst.msk [vmem:[#allocation3 + $0x2c] sm:$0xf] %vm4135_vm2, %v4062_v30  ;;  %v4455_v30 = vld [vmem:[#allocation2 + $0x1d3] sm:$0xff] }
 0x3e9   : > { %4146 = vst.msk [vmem:[#allocation3 + $0x28] sm:$0xf] %vm4135_vm2, %v4060_v52  ;;  %4564 = vrot.lane.b32.xlu1 %v9306_v49, %s9890_s6  ;;  %v4454_v52 = vld [vmem:[#allocation2 + $0x1cb] sm:$0xff] }
 0x3ea   : > { %4562 = vrot.lane.b32.xlu0 %v9305_v7, %s9890_s6  ;;  %v9329_v26 = vpack.c.bf16 %v4454_v52, %v4454_v52 }
 0x3eb   : > { %v4066_v31 = vpop.permute.xlu1 %4065 }
 0x3ec   : > { %v4064_v32 = vpop.permute.xlu0 %4063  ;;  %4149 = vst.msk [vmem:[#allocation3 + $0x34] sm:$0xf] %vm4135_vm2, %v4066_v31  ;;  %v241_v31 = vunpack.c.l.bf16 %v175_v25  ;;  %v4700_v25 = vld [vmem:[#allocation2 + $0x145] sm:$0xff] }
 0x3ed   : > { %4148 = vst.msk [vmem:[#allocation3 + $0x30] sm:$0xf] %vm4135_vm2, %v4064_v32  ;;  %4568 = vrot.lane.b32.xlu1 %v9308_v44, %s9890_s6  ;;  %v4456_v32 = vld [vmem:[#allocation2 + $0x1e3] sm:$0xff] }
 0x3ee   : > { %4566 = vrot.lane.b32.xlu0 %v9307_v56, %s9890_s6  ;;  %309 = vst.msk [vmem:[#allocation2 + $0x10] sm:$0x3f] %vm308_vm1, %v241_v31  ;;  %v9331_v40 = vpack.c.bf16 %v4456_v32, %v4456_v32 }
 0x3ef   : > { %v4070_v54 = vpop.permute.xlu1 %4069 }
 0x3f0   : > { %v4068_v2 = vpop.permute.xlu0 %4067  ;;  %4151 = vst.msk [vmem:[#allocation3 + $0x3c] sm:$0xf] %vm4135_vm2, %v4070_v54 }
 0x3f1   : > { %4150 = vst.msk [vmem:[#allocation3 + $0x38] sm:$0xf] %vm4135_vm2, %v4068_v2  ;;  %4572 = vrot.lane.b32.xlu1 %v9310_v5, %s9890_s6 }
 0x3f2   : > { %4570 = vrot.lane.b32.xlu0 %v9309_v18, %s9890_s6 }
 0x3f3   : > { %v4074_v8 = vpop.permute.xlu1 %4073 }
 0x3f4   : > { %v4072_v19 = vpop.permute.xlu0 %4071  ;;  %4153 = vst.msk [vmem:[#allocation3 + $0x44] sm:$0xf] %vm4135_vm2, %v4074_v8 }
 0x3f5   : > { %4152 = vst.msk [vmem:[#allocation3 + $0x40] sm:$0xf] %vm4135_vm2, %v4072_v19  ;;  %4576 = vrot.lane.b32.xlu1 %v9312_v37, %s9890_s6 }
 0x3f6   : > { %4574 = vrot.lane.b32.xlu0 %v9311_v38, %s9890_s6  ;;  %v9333_v38 = vpack.c.bf16 %v4683_v42, %v4683_v42 }
 0x3f7   : > { %v4078_v17 = vpop.permute.xlu1 %4077 }
 0x3f8   : > { %v4076_v6 = vpop.permute.xlu0 %4075  ;;  %4155 = vst.msk [vmem:[#allocation3 + $0x4c] sm:$0xf] %vm4135_vm2, %v4078_v17 }
 0x3f9   : > { %4154 = vst.msk [vmem:[#allocation3 + $0x48] sm:$0xf] %vm4135_vm2, %v4076_v6  ;;  %4580 = vrot.lane.b32.xlu1 %v9314_v53, %s9890_s6  ;;  %v9336_v53 = vpack.c.bf16 %v4686_v43, %v4686_v43 }
 0x3fa   : > { %4578 = vrot.lane.b32.xlu0 %v9313_v60, %s9890_s6  ;;  %v9335_v60 = vpack.c.bf16 %v4685_v45, %v4685_v45 }
 0x3fb   : > { %v4082_v55 = vpop.permute.xlu1 %4081 }
 0x3fc   : > { %v4080_v3 = vpop.permute.xlu0 %4079  ;;  %4157 = vst.msk [vmem:[#allocation3 + $0x54] sm:$0xf] %vm4135_vm2, %v4082_v55 }
 0x3fd   : > { %4156 = vst.msk [vmem:[#allocation3 + $0x50] sm:$0xf] %vm4135_vm2, %v4080_v3  ;;  %4584 = vrot.lane.b32.xlu1 %v9316_v27, %s9890_s6  ;;  %v9338_v27 = vpack.c.bf16 %v4688_v28, %v4688_v28 }
 0x3fe   : > { %4582 = vrot.lane.b32.xlu0 %v9315_v10, %s9890_s6  ;;  %v9337_v10 = vpack.c.bf16 %v4687_v29, %v4687_v29 }
 0x3ff   : > { %v4086_v22 = vpop.permute.xlu1 %4085 }
 0x400   : > { %v4084_v11 = vpop.permute.xlu0 %4083  ;;  %4159 = vst.msk [vmem:[#allocation3 + $0x5c] sm:$0xf] %vm4135_vm2, %v4086_v22 }
 0x401   : > { %4158 = vst.msk [vmem:[#allocation3 + $0x58] sm:$0xf] %vm4135_vm2, %v4084_v11  ;;  %4588 = vrot.lane.b32.xlu1 %v9318_v36, %s9890_s6  ;;  %v9340_v36 = vpack.c.bf16 %v4690_v4, %v4690_v4  ;;  %v4712_v4 = vld [vmem:[#allocation2 + $0x1d5] sm:$0xff] }
 0x402   : > { %4586 = vrot.lane.b32.xlu0 %v9317_v51, %s9890_s6  ;;  %v9339_v51 = vpack.c.bf16 %v4689_v9, %v4689_v9  ;;  %v4711_v9 = vld [vmem:[#allocation2 + $0x1cd] sm:$0xff] }
 0x403   : > { %v4090_v62 = vpop.permute.xlu1 %4089 }
 0x404   : > { %v4088_v24 = vpop.permute.xlu0 %4087  ;;  %4161 = vst.msk [vmem:[#allocation3 + $0x64] sm:$0xf] %vm4135_vm2, %v4090_v62 }
 0x405   : > { %4160 = vst.msk [vmem:[#allocation3 + $0x60] sm:$0xf] %vm4135_vm2, %v4088_v24  ;;  %4592 = vrot.lane.b32.xlu1 %v9320_v12, %s9890_s6  ;;  %v9342_v12 = vpack.c.bf16 %v4692_v57, %v4692_v57 }
 0x406   : > { %4590 = vrot.lane.b32.xlu0 %v9319_v46, %s9890_s6  ;;  %v9341_v46 = vpack.c.bf16 %v4691_v1, %v4691_v1  ;;  %v4713_v1 = vld [vmem:[#allocation2 + $0x1e5] sm:$0xff] }
 0x407   : > { %v4094_v23 = vpop.permute.xlu1 %4093 }
 0x408   : > { %v4092_v20 = vpop.permute.xlu0 %4091  ;;  %4163 = vst.msk [vmem:[#allocation3 + $0x6c] sm:$0xf] %vm4135_vm2, %v4094_v23  ;;  %v4696_v23 = vld [vmem:[#allocation2 + $0x115] sm:$0xff] }
 0x409   : > { %4162 = vst.msk [vmem:[#allocation3 + $0x68] sm:$0xf] %vm4135_vm2, %v4092_v20  ;;  %4596 = vrot.lane.b32.xlu1 %v11777_v41, %s9890_s6  ;;  %v4695_v20 = vld [vmem:[#allocation2 + $0x10d] sm:$0xff] }
 0x40a   : > { %4594 = vrot.lane.b32.xlu0 %v11779_v48, %s9890_s6 }
 0x40b   : > { %v4098_v49 = vpop.permute.xlu1 %4097 }
 0x40c   : > { %v4096_v7 = vpop.permute.xlu0 %4095  ;;  %4165 = vst.msk [vmem:[#allocation3 + $0x74] sm:$0xf] %vm4135_vm2, %v4098_v49  ;;  %v9346_v49 = vpack.c.bf16 %v4696_v23, %v4696_v23  ;;  %v4942_v23 = vld [vmem:[#allocation2 + $0x18] sm:$0xff] }
 0x40d   : > { %4164 = vst.msk [vmem:[#allocation3 + $0x70] sm:$0xf] %vm4135_vm2, %v4096_v7  ;;  %4600 = vrot.lane.b32.xlu1 %v9324_v58, %s9890_s6  ;;  %v9345_v7 = vpack.c.bf16 %v4695_v20, %v4695_v20 }
 0x40e   : > { %4598 = vrot.lane.b32.xlu0 %v9323_v0, %s9890_s6 }
 0x40f   : > { %v4102_v33 = vpop.permute.xlu1 %4101 }
 0x410   : > { %v4100_v35 = vpop.permute.xlu0 %4099  ;;  %4167 = vst.msk [vmem:[#allocation3 + $0x7c] sm:$0xf] %vm4135_vm2, %v4102_v33  ;;  %v4698_v33 = vld [vmem:[#allocation2 + $0x12d] sm:$0xff] }
 0x411   : > { %4166 = vst.msk [vmem:[#allocation3 + $0x78] sm:$0xf] %vm4135_vm2, %v4100_v35  ;;  %4604 = vrot.lane.b32.xlu1 %v11542_v14, %s9890_s6  ;;  %v9330_v14 = vpack.c.bf16 %v4455_v30, %v4455_v30  ;;  %v4697_v35 = vld [vmem:[#allocation2 + $0x125] sm:$0xff] }
 0x412   : > { %4602 = vrot.lane.b32.xlu0 %v11544_v61, %s9890_s6  ;;  %v4457_v61 = vld [vmem:[#allocation2 + $0x1eb] sm:$0xff] }
 0x413   : > { %v4300_v44 = vpop.permute.xlu1 %4299 }
 0x414   : > { %v4298_v56 = vpop.permute.xlu0 %4297  ;;  %4395 = vst.msk [vmem:[#allocation3 + $0x4] sm:$0xf] %vm4393_vm3, %v4300_v44  ;;  %v9348_v44 = vpack.c.bf16 %v4698_v33, %v4698_v33 }
 0x415   : > { %4394 = vst.msk [vmem:[#allocation3] sm:$0xf] %vm4393_vm3, %v4298_v56  ;;  %4608 = vrot.lane.b32.xlu1 %v11552_v21, %s9890_s6  ;;  %v9332_v21 = vpack.c.bf16 %v4457_v61, %v4457_v61  ;;  %v9347_v56 = vpack.c.bf16 %v4697_v35, %v4697_v35  ;;  %v9350_v61 = vpack.c.bf16 %v4700_v25, %v4700_v25  ;;  %v4945_v35 = vld [vmem:[#allocation2 + $0x38] sm:$0xff] }
 0x416   : > { %4606 = vrot.lane.b32.xlu0 %v11554_v15, %s9890_s6  ;;  %v4684_v15 = vld [vmem:[#allocation2 + $0x85] sm:$0xff] }
 0x417   : > { %v4304_v5 = vpop.permute.xlu1 %4303  ;;  %v9334_v37 = vpack.c.bf16 %v4684_v15, %v4684_v15 }
 0x418   : > { %v4302_v18 = vpop.permute.xlu0 %4301  ;;  %4397 = vst.msk [vmem:[#allocation3 + $0xc] sm:$0xf] %vm4393_vm3, %v4304_v5  ;;  %v4702_v5 = vld [vmem:[#allocation2 + $0x15d] sm:$0xff] }
 0x419   : > { %4396 = vst.msk [vmem:[#allocation3 + $0x8] sm:$0xf] %vm4393_vm3, %v4302_v18  ;;  %4612 = vrot.lane.b32.xlu1 %v9330_v14, %s9890_s6  ;;  %v4699_v14 = vld [vmem:[#allocation2 + $0x13d] sm:$0xff]  ;;  %v4701_v18 = vld [vmem:[#allocation2 + $0x155] sm:$0xff]  ;;  %v9352_v15 = vpack.c.bf16 %v4702_v5, %v4702_v5 }
 0x41a   : > { %4610 = vrot.lane.b32.xlu0 %v9329_v26, %s9890_s6  ;;  %v9349_v32 = vpack.c.bf16 %v4699_v14, %v4699_v14  ;;  %v9351_v42 = vpack.c.bf16 %v4701_v18, %v4701_v18  ;;  %v4947_v14 = vld [vmem:[#allocation2 + $0x50] sm:$0xff]  ;;  %v4949_v18 = vld [vmem:[#allocation2 + $0x68] sm:$0xff] }
 0x41b   : > { %v4308_v54 = vpop.permute.xlu1 %4307 }
 0x41c   : > { %v4306_v2 = vpop.permute.xlu0 %4305  ;;  %4399 = vst.msk [vmem:[#allocation3 + $0x14] sm:$0xf] %vm4393_vm3, %v4308_v54  ;;  %v4704_v54 = vld [vmem:[#allocation2 + $0x175] sm:$0xff] }
 0x41d   : > { %4398 = vst.msk [vmem:[#allocation3 + $0x10] sm:$0xf] %vm4393_vm3, %v4306_v2  ;;  %4616 = vrot.lane.b32.xlu1 %v9332_v21, %s9890_s6  ;;  %v4703_v2 = vld [vmem:[#allocation2 + $0x16d] sm:$0xff]  ;;  %v9354_v43 = vpack.c.bf16 %v4704_v54, %v4704_v54 }
 0x41e   : > { %4614 = vrot.lane.b32.xlu0 %v9331_v40, %s9890_s6  ;;  %v9353_v45 = vpack.c.bf16 %v4703_v2, %v4703_v2  ;;  %v4951_v2 = vld [vmem:[#allocation2 + $0x80] sm:$0xff]  ;;  %s8788_s6 = sshll.u32 %s13074_s13, 6 }
 0x41f   : > { %v4312_v8 = vpop.permute.xlu1 %4311 }
 0x420   : > { %v4310_v19 = vpop.permute.xlu0 %4309  ;;  %4401 = vst.msk [vmem:[#allocation3 + $0x1c] sm:$0xf] %vm4393_vm3, %v4312_v8  ;;  %v4706_v8 = vld [vmem:[#allocation2 + $0x18d] sm:$0xff] }
 0x421   : > { %4400 = vst.msk [vmem:[#allocation3 + $0x18] sm:$0xf] %vm4393_vm3, %v4310_v19  ;;  %4813 = vrot.lane.b32.xlu1 %v9334_v37, %s9891_s7  ;;  %v4705_v19 = vld [vmem:[#allocation2 + $0x185] sm:$0xff]  ;;  %v9356_v28 = vpack.c.bf16 %v4706_v8, %v4706_v8 }
 0x422   : > { %4811 = vrot.lane.b32.xlu0 %v9333_v38, %s9891_s7  ;;  %v9355_v29 = vpack.c.bf16 %v4705_v19, %v4705_v19  ;;  %v4953_v19 = vld [vmem:[#allocation2 + $0x98] sm:$0xff] }
 0x423   : > { %v4316_v17 = vpop.permute.xlu1 %4315 }
 0x424   : > { %v4314_v6 = vpop.permute.xlu0 %4313  ;;  %4403 = vst.msk [vmem:[#allocation3 + $0x24] sm:$0xf] %vm4393_vm3, %v4316_v17 }
 0x425   : > { %4402 = vst.msk [vmem:[#allocation3 + $0x20] sm:$0xf] %vm4393_vm3, %v4314_v6  ;;  %4817 = vrot.lane.b32.xlu1 %v9336_v53, %s9891_s7 }
 0x426   : > { %4815 = vrot.lane.b32.xlu0 %v9335_v60, %s9891_s7 }
 0x427   : > { %v4320_v55 = vpop.permute.xlu1 %4319 }
 0x428   : > { %v4318_v3 = vpop.permute.xlu0 %4317  ;;  %4405 = vst.msk [vmem:[#allocation3 + $0x2c] sm:$0xf] %vm4393_vm3, %v4320_v55 }
 0x429   : > { %4404 = vst.msk [vmem:[#allocation3 + $0x28] sm:$0xf] %vm4393_vm3, %v4318_v3  ;;  %4821 = vrot.lane.b32.xlu1 %v9338_v27, %s9891_s7 }
 0x42a   : > { %4819 = vrot.lane.b32.xlu0 %v9337_v10, %s9891_s7 }
 0x42b   : > { %v4324_v22 = vpop.permute.xlu1 %4323 }
 0x42c   : > { %v4322_v11 = vpop.permute.xlu0 %4321  ;;  %4407 = vst.msk [vmem:[#allocation3 + $0x34] sm:$0xf] %vm4393_vm3, %v4324_v22 }
 0x42d   : > { %4406 = vst.msk [vmem:[#allocation3 + $0x30] sm:$0xf] %vm4393_vm3, %v4322_v11  ;;  %4825 = vrot.lane.b32.xlu1 %v9340_v36, %s9891_s7  ;;  %v236_v36 = vld [vmem:[%s9942_s17 + $0xfc] sm:$0xff]  }
 0x42e   : > { %4823 = vrot.lane.b32.xlu0 %v9339_v51, %s9891_s7  ;;  %v9361_v51 = vpack.c.bf16 %v4711_v9, %v4711_v9  ;;  %v302_v57 = vunpack.c.l.bf16 %v236_v36 }
 0x42f   : > { %v4328_v62 = vpop.permute.xlu1 %4327 }
 0x430   : > { %v4326_v24 = vpop.permute.xlu0 %4325  ;;  %4409 = vst.msk [vmem:[#allocation3 + $0x3c] sm:$0xf] %vm4393_vm3, %v4328_v62 }
 0x431   : > { %4408 = vst.msk [vmem:[#allocation3 + $0x38] sm:$0xf] %vm4393_vm3, %v4326_v24  ;;  %4829 = vrot.lane.b32.xlu1 %v9342_v12, %s9891_s7  ;;  %v9363_v12 = vpack.c.bf16 %v4713_v1, %v4713_v1  ;;  %v4959_v1 = vld [vmem:[#allocation2 + $0xe0] sm:$0xff] }
 0x432   : > { %4827 = vrot.lane.b32.xlu0 %v9341_v46, %s9891_s7  ;;  %370 = vst.msk [vmem:[#allocation2 + $0x1f8] sm:$0xff] %vm305_vm0, %v302_v57  ;;  %v4941_v46 = vld [vmem:[#allocation2 + $0x8] sm:$0xff] }
 0x433   : > { %v4332_v58 = vpop.permute.xlu1 %4331  ;;  %v9366_v24 = vpack.c.bf16 %v4941_v46, %v4941_v46  ;;  %v4961_v46 = vld [vmem:[#allocation2 + $0xf8] sm:$0xff] }
 0x434   : > { %v4330_v0 = vpop.permute.xlu0 %4329  ;;  %4411 = vst.msk [vmem:[#allocation3 + $0x44] sm:$0xf] %vm4393_vm3, %v4332_v58 }
 0x435   : > { %4410 = vst.msk [vmem:[#allocation3 + $0x40] sm:$0xf] %vm4393_vm3, %v4330_v0  ;;  %4833 = vrot.lane.b32.xlu1 %v9344_v50, %s9891_s7  ;;  %v9365_v50 = vpack.c.bf16 %v4940_v47, %v4940_v47  ;;  %v238_v0 = vld [vmem:[%s9942_s17 + $0x104] sm:$0x7]  ;;  %v4960_v47 = vld [vmem:[#allocation2 + $0xf0] sm:$0xff]  ;;  %s9899_s17 = smov 100  }
 0x436   : > { %4831 = vrot.lane.b32.xlu0 %v9343_v63, %s9891_s7  ;;  %v4943_v63 = vld [vmem:[#allocation2 + $0x20] sm:$0xff]  ;;  %v304_v33 = vunpack.c.l.bf16 %v238_v0 }
 0x437   : > { %v4336_v30 = vpop.permute.xlu1 %4335 }
 0x438   : > { %v4334_v52 = vpop.permute.xlu0 %4333  ;;  %4413 = vst.msk [vmem:[#allocation3 + $0x4c] sm:$0xf] %vm4393_vm3, %v4336_v30  ;;  %v4944_v30 = vld [vmem:[#allocation2 + $0x30] sm:$0xff] }
 0x439   : > { %4412 = vst.msk [vmem:[#allocation3 + $0x48] sm:$0xf] %vm4393_vm3, %v4334_v52  ;;  %4837 = vrot.lane.b32.xlu1 %v9346_v49, %s9891_s7  ;;  %v9368_v49 = vpack.c.bf16 %v4943_v63, %v4943_v63  ;;  %v9369_v25 = vpack.c.bf16 %v4944_v30, %v4944_v30  ;;  %v4963_v63 = vld [vmem:[#allocation2 + $0x110] sm:$0xff] }
 0x43a   : > { %4835 = vrot.lane.b32.xlu0 %v9345_v7, %s9891_s7  ;;  %v9367_v7 = vpack.c.bf16 %v4942_v23, %v4942_v23  ;;  %372 = vst.msk [vmem:[#allocation2 + $0x208] sm:$0x3f] %vm308_vm1, %v304_v33  ;;  %v4962_v23 = vld [vmem:[#allocation2 + $0x108] sm:$0xff]  ;;  %v9388_v0 = vpack.c.bf16 %v4963_v63, %v4963_v63  ;;  %v4964_v33 = vld [vmem:[#allocation2 + $0x120] sm:$0xff]  ;;  %vm5164_vm1 = vcmask 618048  }
 0x43b   : > { %v4340_v26 = vpop.permute.xlu1 %4339 }
 0x43c   : > { %v4338_v31 = vpop.permute.xlu0 %4337  ;;  %4415 = vst.msk [vmem:[#allocation3 + $0x54] sm:$0xf] %vm4393_vm3, %v4340_v26  ;;  %v4946_v26 = vld [vmem:[#allocation2 + $0x48] sm:$0xff] }
 0x43d   : > { %4414 = vst.msk [vmem:[#allocation3 + $0x50] sm:$0xf] %vm4393_vm3, %v4338_v31  ;;  %4841 = vrot.lane.b32.xlu1 %v9348_v44, %s9891_s7  ;;  %v9371_v5 = vpack.c.bf16 %v4946_v26, %v4946_v26 }
 0x43e   : > { %4839 = vrot.lane.b32.xlu0 %v9347_v56, %s9891_s7  ;;  %v9370_v56 = vpack.c.bf16 %v4945_v35, %v4945_v35 }
 0x43f   : > { %v4344_v21 = vpop.permute.xlu1 %4343 }
 0x440   : > { %v4342_v40 = vpop.permute.xlu0 %4341  ;;  %4417 = vst.msk [vmem:[#allocation3 + $0x5c] sm:$0xf] %vm4393_vm3, %v4344_v21  ;;  %v4948_v21 = vld [vmem:[#allocation2 + $0x60] sm:$0xff] }
 0x441   : > { %4416 = vst.msk [vmem:[#allocation3 + $0x58] sm:$0xf] %vm4393_vm3, %v4342_v40  ;;  %4845 = vrot.lane.b32.xlu1 %v9350_v61, %s9891_s7  ;;  %v9373_v54 = vpack.c.bf16 %v4948_v21, %v4948_v21 }
 0x442   : > { %4843 = vrot.lane.b32.xlu0 %v9349_v32, %s9891_s7  ;;  %v9372_v32 = vpack.c.bf16 %v4947_v14, %v4947_v14 }
 0x443   : > { %v4348_v37 = vpop.permute.xlu1 %4347 }
 0x444   : > { %v4346_v38 = vpop.permute.xlu0 %4345  ;;  %4419 = vst.msk [vmem:[#allocation3 + $0x64] sm:$0xf] %vm4393_vm3, %v4348_v37  ;;  %v4950_v37 = vld [vmem:[#allocation2 + $0x78] sm:$0xff] }
 0x445   : > { %4418 = vst.msk [vmem:[#allocation3 + $0x60] sm:$0xf] %vm4393_vm3, %v4346_v38  ;;  %4849 = vrot.lane.b32.xlu1 %v9352_v15, %s9891_s7  ;;  %v9375_v8 = vpack.c.bf16 %v4950_v37, %v4950_v37 }
 0x446   : > { %4847 = vrot.lane.b32.xlu0 %v9351_v42, %s9891_s7  ;;  %v9374_v42 = vpack.c.bf16 %v4949_v18, %v4949_v18 }
 0x447   : > { %v4352_v53 = vpop.permute.xlu1 %4351 }
 0x448   : > { %v4350_v60 = vpop.permute.xlu0 %4349  ;;  %4421 = vst.msk [vmem:[#allocation3 + $0x6c] sm:$0xf] %vm4393_vm3, %v4352_v53  ;;  %v4952_v53 = vld [vmem:[#allocation2 + $0x90] sm:$0xff] }
 0x449   : > { %4420 = vst.msk [vmem:[#allocation3 + $0x68] sm:$0xf] %vm4393_vm3, %v4350_v60  ;;  %4853 = vrot.lane.b32.xlu1 %v9354_v43, %s9891_s7 }
 0x44a   : > { %4851 = vrot.lane.b32.xlu0 %v9353_v45, %s9891_s7  ;;  %v9376_v45 = vpack.c.bf16 %v4951_v2, %v4951_v2 }
 0x44b   : > { %v4356_v17 = vpop.permute.xlu1 %4355 }
 0x44c   : > { %v4354_v6 = vpop.permute.xlu0 %4353  ;;  %4423 = vst.msk [vmem:[#allocation3 + $0x74] sm:$0xf] %vm4393_vm3, %v4356_v17  ;;  %v9377_v17 = vpack.c.bf16 %v4952_v53, %v4952_v53 }
 0x44d   : > { %4422 = vst.msk [vmem:[#allocation3 + $0x70] sm:$0xf] %vm4393_vm3, %v4354_v6  ;;  %4857 = vrot.lane.b32.xlu1 %v9356_v28, %s9891_s7  ;;  %v4955_v6 = vld [vmem:[#allocation2 + $0xb0] sm:$0xff] }
 0x44e   : > { %4855 = vrot.lane.b32.xlu0 %v9355_v29, %s9891_s7  ;;  %v9378_v29 = vpack.c.bf16 %v4953_v19, %v4953_v19  ;;  %v9380_v9 = vpack.c.bf16 %v4955_v6, %v4955_v6 }
 0x44f   : > { %v4360_v27 = vpop.permute.xlu1 %4359 }
 0x450   : > { %v4358_v10 = vpop.permute.xlu0 %4357  ;;  %4425 = vst.msk [vmem:[#allocation3 + $0x7c] sm:$0xf] %vm4393_vm3, %v4360_v27  ;;  %v4954_v27 = vld [vmem:[#allocation2 + $0xa8] sm:$0xff] }
 0x451   : > { %4424 = vst.msk [vmem:[#allocation3 + $0x78] sm:$0xf] %vm4393_vm3, %v4358_v10  ;;  %4861 = vrot.lane.b32.xlu1 %v11646_v59, %s9891_s7  ;;  %v9362_v59 = vpack.c.bf16 %v4712_v4, %v4712_v4 }
 0x452   : > { %4859 = vrot.lane.b32.xlu0 %v11648_v16, %s9891_s7  ;;  %v4714_v16 = vld [vmem:[#allocation2 + $0x1ed] sm:$0xff] }
 0x453   : > { %v4557_v55 = vpop.permute.xlu1 %4556 }
 0x454   : > { %v4555_v3 = vpop.permute.xlu0 %4554  ;;  %4652 = vst.msk [vmem:[#allocation3 + $0x4] sm:$0xf] %vm4650_vm4, %v4557_v55  ;;  %v9379_v55 = vpack.c.bf16 %v4954_v27, %v4954_v27 }
 0x455   : > { %4651 = vst.msk [vmem:[#allocation3] sm:$0xf] %vm4650_vm4, %v4555_v3  ;;  %4865 = vrot.lane.b32.xlu1 %v11656_v39, %s9891_s7  ;;  %v9364_v39 = vpack.c.bf16 %v4714_v16, %v4714_v16  ;;  %v4957_v3 = vld [vmem:[#allocation2 + $0xc8] sm:$0xff] }
 0x456   : > { %4863 = vrot.lane.b32.xlu0 %v11658_v34, %s9891_s7  ;;  %v303_v34 = vunpack.c.h.bf16 %v236_v36  ;;  %v4956_v36 = vld [vmem:[#allocation2 + $0xc0] sm:$0xff]  ;;  %v9382_v57 = vpack.c.bf16 %v4957_v3, %v4957_v3 }
 0x457   : > { %v4561_v22 = vpop.permute.xlu1 %4560  ;;  %v9381_v16 = vpack.c.bf16 %v4956_v36, %v4956_v36 }
 0x458   : > { %v4559_v11 = vpop.permute.xlu0 %4558  ;;  %4654 = vst.msk [vmem:[#allocation3 + $0xc] sm:$0xf] %vm4650_vm4, %v4561_v22  ;;  %v4958_v22 = vld [vmem:[#allocation2 + $0xd8] sm:$0xff] }
 0x459   : > { %4653 = vst.msk [vmem:[#allocation3 + $0x8] sm:$0xf] %vm4650_vm4, %v4559_v11  ;;  %4869 = vrot.lane.b32.xlu1 %v9362_v59, %s9891_s7 }
 0x45a   : > { %4867 = vrot.lane.b32.xlu0 %v9361_v51, %s9891_s7  ;;  %371 = vst.msk [vmem:[#allocation2 + $0x200] sm:$0xff] %vm305_vm0, %v303_v34  ;;  %v11924_v34 = vpack.c.bf16 %v4958_v22, %v4958_v22  ;;  %vm4907_vm0 = vcmask 585248  }
 0x45b   : > { %v4565_v13 = vpop.permute.xlu1 %4564 }
 0x45c   : > { %v4563_v62 = vpop.permute.xlu0 %4562  ;;  %4656 = vst.msk [vmem:[#allocation3 + $0x14] sm:$0xf] %vm4650_vm4, %v4565_v13 }
 0x45d   : > { %4655 = vst.msk [vmem:[#allocation3 + $0x10] sm:$0xf] %vm4650_vm4, %v4563_v62  ;;  %4873 = vrot.lane.b32.xlu1 %v9364_v39, %s9891_s7 }
 0x45e   : > { %4871 = vrot.lane.b32.xlu0 %v9363_v12, %s9891_s7  ;;  %v11922_v12 = vpack.c.bf16 %v4959_v1, %v4959_v1 }
 0x45f   : > { %v4569_v20 = vpop.permute.xlu1 %4568 }
 0x460   : > { %v4567_v58 = vpop.permute.xlu0 %4566  ;;  %4658 = vst.msk [vmem:[#allocation3 + $0x1c] sm:$0xf] %vm4650_vm4, %v4569_v20 }
 0x461   : > { %4657 = vst.msk [vmem:[#allocation3 + $0x18] sm:$0xf] %vm4650_vm4, %v4567_v58  ;;  %5070 = vrot.lane.b32.xlu1 %v9366_v24, %s9892_s8  ;;  %v11932_v24 = vpack.c.bf16 %v4961_v46, %v4961_v46  ;;  %v5206_v46 = vld [vmem:[#allocation2 + $0x6b] sm:$0xff] }
 0x462   : > { %5068 = vrot.lane.b32.xlu0 %v9365_v50, %s9892_s8  ;;  %v11934_v50 = vpack.c.bf16 %v4960_v47, %v4960_v47  ;;  %v5205_v47 = vld [vmem:[#allocation2 + $0x63] sm:$0xff]  ;;  %v9406_v63 = vpack.c.bf16 %v5206_v46, %v5206_v46 }
 0x463   : > { %v4573_v52 = vpop.permute.xlu1 %4572 }
 0x464   : > { %v4571_v44 = vpop.permute.xlu0 %4570  ;;  %4660 = vst.msk [vmem:[#allocation3 + $0x24] sm:$0xf] %vm4650_vm4, %v4573_v52 }
 0x465   : > { %4659 = vst.msk [vmem:[#allocation3 + $0x20] sm:$0xf] %vm4650_vm4, %v4571_v44  ;;  %5074 = vrot.lane.b32.xlu1 %v9368_v49, %s9892_s8  ;;  %v9387_v49 = vpack.c.bf16 %v4962_v23, %v4962_v23  ;;  %v11948_v44 = vpack.c.bf16 %v4964_v33, %v4964_v33  ;;  %v9405_v23 = vpack.c.bf16 %v5205_v47, %v5205_v47  ;;  %v6239_v47 = vld [vmem:[#allocation2 + $0xf6] sm:$0xff] }
 0x466   : > { %5072 = vrot.lane.b32.xlu0 %v9367_v7, %s9892_s8  ;;  %v4965_v7 = vld [vmem:[#allocation2 + $0x128] sm:$0xff] }
 0x467   : > { %v4577_v31 = vpop.permute.xlu1 %4576  ;;  %v11946_v52 = vpack.c.bf16 %v4965_v7, %v4965_v7 }
 0x468   : > { %v4575_v61 = vpop.permute.xlu0 %4574  ;;  %4662 = vst.msk [vmem:[#allocation3 + $0x2c] sm:$0xf] %vm4650_vm4, %v4577_v31 }
 0x469   : > { %4661 = vst.msk [vmem:[#allocation3 + $0x28] sm:$0xf] %vm4650_vm4, %v4575_v61  ;;  %5078 = vrot.lane.b32.xlu1 %v9370_v56, %s9892_s8  ;;  %v4967_v56 = vld [vmem:[#allocation2 + $0x140] sm:$0xff] }
 0x46a   : > { %5076 = vrot.lane.b32.xlu0 %v9369_v25, %s9892_s8  ;;  %v4966_v25 = vld [vmem:[#allocation2 + $0x138] sm:$0xff]  ;;  %v11956_v31 = vpack.c.bf16 %v4967_v56, %v4967_v56 }
 0x46b   : > { %v4581_v40 = vpop.permute.xlu1 %4580  ;;  %v11958_v61 = vpack.c.bf16 %v4966_v25, %v4966_v25 }
 0x46c   : > { %v4579_v15 = vpop.permute.xlu0 %4578  ;;  %4664 = vst.msk [vmem:[#allocation3 + $0x34] sm:$0xf] %vm4650_vm4, %v4581_v40 }
 0x46d   : > { %4663 = vst.msk [vmem:[#allocation3 + $0x30] sm:$0xf] %vm4650_vm4, %v4579_v15  ;;  %5082 = vrot.lane.b32.xlu1 %v9372_v32, %s9892_s8  ;;  %v4969_v32 = vld [vmem:[#allocation2 + $0x158] sm:$0xff] }
 0x46e   : > { %5080 = vrot.lane.b32.xlu0 %v9371_v5, %s9892_s8  ;;  %v4968_v5 = vld [vmem:[#allocation2 + $0x150] sm:$0xff]  ;;  %v9394_v40 = vpack.c.bf16 %v4969_v32, %v4969_v32 }
 0x46f   : > { %v4585_v38 = vpop.permute.xlu1 %4584  ;;  %v9393_v15 = vpack.c.bf16 %v4968_v5, %v4968_v5 }
 0x470   : > { %v4583_v43 = vpop.permute.xlu0 %4582  ;;  %4666 = vst.msk [vmem:[#allocation3 + $0x3c] sm:$0xf] %vm4650_vm4, %v4585_v38 }
 0x471   : > { %4665 = vst.msk [vmem:[#allocation3 + $0x38] sm:$0xf] %vm4650_vm4, %v4583_v43  ;;  %5086 = vrot.lane.b32.xlu1 %v9374_v42, %s9892_s8  ;;  %v4971_v42 = vld [vmem:[#allocation2 + $0x170] sm:$0xff] }
 0x472   : > { %5084 = vrot.lane.b32.xlu0 %v9373_v54, %s9892_s8  ;;  %v4970_v54 = vld [vmem:[#allocation2 + $0x168] sm:$0xff]  ;;  %v9396_v38 = vpack.c.bf16 %v4971_v42, %v4971_v42 }
 0x473   : > { %v4589_v60 = vpop.permute.xlu1 %4588  ;;  %v9395_v43 = vpack.c.bf16 %v4970_v54, %v4970_v54 }
 0x474   : > { %v4587_v28 = vpop.permute.xlu0 %4586  ;;  %4668 = vst.msk [vmem:[#allocation3 + $0x44] sm:$0xf] %vm4650_vm4, %v4589_v60 }
 0x475   : > { %4667 = vst.msk [vmem:[#allocation3 + $0x40] sm:$0xf] %vm4650_vm4, %v4587_v28  ;;  %5090 = vrot.lane.b32.xlu1 %v9376_v45, %s9892_s8  ;;  %v5198_v45 = vld [vmem:[#allocation2 + $0xb] sm:$0xff] }
 0x476   : > { %5088 = vrot.lane.b32.xlu0 %v9375_v8, %s9892_s8  ;;  %v5197_v8 = vld [vmem:[#allocation2 + $0x3] sm:$0xff]  ;;  %v9398_v60 = vpack.c.bf16 %v5198_v45, %v5198_v45 }
 0x477   : > { %v4593_v10 = vpop.permute.xlu1 %4592  ;;  %v9397_v28 = vpack.c.bf16 %v5197_v8, %v5197_v8  ;;  %v5741_v8 = vld [vmem:[#allocation2 + $0x1b0] sm:$0xff] }
 0x478   : > { %v4591_v4 = vpop.permute.xlu0 %4590  ;;  %4670 = vst.msk [vmem:[#allocation3 + $0x4c] sm:$0xf] %vm4650_vm4, %v4593_v10 }
 0x479   : > { %4669 = vst.msk [vmem:[#allocation3 + $0x48] sm:$0xf] %vm4650_vm4, %v4591_v4  ;;  %5094 = vrot.lane.b32.xlu1 %v9378_v29, %s9892_s8  ;;  %v5200_v29 = vld [vmem:[#allocation2 + $0x23] sm:$0xff] }
 0x47a   : > { %5092 = vrot.lane.b32.xlu0 %v9377_v17, %s9892_s8  ;;  %v5199_v17 = vld [vmem:[#allocation2 + $0x1b] sm:$0xff]  ;;  %v9400_v10 = vpack.c.bf16 %v5200_v29, %v5200_v29 }
 0x47b   : > { %v4597_v59 = vpop.permute.xlu1 %4596  ;;  %v9399_v4 = vpack.c.bf16 %v5199_v17, %v5199_v17  ;;  %v5742_v29 = vld [vmem:[#allocation2 + $0x1b8] sm:$0xff] }
 0x47c   : > { %v4595_v51 = vpop.permute.xlu0 %4594  ;;  %4672 = vst.msk [vmem:[#allocation3 + $0x54] sm:$0xf] %vm4650_vm4, %v4597_v59 }
 0x47d   : > { %4671 = vst.msk [vmem:[#allocation3 + $0x50] sm:$0xf] %vm4650_vm4, %v4595_v51  ;;  %5098 = vrot.lane.b32.xlu1 %v9380_v9, %s9892_s8  ;;  %v5202_v9 = vld [vmem:[#allocation2 + $0x3b] sm:$0xff] }
 0x47e   : > { %5096 = vrot.lane.b32.xlu0 %v9379_v55, %s9892_s8  ;;  %v5201_v55 = vld [vmem:[#allocation2 + $0x33] sm:$0xff]  ;;  %v9402_v59 = vpack.c.bf16 %v5202_v9, %v5202_v9 }
 0x47f   : > { %v4601_v11 = vpop.permute.xlu1 %4600  ;;  %v9401_v51 = vpack.c.bf16 %v5201_v55, %v5201_v55 }
 0x480   : > { %v4599_v39 = vpop.permute.xlu0 %4598  ;;  %4674 = vst.msk [vmem:[#allocation3 + $0x5c] sm:$0xf] %vm4650_vm4, %v4601_v11 }
 0x481   : > { %4673 = vst.msk [vmem:[#allocation3 + $0x58] sm:$0xf] %vm4650_vm4, %v4599_v39  ;;  %5102 = vrot.lane.b32.xlu1 %v9382_v57, %s9892_s8  ;;  %v5204_v57 = vld [vmem:[#allocation2 + $0x53] sm:$0xff] }
 0x482   : > { %5100 = vrot.lane.b32.xlu0 %v9381_v16, %s9892_s8  ;;  %v5203_v16 = vld [vmem:[#allocation2 + $0x4b] sm:$0xff]  ;;  %v9404_v11 = vpack.c.bf16 %v5204_v57, %v5204_v57 }
 0x483   : > { %v4605_v13 = vpop.permute.xlu1 %4604  ;;  %v9403_v39 = vpack.c.bf16 %v5203_v16, %v5203_v16  ;;  %v6255_v16 = vld [vmem:[#allocation2 + $0x1b6] sm:$0xff] }
 0x484   : > { %v4603_v62 = vpop.permute.xlu0 %4602  ;;  %4676 = vst.msk [vmem:[#allocation3 + $0x64] sm:$0xf] %vm4650_vm4, %v4605_v13 }
 0x485   : > { %4675 = vst.msk [vmem:[#allocation3 + $0x60] sm:$0xf] %vm4650_vm4, %v4603_v62  ;;  %5106 = vrot.lane.b32.xlu1 %v11922_v12, %s9892_s8 }
 0x486   : > { %5104 = vrot.lane.b32.xlu0 %v11924_v34, %s9892_s8 }
 0x487   : > { %v4609_v20 = vpop.permute.xlu1 %4608 }
 0x488   : > { %v4607_v58 = vpop.permute.xlu0 %4606  ;;  %4678 = vst.msk [vmem:[#allocation3 + $0x6c] sm:$0xf] %vm4650_vm4, %v4609_v20  ;;  %v5208_v20 = vld [vmem:[#allocation2 + $0x83] sm:$0xff] }
 0x489   : > { %4677 = vst.msk [vmem:[#allocation3 + $0x68] sm:$0xf] %vm4650_vm4, %v4607_v58  ;;  %5110 = vrot.lane.b32.xlu1 %v11932_v24, %s9892_s8  ;;  %v5207_v58 = vld [vmem:[#allocation2 + $0x7b] sm:$0xff]  ;;  %v9408_v7 = vpack.c.bf16 %v5208_v20, %v5208_v20 }
 0x48a   : > { %5108 = vrot.lane.b32.xlu0 %v11934_v50, %s9892_s8  ;;  %v9407_v33 = vpack.c.bf16 %v5207_v58, %v5207_v58  ;;  %v6513_v20 = vld [vmem:[#allocation2 + $0x1f8] sm:$0xff] }
 0x48b   : > { %v4613_v35 = vpop.permute.xlu1 %4612  ;;  %v6240_v58 = vld [vmem:[#allocation2 + $0xfe] sm:$0xff] }
 0x48c   : > { %v4611_v30 = vpop.permute.xlu0 %4610  ;;  %4680 = vst.msk [vmem:[#allocation3 + $0x74] sm:$0xf] %vm4650_vm4, %v4613_v35  ;;  %v5209_v35 = vld [vmem:[#allocation2 + $0x93] sm:$0xff] }
 0x48d   : > { %4679 = vst.msk [vmem:[#allocation3 + $0x70] sm:$0xf] %vm4650_vm4, %v4611_v30  ;;  %5114 = vrot.lane.b32.xlu1 %v9388_v0, %s9892_s8  ;;  %v9409_v25 = vpack.c.bf16 %v5209_v35, %v5209_v35  ;;  %v6514_v35 = vld [vmem:[#allocation2 + $0x200] sm:$0xff] }
 0x48e   : > { %5112 = vrot.lane.b32.xlu0 %v9387_v49, %s9892_s8 }
 0x48f   : > { %v4617_v14 = vpop.permute.xlu1 %4616 }
 0x490   : > { %v4615_v26 = vpop.permute.xlu0 %4614  ;;  %4682 = vst.msk [vmem:[#allocation3 + $0x7c] sm:$0xf] %vm4650_vm4, %v4617_v14  ;;  %v5211_v14 = vld [vmem:[#allocation2 + $0xab] sm:$0xff] }
 0x491   : > { %4681 = vst.msk [vmem:[#allocation3 + $0x78] sm:$0xf] %vm4650_vm4, %v4615_v26  ;;  %5118 = vrot.lane.b32.xlu1 %v11946_v52, %s9892_s8  ;;  %v9411_v5 = vpack.c.bf16 %v5211_v14, %v5211_v14  ;;  %v6770_v14 = vld [vmem:[#allocation2 + $0x1fb] sm:$0xff] }
 0x492   : > { %5116 = vrot.lane.b32.xlu0 %v11948_v44, %s9892_s8 }
 0x493   : > { %v4814_v18 = vpop.permute.xlu1 %4813 }
 0x494   : > { %v4812_v21 = vpop.permute.xlu0 %4811  ;;  %4909 = vst.msk [vmem:[#allocation3 + $0x4] sm:$0xf] %vm4907_vm0, %v4814_v18  ;;  %v5484_v18 = vld [vmem:[#allocation2 + $0x16e] sm:$0xff] }
 0x495   : > { %4908 = vst.msk [vmem:[#allocation3] sm:$0xf] %vm4907_vm0, %v4812_v21  ;;  %5122 = vrot.lane.b32.xlu1 %v11956_v31, %s9892_s8  ;;  %v5212_v21 = vld [vmem:[#allocation2 + $0xb3] sm:$0xff]  ;;  %v9459_v42 = vpack.c.bf16 %v5484_v18, %v5484_v18  ;;  %v6754_v18 = vld [vmem:[#allocation2 + $0x13b] sm:$0xff] }
 0x496   : > { %5120 = vrot.lane.b32.xlu0 %v11958_v61, %s9892_s8  ;;  %v9412_v54 = vpack.c.bf16 %v5212_v21, %v5212_v21  ;;  %v6771_v21 = vld [vmem:[#allocation2 + $0x203] sm:$0xff] }
 0x497   : > { %v4818_v2 = vpop.permute.xlu1 %4817 }
 0x498   : > { %v4816_v37 = vpop.permute.xlu0 %4815  ;;  %4911 = vst.msk [vmem:[#allocation3 + $0xc] sm:$0xf] %vm4907_vm0, %v4818_v2  ;;  %v5468_v2 = vld [vmem:[#allocation2 + $0xae] sm:$0xff] }
 0x499   : > { %4910 = vst.msk [vmem:[#allocation3 + $0x8] sm:$0xf] %vm4907_vm0, %v4816_v37  ;;  %5126 = vrot.lane.b32.xlu1 %v9394_v40, %s9892_s8 }
 0x49a   : > { %5124 = vrot.lane.b32.xlu0 %v9393_v15, %s9892_s8 }
 0x49b   : > { %v4822_v19 = vpop.permute.xlu1 %4821 }
 0x49c   : > { %v4820_v53 = vpop.permute.xlu0 %4819  ;;  %4913 = vst.msk [vmem:[#allocation3 + $0x14] sm:$0xf] %vm4907_vm0, %v4822_v19  ;;  %v5469_v19 = vld [vmem:[#allocation2 + $0xb6] sm:$0xff] }
 0x49d   : > { %4912 = vst.msk [vmem:[#allocation3 + $0x10] sm:$0xf] %vm4907_vm0, %v4820_v53  ;;  %5130 = vrot.lane.b32.xlu1 %v9396_v38, %s9892_s8 }
 0x49e   : > { %5128 = vrot.lane.b32.xlu0 %v9395_v43, %s9892_s8  ;;  %v9443_v43 = vpack.c.bf16 %v5468_v2, %v5468_v2  ;;  %v6755_v2 = vld [vmem:[#allocation2 + $0x143] sm:$0xff] }
 0x49f   : > { %v4826_v6 = vpop.permute.xlu1 %4825 }
 0x4a0   : > { %v4824_v27 = vpop.permute.xlu0 %4823  ;;  %4915 = vst.msk [vmem:[#allocation3 + $0x1c] sm:$0xf] %vm4907_vm0, %v4826_v6 }
 0x4a1   : > { %4914 = vst.msk [vmem:[#allocation3 + $0x18] sm:$0xf] %vm4907_vm0, %v4824_v27  ;;  %5327 = vrot.lane.b32.xlu1 %v9398_v60, %s9893_s9  ;;  %v9491_v60 = vpack.c.bf16 %v5741_v8, %v5741_v8  ;;  %v9492_v27 = vpack.c.bf16 %v5742_v29, %v5742_v29 }
 0x4a2   : > { %5325 = vrot.lane.b32.xlu0 %v9397_v28, %s9893_s9  ;;  %v9444_v28 = vpack.c.bf16 %v5469_v19, %v5469_v19 }
 0x4a3   : > { %v4830_v3 = vpop.permute.xlu1 %4829 }
 0x4a4   : > { %v4828_v36 = vpop.permute.xlu0 %4827  ;;  %4917 = vst.msk [vmem:[#allocation3 + $0x24] sm:$0xf] %vm4907_vm0, %v4830_v3  ;;  %v5982_v3 = vld [vmem:[#allocation2 + $0xf3] sm:$0xff] }
 0x4a5   : > { %4916 = vst.msk [vmem:[#allocation3 + $0x20] sm:$0xf] %vm4907_vm0, %v4828_v36  ;;  %5331 = vrot.lane.b32.xlu1 %v9400_v10, %s9893_s9  ;;  %v5998_v10 = vld [vmem:[#allocation2 + $0x1b3] sm:$0xff]  ;;  %v5999_v36 = vld [vmem:[#allocation2 + $0x1bb] sm:$0xff]  ;;  %v9507_v57 = vpack.c.bf16 %v5982_v3, %v5982_v3 }
 0x4a6   : > { %5329 = vrot.lane.b32.xlu0 %v9399_v4, %s9893_s9  ;;  %v9523_v55 = vpack.c.bf16 %v5998_v10, %v5998_v10  ;;  %v5210_v10 = vld [vmem:[#allocation2 + $0x9b] sm:$0xff] }
 0x4a7   : > { %v4834_v1 = vpop.permute.xlu1 %4833  ;;  %v9410_v3 = vpack.c.bf16 %v5210_v10, %v5210_v10  ;;  %v6768_v10 = vld [vmem:[#allocation2 + $0x1e3] sm:$0xff] }
 0x4a8   : > { %v4832_v22 = vpop.permute.xlu0 %4831  ;;  %4919 = vst.msk [vmem:[#allocation3 + $0x2c] sm:$0xf] %vm4907_vm0, %v4834_v1  ;;  %v5983_v1 = vld [vmem:[#allocation2 + $0xfb] sm:$0xff] }
 0x4a9   : > { %4918 = vst.msk [vmem:[#allocation3 + $0x28] sm:$0xf] %vm4907_vm0, %v4832_v22  ;;  %5335 = vrot.lane.b32.xlu1 %v9402_v59, %s9893_s9  ;;  %v9508_v46 = vpack.c.bf16 %v5983_v1, %v5983_v1 }
 0x4aa   : > { %5333 = vrot.lane.b32.xlu0 %v9401_v51, %s9893_s9 }
 0x4ab   : > { %v4838_v13 = vpop.permute.xlu1 %4837 }
 0x4ac   : > { %v4836_v62 = vpop.permute.xlu0 %4835  ;;  %4921 = vst.msk [vmem:[#allocation3 + $0x34] sm:$0xf] %vm4907_vm0, %v4838_v13  ;;  %v6256_v13 = vld [vmem:[#allocation2 + $0x1be] sm:$0xff] }
 0x4ad   : > { %4920 = vst.msk [vmem:[#allocation3 + $0x30] sm:$0xf] %vm4907_vm0, %v4836_v62  ;;  %5339 = vrot.lane.b32.xlu1 %v9404_v11, %s9893_s9 }
 0x4ae   : > { %5337 = vrot.lane.b32.xlu0 %v9403_v39, %s9893_s9  ;;  %v9555_v39 = vpack.c.bf16 %v6255_v16, %v6255_v16 }
 0x4af   : > { %v4842_v0 = vpop.permute.xlu1 %4841 }
 0x4b0   : > { %v4840_v49 = vpop.permute.xlu0 %4839  ;;  %4923 = vst.msk [vmem:[#allocation3 + $0x3c] sm:$0xf] %vm4907_vm0, %v4842_v0 }
 0x4b1   : > { %4922 = vst.msk [vmem:[#allocation3 + $0x38] sm:$0xf] %vm4907_vm0, %v4840_v49  ;;  %5343 = vrot.lane.b32.xlu1 %v9406_v63, %s9893_s9  ;;  %v9539_v63 = vpack.c.bf16 %v6239_v47, %v6239_v47 }
 0x4b2   : > { %5341 = vrot.lane.b32.xlu0 %v9405_v23, %s9893_s9  ;;  %v9556_v23 = vpack.c.bf16 %v6256_v13, %v6256_v13 }
 0x4b3   : > { %v4846_v30 = vpop.permute.xlu1 %4845 }
 0x4b4   : > { %v4844_v56 = vpop.permute.xlu0 %4843  ;;  %4925 = vst.msk [vmem:[#allocation3 + $0x44] sm:$0xf] %vm4907_vm0, %v4846_v30 }
 0x4b5   : > { %4924 = vst.msk [vmem:[#allocation3 + $0x40] sm:$0xf] %vm4907_vm0, %v4844_v56  ;;  %5347 = vrot.lane.b32.xlu1 %v9408_v7, %s9893_s9  ;;  %v9587_v7 = vpack.c.bf16 %v6513_v20, %v6513_v20 }
 0x4b6   : > { %5345 = vrot.lane.b32.xlu0 %v9407_v33, %s9893_s9  ;;  %v9540_v33 = vpack.c.bf16 %v6240_v58, %v6240_v58 }
 0x4b7   : > { %v4850_v26 = vpop.permute.xlu1 %4849 }
 0x4b8   : > { %v4848_v32 = vpop.permute.xlu0 %4847  ;;  %4927 = vst.msk [vmem:[#allocation3 + $0x4c] sm:$0xf] %vm4907_vm0, %v4850_v26 }
 0x4b9   : > { %4926 = vst.msk [vmem:[#allocation3 + $0x48] sm:$0xf] %vm4907_vm0, %v4848_v32  ;;  %5385 = vrot.lane.b32.xlu1 %v11779_v48, %s9893_s9  ;;  %v5485_v48 = vld [vmem:[#allocation2 + $0x176] sm:$0xff] }
 0x4ba   : > { %5349 = vrot.lane.b32.xlu0 %v9409_v25, %s9893_s9  ;;  %v9460_v45 = vpack.c.bf16 %v5485_v48, %v5485_v48  ;;  %v9588_v25 = vpack.c.bf16 %v6514_v35, %v6514_v35 }
 0x4bb   : > { %v4854_v40 = vpop.permute.xlu1 %4853 }
 0x4bc   : > { %v4852_v15 = vpop.permute.xlu0 %4851  ;;  %4929 = vst.msk [vmem:[#allocation3 + $0x54] sm:$0xf] %vm4907_vm0, %v4854_v40 }
 0x4bd   : > { %4928 = vst.msk [vmem:[#allocation3 + $0x50] sm:$0xf] %vm4907_vm0, %v4852_v15  ;;  %5353 = vrot.lane.b32.xlu1 %v9411_v5, %s9893_s9  ;;  %v9619_v5 = vpack.c.bf16 %v6770_v14, %v6770_v14  ;;  %v5981_v14 = vld [vmem:[#allocation2 + $0xe3] sm:$0xff] }
 0x4be   : > { %5387 = vrot.lane.b32.xlu0 %v11777_v41, %s9893_s9 }
 0x4bf   : > { %v4858_v37 = vpop.permute.xlu1 %4857 }
 0x4c0   : > { %v4856_v38 = vpop.permute.xlu0 %4855  ;;  %4931 = vst.msk [vmem:[#allocation3 + $0x5c] sm:$0xf] %vm4907_vm0, %v4858_v37 }
 0x4c1   : > { %4930 = vst.msk [vmem:[#allocation3 + $0x58] sm:$0xf] %vm4907_vm0, %v4856_v38  ;;  %5642 = vrot.lane.b32.xlu1 %v9459_v42, %s9894_s10  ;;  %v12056_v42 = vpack.c.bf16 %v6754_v18, %v6754_v18  ;;  %v9506_v18 = vpack.c.bf16 %v5981_v14, %v5981_v14 }
 0x4c2   : > { %5355 = vrot.lane.b32.xlu0 %v9412_v54, %s9893_s9  ;;  %v7027_v54 = vld [vmem:[#allocation2 + $0x1fe] sm:$0xff] }
 0x4c3   : > { %v4862_v41 = vpop.permute.xlu1 %4861  ;;  %v9651_v38 = vpack.c.bf16 %v7027_v54, %v7027_v54 }
 0x4c4   : > { %v4860_v53 = vpop.permute.xlu0 %4859  ;;  %4933 = vst.msk [vmem:[#allocation3 + $0x64] sm:$0xf] %vm4907_vm0, %v4862_v41 }
 0x4c5   : > { %4932 = vst.msk [vmem:[#allocation3 + $0x60] sm:$0xf] %vm4907_vm0, %v4860_v53  ;;  %5610 = vrot.lane.b32.xlu1 %v9443_v43, %s9894_s10  ;;  %v12063_v43 = vpack.c.bf16 %v6755_v2, %v6755_v2  ;;  %v6238_v2 = vld [vmem:[#allocation2 + $0xe6] sm:$0xff] }
 0x4c6   : > { %5644 = vrot.lane.b32.xlu0 %v9460_v45, %s9894_s10  ;;  %v7028_v45 = vld [vmem:[#allocation2 + $0x206] sm:$0xff] }
 0x4c7   : > { %v4866_v17 = vpop.permute.xlu1 %4865  ;;  %v9652_v53 = vpack.c.bf16 %v7028_v45, %v7028_v45 }
 0x4c8   : > { %v4864_v6 = vpop.permute.xlu0 %4863  ;;  %4935 = vst.msk [vmem:[#allocation3 + $0x6c] sm:$0xf] %vm4907_vm0, %v4866_v17 }
 0x4c9   : > { %4934 = vst.msk [vmem:[#allocation3 + $0x68] sm:$0xf] %vm4907_vm0, %v4864_v6  ;;  %5899 = vrot.lane.b32.xlu1 %v9491_v60, %s9895_s11  ;;  %v7011_v60 = vld [vmem:[#allocation2 + $0x13e] sm:$0xff] }
 0x4ca   : > { %5612 = vrot.lane.b32.xlu0 %v9444_v28, %s9894_s10  ;;  %v5226_v28 = vld [vmem:[#allocation2 + $0x15b] sm:$0xff]  ;;  %v12074_v6 = vpack.c.bf16 %v7011_v60, %v7011_v60 }
 0x4cb   : > { %v4870_v4 = vpop.permute.xlu1 %4869 }
 0x4cc   : > { %v4868_v9 = vpop.permute.xlu0 %4867  ;;  %4937 = vst.msk [vmem:[#allocation3 + $0x74] sm:$0xf] %vm4907_vm0, %v4870_v4  ;;  %v7012_v4 = vld [vmem:[#allocation2 + $0x146] sm:$0xff] }
 0x4cd   : > { %4936 = vst.msk [vmem:[#allocation3 + $0x70] sm:$0xf] %vm4907_vm0, %v4868_v9  ;;  %5867 = vrot.lane.b32.xlu1 %v11934_v50, %s9895_s11  ;;  %v9524_v50 = vpack.c.bf16 %v5999_v36, %v5999_v36  ;;  %v12081_v36 = vpack.c.bf16 %v7012_v4, %v7012_v4 }
 0x4ce   : > { %5901 = vrot.lane.b32.xlu0 %v9492_v27, %s9895_s11  ;;  %v9426_v27 = vpack.c.bf16 %v5226_v28, %v5226_v28 }
 0x4cf   : > { %v4874_v59 = vpop.permute.xlu1 %4873 }
 0x4d0   : > { %v4872_v51 = vpop.permute.xlu0 %4871  ;;  %4939 = vst.msk [vmem:[#allocation3 + $0x7c] sm:$0xf] %vm4907_vm0, %v4874_v59  ;;  %v5483_v59 = vld [vmem:[#allocation2 + $0x15e] sm:$0xff] }
 0x4d1   : > { %4938 = vst.msk [vmem:[#allocation3 + $0x78] sm:$0xf] %vm4907_vm0, %v4872_v51  ;;  %6156 = vrot.lane.b32.xlu1 %v9523_v55, %s9896_s14  ;;  %v5482_v51 = vld [vmem:[#allocation2 + $0x156] sm:$0xff]  ;;  %v9458_v16 = vpack.c.bf16 %v5483_v59, %v5483_v59  ;;  %v6753_v59 = vld [vmem:[#allocation2 + $0x12b] sm:$0xff] }
 0x4d2   : > { %5869 = vrot.lane.b32.xlu0 %v11932_v24, %s9895_s11  ;;  %v9457_v1 = vpack.c.bf16 %v5482_v51, %v5482_v51  ;;  %v6752_v51 = vld [vmem:[#allocation2 + $0x123] sm:$0xff] }
 0x4d3   : > { %v5071_v22 = vpop.permute.xlu1 %5070 }
 0x4d4   : > { %v5069_v11 = vpop.permute.xlu0 %5068  ;;  %5166 = vst.msk [vmem:[#allocation3 + $0x4] sm:$0xf] %vm5164_vm1, %v5071_v22  ;;  %v5467_v22 = vld [vmem:[#allocation2 + $0x9e] sm:$0xff] }
 0x4d5   : > { %5165 = vst.msk [vmem:[#allocation3] sm:$0xf] %vm5164_vm1, %v5069_v11  ;;  %6124 = vrot.lane.b32.xlu1 %v9507_v57, %s9896_s14  ;;  %v5466_v11 = vld [vmem:[#allocation2 + $0x96] sm:$0xff]  ;;  %v9442_v47 = vpack.c.bf16 %v5467_v22, %v5467_v22 }
 0x4d6   : > { %6158 = vrot.lane.b32.xlu0 %v9524_v50, %s9896_s14  ;;  %v9441_v13 = vpack.c.bf16 %v5466_v11, %v5466_v11 }
 0x4d7   : > { %v5075_v24 = vpop.permute.xlu1 %5074 }
 0x4d8   : > { %v5073_v62 = vpop.permute.xlu0 %5072  ;;  %5168 = vst.msk [vmem:[#allocation3 + $0xc] sm:$0xf] %vm5164_vm1, %v5075_v24  ;;  %v5740_v24 = vld [vmem:[#allocation2 + $0x1a0] sm:$0xff] }
 0x4d9   : > { %5167 = vst.msk [vmem:[#allocation3 + $0x8] sm:$0xf] %vm5164_vm1, %v5073_v62  ;;  %6413 = vrot.lane.b32.xlu1 %v9555_v39, %s9897_s15  ;;  %v5739_v62 = vld [vmem:[#allocation2 + $0x198] sm:$0xff]  ;;  %v9490_v20 = vpack.c.bf16 %v5740_v24, %v5740_v24  ;;  %v7010_v24 = vld [vmem:[#allocation2 + $0x12e] sm:$0xff] }
 0x4da   : > { %6126 = vrot.lane.b32.xlu0 %v9508_v46, %s9896_s14  ;;  %v9489_v58 = vpack.c.bf16 %v5739_v62, %v5739_v62  ;;  %v7009_v62 = vld [vmem:[#allocation2 + $0x126] sm:$0xff] }
 0x4db   : > { %v5079_v0 = vpop.permute.xlu1 %5078 }
 0x4dc   : > { %v5077_v49 = vpop.permute.xlu0 %5076  ;;  %5170 = vst.msk [vmem:[#allocation3 + $0x14] sm:$0xf] %vm5164_vm1, %v5079_v0 }
 0x4dd   : > { %5169 = vst.msk [vmem:[#allocation3 + $0x10] sm:$0xf] %vm5164_vm1, %v5077_v49  ;;  %6381 = vrot.lane.b32.xlu1 %v9539_v63, %s9897_s15 }
 0x4de   : > { %6415 = vrot.lane.b32.xlu0 %v9556_v23, %s9897_s15 }
 0x4df   : > { %v5083_v30 = vpop.permute.xlu1 %5082 }
 0x4e0   : > { %v5081_v56 = vpop.permute.xlu0 %5080  ;;  %5172 = vst.msk [vmem:[#allocation3 + $0x1c] sm:$0xf] %vm5164_vm1, %v5083_v30 }
 0x4e1   : > { %5171 = vst.msk [vmem:[#allocation3 + $0x18] sm:$0xf] %vm5164_vm1, %v5081_v56  ;;  %6671 = vrot.lane.b32.xlu1 %v9587_v7, %s9898_s16  ;;  %v5997_v7 = vld [vmem:[#allocation2 + $0x1a3] sm:$0xff] }
 0x4e2   : > { %6383 = vrot.lane.b32.xlu0 %v9540_v33, %s9897_s15  ;;  %v5996_v33 = vld [vmem:[#allocation2 + $0x19b] sm:$0xff]  ;;  %v9522_v56 = vpack.c.bf16 %v5997_v7, %v5997_v7 }
 0x4e3   : > { %v5087_v26 = vpop.permute.xlu1 %5086  ;;  %v5464_v7 = vld [vmem:[#allocation2 + $0x7e] sm:$0xff] }
 0x4e4   : > { %v5085_v32 = vpop.permute.xlu0 %5084  ;;  %5174 = vst.msk [vmem:[#allocation3 + $0x24] sm:$0xf] %vm5164_vm1, %v5087_v26  ;;  %v5980_v26 = vld [vmem:[#allocation2 + $0xdb] sm:$0xff] }
 0x4e5   : > { %5173 = vst.msk [vmem:[#allocation3 + $0x20] sm:$0xf] %vm5164_vm1, %v5085_v32  ;;  %6639 = vrot.lane.b32.xlu1 %v11958_v61, %s9898_s16  ;;  %v9620_v61 = vpack.c.bf16 %v6771_v21, %v6771_v21  ;;  %v6254_v21 = vld [vmem:[#allocation2 + $0x1a6] sm:$0xff] }
 0x4e6   : > { %6673 = vrot.lane.b32.xlu0 %v9588_v25, %s9898_s16  ;;  %v9521_v25 = vpack.c.bf16 %v5996_v33, %v5996_v33 }
 0x4e7   : > { %v5091_v40 = vpop.permute.xlu1 %5090 }
 0x4e8   : > { %v5089_v15 = vpop.permute.xlu0 %5088  ;;  %5176 = vst.msk [vmem:[#allocation3 + $0x2c] sm:$0xf] %vm5164_vm1, %v5091_v40  ;;  %v6253_v40 = vld [vmem:[#allocation2 + $0x19e] sm:$0xff] }
 0x4e9   : > { %5175 = vst.msk [vmem:[#allocation3 + $0x28] sm:$0xf] %vm5164_vm1, %v5089_v15  ;;  %6928 = vrot.lane.b32.xlu1 %v9619_v5, %s9899_s17  ;;  %v9553_v54 = vpack.c.bf16 %v6253_v40, %v6253_v40 }
 0x4ea   : > { %6641 = vrot.lane.b32.xlu0 %v11956_v31, %s9898_s16  ;;  %v5225_v31 = vld [vmem:[#allocation2 + $0x153] sm:$0xff] }
 0x4eb   : > { %v5095_v48 = vpop.permute.xlu1 %5094  ;;  %v9425_v41 = vpack.c.bf16 %v5225_v31, %v5225_v31  ;;  %v9538_v31 = vpack.c.bf16 %v6238_v2, %v6238_v2 }
 0x4ec   : > { %v5093_v37 = vpop.permute.xlu0 %5092  ;;  %5178 = vst.msk [vmem:[#allocation3 + $0x34] sm:$0xf] %vm5164_vm1, %v5095_v48  ;;  %v6237_v48 = vld [vmem:[#allocation2 + $0xde] sm:$0xff] }
 0x4ed   : > { %5177 = vst.msk [vmem:[#allocation3 + $0x30] sm:$0xf] %vm5164_vm1, %v5093_v37  ;;  %6896 = vrot.lane.b32.xlu1 %v12056_v42, %s9899_s17  ;;  %v9537_v45 = vpack.c.bf16 %v6237_v48, %v6237_v48 }
 0x4ee   : > { %6930 = vrot.lane.b32.xlu0 %v9620_v61, %s9899_s17  ;;  %v9554_v61 = vpack.c.bf16 %v6254_v21, %v6254_v21 }
 0x4ef   : > { %v5099_v8 = vpop.permute.xlu1 %5098 }
 0x4f0   : > { %v5097_v19 = vpop.permute.xlu0 %5096  ;;  %5180 = vst.msk [vmem:[#allocation3 + $0x3c] sm:$0xf] %vm5164_vm1, %v5099_v8  ;;  %v6512_v8 = vld [vmem:[#allocation2 + $0x1e8] sm:$0xff] }
 0x4f1   : > { %5179 = vst.msk [vmem:[#allocation3 + $0x38] sm:$0xf] %vm5164_vm1, %v5097_v19  ;;  %7185 = vrot.lane.b32.xlu1 %v9651_v38, %s9900_s18  ;;  %v6511_v19 = vld [vmem:[#allocation2 + $0x1e0] sm:$0xff]  ;;  %v9586_v60 = vpack.c.bf16 %v6512_v8, %v6512_v8 }
 0x4f2   : > { %6898 = vrot.lane.b32.xlu0 %v12063_v43, %s9899_s17  ;;  %v9585_v28 = vpack.c.bf16 %v6511_v19, %v6511_v19 }
 0x4f3   : > { %v5103_v29 = vpop.permute.xlu1 %5102 }
 0x4f4   : > { %v5101_v17 = vpop.permute.xlu0 %5100  ;;  %5182 = vst.msk [vmem:[#allocation3 + $0x44] sm:$0xf] %vm5164_vm1, %v5103_v29 }
 0x4f5   : > { %5181 = vst.msk [vmem:[#allocation3 + $0x40] sm:$0xf] %vm5164_vm1, %v5101_v17  ;;  %5381 = vrot.lane.b32.xlu1 %v9425_v41, %s9893_s9 }
 0x4f6   : > { %7187 = vrot.lane.b32.xlu0 %v9652_v53, %s9900_s18 }
 0x4f7   : > { %v5107_v9 = vpop.permute.xlu1 %5106 }
 0x4f8   : > { %v5105_v55 = vpop.permute.xlu0 %5104  ;;  %5184 = vst.msk [vmem:[#allocation3 + $0x4c] sm:$0xf] %vm5164_vm1, %v5107_v9 }
 0x4f9   : > { %5183 = vst.msk [vmem:[#allocation3 + $0x48] sm:$0xf] %vm5164_vm1, %v5105_v55  ;;  %7153 = vrot.lane.b32.xlu1 %v12074_v6, %s9900_s18 }
 0x4fa   : > { %5383 = vrot.lane.b32.xlu0 %v9426_v27, %s9893_s9  ;;  %v6769_v27 = vld [vmem:[#allocation2 + $0x1eb] sm:$0xff] }
 0x4fb   : > { %v5111_v57 = vpop.permute.xlu1 %5110  ;;  %v9618_v55 = vpack.c.bf16 %v6769_v27, %v6769_v27  ;;  %v6236_v27 = vld [vmem:[#allocation2 + $0xce] sm:$0xff] }
 0x4fc   : > { %v5109_v50 = vpop.permute.xlu0 %5108  ;;  %5186 = vst.msk [vmem:[#allocation3 + $0x54] sm:$0xf] %vm5164_vm1, %v5111_v57 }
 0x4fd   : > { %5185 = vst.msk [vmem:[#allocation3 + $0x50] sm:$0xf] %vm5164_vm1, %v5109_v50  ;;  %5351 = vrot.lane.b32.xlu1 %v9410_v3, %s9893_s9  ;;  %v9617_v3 = vpack.c.bf16 %v6768_v10, %v6768_v10  ;;  %v6235_v10 = vld [vmem:[#allocation2 + $0xc6] sm:$0xff] }
 0x4fe   : > { %7155 = vrot.lane.b32.xlu0 %v12081_v36, %s9900_s18 }
 0x4ff   : > { %v5115_v39 = vpop.permute.xlu1 %5114 }
 0x500   : > { %v5113_v46 = vpop.permute.xlu0 %5112  ;;  %5188 = vst.msk [vmem:[#allocation3 + $0x5c] sm:$0xf] %vm5164_vm1, %v5115_v39 }
 0x501   : > { %5187 = vst.msk [vmem:[#allocation3 + $0x58] sm:$0xf] %vm5164_vm1, %v5113_v46  ;;  %5640 = vrot.lane.b32.xlu1 %v9458_v16, %s9894_s10  ;;  %v12136_v16 = vpack.c.bf16 %v6753_v59, %v6753_v59  ;;  %v6510_v59 = vld [vmem:[#allocation2 + $0x1d0] sm:$0xff] }
 0x502   : > { %5638 = vrot.lane.b32.xlu0 %v9457_v1, %s9894_s10  ;;  %v7026_v1 = vld [vmem:[#allocation2 + $0x1ee] sm:$0xff] }
 0x503   : > { %v5119_v63 = vpop.permute.xlu1 %5118  ;;  %v9650_v39 = vpack.c.bf16 %v7026_v1, %v7026_v1  ;;  %v9584_v1 = vpack.c.bf16 %v6510_v59, %v6510_v59 }
 0x504   : > { %v5117_v23 = vpop.permute.xlu0 %5116  ;;  %5190 = vst.msk [vmem:[#allocation3 + $0x64] sm:$0xf] %vm5164_vm1, %v5119_v63 }
 0x505   : > { %5189 = vst.msk [vmem:[#allocation3 + $0x60] sm:$0xf] %vm5164_vm1, %v5117_v23  ;;  %5608 = vrot.lane.b32.xlu1 %v9442_v47, %s9894_s10 }
 0x506   : > { %5606 = vrot.lane.b32.xlu0 %v9441_v13, %s9894_s10 }
 0x507   : > { %v5123_v0 = vpop.permute.xlu1 %5122 }
 0x508   : > { %v5121_v49 = vpop.permute.xlu0 %5120  ;;  %5192 = vst.msk [vmem:[#allocation3 + $0x6c] sm:$0xf] %vm5164_vm1, %v5123_v0 }
 0x509   : > { %5191 = vst.msk [vmem:[#allocation3 + $0x68] sm:$0xf] %vm5164_vm1, %v5121_v49  ;;  %5897 = vrot.lane.b32.xlu1 %v9490_v20, %s9895_s11  ;;  %v12156_v20 = vpack.c.bf16 %v7010_v24, %v7010_v24  ;;  %v6767_v24 = vld [vmem:[#allocation2 + $0x1d3] sm:$0xff] }
 0x50a   : > { %5895 = vrot.lane.b32.xlu0 %v9489_v58, %s9895_s11  ;;  %v12158_v58 = vpack.c.bf16 %v7009_v62, %v7009_v62  ;;  %v6766_v62 = vld [vmem:[#allocation2 + $0x1cb] sm:$0xff] }
 0x50b   : > { %v5127_v35 = vpop.permute.xlu1 %5126 }
 0x50c   : > { %v5125_v30 = vpop.permute.xlu0 %5124  ;;  %5194 = vst.msk [vmem:[#allocation3 + $0x74] sm:$0xf] %vm5164_vm1, %v5127_v35 }
 0x50d   : > { %5193 = vst.msk [vmem:[#allocation3 + $0x70] sm:$0xf] %vm5164_vm1, %v5125_v30  ;;  %5865 = vrot.lane.b32.xlu1 %v11922_v12, %s9895_s11  ;;  %v9505_v12 = vpack.c.bf16 %v5980_v26, %v5980_v26  ;;  %v9439_v30 = vpack.c.bf16 %v5464_v7, %v5464_v7  ;;  %v6750_v7 = vld [vmem:[#allocation2 + $0x10b] sm:$0xff] }
 0x50e   : > { %5863 = vrot.lane.b32.xlu0 %v11924_v34, %s9895_s11 }
 0x50f   : > { %v5131_v32 = vpop.permute.xlu1 %5130 }
 0x510   : > { %v5129_v5 = vpop.permute.xlu0 %5128  ;;  %5196 = vst.msk [vmem:[#allocation3 + $0x7c] sm:$0xf] %vm5164_vm1, %v5131_v32 }
 0x511   : > { %5195 = vst.msk [vmem:[#allocation3 + $0x78] sm:$0xf] %vm5164_vm1, %v5129_v5  ;;  %6154 = vrot.lane.b32.xlu1 %v9522_v56, %s9896_s14  ;;  %v5738_v56 = vld [vmem:[#allocation2 + $0x188] sm:$0xff] }
 0x512   : > { %6152 = vrot.lane.b32.xlu0 %v9521_v25, %s9896_s14  ;;  %v5737_v25 = vld [vmem:[#allocation2 + $0x180] sm:$0xff]  ;;  %v9488_v32 = vpack.c.bf16 %v5738_v56, %v5738_v56  ;;  %v5722_v5 = vld [vmem:[#allocation2 + $0xc8] sm:$0xff]  ;;  %v12216_v56 = vpack.c.bf16 %v6750_v7, %v6750_v7 }
 0x513   : > { %v5328_v34 = vpop.permute.xlu1 %5327  ;;  %v9472_v21 = vpack.c.bf16 %v5722_v5, %v5722_v5 }
 0x514   : > { %v5326_v15 = vpop.permute.xlu0 %5325  ;;  %5423 = vst.msk [vmem:[#allocation3 + $0x4] sm:$0xf] %vm5421_vm5, %v5328_v34  ;;  %v5995_v34 = vld [vmem:[#allocation2 + $0x18b] sm:$0xff] }
 0x515   : > { %5422 = vst.msk [vmem:[#allocation3] sm:$0xf] %vm5421_vm5, %v5326_v15  ;;  %6122 = vrot.lane.b32.xlu1 %v9506_v18, %s9896_s14  ;;  %v5721_v18 = vld [vmem:[#allocation2 + $0xc0] sm:$0xff]  ;;  %v9520_v2 = vpack.c.bf16 %v5995_v34, %v5995_v34 }
 0x516   : > { %6120 = vrot.lane.b32.xlu0 %v9505_v12, %s9896_s14  ;;  %v9471_v40 = vpack.c.bf16 %v5721_v18, %v5721_v18  ;;  %v5994_v15 = vld [vmem:[#allocation2 + $0x183] sm:$0xff] }
 0x517   : > { %v5332_v37 = vpop.permute.xlu1 %5331  ;;  %v9519_v48 = vpack.c.bf16 %v5994_v15, %v5994_v15 }
 0x518   : > { %v5330_v38 = vpop.permute.xlu0 %5329  ;;  %5425 = vst.msk [vmem:[#allocation3 + $0xc] sm:$0xf] %vm5421_vm5, %v5332_v37  ;;  %v5979_v37 = vld [vmem:[#allocation2 + $0xcb] sm:$0xff] }
 0x519   : > { %5424 = vst.msk [vmem:[#allocation3 + $0x8] sm:$0xf] %vm5421_vm5, %v5330_v38  ;;  %6411 = vrot.lane.b32.xlu1 %v9554_v61, %s9897_s15  ;;  %v5978_v38 = vld [vmem:[#allocation2 + $0xc3] sm:$0xff]  ;;  %v9504_v8 = vpack.c.bf16 %v5979_v37, %v5979_v37 }
 0x51a   : > { %6409 = vrot.lane.b32.xlu0 %v9553_v54, %s9897_s15  ;;  %v9503_v19 = vpack.c.bf16 %v5978_v38, %v5978_v38 }
 0x51b   : > { %v5336_v41 = vpop.permute.xlu1 %5335 }
 0x51c   : > { %v5334_v53 = vpop.permute.xlu0 %5333  ;;  %5427 = vst.msk [vmem:[#allocation3 + $0x14] sm:$0xf] %vm5421_vm5, %v5336_v41  ;;  %v6252_v41 = vld [vmem:[#allocation2 + $0x18e] sm:$0xff] }
 0x51d   : > { %5426 = vst.msk [vmem:[#allocation3 + $0x10] sm:$0xf] %vm5421_vm5, %v5334_v53  ;;  %6379 = vrot.lane.b32.xlu1 %v9538_v31, %s9897_s15  ;;  %v6251_v53 = vld [vmem:[#allocation2 + $0x186] sm:$0xff] }
 0x51e   : > { %6377 = vrot.lane.b32.xlu0 %v9537_v45, %s9897_s15 }
 0x51f   : > { %v5340_v29 = vpop.permute.xlu1 %5339 }
 0x520   : > { %v5338_v17 = vpop.permute.xlu0 %5337  ;;  %5429 = vst.msk [vmem:[#allocation3 + $0x1c] sm:$0xf] %vm5421_vm5, %v5340_v29  ;;  %v9552_v29 = vpack.c.bf16 %v6252_v41, %v6252_v41 }
 0x521   : > { %5428 = vst.msk [vmem:[#allocation3 + $0x18] sm:$0xf] %vm5421_vm5, %v5338_v17  ;;  %6669 = vrot.lane.b32.xlu1 %v9586_v60, %s9898_s16  ;;  %v9551_v17 = vpack.c.bf16 %v6251_v53, %v6251_v53 }
 0x522   : > { %6667 = vrot.lane.b32.xlu0 %v9585_v28, %s9898_s16 }
 0x523   : > { %v5344_v4 = vpop.permute.xlu1 %5343 }
 0x524   : > { %v5342_v9 = vpop.permute.xlu0 %5341  ;;  %5431 = vst.msk [vmem:[#allocation3 + $0x24] sm:$0xf] %vm5421_vm5, %v5344_v4 }
 0x525   : > { %5430 = vst.msk [vmem:[#allocation3 + $0x20] sm:$0xf] %vm5421_vm5, %v5342_v9  ;;  %6637 = vrot.lane.b32.xlu1 %v11946_v52, %s9898_s16  ;;  %v12138_v52 = vpack.c.bf16 %v6752_v51, %v6752_v51  ;;  %v6509_v51 = vld [vmem:[#allocation2 + $0x1c8] sm:$0xff] }
 0x526   : > { %6635 = vrot.lane.b32.xlu0 %v11948_v44, %s9898_s16  ;;  %v7025_v44 = vld [vmem:[#allocation2 + $0x1e6] sm:$0xff] }
 0x527   : > { %v5348_v57 = vpop.permute.xlu1 %5347  ;;  %v9649_v46 = vpack.c.bf16 %v7025_v44, %v7025_v44  ;;  %v9583_v44 = vpack.c.bf16 %v6509_v51, %v6509_v51 }
 0x528   : > { %v5346_v50 = vpop.permute.xlu0 %5345  ;;  %5433 = vst.msk [vmem:[#allocation3 + $0x2c] sm:$0xf] %vm5421_vm5, %v5348_v57 }
 0x529   : > { %5432 = vst.msk [vmem:[#allocation3 + $0x28] sm:$0xf] %vm5421_vm5, %v5346_v50  ;;  %6926 = vrot.lane.b32.xlu1 %v9618_v55, %s9899_s17  ;;  %v9536_v55 = vpack.c.bf16 %v6236_v27, %v6236_v27 }
 0x52a   : > { %6924 = vrot.lane.b32.xlu0 %v9617_v3, %s9899_s17  ;;  %v9535_v3 = vpack.c.bf16 %v6235_v10, %v6235_v10 }
 0x52b   : > { %v5386_v22 = vpop.permute.xlu1 %5385 }
 0x52c   : > { %v5350_v11 = vpop.permute.xlu0 %5349  ;;  %5452 = vst.msk [vmem:[#allocation3 + $0x78] sm:$0xf] %vm5421_vm5, %v5386_v22  ;;  %v6494_v22 = vld [vmem:[#allocation2 + $0x110] sm:$0xff] }
 0x52d   : > { %5434 = vst.msk [vmem:[#allocation3 + $0x30] sm:$0xf] %vm5421_vm5, %v5350_v11  ;;  %6894 = vrot.lane.b32.xlu1 %v12136_v16, %s9899_s17  ;;  %v6493_v11 = vld [vmem:[#allocation2 + $0x108] sm:$0xff] }
 0x52e   : > { %6892 = vrot.lane.b32.xlu0 %v12138_v52, %s9899_s17 }
 0x52f   : > { %v5354_v47 = vpop.permute.xlu1 %5353 }
 0x530   : > { %v5388_v13 = vpop.permute.xlu0 %5387  ;;  %5436 = vst.msk [vmem:[#allocation3 + $0x38] sm:$0xf] %vm5421_vm5, %v5354_v47  ;;  %v9568_v47 = vpack.c.bf16 %v6494_v22, %v6494_v22 }
 0x531   : > { %5453 = vst.msk [vmem:[#allocation3 + $0x7c] sm:$0xf] %vm5421_vm5, %v5388_v13  ;;  %7183 = vrot.lane.b32.xlu1 %v9650_v39, %s9900_s18  ;;  %v9567_v13 = vpack.c.bf16 %v6493_v11, %v6493_v11 }
 0x532   : > { %7181 = vrot.lane.b32.xlu0 %v9649_v46, %s9900_s18 }
 0x533   : > { %v5643_v63 = vpop.permute.xlu1 %5642 }
 0x534   : > { %v5356_v23 = vpop.permute.xlu0 %5355  ;;  %5709 = vst.msk [vmem:[#allocation3 + $0x78] sm:$0xf] %vm5678_vm6, %v5643_v63 }
 0x535   : > { %5437 = vst.msk [vmem:[#allocation3 + $0x3c] sm:$0xf] %vm5421_vm5, %v5356_v23  ;;  %5379 = vrot.lane.b32.xlu1 %v12063_v43, %s9893_s9  ;;  %v5465_v43 = vld [vmem:[#allocation2 + $0x86] sm:$0xff] }
 0x536   : > { %5377 = vrot.lane.b32.xlu0 %v12056_v42, %s9893_s9  ;;  %v9440_v35 = vpack.c.bf16 %v5465_v43, %v5465_v43  ;;  %v6751_v43 = vld [vmem:[#allocation2 + $0x113] sm:$0xff] }
 0x537   : > { %v5611_v0 = vpop.permute.xlu1 %5610 }
 0x538   : > { %v5645_v49 = vpop.permute.xlu0 %5644  ;;  %5693 = vst.msk [vmem:[#allocation3 + $0x38] sm:$0xf] %vm5678_vm6, %v5611_v0  ;;  %v9616_v0 = vpack.c.bf16 %v6767_v24, %v6767_v24 }
 0x539   : > { %5710 = vst.msk [vmem:[#allocation3 + $0x7c] sm:$0xf] %vm5678_vm6, %v5645_v49  ;;  %7151 = vrot.lane.b32.xlu1 %v12156_v20, %s9900_s18  ;;  %v9615_v49 = vpack.c.bf16 %v6766_v62, %v6766_v62 }
 0x53a   : > { %7149 = vrot.lane.b32.xlu0 %v12158_v58, %s9900_s18 }
 0x53b   : > { %v5900_v42 = vpop.permute.xlu1 %5899 }
 0x53c   : > { %v5613_v33 = vpop.permute.xlu0 %5612  ;;  %5966 = vst.msk [vmem:[#allocation3 + $0x78] sm:$0xf] %vm5935_vm7, %v5900_v42 }
 0x53d   : > { %5694 = vst.msk [vmem:[#allocation3 + $0x3c] sm:$0xf] %vm5678_vm6, %v5613_v33  ;;  %5636 = vrot.lane.b32.xlu1 %v12081_v36, %s9894_s10  ;;  %v9487_v36 = vpack.c.bf16 %v5737_v25, %v5737_v25  ;;  %v9902_v25 = vmov 0  }
 0x53e   : > { %5634 = vrot.lane.b32.xlu0 %v12074_v6, %s9894_s10 }
 0x53f   : > { %v5868_v14 = vpop.permute.xlu1 %5867 }
 0x540   : > { %v5902_v26 = vpop.permute.xlu0 %5901  ;;  %5950 = vst.msk [vmem:[#allocation3 + $0x38] sm:$0xf] %vm5935_vm7, %v5868_v14  ;;  %v7024_v14 = vld [vmem:[#allocation2 + $0x1d6] sm:$0xff] }
 0x541   : > { %5967 = vst.msk [vmem:[#allocation3 + $0x7c] sm:$0xf] %vm5935_vm7, %v5902_v26  ;;  %5604 = vrot.lane.b32.xlu1 %v9440_v35, %s9894_s10  ;;  %v9901_v35 = vmov 1065369472   ;;  %v7023_v26 = vld [vmem:[#allocation2 + $0x1ce] sm:$0xff]  ;;  %v9648_v5 = vpack.c.bf16 %v7024_v14, %v7024_v14 }
 0x542   : > { %5602 = vrot.lane.b32.xlu0 %v9439_v30, %s9894_s10  ;;  %v12214_v30 = vpack.c.bf16 %v6751_v43, %v6751_v43  ;;  %v9647_v18 = vpack.c.bf16 %v7023_v26, %v7023_v26 }
 0x543   : > { %v6157_v6 = vpop.permute.xlu1 %6156 }
 0x544   : > { %v5870_v12 = vpop.permute.xlu0 %5869  ;;  %6223 = vst.msk [vmem:[#allocation3 + $0x78] sm:$0xf] %vm6192_vm8, %v6157_v6 }
 0x545   : > { %5951 = vst.msk [vmem:[#allocation3 + $0x3c] sm:$0xf] %vm5935_vm7, %v5870_v12  ;;  %5893 = vrot.lane.b32.xlu1 %v9488_v32, %s9895_s11 }
 0x546   : > { %5891 = vrot.lane.b32.xlu0 %v9487_v36, %s9895_s11 }
 0x547   : > { %v6125_v61 = vpop.permute.xlu1 %6124 }
 0x548   : > { %v6159_v54 = vpop.permute.xlu0 %6158  ;;  %6207 = vst.msk [vmem:[#allocation3 + $0x38] sm:$0xf] %vm6192_vm8, %v6125_v61 }
 0x549   : > { %6224 = vst.msk [vmem:[#allocation3 + $0x7c] sm:$0xf] %vm6192_vm8, %v6159_v54  ;;  %5861 = vrot.lane.b32.xlu1 %v9472_v21, %s9895_s11  ;;  %v7008_v21 = vld [vmem:[#allocation2 + $0x116] sm:$0xff] }
 0x54a   : > { %5859 = vrot.lane.b32.xlu0 %v9471_v40, %s9895_s11  ;;  %v7007_v40 = vld [vmem:[#allocation2 + $0x10e] sm:$0xff]  ;;  %v12246_v61 = vpack.c.bf16 %v7008_v21, %v7008_v21 }
 0x54b   : > { %v6414_v31 = vpop.permute.xlu1 %6413  ;;  %v12248_v54 = vpack.c.bf16 %v7007_v40, %v7007_v40 }
 0x54c   : > { %v6127_v45 = vpop.permute.xlu0 %6126  ;;  %6480 = vst.msk [vmem:[#allocation3 + $0x78] sm:$0xf] %vm6449_vm9, %v6414_v31 }
 0x54d   : > { %6208 = vst.msk [vmem:[#allocation3 + $0x3c] sm:$0xf] %vm6192_vm8, %v6127_v45  ;;  %6150 = vrot.lane.b32.xlu1 %v9520_v2, %s9896_s14 }
 0x54e   : > { %6148 = vrot.lane.b32.xlu0 %v9519_v48, %s9896_s14 }
 0x54f   : > { %v6382_v60 = vpop.permute.xlu1 %6381 }
 0x550   : > { %v6416_v28 = vpop.permute.xlu0 %6415  ;;  %6464 = vst.msk [vmem:[#allocation3 + $0x38] sm:$0xf] %vm6449_vm9, %v6382_v60 }
 0x551   : > { %6481 = vst.msk [vmem:[#allocation3 + $0x7c] sm:$0xf] %vm6449_vm9, %v6416_v28  ;;  %6118 = vrot.lane.b32.xlu1 %v9504_v8, %s9896_s14  ;;  %v5736_v8 = vld [vmem:[#allocation2 + $0x170] sm:$0xff] }
 0x552   : > { %6116 = vrot.lane.b32.xlu0 %v9503_v19, %s9896_s14  ;;  %v5735_v19 = vld [vmem:[#allocation2 + $0x168] sm:$0xff]  ;;  %v9486_v60 = vpack.c.bf16 %v5736_v8, %v5736_v8 }
 0x553   : > { %v6672_v4 = vpop.permute.xlu1 %6671  ;;  %v9485_v28 = vpack.c.bf16 %v5735_v19, %v5735_v19 }
 0x554   : > { %v6384_v9 = vpop.permute.xlu0 %6383  ;;  %6738 = vst.msk [vmem:[#allocation3 + $0x78] sm:$0xf] %vm6707_vm10, %v6672_v4  ;;  %v5993_v4 = vld [vmem:[#allocation2 + $0x173] sm:$0xff] }
 0x555   : > { %6465 = vst.msk [vmem:[#allocation3 + $0x3c] sm:$0xf] %vm6449_vm9, %v6384_v9  ;;  %6407 = vrot.lane.b32.xlu1 %v9552_v29, %s9897_s15  ;;  %v5719_v29 = vld [vmem:[#allocation2 + $0xa8] sm:$0xff]  ;;  %v9518_v59 = vpack.c.bf16 %v5993_v4, %v5993_v4 }
 0x556   : > { %6405 = vrot.lane.b32.xlu0 %v9551_v17, %s9897_s15  ;;  %v9469_v10 = vpack.c.bf16 %v5719_v29, %v5719_v29  ;;  %v5992_v9 = vld [vmem:[#allocation2 + $0x16b] sm:$0xff] }
 0x557   : > { %v6640_v57 = vpop.permute.xlu1 %6639  ;;  %v9517_v51 = vpack.c.bf16 %v5992_v9, %v5992_v9 }
 0x558   : > { %v6674_v50 = vpop.permute.xlu0 %6673  ;;  %6722 = vst.msk [vmem:[#allocation3 + $0x38] sm:$0xf] %vm6707_vm10, %v6640_v57  ;;  %v5977_v57 = vld [vmem:[#allocation2 + $0xb3] sm:$0xff] }
 0x559   : > { %6739 = vst.msk [vmem:[#allocation3 + $0x7c] sm:$0xf] %vm6707_vm10, %v6674_v50  ;;  %6375 = vrot.lane.b32.xlu1 %v9536_v55, %s9897_s15  ;;  %v5976_v50 = vld [vmem:[#allocation2 + $0xab] sm:$0xff]  ;;  %v9502_v22 = vpack.c.bf16 %v5977_v57, %v5977_v57 }
 0x55a   : > { %6373 = vrot.lane.b32.xlu0 %v9535_v3, %s9897_s15  ;;  %v9501_v11 = vpack.c.bf16 %v5976_v50, %v5976_v50 }
 0x55b   : > { %v6929_v39 = vpop.permute.xlu1 %6928 }
 0x55c   : > { %v6642_v46 = vpop.permute.xlu0 %6641  ;;  %6995 = vst.msk [vmem:[#allocation3 + $0x78] sm:$0xf] %vm6964_vm11, %v6929_v39  ;;  %v6250_v39 = vld [vmem:[#allocation2 + $0x176] sm:$0xff] }
 0x55d   : > { %6723 = vst.msk [vmem:[#allocation3 + $0x3c] sm:$0xf] %vm6707_vm10, %v6642_v46  ;;  %6665 = vrot.lane.b32.xlu1 %v9584_v1, %s9898_s16  ;;  %v6249_v46 = vld [vmem:[#allocation2 + $0x16e] sm:$0xff]  ;;  %v9550_v24 = vpack.c.bf16 %v6250_v39, %v6250_v39 }
 0x55e   : > { %6663 = vrot.lane.b32.xlu0 %v9583_v44, %s9898_s16  ;;  %v9549_v62 = vpack.c.bf16 %v6249_v46, %v6249_v46 }
 0x55f   : > { %v6897_v63 = vpop.permute.xlu1 %6896 }
 0x560   : > { %v6931_v23 = vpop.permute.xlu0 %6930  ;;  %6979 = vst.msk [vmem:[#allocation3 + $0x38] sm:$0xf] %vm6964_vm11, %v6897_v63  ;;  %v6234_v63 = vld [vmem:[#allocation2 + $0xb6] sm:$0xff] }
 0x561   : > { %6996 = vst.msk [vmem:[#allocation3 + $0x7c] sm:$0xf] %vm6964_vm11, %v6931_v23  ;;  %6633 = vrot.lane.b32.xlu1 %v9568_v47, %s9898_s16  ;;  %v6233_v23 = vld [vmem:[#allocation2 + $0xae] sm:$0xff]  ;;  %v9534_v43 = vpack.c.bf16 %v6234_v63, %v6234_v63 }
 0x562   : > { %6631 = vrot.lane.b32.xlu0 %v9567_v13, %s9898_s16  ;;  %v9533_v7 = vpack.c.bf16 %v6233_v23, %v6233_v23 }
 0x563   : > { %v7186_v42 = vpop.permute.xlu1 %7185 }
 0x564   : > { %v6899_v33 = vpop.permute.xlu0 %6898  ;;  %7252 = vst.msk [vmem:[#allocation3 + $0x78] sm:$0xf] %vm7221_vm12, %v7186_v42  ;;  %v6508_v42 = vld [vmem:[#allocation2 + $0x1b8] sm:$0xff] }
 0x565   : > { %6980 = vst.msk [vmem:[#allocation3 + $0x3c] sm:$0xf] %vm6964_vm11, %v6899_v33  ;;  %6922 = vrot.lane.b32.xlu1 %v9616_v0, %s9899_s17  ;;  %v6507_v33 = vld [vmem:[#allocation2 + $0x1b0] sm:$0xff] }
 0x566   : > { %7285 = vst.msk [vmem:[#allocation3 + $0x78] sm:$0xf] %vm7254_vm13, %v9901_v35  ;;  %6920 = vrot.lane.b32.xlu0 %v9615_v49, %s9899_s17 }
 0x567   : > { %7318 = vst.msk [vmem:[#allocation3 + $0x78] sm:$0xf] %vm7287_vm14, %v9902_v25  ;;  %v5382_v32 = vpop.permute.xlu1 %5381 }
 0x568   : > { %v7188_v36 = vpop.permute.xlu0 %7187  ;;  %5450 = vst.msk [vmem:[#allocation3 + $0x70] sm:$0xf] %vm5421_vm5, %v5382_v32  ;;  %v9582_v32 = vpack.c.bf16 %v6508_v42, %v6508_v42 }
 0x569   : > { %7253 = vst.msk [vmem:[#allocation3 + $0x7c] sm:$0xf] %vm7221_vm12, %v7188_v36  ;;  %6890 = vrot.lane.b32.xlu1 %v12214_v30, %s9899_s17  ;;  %v9581_v36 = vpack.c.bf16 %v6507_v33, %v6507_v33 }
 0x56a   : > { %7286 = vst.msk [vmem:[#allocation3 + $0x7c] sm:$0xf] %vm7254_vm13, %v9901_v35  ;;  %6888 = vrot.lane.b32.xlu0 %v12216_v56, %s9899_s17 }
 0x56b   : > { %7319 = vst.msk [vmem:[#allocation3 + $0x7c] sm:$0xf] %vm7287_vm14, %v9902_v25  ;;  %v7154_v6 = vpop.permute.xlu1 %7153 }
 0x56c   : > { %v5384_v12 = vpop.permute.xlu0 %5383  ;;  %7236 = vst.msk [vmem:[#allocation3 + $0x38] sm:$0xf] %vm7221_vm12, %v7154_v6 }
 0x56d   : > { %5451 = vst.msk [vmem:[#allocation3 + $0x74] sm:$0xf] %vm5421_vm5, %v5384_v12  ;;  %7179 = vrot.lane.b32.xlu1 %v9648_v5, %s9900_s18  ;;  %v6492_v5 = vld [vmem:[#allocation2 + $0xf8] sm:$0xff] }
 0x56e   : > { %7269 = vst.msk [vmem:[#allocation3 + $0x38] sm:$0xf] %vm7254_vm13, %v9901_v35  ;;  %7177 = vrot.lane.b32.xlu0 %v9647_v18, %s9900_s18  ;;  %v6491_v18 = vld [vmem:[#allocation2 + $0xf0] sm:$0xff]  ;;  %v9566_v21 = vpack.c.bf16 %v6492_v5, %v6492_v5 }
 0x56f   : > { %7302 = vst.msk [vmem:[#allocation3 + $0x38] sm:$0xf] %vm7287_vm14, %v9902_v25  ;;  %v5352_v34 = vpop.permute.xlu1 %5351  ;;  %v9565_v40 = vpack.c.bf16 %v6491_v18, %v6491_v18 }
 0x570   : > { %v7156_v15 = vpop.permute.xlu0 %7155  ;;  %5435 = vst.msk [vmem:[#allocation3 + $0x34] sm:$0xf] %vm5421_vm5, %v5352_v34  ;;  %v6765_v34 = vld [vmem:[#allocation2 + $0x1bb] sm:$0xff] }
 0x571   : > { %7237 = vst.msk [vmem:[#allocation3 + $0x3c] sm:$0xf] %vm7221_vm12, %v7156_v15  ;;  %5375 = vrot.lane.b32.xlu1 %v12136_v16, %s9893_s9  ;;  %v5463_v16 = vld [vmem:[#allocation2 + $0x6e] sm:$0xff] }
 0x572   : > { %7270 = vst.msk [vmem:[#allocation3 + $0x3c] sm:$0xf] %vm7254_vm13, %v9901_v35  ;;  %5373 = vrot.lane.b32.xlu0 %v12138_v52, %s9893_s9  ;;  %v5462_v52 = vld [vmem:[#allocation2 + $0x66] sm:$0xff]  ;;  %v9438_v31 = vpack.c.bf16 %v5463_v16, %v5463_v16  ;;  %v6764_v15 = vld [vmem:[#allocation2 + $0x1b3] sm:$0xff]  ;;  %v9614_v16 = vpack.c.bf16 %v6765_v34, %v6765_v34 }
 0x573   : > { %7303 = vst.msk [vmem:[#allocation3 + $0x3c] sm:$0xf] %vm7287_vm14, %v9902_v25  ;;  %v5641_v2 = vpop.permute.xlu1 %5640  ;;  %v9437_v45 = vpack.c.bf16 %v5462_v52, %v5462_v52  ;;  %v9613_v52 = vpack.c.bf16 %v6764_v15, %v6764_v15 }
 0x574   : > { %v5639_v48 = vpop.permute.xlu0 %5638  ;;  %5708 = vst.msk [vmem:[#allocation3 + $0x74] sm:$0xf] %vm5678_vm6, %v5641_v2 }
 0x575   : > { %5707 = vst.msk [vmem:[#allocation3 + $0x70] sm:$0xf] %vm5678_vm6, %v5639_v48  ;;  %7147 = vrot.lane.b32.xlu1 %v12246_v61, %s9900_s18 }
 0x576   : > { %7145 = vrot.lane.b32.xlu0 %v12248_v54, %s9900_s18 }
 0x577   : > { %v5609_v37 = vpop.permute.xlu1 %5608 }
 0x578   : > { %v5607_v38 = vpop.permute.xlu0 %5606  ;;  %5692 = vst.msk [vmem:[#allocation3 + $0x34] sm:$0xf] %vm5678_vm6, %v5609_v37  ;;  %v6749_v37 = vld [vmem:[#allocation2 + $0xfb] sm:$0xff] }
 0x579   : > { %5691 = vst.msk [vmem:[#allocation3 + $0x30] sm:$0xf] %vm5678_vm6, %v5607_v38  ;;  %5632 = vrot.lane.b32.xlu1 %v12156_v20, %s9894_s10  ;;  %v5720_v20 = vld [vmem:[#allocation2 + $0xb0] sm:$0xff]  ;;  %v12304_v8 = vpack.c.bf16 %v6749_v37, %v6749_v37 }
 0x57a   : > { %5630 = vrot.lane.b32.xlu0 %v12158_v58, %s9894_s10  ;;  %v9470_v27 = vpack.c.bf16 %v5720_v20, %v5720_v20  ;;  %v6748_v38 = vld [vmem:[#allocation2 + $0xf3] sm:$0xff] }
 0x57b   : > { %v5898_v41 = vpop.permute.xlu1 %5897  ;;  %v12306_v19 = vpack.c.bf16 %v6748_v38, %v6748_v38 }
 0x57c   : > { %v5896_v53 = vpop.permute.xlu0 %5895  ;;  %5965 = vst.msk [vmem:[#allocation3 + $0x74] sm:$0xf] %vm5935_vm7, %v5898_v41  ;;  %v7022_v41 = vld [vmem:[#allocation2 + $0x1be] sm:$0xff] }
 0x57d   : > { %5964 = vst.msk [vmem:[#allocation3 + $0x70] sm:$0xf] %vm5935_vm7, %v5896_v53  ;;  %5600 = vrot.lane.b32.xlu1 %v9438_v31, %s9894_s10  ;;  %v7021_v53 = vld [vmem:[#allocation2 + $0x1b6] sm:$0xff]  ;;  %v9646_v20 = vpack.c.bf16 %v7022_v41, %v7022_v41 }
 0x57e   : > { %5598 = vrot.lane.b32.xlu0 %v9437_v45, %s9894_s10  ;;  %v9645_v29 = vpack.c.bf16 %v7021_v53, %v7021_v53 }
 0x57f   : > { %v5866_v17 = vpop.permute.xlu1 %5865 }
 0x580   : > { %v5864_v58 = vpop.permute.xlu0 %5863  ;;  %5949 = vst.msk [vmem:[#allocation3 + $0x34] sm:$0xf] %vm5935_vm7, %v5866_v17 }
 0x581   : > { %5948 = vst.msk [vmem:[#allocation3 + $0x30] sm:$0xf] %vm5935_vm7, %v5864_v58  ;;  %5889 = vrot.lane.b32.xlu1 %v9486_v60, %s9895_s11 }
 0x582   : > { %5887 = vrot.lane.b32.xlu0 %v9485_v28, %s9895_s11 }
 0x583   : > { %v6155_v55 = vpop.permute.xlu1 %6154 }
 0x584   : > { %v6153_v3 = vpop.permute.xlu0 %6152  ;;  %6222 = vst.msk [vmem:[#allocation3 + $0x74] sm:$0xf] %vm6192_vm8, %v6155_v55 }
 0x585   : > { %6221 = vst.msk [vmem:[#allocation3 + $0x70] sm:$0xf] %vm6192_vm8, %v6153_v3  ;;  %5857 = vrot.lane.b32.xlu1 %v9470_v27, %s9895_s11  ;;  %v7006_v27 = vld [vmem:[#allocation2 + $0xfe] sm:$0xff] }
 0x586   : > { %5855 = vrot.lane.b32.xlu0 %v9469_v10, %s9895_s11  ;;  %v7005_v10 = vld [vmem:[#allocation2 + $0xf6] sm:$0xff]  ;;  %v12336_v55 = vpack.c.bf16 %v7006_v27, %v7006_v27 }
 0x587   : > { %v6123_v1 = vpop.permute.xlu1 %6122  ;;  %v12338_v3 = vpack.c.bf16 %v7005_v10, %v7005_v10 }
 0x588   : > { %v6121_v44 = vpop.permute.xlu0 %6120  ;;  %6206 = vst.msk [vmem:[#allocation3 + $0x34] sm:$0xf] %vm6192_vm8, %v6123_v1 }
 0x589   : > { %6205 = vst.msk [vmem:[#allocation3 + $0x30] sm:$0xf] %vm6192_vm8, %v6121_v44  ;;  %6146 = vrot.lane.b32.xlu1 %v9518_v59, %s9896_s14 }
 0x58a   : > { %6144 = vrot.lane.b32.xlu0 %v9517_v51, %s9896_s14 }
 0x58b   : > { %v6412_v47 = vpop.permute.xlu1 %6411 }
 0x58c   : > { %v6410_v13 = vpop.permute.xlu0 %6409  ;;  %6479 = vst.msk [vmem:[#allocation3 + $0x74] sm:$0xf] %vm6449_vm9, %v6412_v47 }
 0x58d   : > { %6478 = vst.msk [vmem:[#allocation3 + $0x70] sm:$0xf] %vm6449_vm9, %v6410_v13  ;;  %6114 = vrot.lane.b32.xlu1 %v9502_v22, %s9896_s14  ;;  %v5734_v22 = vld [vmem:[#allocation2 + $0x158] sm:$0xff] }
 0x58e   : > { %6112 = vrot.lane.b32.xlu0 %v9501_v11, %s9896_s14  ;;  %v5733_v11 = vld [vmem:[#allocation2 + $0x150] sm:$0xff]  ;;  %v9484_v47 = vpack.c.bf16 %v5734_v22, %v5734_v22 }
 0x58f   : > { %v6380_v0 = vpop.permute.xlu1 %6379  ;;  %v9483_v13 = vpack.c.bf16 %v5733_v11, %v5733_v11 }
 0x590   : > { %v6378_v49 = vpop.permute.xlu0 %6377  ;;  %6463 = vst.msk [vmem:[#allocation3 + $0x34] sm:$0xf] %vm6449_vm9, %v6380_v0  ;;  %v5991_v0 = vld [vmem:[#allocation2 + $0x15b] sm:$0xff] }
 0x591   : > { %6462 = vst.msk [vmem:[#allocation3 + $0x30] sm:$0xf] %vm6449_vm9, %v6378_v49  ;;  %6403 = vrot.lane.b32.xlu1 %v9550_v24, %s9897_s15  ;;  %v5717_v24 = vld [vmem:[#allocation2 + $0x90] sm:$0xff]  ;;  %v9516_v42 = vpack.c.bf16 %v5991_v0, %v5991_v0 }
 0x592   : > { %6401 = vrot.lane.b32.xlu0 %v9549_v62, %s9897_s15  ;;  %v9467_v23 = vpack.c.bf16 %v5717_v24, %v5717_v24  ;;  %v5990_v49 = vld [vmem:[#allocation2 + $0x153] sm:$0xff] }
 0x593   : > { %v6670_v14 = vpop.permute.xlu1 %6669  ;;  %v9515_v33 = vpack.c.bf16 %v5990_v49, %v5990_v49 }
 0x594   : > { %v6668_v26 = vpop.permute.xlu0 %6667  ;;  %6737 = vst.msk [vmem:[#allocation3 + $0x74] sm:$0xf] %vm6707_vm10, %v6670_v14  ;;  %v5975_v14 = vld [vmem:[#allocation2 + $0x9b] sm:$0xff] }
 0x595   : > { %6736 = vst.msk [vmem:[#allocation3 + $0x70] sm:$0xf] %vm6707_vm10, %v6668_v26  ;;  %6371 = vrot.lane.b32.xlu1 %v9534_v43, %s9897_s15  ;;  %v5974_v26 = vld [vmem:[#allocation2 + $0x93] sm:$0xff]  ;;  %v9500_v5 = vpack.c.bf16 %v5975_v14, %v5975_v14 }
 0x596   : > { %6369 = vrot.lane.b32.xlu0 %v9533_v7, %s9897_s15  ;;  %v9499_v18 = vpack.c.bf16 %v5974_v26, %v5974_v26 }
 0x597   : > { %v6638_v6 = vpop.permute.xlu1 %6637 }
 0x598   : > { %v6636_v12 = vpop.permute.xlu0 %6635  ;;  %6721 = vst.msk [vmem:[#allocation3 + $0x34] sm:$0xf] %vm6707_vm10, %v6638_v6  ;;  %v6248_v6 = vld [vmem:[#allocation2 + $0x15e] sm:$0xff] }
 0x599   : > { %6720 = vst.msk [vmem:[#allocation3 + $0x30] sm:$0xf] %vm6707_vm10, %v6636_v12  ;;  %6661 = vrot.lane.b32.xlu1 %v9582_v32, %s9898_s16  ;;  %v6247_v12 = vld [vmem:[#allocation2 + $0x156] sm:$0xff]  ;;  %v9548_v34 = vpack.c.bf16 %v6248_v6, %v6248_v6 }
 0x59a   : > { %6659 = vrot.lane.b32.xlu0 %v9581_v36, %s9898_s16  ;;  %v9547_v15 = vpack.c.bf16 %v6247_v12, %v6247_v12 }
 0x59b   : > { %v6927_v2 = vpop.permute.xlu1 %6926 }
 0x59c   : > { %v6925_v48 = vpop.permute.xlu0 %6924  ;;  %6994 = vst.msk [vmem:[#allocation3 + $0x74] sm:$0xf] %vm6964_vm11, %v6927_v2  ;;  %v6232_v2 = vld [vmem:[#allocation2 + $0x9e] sm:$0xff] }
 0x59d   : > { %6993 = vst.msk [vmem:[#allocation3 + $0x70] sm:$0xf] %vm6964_vm11, %v6925_v48  ;;  %6629 = vrot.lane.b32.xlu1 %v9566_v21, %s9898_s16  ;;  %v6231_v48 = vld [vmem:[#allocation2 + $0x96] sm:$0xff]  ;;  %v9532_v37 = vpack.c.bf16 %v6232_v2, %v6232_v2 }
 0x59e   : > { %6627 = vrot.lane.b32.xlu0 %v9565_v40, %s9898_s16  ;;  %v9531_v38 = vpack.c.bf16 %v6231_v48, %v6231_v48 }
 0x59f   : > { %v6895_v31 = vpop.permute.xlu1 %6894 }
 0x5a0   : > { %v6893_v45 = vpop.permute.xlu0 %6892  ;;  %6978 = vst.msk [vmem:[#allocation3 + $0x34] sm:$0xf] %vm6964_vm11, %v6895_v31  ;;  %v6506_v31 = vld [vmem:[#allocation2 + $0x1a0] sm:$0xff] }
 0x5a1   : > { %6977 = vst.msk [vmem:[#allocation3 + $0x30] sm:$0xf] %vm6964_vm11, %v6893_v45  ;;  %6918 = vrot.lane.b32.xlu1 %v9614_v16, %s9899_s17  ;;  %v6505_v45 = vld [vmem:[#allocation2 + $0x198] sm:$0xff] }
 0x5a2   : > { %6916 = vrot.lane.b32.xlu0 %v9613_v52, %s9899_s17 }
 0x5a3   : > { %v7184_v60 = vpop.permute.xlu1 %7183 }
 0x5a4   : > { %v7182_v28 = vpop.permute.xlu0 %7181  ;;  %7251 = vst.msk [vmem:[#allocation3 + $0x74] sm:$0xf] %vm7221_vm12, %v7184_v60  ;;  %v9580_v60 = vpack.c.bf16 %v6506_v31, %v6506_v31 }
 0x5a5   : > { %7250 = vst.msk [vmem:[#allocation3 + $0x70] sm:$0xf] %vm7221_vm12, %v7182_v28  ;;  %6886 = vrot.lane.b32.xlu1 %v12304_v8, %s9899_s17  ;;  %v9579_v28 = vpack.c.bf16 %v6505_v45, %v6505_v45 }
 0x5a6   : > { %7284 = vst.msk [vmem:[#allocation3 + $0x74] sm:$0xf] %vm7254_vm13, %v9901_v35  ;;  %7283 = vst.msk [vmem:[#allocation3 + $0x70] sm:$0xf] %vm7254_vm13, %v9901_v35  ;;  %6884 = vrot.lane.b32.xlu0 %v12306_v19, %s9899_s17 }
 0x5a7   : > { %7317 = vst.msk [vmem:[#allocation3 + $0x74] sm:$0xf] %vm7287_vm14, %v9902_v25  ;;  %7316 = vst.msk [vmem:[#allocation3 + $0x70] sm:$0xf] %vm7287_vm14, %v9902_v25  ;;  %v5380_v17 = vpop.permute.xlu1 %5379 }
 0x5a8   : > { %v5378_v58 = vpop.permute.xlu0 %5377  ;;  %5449 = vst.msk [vmem:[#allocation3 + $0x6c] sm:$0xf] %vm5421_vm5, %v5380_v17 }
 0x5a9   : > { %5448 = vst.msk [vmem:[#allocation3 + $0x68] sm:$0xf] %vm5421_vm5, %v5378_v58  ;;  %7175 = vrot.lane.b32.xlu1 %v9646_v20, %s9900_s18  ;;  %v6490_v20 = vld [vmem:[#allocation2 + $0xe0] sm:$0xff] }
 0x5aa   : > { %7173 = vrot.lane.b32.xlu0 %v9645_v29, %s9900_s18  ;;  %v6489_v29 = vld [vmem:[#allocation2 + $0xd8] sm:$0xff]  ;;  %v9564_v27 = vpack.c.bf16 %v6490_v20, %v6490_v20 }
 0x5ab   : > { %v7152_v4 = vpop.permute.xlu1 %7151  ;;  %v9563_v10 = vpack.c.bf16 %v6489_v29, %v6489_v29 }
 0x5ac   : > { %v7150_v9 = vpop.permute.xlu0 %7149  ;;  %7235 = vst.msk [vmem:[#allocation3 + $0x34] sm:$0xf] %vm7221_vm12, %v7152_v4  ;;  %v6763_v4 = vld [vmem:[#allocation2 + $0x1a3] sm:$0xff] }
 0x5ad   : > { %7234 = vst.msk [vmem:[#allocation3 + $0x30] sm:$0xf] %vm7221_vm12, %v7150_v9  ;;  %5371 = vrot.lane.b32.xlu1 %v12214_v30, %s9893_s9  ;;  %v5461_v30 = vld [vmem:[#allocation2 + $0x56] sm:$0xff] }
 0x5ae   : > { %7268 = vst.msk [vmem:[#allocation3 + $0x34] sm:$0xf] %vm7254_vm13, %v9901_v35  ;;  %7267 = vst.msk [vmem:[#allocation3 + $0x30] sm:$0xf] %vm7254_vm13, %v9901_v35  ;;  %5369 = vrot.lane.b32.xlu0 %v12216_v56, %s9893_s9  ;;  %v5460_v56 = vld [vmem:[#allocation2 + $0x4e] sm:$0xff]  ;;  %v9436_v1 = vpack.c.bf16 %v5461_v30, %v5461_v30  ;;  %v6762_v9 = vld [vmem:[#allocation2 + $0x19b] sm:$0xff]  ;;  %v9612_v30 = vpack.c.bf16 %v6763_v4, %v6763_v4 }
 0x5af   : > { %7301 = vst.msk [vmem:[#allocation3 + $0x34] sm:$0xf] %vm7287_vm14, %v9902_v25  ;;  %7300 = vst.msk [vmem:[#allocation3 + $0x30] sm:$0xf] %vm7287_vm14, %v9902_v25  ;;  %v5637_v59 = vpop.permute.xlu1 %5636  ;;  %v9435_v44 = vpack.c.bf16 %v5460_v56, %v5460_v56  ;;  %v9611_v56 = vpack.c.bf16 %v6762_v9, %v6762_v9 }
 0x5b0   : > { %v5635_v51 = vpop.permute.xlu0 %5634  ;;  %5706 = vst.msk [vmem:[#allocation3 + $0x6c] sm:$0xf] %vm5678_vm6, %v5637_v59 }
 0x5b1   : > { %5705 = vst.msk [vmem:[#allocation3 + $0x68] sm:$0xf] %vm5678_vm6, %v5635_v51  ;;  %7143 = vrot.lane.b32.xlu1 %v12336_v55, %s9900_s18 }
 0x5b2   : > { %7141 = vrot.lane.b32.xlu0 %v12338_v3, %s9900_s18 }
 0x5b3   : > { %v5605_v57 = vpop.permute.xlu1 %5604 }
 0x5b4   : > { %v5603_v50 = vpop.permute.xlu0 %5602  ;;  %5690 = vst.msk [vmem:[#allocation3 + $0x2c] sm:$0xf] %vm5678_vm6, %v5605_v57  ;;  %v6747_v57 = vld [vmem:[#allocation2 + $0xe3] sm:$0xff] }
 0x5b5   : > { %5689 = vst.msk [vmem:[#allocation3 + $0x28] sm:$0xf] %vm5678_vm6, %v5603_v50  ;;  %5628 = vrot.lane.b32.xlu1 %v12246_v61, %s9894_s10  ;;  %v5718_v61 = vld [vmem:[#allocation2 + $0x98] sm:$0xff]  ;;  %v12396_v22 = vpack.c.bf16 %v6747_v57, %v6747_v57 }
 0x5b6   : > { %5626 = vrot.lane.b32.xlu0 %v12248_v54, %s9894_s10  ;;  %v9468_v63 = vpack.c.bf16 %v5718_v61, %v5718_v61  ;;  %v6746_v50 = vld [vmem:[#allocation2 + $0xdb] sm:$0xff] }
 0x5b7   : > { %v5894_v39 = vpop.permute.xlu1 %5893  ;;  %v12398_v11 = vpack.c.bf16 %v6746_v50, %v6746_v50 }
 0x5b8   : > { %v5892_v46 = vpop.permute.xlu0 %5891  ;;  %5963 = vst.msk [vmem:[#allocation3 + $0x6c] sm:$0xf] %vm5935_vm7, %v5894_v39  ;;  %v7020_v39 = vld [vmem:[#allocation2 + $0x1a6] sm:$0xff] }
 0x5b9   : > { %5962 = vst.msk [vmem:[#allocation3 + $0x68] sm:$0xf] %vm5935_vm7, %v5892_v46  ;;  %5596 = vrot.lane.b32.xlu1 %v9436_v1, %s9894_s10  ;;  %v7019_v46 = vld [vmem:[#allocation2 + $0x19e] sm:$0xff]  ;;  %v9644_v61 = vpack.c.bf16 %v7020_v39, %v7020_v39 }
 0x5ba   : > { %5594 = vrot.lane.b32.xlu0 %v9435_v44, %s9894_s10  ;;  %v9643_v24 = vpack.c.bf16 %v7019_v46, %v7019_v46 }
 0x5bb   : > { %v5862_v62 = vpop.permute.xlu1 %5861 }
 0x5bc   : > { %v5860_v54 = vpop.permute.xlu0 %5859  ;;  %5947 = vst.msk [vmem:[#allocation3 + $0x2c] sm:$0xf] %vm5935_vm7, %v5862_v62 }
 0x5bd   : > { %5946 = vst.msk [vmem:[#allocation3 + $0x28] sm:$0xf] %vm5935_vm7, %v5860_v54  ;;  %5885 = vrot.lane.b32.xlu1 %v9484_v47, %s9895_s11 }
 0x5be   : > { %5883 = vrot.lane.b32.xlu0 %v9483_v13, %s9895_s11 }
 0x5bf   : > { %v6151_v43 = vpop.permute.xlu1 %6150 }
 0x5c0   : > { %v6149_v7 = vpop.permute.xlu0 %6148  ;;  %6220 = vst.msk [vmem:[#allocation3 + $0x6c] sm:$0xf] %vm6192_vm8, %v6151_v43 }
 0x5c1   : > { %6219 = vst.msk [vmem:[#allocation3 + $0x68] sm:$0xf] %vm6192_vm8, %v6149_v7  ;;  %5853 = vrot.lane.b32.xlu1 %v9468_v63, %s9895_s11  ;;  %v7004_v63 = vld [vmem:[#allocation2 + $0xe6] sm:$0xff] }
 0x5c2   : > { %5851 = vrot.lane.b32.xlu0 %v9467_v23, %s9895_s11  ;;  %v7003_v23 = vld [vmem:[#allocation2 + $0xde] sm:$0xff]  ;;  %v12428_v43 = vpack.c.bf16 %v7004_v63, %v7004_v63 }
 0x5c3   : > { %v6119_v32 = vpop.permute.xlu1 %6118  ;;  %v12430_v7 = vpack.c.bf16 %v7003_v23, %v7003_v23 }
 0x5c4   : > { %v6117_v36 = vpop.permute.xlu0 %6116  ;;  %6204 = vst.msk [vmem:[#allocation3 + $0x2c] sm:$0xf] %vm6192_vm8, %v6119_v32 }
 0x5c5   : > { %6203 = vst.msk [vmem:[#allocation3 + $0x28] sm:$0xf] %vm6192_vm8, %v6117_v36  ;;  %6142 = vrot.lane.b32.xlu1 %v9516_v42, %s9896_s14 }
 0x5c6   : > { %6140 = vrot.lane.b32.xlu0 %v9515_v33, %s9896_s14 }
 0x5c7   : > { %v6408_v21 = vpop.permute.xlu1 %6407 }
 0x5c8   : > { %v6406_v40 = vpop.permute.xlu0 %6405  ;;  %6477 = vst.msk [vmem:[#allocation3 + $0x6c] sm:$0xf] %vm6449_vm9, %v6408_v21 }
 0x5c9   : > { %6476 = vst.msk [vmem:[#allocation3 + $0x68] sm:$0xf] %vm6449_vm9, %v6406_v40  ;;  %6110 = vrot.lane.b32.xlu1 %v9500_v5, %s9896_s14  ;;  %v5732_v5 = vld [vmem:[#allocation2 + $0x140] sm:$0xff] }
 0x5ca   : > { %6108 = vrot.lane.b32.xlu0 %v9499_v18, %s9896_s14  ;;  %v5731_v18 = vld [vmem:[#allocation2 + $0x138] sm:$0xff]  ;;  %v9482_v21 = vpack.c.bf16 %v5732_v5, %v5732_v5 }
 0x5cb   : > { %v6376_v16 = vpop.permute.xlu1 %6375  ;;  %v9481_v40 = vpack.c.bf16 %v5731_v18, %v5731_v18 }
 0x5cc   : > { %v6374_v52 = vpop.permute.xlu0 %6373  ;;  %6461 = vst.msk [vmem:[#allocation3 + $0x2c] sm:$0xf] %vm6449_vm9, %v6376_v16  ;;  %v5989_v16 = vld [vmem:[#allocation2 + $0x143] sm:$0xff] }
 0x5cd   : > { %6460 = vst.msk [vmem:[#allocation3 + $0x28] sm:$0xf] %vm6449_vm9, %v6374_v52  ;;  %6399 = vrot.lane.b32.xlu1 %v9548_v34, %s9897_s15  ;;  %v5715_v34 = vld [vmem:[#allocation2 + $0x78] sm:$0xff]  ;;  %v9514_v31 = vpack.c.bf16 %v5989_v16, %v5989_v16 }
 0x5ce   : > { %6397 = vrot.lane.b32.xlu0 %v9547_v15, %s9897_s15  ;;  %v9465_v48 = vpack.c.bf16 %v5715_v34, %v5715_v34  ;;  %v5988_v52 = vld [vmem:[#allocation2 + $0x13b] sm:$0xff] }
 0x5cf   : > { %v6666_v41 = vpop.permute.xlu1 %6665  ;;  %v9513_v45 = vpack.c.bf16 %v5988_v52, %v5988_v52 }
 0x5d0   : > { %v6664_v53 = vpop.permute.xlu0 %6663  ;;  %6735 = vst.msk [vmem:[#allocation3 + $0x6c] sm:$0xf] %vm6707_vm10, %v6666_v41  ;;  %v5973_v41 = vld [vmem:[#allocation2 + $0x83] sm:$0xff] }
 0x5d1   : > { %6734 = vst.msk [vmem:[#allocation3 + $0x68] sm:$0xf] %vm6707_vm10, %v6664_v53  ;;  %6367 = vrot.lane.b32.xlu1 %v9532_v37, %s9897_s15  ;;  %v5972_v53 = vld [vmem:[#allocation2 + $0x7b] sm:$0xff]  ;;  %v9498_v20 = vpack.c.bf16 %v5973_v41, %v5973_v41 }
 0x5d2   : > { %6365 = vrot.lane.b32.xlu0 %v9531_v38, %s9897_s15  ;;  %v9497_v29 = vpack.c.bf16 %v5972_v53, %v5972_v53 }
 0x5d3   : > { %v6634_v17 = vpop.permute.xlu1 %6633 }
 0x5d4   : > { %v6632_v58 = vpop.permute.xlu0 %6631  ;;  %6719 = vst.msk [vmem:[#allocation3 + $0x2c] sm:$0xf] %vm6707_vm10, %v6634_v17  ;;  %v6246_v17 = vld [vmem:[#allocation2 + $0x146] sm:$0xff] }
 0x5d5   : > { %6718 = vst.msk [vmem:[#allocation3 + $0x28] sm:$0xf] %vm6707_vm10, %v6632_v58  ;;  %6657 = vrot.lane.b32.xlu1 %v9580_v60, %s9898_s16  ;;  %v6245_v58 = vld [vmem:[#allocation2 + $0x13e] sm:$0xff]  ;;  %v9546_v4 = vpack.c.bf16 %v6246_v17, %v6246_v17 }
 0x5d6   : > { %6655 = vrot.lane.b32.xlu0 %v9579_v28, %s9898_s16  ;;  %v9545_v9 = vpack.c.bf16 %v6245_v58, %v6245_v58 }
 0x5d7   : > { %v6923_v59 = vpop.permute.xlu1 %6922 }
 0x5d8   : > { %v6921_v51 = vpop.permute.xlu0 %6920  ;;  %6992 = vst.msk [vmem:[#allocation3 + $0x6c] sm:$0xf] %vm6964_vm11, %v6923_v59  ;;  %v6230_v59 = vld [vmem:[#allocation2 + $0x86] sm:$0xff] }
 0x5d9   : > { %6991 = vst.msk [vmem:[#allocation3 + $0x68] sm:$0xf] %vm6964_vm11, %v6921_v51  ;;  %6625 = vrot.lane.b32.xlu1 %v9564_v27, %s9898_s16  ;;  %v6229_v51 = vld [vmem:[#allocation2 + $0x7e] sm:$0xff]  ;;  %v9530_v57 = vpack.c.bf16 %v6230_v59, %v6230_v59 }
 0x5da   : > { %6623 = vrot.lane.b32.xlu0 %v9563_v10, %s9898_s16  ;;  %v9529_v50 = vpack.c.bf16 %v6229_v51, %v6229_v51 }
 0x5db   : > { %v6891_v1 = vpop.permute.xlu1 %6890 }
 0x5dc   : > { %v6889_v44 = vpop.permute.xlu0 %6888  ;;  %6976 = vst.msk [vmem:[#allocation3 + $0x2c] sm:$0xf] %vm6964_vm11, %v6891_v1  ;;  %v6504_v1 = vld [vmem:[#allocation2 + $0x188] sm:$0xff] }
 0x5dd   : > { %6975 = vst.msk [vmem:[#allocation3 + $0x28] sm:$0xf] %vm6964_vm11, %v6889_v44  ;;  %6914 = vrot.lane.b32.xlu1 %v9612_v30, %s9899_s17  ;;  %v6503_v44 = vld [vmem:[#allocation2 + $0x180] sm:$0xff] }
 0x5de   : > { %6912 = vrot.lane.b32.xlu0 %v9611_v56, %s9899_s17 }
 0x5df   : > { %v7180_v47 = vpop.permute.xlu1 %7179 }
 0x5e0   : > { %v7178_v13 = vpop.permute.xlu0 %7177  ;;  %7249 = vst.msk [vmem:[#allocation3 + $0x6c] sm:$0xf] %vm7221_vm12, %v7180_v47  ;;  %v9578_v47 = vpack.c.bf16 %v6504_v1, %v6504_v1 }
 0x5e1   : > { %7248 = vst.msk [vmem:[#allocation3 + $0x68] sm:$0xf] %vm7221_vm12, %v7178_v13  ;;  %6882 = vrot.lane.b32.xlu1 %v12396_v22, %s9899_s17  ;;  %v9577_v13 = vpack.c.bf16 %v6503_v44, %v6503_v44 }
 0x5e2   : > { %7282 = vst.msk [vmem:[#allocation3 + $0x6c] sm:$0xf] %vm7254_vm13, %v9901_v35  ;;  %7281 = vst.msk [vmem:[#allocation3 + $0x68] sm:$0xf] %vm7254_vm13, %v9901_v35  ;;  %6880 = vrot.lane.b32.xlu0 %v12398_v11, %s9899_s17 }
 0x5e3   : > { %7315 = vst.msk [vmem:[#allocation3 + $0x6c] sm:$0xf] %vm7287_vm14, %v9902_v25  ;;  %7314 = vst.msk [vmem:[#allocation3 + $0x68] sm:$0xf] %vm7287_vm14, %v9902_v25  ;;  %v5376_v62 = vpop.permute.xlu1 %5375 }
 0x5e4   : > { %v5374_v54 = vpop.permute.xlu0 %5373  ;;  %5447 = vst.msk [vmem:[#allocation3 + $0x64] sm:$0xf] %vm5421_vm5, %v5376_v62 }
 0x5e5   : > { %5446 = vst.msk [vmem:[#allocation3 + $0x60] sm:$0xf] %vm5421_vm5, %v5374_v54  ;;  %7171 = vrot.lane.b32.xlu1 %v9644_v61, %s9900_s18  ;;  %v6488_v61 = vld [vmem:[#allocation2 + $0xc8] sm:$0xff] }
 0x5e6   : > { %7169 = vrot.lane.b32.xlu0 %v9643_v24, %s9900_s18  ;;  %v6487_v24 = vld [vmem:[#allocation2 + $0xc0] sm:$0xff]  ;;  %v9562_v63 = vpack.c.bf16 %v6488_v61, %v6488_v61 }
 0x5e7   : > { %v7148_v0 = vpop.permute.xlu1 %7147  ;;  %v9561_v23 = vpack.c.bf16 %v6487_v24, %v6487_v24 }
 0x5e8   : > { %v7146_v49 = vpop.permute.xlu0 %7145  ;;  %7233 = vst.msk [vmem:[#allocation3 + $0x2c] sm:$0xf] %vm7221_vm12, %v7148_v0  ;;  %v6761_v0 = vld [vmem:[#allocation2 + $0x18b] sm:$0xff] }
 0x5e9   : > { %7232 = vst.msk [vmem:[#allocation3 + $0x28] sm:$0xf] %vm7221_vm12, %v7146_v49  ;;  %5367 = vrot.lane.b32.xlu1 %v12304_v8, %s9893_s9  ;;  %v5459_v8 = vld [vmem:[#allocation2 + $0x3e] sm:$0xff] }
 0x5ea   : > { %7266 = vst.msk [vmem:[#allocation3 + $0x2c] sm:$0xf] %vm7254_vm13, %v9901_v35  ;;  %7265 = vst.msk [vmem:[#allocation3 + $0x28] sm:$0xf] %vm7254_vm13, %v9901_v35  ;;  %5365 = vrot.lane.b32.xlu0 %v12306_v19, %s9893_s9  ;;  %v5458_v19 = vld [vmem:[#allocation2 + $0x36] sm:$0xff]  ;;  %v9434_v32 = vpack.c.bf16 %v5459_v8, %v5459_v8  ;;  %v6760_v49 = vld [vmem:[#allocation2 + $0x183] sm:$0xff]  ;;  %v9610_v8 = vpack.c.bf16 %v6761_v0, %v6761_v0 }
 0x5eb   : > { %7299 = vst.msk [vmem:[#allocation3 + $0x2c] sm:$0xf] %vm7287_vm14, %v9902_v25  ;;  %7298 = vst.msk [vmem:[#allocation3 + $0x28] sm:$0xf] %vm7287_vm14, %v9902_v25  ;;  %v5633_v42 = vpop.permute.xlu1 %5632  ;;  %v9433_v36 = vpack.c.bf16 %v5458_v19, %v5458_v19  ;;  %v9609_v19 = vpack.c.bf16 %v6760_v49, %v6760_v49 }
 0x5ec   : > { %v5631_v33 = vpop.permute.xlu0 %5630  ;;  %5704 = vst.msk [vmem:[#allocation3 + $0x64] sm:$0xf] %vm5678_vm6, %v5633_v42 }
 0x5ed   : > { %5703 = vst.msk [vmem:[#allocation3 + $0x60] sm:$0xf] %vm5678_vm6, %v5631_v33  ;;  %7139 = vrot.lane.b32.xlu1 %v12428_v43, %s9900_s18 }
 0x5ee   : > { %7137 = vrot.lane.b32.xlu0 %v12430_v7, %s9900_s18 }
 0x5ef   : > { %v5601_v14 = vpop.permute.xlu1 %5600 }
 0x5f0   : > { %v5599_v26 = vpop.permute.xlu0 %5598  ;;  %5688 = vst.msk [vmem:[#allocation3 + $0x24] sm:$0xf] %vm5678_vm6, %v5601_v14  ;;  %v6745_v14 = vld [vmem:[#allocation2 + $0xcb] sm:$0xff] }
 0x5f1   : > { %5687 = vst.msk [vmem:[#allocation3 + $0x20] sm:$0xf] %vm5678_vm6, %v5599_v26  ;;  %5624 = vrot.lane.b32.xlu1 %v12336_v55, %s9894_s10  ;;  %v5716_v55 = vld [vmem:[#allocation2 + $0x80] sm:$0xff]  ;;  %v12488_v5 = vpack.c.bf16 %v6745_v14, %v6745_v14 }
 0x5f2   : > { %5622 = vrot.lane.b32.xlu0 %v12338_v3, %s9894_s10  ;;  %v9466_v2 = vpack.c.bf16 %v5716_v55, %v5716_v55  ;;  %v6744_v26 = vld [vmem:[#allocation2 + $0xc3] sm:$0xff] }
 0x5f3   : > { %v5890_v6 = vpop.permute.xlu1 %5889  ;;  %v12490_v18 = vpack.c.bf16 %v6744_v26, %v6744_v26 }
 0x5f4   : > { %v5888_v12 = vpop.permute.xlu0 %5887  ;;  %5961 = vst.msk [vmem:[#allocation3 + $0x64] sm:$0xf] %vm5935_vm7, %v5890_v6  ;;  %v7018_v6 = vld [vmem:[#allocation2 + $0x18e] sm:$0xff] }
 0x5f5   : > { %5960 = vst.msk [vmem:[#allocation3 + $0x60] sm:$0xf] %vm5935_vm7, %v5888_v12  ;;  %5592 = vrot.lane.b32.xlu1 %v9434_v32, %s9894_s10  ;;  %v7017_v12 = vld [vmem:[#allocation2 + $0x186] sm:$0xff]  ;;  %v9642_v55 = vpack.c.bf16 %v7018_v6, %v7018_v6 }
 0x5f6   : > { %5590 = vrot.lane.b32.xlu0 %v9433_v36, %s9894_s10  ;;  %v9641_v34 = vpack.c.bf16 %v7017_v12, %v7017_v12 }
 0x5f7   : > { %v5858_v15 = vpop.permute.xlu1 %5857 }
 0x5f8   : > { %v5856_v3 = vpop.permute.xlu0 %5855  ;;  %5945 = vst.msk [vmem:[#allocation3 + $0x24] sm:$0xf] %vm5935_vm7, %v5858_v15 }
 0x5f9   : > { %5944 = vst.msk [vmem:[#allocation3 + $0x20] sm:$0xf] %vm5935_vm7, %v5856_v3  ;;  %5881 = vrot.lane.b32.xlu1 %v9482_v21, %s9895_s11 }
 0x5fa   : > { %5879 = vrot.lane.b32.xlu0 %v9481_v40, %s9895_s11 }
 0x5fb   : > { %v6147_v37 = vpop.permute.xlu1 %6146 }
 0x5fc   : > { %v6145_v38 = vpop.permute.xlu0 %6144  ;;  %6218 = vst.msk [vmem:[#allocation3 + $0x64] sm:$0xf] %vm6192_vm8, %v6147_v37 }
 0x5fd   : > { %6217 = vst.msk [vmem:[#allocation3 + $0x60] sm:$0xf] %vm6192_vm8, %v6145_v38  ;;  %5849 = vrot.lane.b32.xlu1 %v9466_v2, %s9895_s11  ;;  %v7002_v2 = vld [vmem:[#allocation2 + $0xce] sm:$0xff] }
 0x5fe   : > { %5847 = vrot.lane.b32.xlu0 %v9465_v48, %s9895_s11  ;;  %v7001_v48 = vld [vmem:[#allocation2 + $0xc6] sm:$0xff]  ;;  %v12520_v37 = vpack.c.bf16 %v7002_v2, %v7002_v2 }
 0x5ff   : > { %v6115_v60 = vpop.permute.xlu1 %6114  ;;  %v12522_v38 = vpack.c.bf16 %v7001_v48, %v7001_v48 }
 0x600   : > { %v6113_v28 = vpop.permute.xlu0 %6112  ;;  %6202 = vst.msk [vmem:[#allocation3 + $0x24] sm:$0xf] %vm6192_vm8, %v6115_v60 }
 0x601   : > { %6201 = vst.msk [vmem:[#allocation3 + $0x20] sm:$0xf] %vm6192_vm8, %v6113_v28  ;;  %6138 = vrot.lane.b32.xlu1 %v9514_v31, %s9896_s14 }
 0x602   : > { %6136 = vrot.lane.b32.xlu0 %v9513_v45, %s9896_s14 }
 0x603   : > { %v6404_v27 = vpop.permute.xlu1 %6403 }
 0x604   : > { %v6402_v10 = vpop.permute.xlu0 %6401  ;;  %6475 = vst.msk [vmem:[#allocation3 + $0x64] sm:$0xf] %vm6449_vm9, %v6404_v27 }
 0x605   : > { %6474 = vst.msk [vmem:[#allocation3 + $0x60] sm:$0xf] %vm6449_vm9, %v6402_v10  ;;  %6106 = vrot.lane.b32.xlu1 %v9498_v20, %s9896_s14  ;;  %v5730_v20 = vld [vmem:[#allocation2 + $0x128] sm:$0xff] }
 0x606   : > { %6104 = vrot.lane.b32.xlu0 %v9497_v29, %s9896_s14  ;;  %v5729_v29 = vld [vmem:[#allocation2 + $0x120] sm:$0xff]  ;;  %v9480_v27 = vpack.c.bf16 %v5730_v20, %v5730_v20 }
 0x607   : > { %v6372_v30 = vpop.permute.xlu1 %6371  ;;  %v9479_v10 = vpack.c.bf16 %v5729_v29, %v5729_v29 }
 0x608   : > { %v6370_v56 = vpop.permute.xlu0 %6369  ;;  %6459 = vst.msk [vmem:[#allocation3 + $0x24] sm:$0xf] %vm6449_vm9, %v6372_v30  ;;  %v5987_v30 = vld [vmem:[#allocation2 + $0x12b] sm:$0xff] }
 0x609   : > { %6458 = vst.msk [vmem:[#allocation3 + $0x20] sm:$0xf] %vm6449_vm9, %v6370_v56  ;;  %6395 = vrot.lane.b32.xlu1 %v9546_v4, %s9897_s15  ;;  %v5713_v4 = vld [vmem:[#allocation2 + $0x60] sm:$0xff]  ;;  %v9512_v1 = vpack.c.bf16 %v5987_v30, %v5987_v30 }
 0x60a   : > { %6393 = vrot.lane.b32.xlu0 %v9545_v9, %s9897_s15  ;;  %v9463_v51 = vpack.c.bf16 %v5713_v4, %v5713_v4  ;;  %v5986_v56 = vld [vmem:[#allocation2 + $0x123] sm:$0xff] }
 0x60b   : > { %v6662_v39 = vpop.permute.xlu1 %6661  ;;  %v9511_v44 = vpack.c.bf16 %v5986_v56, %v5986_v56 }
 0x60c   : > { %v6660_v46 = vpop.permute.xlu0 %6659  ;;  %6733 = vst.msk [vmem:[#allocation3 + $0x64] sm:$0xf] %vm6707_vm10, %v6662_v39  ;;  %v5971_v39 = vld [vmem:[#allocation2 + $0x6b] sm:$0xff] }
 0x60d   : > { %6732 = vst.msk [vmem:[#allocation3 + $0x60] sm:$0xf] %vm6707_vm10, %v6660_v46  ;;  %6363 = vrot.lane.b32.xlu1 %v9530_v57, %s9897_s15  ;;  %v5970_v46 = vld [vmem:[#allocation2 + $0x63] sm:$0xff]  ;;  %v9496_v61 = vpack.c.bf16 %v5971_v39, %v5971_v39 }
 0x60e   : > { %6361 = vrot.lane.b32.xlu0 %v9529_v50, %s9897_s15  ;;  %v9495_v24 = vpack.c.bf16 %v5970_v46, %v5970_v46 }
 0x60f   : > { %v6630_v62 = vpop.permute.xlu1 %6629 }
 0x610   : > { %v6628_v54 = vpop.permute.xlu0 %6627  ;;  %6717 = vst.msk [vmem:[#allocation3 + $0x24] sm:$0xf] %vm6707_vm10, %v6630_v62  ;;  %v6244_v62 = vld [vmem:[#allocation2 + $0x12e] sm:$0xff] }
 0x611   : > { %6716 = vst.msk [vmem:[#allocation3 + $0x20] sm:$0xf] %vm6707_vm10, %v6628_v54  ;;  %6653 = vrot.lane.b32.xlu1 %v9578_v47, %s9898_s16  ;;  %v6243_v54 = vld [vmem:[#allocation2 + $0x126] sm:$0xff]  ;;  %v9544_v0 = vpack.c.bf16 %v6244_v62, %v6244_v62 }
 0x612   : > { %6651 = vrot.lane.b32.xlu0 %v9577_v13, %s9898_s16  ;;  %v9543_v49 = vpack.c.bf16 %v6243_v54, %v6243_v54  ;;  %v9796_v54 = vld [vmem:[#allocation3 + $0x30] sm:$0xff]  }
 0x613   : > { %v6919_v42 = vpop.permute.xlu1 %6918 }
 0x614   : > { %v6917_v33 = vpop.permute.xlu0 %6916  ;;  %6990 = vst.msk [vmem:[#allocation3 + $0x64] sm:$0xf] %vm6964_vm11, %v6919_v42  ;;  %v6228_v42 = vld [vmem:[#allocation2 + $0x6e] sm:$0xff] }
 0x615   : > { %6989 = vst.msk [vmem:[#allocation3 + $0x60] sm:$0xf] %vm6964_vm11, %v6917_v33  ;;  %6621 = vrot.lane.b32.xlu1 %v9562_v63, %s9898_s16  ;;  %v6227_v33 = vld [vmem:[#allocation2 + $0x66] sm:$0xff]  ;;  %v9528_v14 = vpack.c.bf16 %v6228_v42, %v6228_v42  ;;  %v5712_v42 = vld [vmem:[#allocation2 + $0x50] sm:$0xff] }
 0x616   : > { %6619 = vrot.lane.b32.xlu0 %v9561_v23, %s9898_s16  ;;  %v9527_v26 = vpack.c.bf16 %v6227_v33, %v6227_v33  ;;  %v5711_v33 = vld [vmem:[#allocation2 + $0x48] sm:$0xff] }
 0x617   : > { %v6887_v32 = vpop.permute.xlu1 %6886 }
 0x618   : > { %v6885_v36 = vpop.permute.xlu0 %6884  ;;  %6974 = vst.msk [vmem:[#allocation3 + $0x24] sm:$0xf] %vm6964_vm11, %v6887_v32  ;;  %v6502_v32 = vld [vmem:[#allocation2 + $0x170] sm:$0xff] }
 0x619   : > { %6973 = vst.msk [vmem:[#allocation3 + $0x20] sm:$0xf] %vm6964_vm11, %v6885_v36  ;;  %6910 = vrot.lane.b32.xlu1 %v9610_v8, %s9899_s17  ;;  %v6501_v36 = vld [vmem:[#allocation2 + $0x168] sm:$0xff] }
 0x61a   : > { %6908 = vrot.lane.b32.xlu0 %v9609_v19, %s9899_s17 }
 0x61b   : > { %v7176_v21 = vpop.permute.xlu1 %7175 }
 0x61c   : > { %v7174_v40 = vpop.permute.xlu0 %7173  ;;  %7247 = vst.msk [vmem:[#allocation3 + $0x64] sm:$0xf] %vm7221_vm12, %v7176_v21  ;;  %v9576_v21 = vpack.c.bf16 %v6502_v32, %v6502_v32  ;;  %v9461_v32 = vpack.c.bf16 %v5711_v33, %v5711_v33 }
 0x61d   : > { %7246 = vst.msk [vmem:[#allocation3 + $0x60] sm:$0xf] %vm7221_vm12, %v7174_v40  ;;  %6878 = vrot.lane.b32.xlu1 %v12488_v5, %s9899_s17  ;;  %v9575_v40 = vpack.c.bf16 %v6501_v36, %v6501_v36  ;;  %v9798_v36 = vld [vmem:[#allocation3 + $0x28] sm:$0xff]  }
 0x61e   : > { %7280 = vst.msk [vmem:[#allocation3 + $0x64] sm:$0xf] %vm7254_vm13, %v9901_v35  ;;  %7279 = vst.msk [vmem:[#allocation3 + $0x60] sm:$0xf] %vm7254_vm13, %v9901_v35  ;;  %6876 = vrot.lane.b32.xlu0 %v12490_v18, %s9899_s17 }
 0x61f   : > { %7313 = vst.msk [vmem:[#allocation3 + $0x64] sm:$0xf] %vm7287_vm14, %v9902_v25  ;;  %7312 = vst.msk [vmem:[#allocation3 + $0x60] sm:$0xf] %vm7287_vm14, %v9902_v25  ;;  %v5372_v15 = vpop.permute.xlu1 %5371 }
 0x620   : > { %v5370_v3 = vpop.permute.xlu0 %5369  ;;  %5445 = vst.msk [vmem:[#allocation3 + $0x5c] sm:$0xf] %vm5421_vm5, %v5372_v15 }
 0x621   : > { %5444 = vst.msk [vmem:[#allocation3 + $0x58] sm:$0xf] %vm5421_vm5, %v5370_v3  ;;  %7167 = vrot.lane.b32.xlu1 %v9642_v55, %s9900_s18  ;;  %v6486_v55 = vld [vmem:[#allocation2 + $0xb0] sm:$0xff] }
 0x622   : > { %7165 = vrot.lane.b32.xlu0 %v9641_v34, %s9900_s18  ;;  %v6485_v34 = vld [vmem:[#allocation2 + $0xa8] sm:$0xff]  ;;  %v9560_v2 = vpack.c.bf16 %v6486_v55, %v6486_v55 }
 0x623   : > { %v7144_v16 = vpop.permute.xlu1 %7143  ;;  %v9559_v48 = vpack.c.bf16 %v6485_v34, %v6485_v34 }
 0x624   : > { %v7142_v52 = vpop.permute.xlu0 %7141  ;;  %7231 = vst.msk [vmem:[#allocation3 + $0x24] sm:$0xf] %vm7221_vm12, %v7144_v16  ;;  %v6759_v16 = vld [vmem:[#allocation2 + $0x173] sm:$0xff] }
 0x625   : > { %7230 = vst.msk [vmem:[#allocation3 + $0x20] sm:$0xf] %vm7221_vm12, %v7142_v52  ;;  %5363 = vrot.lane.b32.xlu1 %v12396_v22, %s9893_s9  ;;  %v5457_v22 = vld [vmem:[#allocation2 + $0x26] sm:$0xff] }
 0x626   : > { %7264 = vst.msk [vmem:[#allocation3 + $0x24] sm:$0xf] %vm7254_vm13, %v9901_v35  ;;  %7263 = vst.msk [vmem:[#allocation3 + $0x20] sm:$0xf] %vm7254_vm13, %v9901_v35  ;;  %5361 = vrot.lane.b32.xlu0 %v12398_v11, %s9893_s9  ;;  %v5456_v11 = vld [vmem:[#allocation2 + $0x1e] sm:$0xff]  ;;  %v9432_v60 = vpack.c.bf16 %v5457_v22, %v5457_v22  ;;  %v6758_v52 = vld [vmem:[#allocation2 + $0x16b] sm:$0xff]  ;;  %v9608_v22 = vpack.c.bf16 %v6759_v16, %v6759_v16 }
 0x627   : > { %7297 = vst.msk [vmem:[#allocation3 + $0x24] sm:$0xf] %vm7287_vm14, %v9902_v25  ;;  %7296 = vst.msk [vmem:[#allocation3 + $0x20] sm:$0xf] %vm7287_vm14, %v9902_v25  ;;  %v5629_v31 = vpop.permute.xlu1 %5628  ;;  %v9431_v28 = vpack.c.bf16 %v5456_v11, %v5456_v11  ;;  %v9607_v11 = vpack.c.bf16 %v6758_v52, %v6758_v52  ;;  %v9799_v16 = vld [vmem:[#allocation3 + $0x60] sm:$0xff]  }
 0x628   : > { %v5627_v45 = vpop.permute.xlu0 %5626  ;;  %5702 = vst.msk [vmem:[#allocation3 + $0x5c] sm:$0xf] %vm5678_vm6, %v5629_v31 }
 0x629   : > { %5701 = vst.msk [vmem:[#allocation3 + $0x58] sm:$0xf] %vm5678_vm6, %v5627_v45  ;;  %7135 = vrot.lane.b32.xlu1 %v12520_v37, %s9900_s18 }
 0x62a   : > { %7133 = vrot.lane.b32.xlu0 %v12522_v38, %s9900_s18 }
 0x62b   : > { %v5597_v41 = vpop.permute.xlu1 %5596 }
 0x62c   : > { %v5595_v53 = vpop.permute.xlu0 %5594  ;;  %5686 = vst.msk [vmem:[#allocation3 + $0x1c] sm:$0xf] %vm5678_vm6, %v5597_v41  ;;  %v6743_v41 = vld [vmem:[#allocation2 + $0xb3] sm:$0xff] }
 0x62d   : > { %5685 = vst.msk [vmem:[#allocation3 + $0x18] sm:$0xf] %vm5678_vm6, %v5595_v53  ;;  %5620 = vrot.lane.b32.xlu1 %v12428_v43, %s9894_s10  ;;  %v5714_v43 = vld [vmem:[#allocation2 + $0x68] sm:$0xff]  ;;  %v9592_v20 = vpack.c.bf16 %v6743_v41, %v6743_v41 }
 0x62e   : > { %5618 = vrot.lane.b32.xlu0 %v12430_v7, %s9894_s10  ;;  %v9464_v59 = vpack.c.bf16 %v5714_v43, %v5714_v43  ;;  %v6742_v53 = vld [vmem:[#allocation2 + $0xab] sm:$0xff] }
 0x62f   : > { %v5886_v17 = vpop.permute.xlu1 %5885  ;;  %v9591_v29 = vpack.c.bf16 %v6742_v53, %v6742_v53 }
 0x630   : > { %v5884_v58 = vpop.permute.xlu0 %5883  ;;  %5959 = vst.msk [vmem:[#allocation3 + $0x5c] sm:$0xf] %vm5935_vm7, %v5886_v17  ;;  %v7016_v17 = vld [vmem:[#allocation2 + $0x176] sm:$0xff] }
 0x631   : > { %5958 = vst.msk [vmem:[#allocation3 + $0x58] sm:$0xf] %vm5935_vm7, %v5884_v58  ;;  %5588 = vrot.lane.b32.xlu1 %v9432_v60, %s9894_s10  ;;  %v7015_v58 = vld [vmem:[#allocation2 + $0x16e] sm:$0xff]  ;;  %v9640_v43 = vpack.c.bf16 %v7016_v17, %v7016_v17 }
 0x632   : > { %5586 = vrot.lane.b32.xlu0 %v9431_v28, %s9894_s10  ;;  %v9639_v4 = vpack.c.bf16 %v7015_v58, %v7015_v58 }
 0x633   : > { %v5854_v9 = vpop.permute.xlu1 %5853 }
 0x634   : > { %v5852_v7 = vpop.permute.xlu0 %5851  ;;  %5943 = vst.msk [vmem:[#allocation3 + $0x1c] sm:$0xf] %vm5935_vm7, %v5854_v9 }
 0x635   : > { %5942 = vst.msk [vmem:[#allocation3 + $0x18] sm:$0xf] %vm5935_vm7, %v5852_v7  ;;  %5877 = vrot.lane.b32.xlu1 %v9480_v27, %s9895_s11 }
 0x636   : > { %5875 = vrot.lane.b32.xlu0 %v9479_v10, %s9895_s11 }
 0x637   : > { %v6143_v57 = vpop.permute.xlu1 %6142 }
 0x638   : > { %v6141_v50 = vpop.permute.xlu0 %6140  ;;  %6216 = vst.msk [vmem:[#allocation3 + $0x5c] sm:$0xf] %vm6192_vm8, %v6143_v57  ;;  %v9793_v57 = vld [vmem:[#allocation3 + $0x78] sm:$0xff]  }
 0x639   : > { %6215 = vst.msk [vmem:[#allocation3 + $0x58] sm:$0xf] %vm6192_vm8, %v6141_v50  ;;  %5845 = vrot.lane.b32.xlu1 %v9464_v59, %s9895_s11  ;;  %v7000_v59 = vld [vmem:[#allocation2 + $0xb6] sm:$0xff]  ;;  %9707 = vmatprep.subr.bf16.mxu0 %v9793_v57 }
 0x63a   : > { %5843 = vrot.lane.b32.xlu0 %v9463_v51, %s9895_s11  ;;  %v6999_v51 = vld [vmem:[#allocation2 + $0xae] sm:$0xff]  ;;  %v9624_v50 = vpack.c.bf16 %v7000_v59, %v7000_v59  ;;  %9727 = vmatprep.subr.bf16.mxu1 %v9793_v57  ;;  %v6484_v57 = vld [vmem:[#allocation2 + $0x98] sm:$0xff] }
 0x63b   : > { %v6111_v47 = vpop.permute.xlu1 %6110 }
 0x63c   : > { %v6109_v13 = vpop.permute.xlu0 %6108  ;;  %6200 = vst.msk [vmem:[#allocation3 + $0x1c] sm:$0xf] %vm6192_vm8, %v6111_v47 }
 0x63d   : > { %6199 = vst.msk [vmem:[#allocation3 + $0x18] sm:$0xf] %vm6192_vm8, %v6109_v13  ;;  %6134 = vrot.lane.b32.xlu1 %v9512_v1, %s9896_s14  ;;  %v9623_v1 = vpack.c.bf16 %v6999_v51, %v6999_v51 }
 0x63e   : > { %6132 = vrot.lane.b32.xlu0 %v9511_v44, %s9896_s14  ;;  %v9794_v44 = vld [vmem:[#allocation3 + $0x38] sm:$0xff]  }
 0x63f   : > { %v6400_v63 = vpop.permute.xlu1 %6399  ;;  %9708 = vmatpush3.bf16.xpose.msra.mxu0 %v9794_v44  ;;  %9735 = vmatpush3.bf16.xpose.msra.mxu1 %v9794_v44 }
 0x640   : > { %v6398_v23 = vpop.permute.xlu0 %6397  ;;  %6473 = vst.msk [vmem:[#allocation3 + $0x5c] sm:$0xf] %vm6449_vm9, %v6400_v63  ;;  %v5728_v63 = vld [vmem:[#allocation2 + $0x110] sm:$0xff] }
 0x641   : > { %6472 = vst.msk [vmem:[#allocation3 + $0x58] sm:$0xf] %vm6449_vm9, %v6398_v23  ;;  %6102 = vrot.lane.b32.xlu1 %v9496_v61, %s9896_s14  ;;  %v9795_v61 = vld [vmem:[#allocation3 + $0x70] sm:$0xff]   ;;  %v5727_v23 = vld [vmem:[#allocation2 + $0x108] sm:$0xff] }
 0x642   : > { %6100 = vrot.lane.b32.xlu0 %v9495_v24, %s9896_s14  ;;  %9709 = vmatprep.subr.bf16.mxu0 %v9795_v61 }
 0x643   : > { %v6368_v8 = vpop.permute.xlu1 %6367  ;;  %9728 = vmatprep.subr.bf16.mxu1 %v9795_v61 }
 0x644   : > { %v6366_v19 = vpop.permute.xlu0 %6365  ;;  %6457 = vst.msk [vmem:[#allocation3 + $0x1c] sm:$0xf] %vm6449_vm9, %v6368_v8 }
 0x645   : > { %6456 = vst.msk [vmem:[#allocation3 + $0x18] sm:$0xf] %vm6449_vm9, %v6366_v19  ;;  %6391 = vrot.lane.b32.xlu1 %v9544_v0, %s9897_s15 }
 0x646   : > { %6389 = vrot.lane.b32.xlu0 %v9543_v49, %s9897_s15 }
 0x647   : > { %v6658_v6 = vpop.permute.xlu1 %6657  ;;  %9710 = vmatpush3.bf16.xpose.msra.mxu0 %v9796_v54  ;;  %9736 = vmatpush3.bf16.xpose.msra.mxu1 %v9796_v54  ;;  %v6740_v54 = vld [vmem:[#allocation2 + $0x93] sm:$0xff] }
 0x648   : > { %v6656_v12 = vpop.permute.xlu0 %6655  ;;  %6731 = vst.msk [vmem:[#allocation3 + $0x5c] sm:$0xf] %vm6707_vm10, %v6658_v6  ;;  %v5985_v6 = vld [vmem:[#allocation2 + $0x113] sm:$0xff] }
 0x649   : > { %6730 = vst.msk [vmem:[#allocation3 + $0x58] sm:$0xf] %vm6707_vm10, %v6656_v12  ;;  %6359 = vrot.lane.b32.xlu1 %v9528_v14, %s9897_s15  ;;  %v9797_v14 = vld [vmem:[#allocation3 + $0x68] sm:$0xff]   ;;  %v5984_v12 = vld [vmem:[#allocation2 + $0x10b] sm:$0xff]  ;;  %v9510_v55 = vpack.c.bf16 %v5985_v6, %v5985_v6 }
 0x64a   : > { %6357 = vrot.lane.b32.xlu0 %v9527_v26, %s9897_s15  ;;  %v9462_v26 = vpack.c.bf16 %v5712_v42, %v5712_v42  ;;  %9711 = vmatprep.subr.bf16.mxu0 %v9797_v14  ;;  %v9509_v34 = vpack.c.bf16 %v5984_v12, %v5984_v12 }
 0x64b   : > { %v6626_v15 = vpop.permute.xlu1 %6625  ;;  %9729 = vmatprep.subr.bf16.mxu1 %v9797_v14  ;;  %v6998_v14 = vld [vmem:[#allocation2 + $0x9e] sm:$0xff] }
 0x64c   : > { %v6624_v3 = vpop.permute.xlu0 %6623  ;;  %6715 = vst.msk [vmem:[#allocation3 + $0x1c] sm:$0xf] %vm6707_vm10, %v6626_v15  ;;  %v5969_v15 = vld [vmem:[#allocation2 + $0x53] sm:$0xff]  ;;  %v9622_v6 = vpack.c.bf16 %v6998_v14, %v6998_v14 }
 0x64d   : > { %6714 = vst.msk [vmem:[#allocation3 + $0x18] sm:$0xf] %vm6707_vm10, %v6624_v3  ;;  %6649 = vrot.lane.b32.xlu1 %v9576_v21, %s9898_s16  ;;  %v5968_v3 = vld [vmem:[#allocation2 + $0x4b] sm:$0xff]  ;;  %v9494_v52 = vpack.c.bf16 %v5969_v15, %v5969_v15 }
 0x64e   : > { %6647 = vrot.lane.b32.xlu0 %v9575_v40, %s9898_s16 }
 0x64f   : > { %v6915_v31 = vpop.permute.xlu1 %6914  ;;  %9712 = vmatpush3.bf16.xpose.msra.mxu0 %v9798_v36  ;;  %9737 = vmatpush3.bf16.xpose.msra.mxu1 %v9798_v36 }
 0x650   : > { %v6913_v45 = vpop.permute.xlu0 %6912  ;;  %6988 = vst.msk [vmem:[#allocation3 + $0x5c] sm:$0xf] %vm6964_vm11, %v6915_v31  ;;  %v9493_v31 = vpack.c.bf16 %v5968_v3, %v5968_v3  ;;  %9713 = vmatprep.subr.bf16.mxu0 %v9799_v16  ;;  %9730 = vmatprep.subr.bf16.mxu1 %v9799_v16 }
 0x651   : > { %6987 = vst.msk [vmem:[#allocation3 + $0x58] sm:$0xf] %vm6964_vm11, %v6913_v45  ;;  %6617 = vrot.lane.b32.xlu1 %v9560_v2, %s9898_s16  ;;  %v9800_v45 = vld [vmem:[#allocation3 + $0x20] sm:$0xff]  }
 0x652   : > { %6615 = vrot.lane.b32.xlu0 %v9559_v48, %s9898_s16 }
 0x653   : > { %v6883_v60 = vpop.permute.xlu1 %6882 }
 0x654   : > { %v6881_v28 = vpop.permute.xlu0 %6880  ;;  %6972 = vst.msk [vmem:[#allocation3 + $0x1c] sm:$0xf] %vm6964_vm11, %v6883_v60 }
 0x655   : > { %6971 = vst.msk [vmem:[#allocation3 + $0x18] sm:$0xf] %vm6964_vm11, %v6881_v28  ;;  %6906 = vrot.lane.b32.xlu1 %v9608_v22, %s9899_s17  ;;  %v6242_v22 = vld [vmem:[#allocation2 + $0x116] sm:$0xff] }
 0x656   : > { %6904 = vrot.lane.b32.xlu0 %v9607_v11, %s9899_s17  ;;  %v6241_v11 = vld [vmem:[#allocation2 + $0x10e] sm:$0xff]  ;;  %v9542_v60 = vpack.c.bf16 %v6242_v22, %v6242_v22 }
 0x657   : > { %v7172_v27 = vpop.permute.xlu1 %7171  ;;  %9714 = vmatpush3.bf16.xpose.msra.mxu0 %v9800_v45  ;;  %9738 = vmatpush3.bf16.xpose.msra.mxu1 %v9800_v45  ;;  %v9541_v28 = vpack.c.bf16 %v6241_v11, %v6241_v11 }
 0x658   : > { %v7170_v10 = vpop.permute.xlu0 %7169  ;;  %7245 = vst.msk [vmem:[#allocation3 + $0x5c] sm:$0xf] %vm7221_vm12, %v7172_v27 }
 0x659   : > { %7244 = vst.msk [vmem:[#allocation3 + $0x58] sm:$0xf] %vm7221_vm12, %v7170_v10  ;;  %6874 = vrot.lane.b32.xlu1 %v9592_v20, %s9899_s17  ;;  %v6226_v20 = vld [vmem:[#allocation2 + $0x56] sm:$0xff] }
 0x65a   : > { %7278 = vst.msk [vmem:[#allocation3 + $0x5c] sm:$0xf] %vm7254_vm13, %v9901_v35  ;;  %7277 = vst.msk [vmem:[#allocation3 + $0x58] sm:$0xf] %vm7254_vm13, %v9901_v35  ;;  %6872 = vrot.lane.b32.xlu0 %v9591_v29, %s9899_s17  ;;  %v6225_v29 = vld [vmem:[#allocation2 + $0x4e] sm:$0xff]  ;;  %v9526_v10 = vpack.c.bf16 %v6226_v20, %v6226_v20 }
 0x65b   : > { %7311 = vst.msk [vmem:[#allocation3 + $0x5c] sm:$0xf] %vm7287_vm14, %v9902_v25  ;;  %7310 = vst.msk [vmem:[#allocation3 + $0x58] sm:$0xf] %vm7287_vm14, %v9902_v25  ;;  %v5368_v9 = vpop.permute.xlu1 %5367 }
 0x65c   : > { %v5366_v7 = vpop.permute.xlu0 %5365  ;;  %5443 = vst.msk [vmem:[#allocation3 + $0x54] sm:$0xf] %vm5421_vm5, %v5368_v9  ;;  %v6500_v9 = vld [vmem:[#allocation2 + $0x158] sm:$0xff] }
 0x65d   : > { %5442 = vst.msk [vmem:[#allocation3 + $0x50] sm:$0xf] %vm5421_vm5, %v5366_v7  ;;  %7163 = vrot.lane.b32.xlu1 %v9640_v43, %s9900_s18  ;;  %v9525_v43 = vpack.c.bf16 %v6225_v29, %v6225_v29  ;;  %v6499_v7 = vld [vmem:[#allocation2 + $0x150] sm:$0xff] }
 0x65e   : > { %7161 = vrot.lane.b32.xlu0 %v9639_v4, %s9900_s18 }
 0x65f   : > { %v7140_v30 = vpop.permute.xlu1 %7139 }
 0x660   : > { %v7138_v56 = vpop.permute.xlu0 %7137  ;;  %7229 = vst.msk [vmem:[#allocation3 + $0x1c] sm:$0xf] %vm7221_vm12, %v7140_v30  ;;  %v9574_v30 = vpack.c.bf16 %v6500_v9, %v6500_v9 }
 0x661   : > { %7228 = vst.msk [vmem:[#allocation3 + $0x18] sm:$0xf] %vm7221_vm12, %v7138_v56  ;;  %5359 = vrot.lane.b32.xlu1 %v12488_v5, %s9893_s9  ;;  %v5455_v5 = vld [vmem:[#allocation2 + $0xe] sm:$0xff]  ;;  %v9573_v56 = vpack.c.bf16 %v6499_v7, %v6499_v7 }
 0x662   : > { %7262 = vst.msk [vmem:[#allocation3 + $0x1c] sm:$0xf] %vm7254_vm13, %v9901_v35  ;;  %7261 = vst.msk [vmem:[#allocation3 + $0x18] sm:$0xf] %vm7254_vm13, %v9901_v35  ;;  %5357 = vrot.lane.b32.xlu0 %v12490_v18, %s9893_s9  ;;  %v5454_v18 = vld [vmem:[#allocation2 + $0x6] sm:$0xff]  ;;  %v9430_v24 = vpack.c.bf16 %v5455_v5, %v5455_v5  ;;  %v6757_v5 = vld [vmem:[#allocation2 + $0x15b] sm:$0xff]  ;;  %s12934_s9 = scalar_lea.vmem %s12958_s3, %s8788_s6 }
 0x663   : > { %7295 = vst.msk [vmem:[#allocation3 + $0x1c] sm:$0xf] %vm7287_vm14, %v9902_v25  ;;  %7294 = vst.msk [vmem:[#allocation3 + $0x18] sm:$0xf] %vm7287_vm14, %v9902_v25  ;;  %v5625_v39 = vpop.permute.xlu1 %5624  ;;  %v9429_v62 = vpack.c.bf16 %v5454_v18, %v5454_v18  ;;  %v9801_v27 = vld [vmem:[#allocation3 + $0x58] sm:$0xff]   ;;  %v6756_v18 = vld [vmem:[#allocation2 + $0x153] sm:$0xff]  ;;  %v9606_v61 = vpack.c.bf16 %v6757_v5, %v6757_v5 }
 0x664   : > { %v5623_v46 = vpop.permute.xlu0 %5622  ;;  %5700 = vst.msk [vmem:[#allocation3 + $0x54] sm:$0xf] %vm5678_vm6, %v5625_v39  ;;  %9715 = vmatprep.subr.bf16.mxu0 %v9801_v27  ;;  %9731 = vmatprep.subr.bf16.mxu1 %v9801_v27  ;;  %v9558_v39 = vpack.c.bf16 %v6484_v57, %v6484_v57 }
 0x665   : > { %5699 = vst.msk [vmem:[#allocation3 + $0x50] sm:$0xf] %vm5678_vm6, %v5623_v46  ;;  %7131 = vrot.lane.b32.xlu1 %v9624_v50, %s9900_s18  ;;  %v6483_v50 = vld [vmem:[#allocation2 + $0x90] sm:$0xff] }
 0x666   : > { %7129 = vrot.lane.b32.xlu0 %v9623_v1, %s9900_s18  ;;  %v9557_v46 = vpack.c.bf16 %v6483_v50, %v6483_v50 }
 0x667   : > { %v5593_v47 = vpop.permute.xlu1 %5592 }
 0x668   : > { %v5591_v13 = vpop.permute.xlu0 %5590  ;;  %5684 = vst.msk [vmem:[#allocation3 + $0x14] sm:$0xf] %vm5678_vm6, %v5593_v47 }
 0x669   : > { %5683 = vst.msk [vmem:[#allocation3 + $0x10] sm:$0xf] %vm5678_vm6, %v5591_v13  ;;  %5616 = vrot.lane.b32.xlu1 %v12520_v37, %s9894_s10  ;;  %v9478_v37 = vpack.c.bf16 %v5728_v63, %v5728_v63 }
 0x66a   : > { %5614 = vrot.lane.b32.xlu0 %v12522_v38, %s9894_s10  ;;  %v9477_v38 = vpack.c.bf16 %v5727_v23, %v5727_v23  ;;  %v9802_v4 = vld [vmem:[#allocation3 + $0x18] sm:$0xff]  }
 0x66b   : > { %v5882_v0 = vpop.permute.xlu1 %5881  ;;  %9716 = vmatpush3.bf16.xpose.msra.mxu0 %v9802_v4  ;;  %9739 = vmatpush3.bf16.xpose.msra.mxu1 %v9802_v4 }
 0x66c   : > { %v5880_v49 = vpop.permute.xlu0 %5879  ;;  %5957 = vst.msk [vmem:[#allocation3 + $0x54] sm:$0xf] %vm5935_vm7, %v5882_v0 }
 0x66d   : > { %5956 = vst.msk [vmem:[#allocation3 + $0x50] sm:$0xf] %vm5935_vm7, %v5880_v49  ;;  %5584 = vrot.lane.b32.xlu1 %v9430_v24, %s9894_s10  ;;  %v9605_v24 = vpack.c.bf16 %v6756_v18, %v6756_v18  ;;  %v9589_v49 = vpack.c.bf16 %v6740_v54, %v6740_v54 }
 0x66e   : > { %5582 = vrot.lane.b32.xlu0 %v9429_v62, %s9894_s10  ;;  %v6741_v62 = vld [vmem:[#allocation2 + $0x9b] sm:$0xff] }
 0x66f   : > { %v5850_v8 = vpop.permute.xlu1 %5849  ;;  %v9590_v0 = vpack.c.bf16 %v6741_v62, %v6741_v62 }
 0x670   : > { %v5848_v19 = vpop.permute.xlu0 %5847  ;;  %5941 = vst.msk [vmem:[#allocation3 + $0x14] sm:$0xf] %vm5935_vm7, %v5850_v8 }
 0x671   : > { %5940 = vst.msk [vmem:[#allocation3 + $0x10] sm:$0xf] %vm5935_vm7, %v5848_v19  ;;  %5873 = vrot.lane.b32.xlu1 %v9478_v37, %s9895_s11  ;;  %v7014_v37 = vld [vmem:[#allocation2 + $0x15e] sm:$0xff] }
 0x672   : > { %5871 = vrot.lane.b32.xlu0 %v9477_v38, %s9895_s11  ;;  %v7013_v38 = vld [vmem:[#allocation2 + $0x156] sm:$0xff]  ;;  %v9638_v8 = vpack.c.bf16 %v7014_v37, %v7014_v37 }
 0x673   : > { %v6139_v21 = vpop.permute.xlu1 %6138  ;;  %v9637_v19 = vpack.c.bf16 %v7013_v38, %v7013_v38 }
 0x674   : > { %v6137_v40 = vpop.permute.xlu0 %6136  ;;  %6214 = vst.msk [vmem:[#allocation3 + $0x54] sm:$0xf] %vm6192_vm8, %v6139_v21 }
 0x675   : > { %6213 = vst.msk [vmem:[#allocation3 + $0x50] sm:$0xf] %vm6192_vm8, %v6137_v40  ;;  %5841 = vrot.lane.b32.xlu1 %v9462_v26, %s9895_s11  ;;  %v6997_v26 = vld [vmem:[#allocation2 + $0x96] sm:$0xff] }
 0x676   : > { %5839 = vrot.lane.b32.xlu0 %v9461_v32, %s9895_s11  ;;  %v9621_v12 = vpack.c.bf16 %v6997_v26, %v6997_v26 }
 0x677   : > { %v6107_v2 = vpop.permute.xlu1 %6106 }
 0x678   : > { %v6105_v48 = vpop.permute.xlu0 %6104  ;;  %6198 = vst.msk [vmem:[#allocation3 + $0x14] sm:$0xf] %vm6192_vm8, %v6107_v2  ;;  %v12699_v2 = vld [vmem:[%s12956_s1 + $0x8] sm:$0xff]  }
 0x679   : > { %6197 = vst.msk [vmem:[#allocation3 + $0x10] sm:$0xf] %vm6192_vm8, %v6105_v48  ;;  %6130 = vrot.lane.b32.xlu1 %v9510_v55, %s9896_s14  ;;  %v12679_v55 = vld [vmem:[%s12956_s1] sm:$0xff]   ;;  %9725 = vmatprep.mubr.bf16.mxu1 %v12699_v2 }
 0x67a   : > { %6128 = vrot.lane.b32.xlu0 %v9509_v34, %s9896_s14  ;;  %9723 = vmatprep.mubr.bf16.mxu0 %v12679_v55 }
 0x67b   : > { %v6396_v41 = vpop.permute.xlu1 %6395 }
 0x67c   : > { %v6394_v53 = vpop.permute.xlu0 %6393  ;;  %6471 = vst.msk [vmem:[#allocation3 + $0x54] sm:$0xf] %vm6449_vm9, %v6396_v41 }
 0x67d   : > { %6470 = vst.msk [vmem:[#allocation3 + $0x50] sm:$0xf] %vm6449_vm9, %v6394_v53  ;;  %6098 = vrot.lane.b32.xlu1 %v9494_v52, %s9896_s14 }
 0x67e   : > { %6096 = vrot.lane.b32.xlu0 %v9493_v31, %s9896_s14 }
 0x67f   : > { %v6364_v17 = vpop.permute.xlu1 %6363 }
 0x680   : > { %v6362_v58 = vpop.permute.xlu0 %6361  ;;  %6455 = vst.msk [vmem:[#allocation3 + $0x14] sm:$0xf] %vm6449_vm9, %v6364_v17 }
 0x681   : > { %6454 = vst.msk [vmem:[#allocation3 + $0x10] sm:$0xf] %vm6449_vm9, %v6362_v58  ;;  %6387 = vrot.lane.b32.xlu1 %v9542_v60, %s9897_s15 }
 0x682   : > { %6385 = vrot.lane.b32.xlu0 %v9541_v28, %s9897_s15 }
 0x683   : > { %v6654_v59 = vpop.permute.xlu1 %6653 }
 0x684   : > { %v6652_v51 = vpop.permute.xlu0 %6651  ;;  %6729 = vst.msk [vmem:[#allocation3 + $0x54] sm:$0xf] %vm6707_vm10, %v6654_v59 }
 0x685   : > { %6728 = vst.msk [vmem:[#allocation3 + $0x50] sm:$0xf] %vm6707_vm10, %v6652_v51  ;;  %6355 = vrot.lane.b32.xlu1 %v9526_v10, %s9897_s15 }
 0x686   : > { %6353 = vrot.lane.b32.xlu0 %v9525_v43, %s9897_s15 }
 0x687   : > { %v6622_v1 = vpop.permute.xlu1 %6621 }
 0x688   : > { %v6620_v44 = vpop.permute.xlu0 %6619  ;;  %6713 = vst.msk [vmem:[#allocation3 + $0x14] sm:$0xf] %vm6707_vm10, %v6622_v1 }
 0x689   : > { %6712 = vst.msk [vmem:[#allocation3 + $0x10] sm:$0xf] %vm6707_vm10, %v6620_v44  ;;  %6645 = vrot.lane.b32.xlu1 %v9574_v30, %s9898_s16 }
 0x68a   : > { %6643 = vrot.lane.b32.xlu0 %v9573_v56, %s9898_s16 }
 0x68b   : > { %v6911_v47 = vpop.permute.xlu1 %6910 }
 0x68c   : > { %v6909_v13 = vpop.permute.xlu0 %6908  ;;  %6986 = vst.msk [vmem:[#allocation3 + $0x54] sm:$0xf] %vm6964_vm11, %v6911_v47 }
 0x68d   : > { %6985 = vst.msk [vmem:[#allocation3 + $0x50] sm:$0xf] %vm6964_vm11, %v6909_v13  ;;  %6613 = vrot.lane.b32.xlu1 %v9558_v39, %s9898_s16 }
 0x68e   : > { %6611 = vrot.lane.b32.xlu0 %v9557_v46, %s9898_s16 }
 0x68f   : > { %v6879_v63 = vpop.permute.xlu1 %6878 }
 0x690   : > { %v6877_v23 = vpop.permute.xlu0 %6876  ;;  %6970 = vst.msk [vmem:[#allocation3 + $0x14] sm:$0xf] %vm6964_vm11, %v6879_v63 }
 0x691   : > { %6969 = vst.msk [vmem:[#allocation3 + $0x10] sm:$0xf] %vm6964_vm11, %v6877_v23  ;;  %6902 = vrot.lane.b32.xlu1 %v9606_v61, %s9899_s17 }
 0x692   : > { %6900 = vrot.lane.b32.xlu0 %v9605_v24, %s9899_s17 }
 0x693   : > { %v7168_v42 = vpop.permute.xlu1 %7167 }
 0x694   : > { %v7166_v33 = vpop.permute.xlu0 %7165  ;;  %7243 = vst.msk [vmem:[#allocation3 + $0x54] sm:$0xf] %vm7221_vm12, %v7168_v42 }
 0x695   : > { %7242 = vst.msk [vmem:[#allocation3 + $0x50] sm:$0xf] %vm7221_vm12, %v7166_v33  ;;  %6870 = vrot.lane.b32.xlu1 %v9590_v0, %s9899_s17 }
 0x696   : > { %7276 = vst.msk [vmem:[#allocation3 + $0x54] sm:$0xf] %vm7254_vm13, %v9901_v35  ;;  %7275 = vst.msk [vmem:[#allocation3 + $0x50] sm:$0xf] %vm7254_vm13, %v9901_v35  ;;  %6868 = vrot.lane.b32.xlu0 %v9589_v49, %s9899_s17 }
 0x697   : > { %7309 = vst.msk [vmem:[#allocation3 + $0x54] sm:$0xf] %vm7287_vm14, %v9902_v25  ;;  %7308 = vst.msk [vmem:[#allocation3 + $0x50] sm:$0xf] %vm7287_vm14, %v9902_v25  ;;  %v5364_v32 = vpop.permute.xlu1 %5363 }
 0x698   : > { %v5362_v36 = vpop.permute.xlu0 %5361  ;;  %5441 = vst.msk [vmem:[#allocation3 + $0x4c] sm:$0xf] %vm5421_vm5, %v5364_v32 }
 0x699   : > { %5440 = vst.msk [vmem:[#allocation3 + $0x48] sm:$0xf] %vm5421_vm5, %v5362_v36  ;;  %7159 = vrot.lane.b32.xlu1 %v9638_v8, %s9900_s18 }
 0x69a   : > { %7157 = vrot.lane.b32.xlu0 %v9637_v19, %s9900_s18 }
 0x69b   : > { %v7136_v21 = vpop.permute.xlu1 %7135 }
 0x69c   : > { %v7134_v40 = vpop.permute.xlu0 %7133  ;;  %7227 = vst.msk [vmem:[#allocation3 + $0x14] sm:$0xf] %vm7221_vm12, %v7136_v21 }
 0x69d   : > { %7226 = vst.msk [vmem:[#allocation3 + $0x10] sm:$0xf] %vm7221_vm12, %v7134_v40  ;;  %7127 = vrot.lane.b32.xlu1 %v9622_v6, %s9900_s18 }
 0x69e   : > { %7260 = vst.msk [vmem:[#allocation3 + $0x14] sm:$0xf] %vm7254_vm13, %v9901_v35  ;;  %7259 = vst.msk [vmem:[#allocation3 + $0x10] sm:$0xf] %vm7254_vm13, %v9901_v35  ;;  %7125 = vrot.lane.b32.xlu0 %v9621_v12, %s9900_s18  ;;  %v9803_v34 = vld [vmem:[#allocation3 + $0x50] sm:$0xff]  }
 0x69f   : > { %7293 = vst.msk [vmem:[#allocation3 + $0x14] sm:$0xf] %vm7287_vm14, %v9902_v25  ;;  %7292 = vst.msk [vmem:[#allocation3 + $0x10] sm:$0xf] %vm7287_vm14, %v9902_v25  ;;  %v5621_v15 = vpop.permute.xlu1 %5620  ;;  %9717 = vmatprep.subr.bf16.mxu0 %v9803_v34  ;;  %9732 = vmatprep.subr.bf16.mxu1 %v9803_v34 }
 0x6a0   : > { %v5619_v3 = vpop.permute.xlu0 %5618  ;;  %5698 = vst.msk [vmem:[#allocation3 + $0x4c] sm:$0xf] %vm5678_vm6, %v5621_v15 }
 0x6a1   : > { %5697 = vst.msk [vmem:[#allocation3 + $0x48] sm:$0xf] %vm5678_vm6, %v5619_v3 }
 0x6a3   : > { %v5589_v48 = vpop.permute.xlu1 %5588 }
 0x6a4   : > { %v5587_v16 = vpop.permute.xlu0 %5586  ;;  %5682 = vst.msk [vmem:[#allocation3 + $0xc] sm:$0xf] %vm5678_vm6, %v5589_v48 }
 0x6a5   : > { %5681 = vst.msk [vmem:[#allocation3 + $0x8] sm:$0xf] %vm5678_vm6, %v5587_v16 }
 0x6a6   : > { %v9804_v52 = vld [vmem:[#allocation3 + $0x10] sm:$0xff]  }
 0x6a7   : > { %v5878_v31 = vpop.permute.xlu1 %5877  ;;  %9718 = vmatpush3.bf16.xpose.msra.mxu0 %v9804_v52  ;;  %9740 = vmatpush3.bf16.xpose.msra.mxu1 %v9804_v52 }
 0x6a8   : > { %v5876_v45 = vpop.permute.xlu0 %5875  ;;  %5955 = vst.msk [vmem:[#allocation3 + $0x4c] sm:$0xf] %vm5935_vm7, %v5878_v31 }
 0x6a9   : > { %5954 = vst.msk [vmem:[#allocation3 + $0x48] sm:$0xf] %vm5935_vm7, %v5876_v45 }
 0x6ab   : > { %v5846_v22 = vpop.permute.xlu1 %5845 }
 0x6ac   : > { %v5844_v11 = vpop.permute.xlu0 %5843  ;;  %5939 = vst.msk [vmem:[#allocation3 + $0xc] sm:$0xf] %vm5935_vm7, %v5846_v22 }
 0x6ad   : > { %5938 = vst.msk [vmem:[#allocation3 + $0x8] sm:$0xf] %vm5935_vm7, %v5844_v11 }
 0x6af   : > { %v6135_v41 = vpop.permute.xlu1 %6134 }
 0x6b0   : > { %v6133_v53 = vpop.permute.xlu0 %6132  ;;  %6212 = vst.msk [vmem:[#allocation3 + $0x4c] sm:$0xf] %vm6192_vm8, %v6135_v41 }
 0x6b1   : > { %6211 = vst.msk [vmem:[#allocation3 + $0x48] sm:$0xf] %vm6192_vm8, %v6133_v53 }
 0x6b3   : > { %v6103_v60 = vpop.permute.xlu1 %6102 }
 0x6b4   : > { %v6101_v28 = vpop.permute.xlu0 %6100  ;;  %6196 = vst.msk [vmem:[#allocation3 + $0xc] sm:$0xf] %vm6192_vm8, %v6103_v60 }
 0x6b5   : > { %6195 = vst.msk [vmem:[#allocation3 + $0x8] sm:$0xf] %vm6192_vm8, %v6101_v28  ;;  %v12819_v28 = vld [vmem:[%s12957_s2] sm:$0xff] }
 0x6b7   : > { %v6392_v20 = vpop.permute.xlu1 %6391 }
 0x6b8   : > { %v6390_v29 = vpop.permute.xlu0 %6389  ;;  %6469 = vst.msk [vmem:[#allocation3 + $0x4c] sm:$0xf] %vm6449_vm9, %v6392_v20  ;;  %v12825_v20 = vld [vmem:[%s12957_s2 + $0x10] sm:$0xff] }
 0x6b9   : > { %6468 = vst.msk [vmem:[#allocation3 + $0x48] sm:$0xf] %vm6449_vm9, %v6390_v29  ;;  %v12831_v29 = vld [vmem:[%s12957_s2 + $0x18] sm:$0xff] }
 0x6bb   : > { %v6360_v17 = vpop.permute.xlu1 %6359 }
 0x6bc   : > { %v6358_v58 = vpop.permute.xlu0 %6357  ;;  %6453 = vst.msk [vmem:[#allocation3 + $0xc] sm:$0xf] %vm6449_vm9, %v6360_v17  ;;  %v12836_v17 = vld [vmem:[%s12957_s2 + $0x8] sm:$0xff] }
 0x6bd   : > { %6452 = vst.msk [vmem:[#allocation3 + $0x8] sm:$0xf] %vm6449_vm9, %v6358_v58 }
 0x6bf   : > { %v6650_v27 = vpop.permute.xlu1 %6649 }
 0x6c0   : > { %v6648_v10 = vpop.permute.xlu0 %6647  ;;  %6727 = vst.msk [vmem:[#allocation3 + $0x4c] sm:$0xf] %vm6707_vm10, %v6650_v27 }
 0x6c1   : > { %6726 = vst.msk [vmem:[#allocation3 + $0x48] sm:$0xf] %vm6707_vm10, %v6648_v10 }
 0x6c3   : > { %v6618_v43 = vpop.permute.xlu1 %6617 }
 0x6c4   : > { %v6616_v4 = vpop.permute.xlu0 %6615  ;;  %6711 = vst.msk [vmem:[#allocation3 + $0xc] sm:$0xf] %vm6707_vm10, %v6618_v43 }
 0x6c5   : > { %6710 = vst.msk [vmem:[#allocation3 + $0x8] sm:$0xf] %vm6707_vm10, %v6616_v4 }
 0x6c7   : > { %v6907_v9 = vpop.permute.xlu1 %6906 }
 0x6c8   : > { %v6905_v7 = vpop.permute.xlu0 %6904  ;;  %6984 = vst.msk [vmem:[#allocation3 + $0x4c] sm:$0xf] %vm6964_vm11, %v6907_v9 }
 0x6c9   : > { %6983 = vst.msk [vmem:[#allocation3 + $0x48] sm:$0xf] %vm6964_vm11, %v6905_v7 }
 0x6cb   : > { %v6875_v59 = vpop.permute.xlu1 %6874 }
 0x6cc   : > { %v6873_v51 = vpop.permute.xlu0 %6872  ;;  %6968 = vst.msk [vmem:[#allocation3 + $0xc] sm:$0xf] %vm6964_vm11, %v6875_v59 }
 0x6cd   : > { %6967 = vst.msk [vmem:[#allocation3 + $0x8] sm:$0xf] %vm6964_vm11, %v6873_v51 }
 0x6cf   : > { %v7164_v30 = vpop.permute.xlu1 %7163 }
 0x6d0   : > { %v7162_v56 = vpop.permute.xlu0 %7161  ;;  %7241 = vst.msk [vmem:[#allocation3 + $0x4c] sm:$0xf] %vm7221_vm12, %v7164_v30 }
 0x6d1   : > { %7240 = vst.msk [vmem:[#allocation3 + $0x48] sm:$0xf] %vm7221_vm12, %v7162_v56 }
 0x6d2   : > { %7274 = vst.msk [vmem:[#allocation3 + $0x4c] sm:$0xf] %vm7254_vm13, %v9901_v35  ;;  %7273 = vst.msk [vmem:[#allocation3 + $0x48] sm:$0xf] %vm7254_vm13, %v9901_v35 }
 0x6d3   : > { %7307 = vst.msk [vmem:[#allocation3 + $0x4c] sm:$0xf] %vm7287_vm14, %v9902_v25  ;;  %7306 = vst.msk [vmem:[#allocation3 + $0x48] sm:$0xf] %vm7287_vm14, %v9902_v25  ;;  %v5360_v57 = vpop.permute.xlu1 %5359 }
 0x6d4   : > { %v5358_v50 = vpop.permute.xlu0 %5357  ;;  %5439 = vst.msk [vmem:[#allocation3 + $0x44] sm:$0xf] %vm5421_vm5, %v5360_v57 }
 0x6d5   : > { %5438 = vst.msk [vmem:[#allocation3 + $0x40] sm:$0xf] %vm5421_vm5, %v5358_v50 }
 0x6d7   : > { %v7132_v1 = vpop.permute.xlu1 %7131 }
 0x6d8   : > { %v7130_v44 = vpop.permute.xlu0 %7129  ;;  %7225 = vst.msk [vmem:[#allocation3 + $0xc] sm:$0xf] %vm7221_vm12, %v7132_v1 }
 0x6d9   : > { %7224 = vst.msk [vmem:[#allocation3 + $0x8] sm:$0xf] %vm7221_vm12, %v7130_v44 }
 0x6da   : > { %7258 = vst.msk [vmem:[#allocation3 + $0xc] sm:$0xf] %vm7254_vm13, %v9901_v35  ;;  %7257 = vst.msk [vmem:[#allocation3 + $0x8] sm:$0xf] %vm7254_vm13, %v9901_v35  ;;  %v9805_v39 = vld [vmem:[#allocation3 + $0x48] sm:$0xff]  }
 0x6db   : > { %7291 = vst.msk [vmem:[#allocation3 + $0xc] sm:$0xf] %vm7287_vm14, %v9902_v25  ;;  %7290 = vst.msk [vmem:[#allocation3 + $0x8] sm:$0xf] %vm7287_vm14, %v9902_v25  ;;  %v5617_v46 = vpop.permute.xlu1 %5616  ;;  %9719 = vmatprep.subr.bf16.mxu0 %v9805_v39  ;;  %9733 = vmatprep.subr.bf16.mxu1 %v9805_v39 }
 0x6dc   : > { %v5615_v5 = vpop.permute.xlu0 %5614  ;;  %5696 = vst.msk [vmem:[#allocation3 + $0x44] sm:$0xf] %vm5678_vm6, %v5617_v46 }
 0x6dd   : > { %5695 = vst.msk [vmem:[#allocation3 + $0x40] sm:$0xf] %vm5678_vm6, %v5615_v5 }
 0x6df   : > { %v5585_v18 = vpop.permute.xlu1 %5584 }
 0x6e0   : > { %v5583_v47 = vpop.permute.xlu0 %5582  ;;  %5680 = vst.msk [vmem:[#allocation3 + $0x4] sm:$0xf] %vm5678_vm6, %v5585_v18 }
 0x6e1   : > { %5679 = vst.msk [vmem:[#allocation3] sm:$0xf] %vm5678_vm6, %v5583_v47 }
 0x6e2   : > { %v9806_v13 = vld [vmem:[#allocation3 + $0x8] sm:$0xff]  }
 0x6e3   : > { %v5874_v61 = vpop.permute.xlu1 %5873  ;;  %9720 = vmatpush3.bf16.xpose.msra.mxu0 %v9806_v13  ;;  %9741 = vmatpush3.bf16.xpose.msra.mxu1 %v9806_v13 }
 0x6e4   : > { %v5872_v24 = vpop.permute.xlu0 %5871  ;;  %5953 = vst.msk [vmem:[#allocation3 + $0x44] sm:$0xf] %vm5935_vm7, %v5874_v61 }
 0x6e5   : > { %5952 = vst.msk [vmem:[#allocation3 + $0x40] sm:$0xf] %vm5935_vm7, %v5872_v24 }
 0x6e7   : > { %v5842_v62 = vpop.permute.xlu1 %5841 }
 0x6e8   : > { %v5840_v54 = vpop.permute.xlu0 %5839  ;;  %5937 = vst.msk [vmem:[#allocation3 + $0x4] sm:$0xf] %vm5935_vm7, %v5842_v62 }
 0x6e9   : > { %5936 = vst.msk [vmem:[#allocation3] sm:$0xf] %vm5935_vm7, %v5840_v54 }
 0x6eb   : > { %v6131_v63 = vpop.permute.xlu1 %6130 }
 0x6ec   : > { %v6129_v23 = vpop.permute.xlu0 %6128  ;;  %6210 = vst.msk [vmem:[#allocation3 + $0x44] sm:$0xf] %vm6192_vm8, %v6131_v63 }
 0x6ed   : > { %6209 = vst.msk [vmem:[#allocation3 + $0x40] sm:$0xf] %vm6192_vm8, %v6129_v23 }
 0x6ef   : > { %v6099_v0 = vpop.permute.xlu1 %6098 }
 0x6f0   : > { %v6097_v49 = vpop.permute.xlu0 %6096  ;;  %6194 = vst.msk [vmem:[#allocation3 + $0x4] sm:$0xf] %vm6192_vm8, %v6099_v0 }
 0x6f1   : > { %6193 = vst.msk [vmem:[#allocation3] sm:$0xf] %vm6192_vm8, %v6097_v49 }
 0x6f3   : > { %v6388_v37 = vpop.permute.xlu1 %6387 }
 0x6f4   : > { %v6386_v38 = vpop.permute.xlu0 %6385  ;;  %6467 = vst.msk [vmem:[#allocation3 + $0x44] sm:$0xf] %vm6449_vm9, %v6388_v37 }
 0x6f5   : > { %6466 = vst.msk [vmem:[#allocation3 + $0x40] sm:$0xf] %vm6449_vm9, %v6386_v38 }
 0x6f7   : > { %v6356_v42 = vpop.permute.xlu1 %6355 }
 0x6f8   : > { %v6354_v33 = vpop.permute.xlu0 %6353  ;;  %6451 = vst.msk [vmem:[#allocation3 + $0x4] sm:$0xf] %vm6449_vm9, %v6356_v42 }
 0x6f9   : > { %6450 = vst.msk [vmem:[#allocation3] sm:$0xf] %vm6449_vm9, %v6354_v33 }
 0x6fb   : > { %v6646_v8 = vpop.permute.xlu1 %6645 }
 0x6fc   : > { %v6644_v19 = vpop.permute.xlu0 %6643  ;;  %6725 = vst.msk [vmem:[#allocation3 + $0x44] sm:$0xf] %vm6707_vm10, %v6646_v8 }
 0x6fd   : > { %6724 = vst.msk [vmem:[#allocation3 + $0x40] sm:$0xf] %vm6707_vm10, %v6644_v19 }
 0x6ff   : > { %v6614_v14 = vpop.permute.xlu1 %6613 }
 0x700   : > { %v6612_v26 = vpop.permute.xlu0 %6611  ;;  %6709 = vst.msk [vmem:[#allocation3 + $0x4] sm:$0xf] %vm6707_vm10, %v6614_v14 }
 0x701   : > { %6708 = vst.msk [vmem:[#allocation3] sm:$0xf] %vm6707_vm10, %v6612_v26 }
 0x703   : > { %v6903_v32 = vpop.permute.xlu1 %6902 }
 0x704   : > { %v6901_v36 = vpop.permute.xlu0 %6900  ;;  %6982 = vst.msk [vmem:[#allocation3 + $0x44] sm:$0xf] %vm6964_vm11, %v6903_v32 }
 0x705   : > { %6981 = vst.msk [vmem:[#allocation3 + $0x40] sm:$0xf] %vm6964_vm11, %v6901_v36 }
 0x707   : > { %v6871_v6 = vpop.permute.xlu1 %6870 }
 0x708   : > { %v6869_v12 = vpop.permute.xlu0 %6868  ;;  %6966 = vst.msk [vmem:[#allocation3 + $0x4] sm:$0xf] %vm6964_vm11, %v6871_v6 }
 0x709   : > { %6965 = vst.msk [vmem:[#allocation3] sm:$0xf] %vm6964_vm11, %v6869_v12 }
 0x70b   : > { %v7160_v21 = vpop.permute.xlu1 %7159 }
 0x70c   : > { %v7158_v40 = vpop.permute.xlu0 %7157  ;;  %7239 = vst.msk [vmem:[#allocation3 + $0x44] sm:$0xf] %vm7221_vm12, %v7160_v21 }
 0x70d   : > { %7238 = vst.msk [vmem:[#allocation3 + $0x40] sm:$0xf] %vm7221_vm12, %v7158_v40 }
 0x70e   : > { %7272 = vst.msk [vmem:[#allocation3 + $0x44] sm:$0xf] %vm7254_vm13, %v9901_v35  ;;  %7271 = vst.msk [vmem:[#allocation3 + $0x40] sm:$0xf] %vm7254_vm13, %v9901_v35 }
 0x70f   : > { %7305 = vst.msk [vmem:[#allocation3 + $0x44] sm:$0xf] %vm7287_vm14, %v9902_v25  ;;  %7304 = vst.msk [vmem:[#allocation3 + $0x40] sm:$0xf] %vm7287_vm14, %v9902_v25  ;;  %v7128_v34 = vpop.permute.xlu1 %7127 }
 0x710   : > { %v7126_v15 = vpop.permute.xlu0 %7125  ;;  %7223 = vst.msk [vmem:[#allocation3 + $0x4] sm:$0xf] %vm7221_vm12, %v7128_v34 }
 0x711   : > { %7222 = vst.msk [vmem:[#allocation3] sm:$0xf] %vm7221_vm12, %v7126_v15 }
 0x712   : > { %7256 = vst.msk [vmem:[#allocation3 + $0x4] sm:$0xf] %vm7254_vm13, %v9901_v35  ;;  %7255 = vst.msk [vmem:[#allocation3] sm:$0xf] %vm7254_vm13, %v9901_v35 }
 0x713   : > { %7289 = vst.msk [vmem:[#allocation3 + $0x4] sm:$0xf] %vm7287_vm14, %v9902_v25  ;;  %7288 = vst.msk [vmem:[#allocation3] sm:$0xf] %vm7287_vm14, %v9902_v25 }
 0x716   : > { %v9807_v3 = vld [vmem:[#allocation3 + $0x40] sm:$0xff]  }
 0x717   : > { %9721 = vmatprep.subr.bf16.mxu0 %v9807_v3  ;;  %9734 = vmatprep.subr.bf16.mxu1 %v9807_v3 }
 0x71a   : > { %v9808_v48 = vld [vmem:[#allocation3] sm:$0xff]  }
 0x71b   : > { %9722 = vmatpush3.bf16.xpose.msra.mxu0 %v9808_v48  ;;  %9742 = vmatpush3.bf16.xpose.msra.mxu1 %v9808_v48 }
 0x722   : > { %9724 = vmatmul.mubr.bf16.vlgmr.msra.gmra.mxu0 %v12679_v55  ;;  %9726 = vmatmul.mubr.bf16.vlgmr.msra.gmra.mxu1 %v12699_v2 }
 0x7e2   : > { %v12792_v16 = vpop.f32.mrf.mxu0  ;;  %v12794_v52 = vpop.f32.mrf.mxu1 }
 0x7e4   : > { %v12796_v35 = vpop.f32.mrf.mxu0  ;;  %v12798_v31 = vpop.f32.mrf.mxu1 }
 0x7e5   : > { %v7521_v45 = vadd.f32 %v12796_v35, %v12792_v16  ;;  %v7527_v55 = vadd.f32 %v12798_v31, %v12794_v52 }
 0x7e6   : > { %v12802_v22 = vpop.f32.mrf.mxu0  ;;  %v12804_v11 = vpop.f32.mrf.mxu1 }
 0x7e7   : > { %7522 = vadd.xlane.f32.xlu0 %v7521_v45 }
 0x7e8   : > { %v12808_v2 = vpop.f32.mrf.mxu0  ;;  %v12812_v53 = vpop.f32.mrf.mxu1 }
 0x7e9   : > { %v7524_v41 = vadd.f32 %v12808_v2, %v12802_v22  ;;  %v7530_v60 = vadd.f32 %v12812_v53, %v12804_v11 }
 0x7eb   : > { %7528 = vadd.xlane.f32.xlu0 %v7527_v55  ;;  %7525 = vadd.xlane.f32.xlu1 %v7524_v41 }
 0x7ef   : > { %7531 = vadd.xlane.f32.xlu0 %v7530_v60 }
 0x7fc   : > { %7689 = vrot.lane.b32.xlu1 %v12819_v28, %s9903_s25 }
 0x800   : > { %7693 = vrot.lane.b32.xlu1 %v12825_v20, %s9903_s25 }
 0x804   : > { %7695 = vrot.lane.b32.xlu1 %v12831_v29, %s9903_s25 }
 0x805   : > { %7691 = vrot.lane.b32.xlu0 %v12836_v17, %s9903_s25 }
 0x870   : > { %v7523_v58 = vpop.xlane.xlu0 %7522 }
 0x871   : > { %v7533_v27 = vmul.f32 0.00390625, %v7523_v58 }
 0x873   : > { %v12841_v10 = vsub.f32 %v12792_v16, %v7533_v27  ;;  %v12844_v43 = vsub.f32 %v12796_v35, %v7533_v27  ;;  %v7685_v56 = vmul.f32 %v7533_v27, %v12819_v28  ;;  %v9904_v27 = vmov 4  }
 0x874   : > { %v7529_v4 = vpop.xlane.xlu0 %7528  ;;  %v7526_v9 = vpop.xlane.xlu1 %7525  ;;  %9785 = vset.pattern.permute.xlu0 %v9904_v27  ;;  %9786 = vset.pattern.permute.xlu1 %v9904_v27 }
 0x875   : > { %v7535_v7 = vmul.f32 0.00390625, %v7529_v4  ;;  %v7534_v59 = vmul.f32 0.00390625, %v7526_v9  ;;  %v7545_v51 = vmul.f32 %v12841_v10, %v12841_v10  ;;  %v7546_v30 = vmul.f32 %v12844_v43, %v12844_v43 }
 0x877   : > { %v12852_v57 = vsub.f32 %v12794_v52, %v7535_v7  ;;  %v12855_v50 = vsub.f32 %v12798_v31, %v7535_v7  ;;  %v12858_v1 = vsub.f32 %v12802_v22, %v7534_v59  ;;  %v12861_v44 = vsub.f32 %v12808_v2, %v7534_v59 }
 0x878   : > { %v7532_v39 = vpop.xlane.xlu0 %7531  ;;  %v12863_v46 = vpop.permute.xlu1 %7689  ;;  %v7553_v5 = vadd.f32 %v7546_v30, %v7545_v51  ;;  %v7686_v61 = vmul.f32 %v7534_v59, %v12836_v17  ;;  %v7687_v49 = vmul.f32 %v7535_v7, %v12825_v20 }
 0x879   : > { %v7536_v18 = vmul.f32 0.00390625, %v7532_v39  ;;  %v7701_v47 = vadd.f32 %v12863_v46, %v7685_v56  ;;  %v7549_v13 = vmul.f32 %v12852_v57, %v12852_v57  ;;  %v7550_v24 = vmul.f32 %v12855_v50, %v12855_v50 }
 0x87a   : > { %7554 = vadd.xlane.f32.xlu0 %v7553_v5  ;;  %v7547_v62 = vmul.f32 %v12858_v1, %v12858_v1  ;;  %v7548_v54 = vmul.f32 %v12861_v44, %v12861_v44 }
 0x87b   : > { %v12876_v63 = vsub.f32 %v12804_v11, %v7536_v18  ;;  %v12879_v23 = vsub.f32 %v12812_v53, %v7536_v18  ;;  %v8782_v0 = vmul.f32 -1.442695, %v7701_v47  ;;  %v7559_v42 = vadd.f32 %v7550_v24, %v7549_v13 }
 0x87c   : > { %v12882_v37 = vpop.permute.xlu0 %7691  ;;  %v12884_v38 = vpop.permute.xlu1 %7693  ;;  %v7556_v33 = vadd.f32 %v7548_v54, %v7547_v62  ;;  %v7688_v6 = vmul.f32 %v7536_v18, %v12831_v29 }
 0x87d   : > { %9811 = vpow2.f32 %v8782_v0  ;;  %v7702_v8 = vadd.f32 %v12882_v37, %v7686_v61  ;;  %v7703_v19 = vadd.f32 %v12884_v38, %v7687_v49  ;;  %v7551_v14 = vmul.f32 %v12876_v63, %v12876_v63 }
 0x87e   : > { %7560 = vadd.xlane.f32.xlu0 %v7559_v42  ;;  %7557 = vadd.xlane.f32.xlu1 %v7556_v33  ;;  %v7552_v26 = vmul.f32 %v12879_v23, %v12879_v23 }
 0x87f   : > { %v8783_v32 = vmul.f32 -1.442695, %v7702_v8  ;;  %v8784_v36 = vmul.f32 -1.442695, %v7703_v19 }
 0x880   : > { %v12893_v12 = vpop.permute.xlu1 %7695  ;;  %v7562_v21 = vadd.f32 %v7552_v26, %v7551_v14 }
 0x881   : > { %9813 = vpow2.f32 %v8783_v32  ;;  %v7704_v40 = vadd.f32 %v12893_v12, %v7688_v6  ;;  %v9906_v32 = vmov 5  }
 0x882   : > { %9815 = vpow2.f32 %v8784_v36  ;;  %7563 = vadd.xlane.f32.xlu0 %v7562_v21  ;;  %v9907_v36 = vmov 1   ;;  %v7750_v21 = vsub.f32 1.0, %v12836_v17 }
 0x883   : > { %v8785_v34 = vmul.f32 -1.442695, %v7704_v40 }
 0x885   : > { %9817 = vpow2.f32 %v8785_v34  ;;  %v7754_v34 = vsub.f32 %v7750_v21, %v12882_v37 }
 0x88a   : > { %v9812_v15 = vpop.eup %9811 }
 0x88b   : > { %v7717_v3 = vadd.f32 1.0, %v9812_v15 }
 0x88d   : > { %9819 = vrcp.f32 %v7717_v3 }
 0x88e   : > { %v9814_v48 = vpop.eup %9813 }
 0x88f   : > { %v9816_v45 = vpop.eup %9815  ;;  %v7718_v55 = vadd.f32 1.0, %v9814_v48  ;;  %v7749_v48 = vsub.f32 1.0, %v12819_v28 }
 0x890   : > { %v7719_v41 = vadd.f32 1.0, %v9816_v45 }
 0x891   : > { %9821 = vrcp.f32 %v7718_v55 }
 0x892   : > { %v9818_v60 = vpop.eup %9817  ;;  %9823 = vrcp.f32 %v7719_v41  ;;  %v7753_v41 = vsub.f32 %v7749_v48, %v12863_v46 }
 0x893   : > { %v7720_v58 = vadd.f32 1.0, %v9818_v60  ;;  %v7751_v60 = vsub.f32 1.0, %v12825_v20 }
 0x895   : > { %9825 = vrcp.f32 %v7720_v58 }
 0x89a   : > { %v9820_v4 = vpop.eup %9819 }
 0x89b   : > { %7733 = vrot.lane.b32.xlu1 %v9820_v4, %s9905_s5  ;;  %v7752_v4 = vsub.f32 1.0, %v12831_v29 }
 0x89e   : > { %v9822_v9 = vpop.eup %9821 }
 0x89f   : > { %v9824_v7 = vpop.eup %9823  ;;  %7735 = vrot.lane.b32.xlu0 %v9822_v9, %s9905_s5 }
 0x8a0   : > { %7737 = vrot.lane.b32.xlu1 %v9824_v7, %s9905_s5  ;;  %v7756_v7 = vsub.f32 %v7752_v4, %v12893_v12 }
 0x8a2   : > { %v9826_v59 = vpop.eup %9825 }
 0x8a4   : > { %7739 = vrot.lane.b32.xlu1 %v9826_v59, %s9905_s5 }
 0x903   : > { %v7555_v51 = vpop.xlane.xlu0 %7554 }
 0x904   : > { %v7565_v30 = vmul.f32 0.00390625, %v7555_v51 }
 0x906   : > { %v7569_v56 = vadd.f32 1e-05, %v7565_v30 }
 0x907   : > { %v7561_v39 = vpop.xlane.xlu0 %7560  ;;  %v7558_v5 = vpop.xlane.xlu1 %7557 }
 0x908   : > { %9827 = vrsqrt.f32 %v7569_v56  ;;  %v7567_v18 = vmul.f32 0.00390625, %v7561_v39  ;;  %v7566_v47 = vmul.f32 0.00390625, %v7558_v5 }
 0x90a   : > { %v7570_v13 = vadd.f32 1e-05, %v7566_v47  ;;  %v7571_v61 = vadd.f32 1e-05, %v7567_v18 }
 0x90b   : > { %v7564_v24 = vpop.xlane.xlu0 %7563 }
 0x90c   : > { %v7568_v62 = vmul.f32 0.00390625, %v7564_v24  ;;  %9829 = vrsqrt.f32 %v7570_v13 }
 0x90d   : > { %9831 = vrsqrt.f32 %v7571_v61  ;;  %v7734_v15 = vpop.permute.xlu1 %7733 }
 0x90e   : > { %v7572_v54 = vadd.f32 1e-05, %v7568_v62  ;;  %v7745_v55 = vmul.f32 %v7734_v15, %v12819_v28 }
 0x910   : > { %9833 = vrsqrt.f32 %v7572_v54  ;;  %v7757_v37 = vadd.f32 %v7753_v41, %v7745_v55 }
 0x911   : > { %v7736_v6 = vpop.permute.xlu0 %7735 }
 0x912   : > { %v7746_v40 = vmul.f32 %v7736_v6, %v12836_v17  ;;  %v7738_v45 = vpop.permute.xlu1 %7737 }
 0x913   : > { %v7747_v58 = vmul.f32 %v7738_v45, %v12825_v20 }
 0x914   : > { %v7758_v3 = vadd.f32 %v7754_v34, %v7746_v40 }
 0x915   : > { %v9828_v0 = vpop.eup %9827 }
 0x916   : > { %v7577_v49 = vmul.f32 %v9828_v0, %v12819_v28  ;;  %v7740_v27 = vpop.permute.xlu1 %7739 }
 0x918   : > { %7583 = vperm.xlu0 %9785, %v7577_v49  }
 0x919   : > { %v9830_v42 = vpop.eup %9829 }
 0x91a   : > { %v7578_v33 = vmul.f32 %v9830_v42, %v12836_v17  ;;  %v9832_v8 = vpop.eup %9831 }
 0x91b   : > { %v7579_v26 = vmul.f32 %v9832_v8, %v12825_v20 }
 0x91c   : > { %7588 = vperm.xlu1 %9786, %v7578_v33  }
 0x91d   : > { %v9834_v19 = vpop.eup %9833 }
 0x91e   : > { %v7580_v14 = vmul.f32 %v9834_v19, %v12831_v29 }
 0x920   : > { %7598 = vperm.xlu0 %9785, %v7580_v14   ;;  %7593 = vperm.xlu1 %9786, %v7579_v26  }
 0x924   : > { %9788 = vset.pattern.permute.xlu0 %v9906_v32  ;;  %9787 = vset.pattern.permute.xlu1 %v9906_v32 }
 0x925   : > { %7616 = vperm.xlu0 %9788, %v12836_v17   ;;  %7611 = vperm.xlu1 %9787, %v12819_v28  }
 0x929   : > { %9789 = vset.pattern.permute.xlu0 %v9907_v36  ;;  %7621 = vperm.xlu1 %9787, %v12825_v20  }
 0x92a   : > { %7762 = vperm.xlu0 %9789, %v12819_v28   ;;  %v7748_v28 = vmul.f32 %v7740_v27, %v12831_v29 }
 0x92c   : > { %v7760_v46 = vadd.f32 %v7756_v7, %v7748_v28 }
 0x92d   : > { %7626 = vperm.xlu1 %9787, %v12831_v29  }
 0x92e   : > { %7774 = vperm.xlu0 %9789, %v12831_v29  }
 0x931   : > { %9790 = vset.pattern.permute.xlu1 %v9907_v36 }
 0x932   : > { %9792 = vset.pattern.permute.xlu0 %v9902_v25  ;;  %7766 = vperm.xlu1 %9790, %v12836_v17   ;;  %v7755_v17 = vsub.f32 %v7751_v60, %v12884_v38 }
 0x933   : > { %7792 = vperm.xlu0 %9792, %v7758_v3  }
 0x934   : > { %v7759_v9 = vadd.f32 %v7755_v17, %v7747_v58 }
 0x936   : > { %7770 = vperm.xlu1 %9790, %v12825_v20  }
 0x93a   : > { %9791 = vset.pattern.permute.xlu1 %v9902_v25 }
 0x93b   : > { %7787 = vperm.xlu1 %9791, %v7757_v37  }
 0x93f   : > { %7797 = vperm.xlu1 %9791, %v7759_v9  }
 0x943   : > { %7802 = vperm.xlu1 %9791, %v7760_v46  }
 0x993   : > { %v7584_v59 = vpop.permute.xlu0 %7583 }
 0x994   : > { %v7601_v38 = vmul.f32 %v7584_v59, %v12841_v10  ;;  %v7602_v39 = vmul.f32 %v7584_v59, %v12844_v43 }
 0x997   : > { %v7589_v51 = vpop.permute.xlu1 %7588 }
 0x998   : > { %v7603_v56 = vmul.f32 %v7589_v51, %v12858_v1  ;;  %v7604_v25 = vmul.f32 %v7589_v51, %v12861_v44 }
 0x99b   : > { %v7599_v30 = vpop.permute.xlu0 %7598  ;;  %v7594_v20 = vpop.permute.xlu1 %7593 }
 0x99c   : > { %v7605_v62 = vmul.f32 %v7594_v20, %v12852_v57  ;;  %v7606_v54 = vmul.f32 %v7594_v20, %v12855_v50  ;;  %v7607_v43 = vmul.f32 %v7599_v30, %v12876_v63  ;;  %v7608_v42 = vmul.f32 %v7599_v30, %v12879_v23 }
 0x9a0   : > { %v7617_v5 = vpop.permute.xlu0 %7616  ;;  %v7612_v47 = vpop.permute.xlu1 %7611 }
 0x9a1   : > { %v7631_v18 = vadd.f32 %v7617_v5, %v7603_v56  ;;  %v7632_v29 = vadd.f32 %v7617_v5, %v7604_v25  ;;  %v7629_v12 = vadd.f32 %v7612_v47, %v7601_v38  ;;  %v7630_v13 = vadd.f32 %v7612_v47, %v7602_v39 }
 0x9a3   : > { %v8776_v61 = vmul.f32 -1.442695, %v7631_v18  ;;  %v8777_v24 = vmul.f32 -1.442695, %v7632_v29  ;;  %v8774_v0 = vmul.f32 -1.442695, %v7629_v12 }
 0x9a4   : > { %v8775_v1 = vmul.f32 -1.442695, %v7630_v13  ;;  %v7622_v44 = vpop.permute.xlu1 %7621 }
 0x9a5   : > { %9835 = vpow2.f32 %v8776_v61  ;;  %v7633_v10 = vadd.f32 %v7622_v44, %v7605_v62  ;;  %v7634_v49 = vadd.f32 %v7622_v44, %v7606_v54  ;;  %v7763_v55 = vpop.permute.xlu0 %7762 }
 0x9a6   : > { %9837 = vpow2.f32 %v8777_v24 }
 0x9a7   : > { %9839 = vpow2.f32 %v8774_v0  ;;  %v8778_v33 = vmul.f32 -1.442695, %v7633_v10  ;;  %v8779_v8 = vmul.f32 -1.442695, %v7634_v49 }
 0x9a8   : > { %9841 = vpow2.f32 %v8775_v1  ;;  %v7627_v19 = vpop.permute.xlu1 %7626 }
 0x9a9   : > { %9843 = vpow2.f32 %v8778_v33  ;;  %v7635_v57 = vadd.f32 %v7627_v19, %v7607_v43  ;;  %v7636_v14 = vadd.f32 %v7627_v19, %v7608_v42  ;;  %v7775_v4 = vpop.permute.xlu0 %7774 }
 0x9aa   : > { %9845 = vpow2.f32 %v8779_v8 }
 0x9ab   : > { %v8780_v50 = vmul.f32 -1.442695, %v7635_v57  ;;  %v8781_v26 = vmul.f32 -1.442695, %v7636_v14 }
 0x9ad   : > { %9847 = vpow2.f32 %v8780_v50  ;;  %v7767_v34 = vpop.permute.xlu1 %7766 }
 0x9ae   : > { %9849 = vpow2.f32 %v8781_v26  ;;  %v7793_v51 = vpop.permute.xlu0 %7792 }
 0x9b1   : > { %v7771_v37 = vpop.permute.xlu1 %7770 }
 0x9b2   : > { %v9836_v32 = vpop.eup %9835 }
 0x9b3   : > { %v9838_v36 = vpop.eup %9837  ;;  %v7663_v6 = vadd.f32 1.0, %v9836_v32 }
 0x9b4   : > { %v9840_v21 = vpop.eup %9839  ;;  %v7664_v63 = vadd.f32 1.0, %v9838_v36 }
 0x9b5   : > { %v9842_v40 = vpop.eup %9841  ;;  %9851 = vrcp.f32 %v7663_v6  ;;  %v7661_v23 = vadd.f32 1.0, %v9840_v21 }
 0x9b6   : > { %9853 = vrcp.f32 %v7664_v63  ;;  %v7662_v15 = vadd.f32 1.0, %v9842_v40  ;;  %v9844_v3 = vpop.eup %9843  ;;  %v7788_v9 = vpop.permute.xlu1 %7787 }
 0x9b7   : > { %9855 = vrcp.f32 %v7661_v23  ;;  %v9846_v48 = vpop.eup %9845  ;;  %v7665_v45 = vadd.f32 1.0, %v9844_v3 }
 0x9b8   : > { %9857 = vrcp.f32 %v7662_v15  ;;  %v7666_v41 = vadd.f32 1.0, %v9846_v48 }
 0x9b9   : > { %9859 = vrcp.f32 %v7665_v45 }
 0x9ba   : > { %v9848_v60 = vpop.eup %9847  ;;  %9861 = vrcp.f32 %v7666_v41  ;;  %v7798_v47 = vpop.permute.xlu1 %7797 }
 0x9bb   : > { %v9850_v58 = vpop.eup %9849  ;;  %v7667_v27 = vadd.f32 1.0, %v9848_v60 }
 0x9bc   : > { %v7668_v17 = vadd.f32 1.0, %v9850_v58 }
 0x9bd   : > { %9863 = vrcp.f32 %v7667_v27 }
 0x9be   : > { %9865 = vrcp.f32 %v7668_v17  ;;  %v7803_v33 = vpop.permute.xlu1 %7802 }
 0x9c2   : > { %v9852_v28 = vpop.eup %9851 }
 0x9c3   : > { %v9854_v7 = vpop.eup %9853  ;;  %v7779_v46 = vmul.f32 %v9852_v28, %v7767_v34 }
 0x9c4   : > { %v9856_v59 = vpop.eup %9855  ;;  %v7780_v30 = vmul.f32 %v9854_v7, %v7767_v34 }
 0x9c5   : > { %v9858_v20 = vpop.eup %9857  ;;  %v7777_v56 = vmul.f32 %v9856_v59, %v7763_v55  ;;  %v7807_v25 = vadd.f32 %v7793_v51, %v7779_v46 }
 0x9c6   : > { %v7778_v38 = vmul.f32 %v9858_v20, %v7763_v55  ;;  %v7808_v39 = vadd.f32 %v7793_v51, %v7780_v30  ;;  %v9860_v5 = vpop.eup %9859 }
 0x9c7   : > { %v7815_v18 = vmul.f32 %v7807_v25, %v12802_v22  ;;  %v7805_v29 = vadd.f32 %v7788_v9, %v7777_v56  ;;  %v9862_v12 = vpop.eup %9861  ;;  %v7781_v61 = vmul.f32 %v9860_v5, %v7771_v37 }
 0x9c8   : > { %v7816_v13 = vmul.f32 %v7808_v39, %v12808_v2  ;;  %v7806_v24 = vadd.f32 %v7788_v9, %v7778_v38  ;;  %v7782_v62 = vmul.f32 %v9862_v12, %v7771_v37 }
 0x9c9   : > { %7823 = vst [vmem:[%s12934_s9 + $0x10] sm:$0xff] %v7815_v18  ;;  %v7813_v54 = vmul.f32 %v7805_v29, %v12792_v16  ;;  %v7809_v1 = vadd.f32 %v7798_v47, %v7781_v61 }
 0x9ca   : > { %7824 = vst [vmem:[%s12934_s9 + $0x18] sm:$0xff] %v7816_v13  ;;  %v7814_v0 = vmul.f32 %v7806_v24, %v12796_v35  ;;  %v9864_v44 = vpop.eup %9863  ;;  %v7810_v22 = vadd.f32 %v7798_v47, %v7782_v62 }
 0x9cb   : > { %7821 = vst [vmem:[%s12934_s9] sm:$0xff] %v7813_v54  ;;  %v9866_v10 = vpop.eup %9865  ;;  %v7783_v49 = vmul.f32 %v9864_v44, %v7775_v4  ;;  %v7817_v2 = vmul.f32 %v7809_v1, %v12794_v52 }
 0x9cc   : > { %7822 = vst [vmem:[%s12934_s9 + $0x8] sm:$0xff] %v7814_v0  ;;  %v7784_v43 = vmul.f32 %v9866_v10, %v7775_v4  ;;  %v7818_v42 = vmul.f32 %v7810_v22, %v12798_v31 }
 0x9cd   : > { %7825 = vst [vmem:[%s12934_s9 + $0x20] sm:$0xff] %v7817_v2  ;;  %v7811_v16 = vadd.f32 %v7803_v33, %v7783_v49 }
 0x9ce   : > { %7826 = vst [vmem:[%s12934_s9 + $0x28] sm:$0xff] %v7818_v42  ;;  %v7812_v8 = vadd.f32 %v7803_v33, %v7784_v43 }
 0x9cf   : > { %v7819_v35 = vmul.f32 %v7811_v16, %v12804_v11 }
 0x9d0   : > { %v7820_v19 = vmul.f32 %v7812_v8, %v12812_v53 }
 0x9d1   : > { %7827 = vst [vmem:[%s12934_s9 + $0x30] sm:$0xff] %v7819_v35 }
 0x9d2   : > { %7828 = vst [vmem:[%s12934_s9 + $0x38] sm:$0xff] %v7820_v19 }
 0x9d3 PF: > { %s13_s12 = sadd.s32 1, %s9873_s12  }
 0x9d4   : > { %p10_p4 = scmp.ge.s32.totalorder %s13_s12, 4  }
 0x9d6   :  { %12 = sbr.rel (!%p10_p4) target bundleno = 1 (0x1), region = 68 }

</bundles_post_ra>
